<compile_context>
chip_gen: v7x
topology: tpu7x:2x2x1
jax: 0.10.0
libtpu: 0.0.40
codegen_flags: <defaults>
</compile_context>

<pallas_src>
import jax
import jax.numpy as jnp
from jax.experimental import pallas as pl
from jax.experimental.pallas import tpu as pltpu

EPS = 1e-5
DILATIONS = (6, 12, 18)  # dilations of aspp2/3/4 in the PyTorch module


# ----------------------------------------------------------------------------
# Static planning for the dilated 3x3 convolutions (kx taps fused along K).
# ----------------------------------------------------------------------------
def _build_plan(H, W, dilations):
    """Static plan for the dilated 3x3 branches at spatial size (H, W).

    Returns (col_dxs, x_col, branches):
      col_dxs  : list of column shifts dx; the wrapper builds
                 xcat[..., k*C:(k+1)*C] = shift_cols(x, col_dxs[k]).  dx == 0 is x.
      x_col    : index into col_dxs of the unshifted x.
      branches : per dilation a dict with
                   col0  : first column group used by the branch
                   ncols : number of column groups (3, or 1 if the branch degenerates
                           to a pure 1x1 because the kx side taps only see padding)
                   kxs   : kernel kx index (0/1/2) of each column group, layout order
                   bands : [(ky, out_row0, in_row0, n_rows), ...] valid dy bands in
                           flat (H*W) row coords; the dy=0 (full-extent) band first.
    """
    need3 = [d for d in dilations if W - d > 0]  # branches whose kx side taps see data
    if need3:
        col_dxs = [-need3[0], need3[0], 0]
        x_col = 2
        if len(need3) >= 2:
            col_dxs += [-need3[1], need3[1]]
        for d in need3[2:]:
            col_dxs += [0, -d, d]
    else:
        col_dxs, x_col = [0], 0

    branches = []
    for d in dilations:
        bands = []
        for ky, dy in ((1, 0), (0, -d), (2, d)):
            nrow = H - abs(dy)
            if nrow <= 0:
                continue  # tap rows land entirely in the zero padding
            oy = max(0, -dy)
            iy = oy + dy
            bands.append((ky, oy * W, iy * W, nrow * W))
        if W - d > 0:
            pos = need3.index(d)
            if pos == 0:
                col0, ncols, kxs = 0, 3, (0, 2, 1)        # [sh(-d), sh(+d), x]
            elif pos == 1:
                col0, ncols, kxs = 2, 3, (1, 0, 2)        # [x, sh(-d), sh(+d)]
            else:
                col0, ncols, kxs = 5 + 3 * (pos - 2), 3, (1, 0, 2)
        else:
            col0, ncols, kxs = x_col, 1, (1,)             # degenerate pure 1x1
        branches.append(dict(col0=col0, ncols=ncols, kxs=kxs, bands=bands))
    return col_dxs, x_col, branches


# ----------------------------------------------------------------------------
# Fused ASPP kernel (one image per grid step)
# ----------------------------------------------------------------------------
def _make_aspp_kernel(HW, C, Cout, x_off, branch_plans, row_tile):
    """branch_plans: per dilated branch (col_offset_lanes, col_width_lanes, bands)
    with bands = [(out_row0, in_row0, n_rows), ...], dy=0 full-extent band first."""
    f32 = jnp.float32
    bf16 = jnp.bfloat16
    tiles = [(t, min(row_tile, HW - t)) for t in range(0, HW, row_tile)]

    def kernel(xcat_ref, w1_ref, wd6_ref, wd12_ref, wd18_ref, wc_ref, b_ref,
               cfin_ref, o_ref, zacc_ref):
        wd_refs = (wd6_ref, wd12_ref, wd18_ref)

        # ---- branch 1: 1x1 conv -> BN bias -> ReLU -> final-conv chunk 0 ----
        # (initializes the fused output accumulator)
        for t, n in tiles:
            sl = pl.ds(t, n)
            xx = xcat_ref[sl, pl.ds(x_off, C)]
            y1 = jnp.maximum(
                jnp.dot(xx, w1_ref[...], preferred_element_type=f32)
                + b_ref[0:1, :], 0.0)
            o_ref[sl, :] = jnp.dot(y1.astype(bf16), wc_ref[0],
                                   preferred_element_type=f32)

        # ---- branches 2-4: dilated 3x3 convs (kx taps fused along K) ---------
        n_br = len(branch_plans)
        for bi, (c_off, c_width, bands) in enumerate(branch_plans):
            wd_ref = wd_refs[bi]

            # accumulate the atrous conv for this branch into VMEM f32 scratch;
            # band 0 (dy = 0) always covers every output row, so it initializes.
            for j, (out0, in0, nrows) in enumerate(bands):
                lhs = xcat_ref[pl.ds(in0, nrows), pl.ds(c_off, c_width)]
                contrib = jnp.dot(lhs, wd_ref[j], preferred_element_type=f32)
                if j == 0:
                    zacc_ref[...] = contrib
                else:
                    zacc_ref[pl.ds(out0, nrows), :] += contrib

            # BN bias + ReLU, then project through this branch's slice of the
            # final 1x1 conv, accumulating into o_ref.
            bk = b_ref[bi + 1:bi + 2, :]
            last = bi == n_br - 1
            for t, n in tiles:
                sl = pl.ds(t, n)
                yk = jnp.maximum(zacc_ref[sl, :] + bk, 0.0)
                proj = jnp.dot(yk.astype(bf16), wc_ref[bi + 1],
                               preferred_element_type=f32)
                if last:
                    # cfin = (GAP-branch contribution + final BN bias), per image
                    o_ref[sl, :] = jnp.maximum(
                        o_ref[sl, :] + proj + cfin_ref[...], 0.0)
                else:
                    o_ref[sl, :] += proj

    return kernel


# ----------------------------------------------------------------------------
# Parameters (deterministic synthetic init, shapes match the PyTorch module)
# ----------------------------------------------------------------------------
def _bn_params(key, c):
    k1, k2, k3, k4 = jax.random.split(key, 4)
    gamma = 1.0 + 0.1 * jax.random.normal(k1, (c,), jnp.float32)
    beta = 0.1 * jax.random.normal(k2, (c,), jnp.float32)
    mean = 0.1 * jax.random.normal(k3, (c,), jnp.float32)
    var = 1.0 + 0.1 * jnp.abs(jax.random.normal(k4, (c,), jnp.float32))
    return gamma, beta, mean, var


def init_params(key):
    ks = jax.random.split(key, 12)
    P = {}
    P["w1_oihw"] = 0.05 * jax.random.normal(ks[0], (256, 256, 1, 1), jnp.float32)
    P["w2_oihw"] = 0.05 * jax.random.normal(ks[1], (256, 256, 3, 3), jnp.float32)
    P["w3_oihw"] = 0.05 * jax.random.normal(ks[2], (256, 256, 3, 3), jnp.float32)
    P["w4_oihw"] = 0.05 * jax.random.normal(ks[3], (256, 256, 3, 3), jnp.float32)
    P["wg_oihw"] = 0.05 * jax.random.normal(ks[4], (256, 256, 1, 1), jnp.float32)
    P["wc_oihw"] = 0.05 * jax.random.normal(ks[5], (256, 1280, 1, 1), jnp.float32)
    P["bn1"] = _bn_params(ks[6], 256)
    P["bn2"] = _bn_params(ks[7], 256)
    P["bn3"] = _bn_params(ks[8], 256)
    P["bn4"] = _bn_params(ks[9], 256)
    P["bng"] = _bn_params(ks[10], 256)
    P["bnc"] = _bn_params(ks[11], 256)
    return P


def _fold_bn_into_conv(w_oihw, bn):
    """Fold inference-mode BN scale into the conv weight; return leftover bias."""
    gamma, beta, mean, var = bn
    s = gamma / jnp.sqrt(var + EPS)
    return w_oihw * s[:, None, None, None], beta - mean * s


def _shift_cols(x_nhwc, dx):
    """out[:, :, x, :] = x[:, :, x+dx, :] when 0 <= x+dx < W, else 0."""
    W = x_nhwc.shape[2]
    if dx == 0:
        return x_nhwc
    if dx > 0:
        core = x_nhwc[:, :, dx:, :]
        return jnp.pad(core, ((0, 0), (0, 0), (0, dx), (0, 0)))
    core = x_nhwc[:, :, :W + dx, :]
    return jnp.pad(core, ((0, 0), (0, 0), (-dx, 0), (0, 0)))


# ----------------------------------------------------------------------------
# One-time weight preparation (hoisted out of the jitted forward)
# ----------------------------------------------------------------------------
def prepare_params(P, H, W):
    C, Cout = 256, 256
    bf16 = jnp.bfloat16

    w1, b1 = _fold_bn_into_conv(P["w1_oihw"], P["bn1"])
    w2, b2 = _fold_bn_into_conv(P["w2_oihw"], P["bn2"])
    w3, b3 = _fold_bn_into_conv(P["w3_oihw"], P["bn3"])
    w4, b4 = _fold_bn_into_conv(P["w4_oihw"], P["bn4"])
    wg, bg = _fold_bn_into_conv(P["wg_oihw"], P["bng"])
    wc, bc = _fold_bn_into_conv(P["wc_oihw"], P["bnc"])

    # 1x1 weights -> (Cin, Cout); final 1x1 split into one chunk per branch.
    w1k = w1[:, :, 0, 0].T.astype(bf16)                       # (256, 256)
    wg_t = wg[:, :, 0, 0].T                                   # (256, 256) f32
    wc_t = wc[:, :, 0, 0].T.reshape(5, C, Cout)               # (5, 256, 256) f32
    wck4 = wc_t[:4].astype(bf16)                              # chunks for branches 1-4
    wc4_t = wc_t[4]                                           # GAP branch chunk, f32

    # K-stacked weights for the dilated branches, matching _build_plan's layout.
    _, _, branches = _build_plan(H, W, DILATIONS)
    wd_arrays = []
    for br, w_oihw in zip(branches, (w2, w3, w4)):
        w_hwio = jnp.transpose(w_oihw, (2, 3, 1, 0))          # (3, 3, Cin, Cout)
        stacks = [jnp.concatenate([w_hwio[ky, kx] for kx in br["kxs"]], axis=0)
                  for (ky, _o0, _i0, _nr) in br["bands"]]
        wd_arrays.append(jnp.stack(stacks, axis=0).astype(bf16))

    biases4 = jnp.stack([b1, b2, b3, b4], axis=0).astype(jnp.float32)
    return dict(w1k=w1k, wd6=wd_arrays[0], wd12=wd_arrays[1], wd18=wd_arrays[2],
                wck4=wck4, biases4=biases4, wg_t=wg_t, wc4_t=wc4_t, bg=bg, bc=bc)


# ----------------------------------------------------------------------------
# ASPP_Block forward (wrapper / glue around the single fused kernel)
# ----------------------------------------------------------------------------
def aspp_block_forward(x_nchw, prep):
    N, C, H, W = x_nchw.shape
    HW = H * W
    Cout = 256
    bf16 = jnp.bfloat16
    row_tile = min(HW, 256)

    col_dxs, x_col, branches = _build_plan(H, W, DILATIONS)
    NCOLS = len(col_dxs)

    x_nhwc = jnp.transpose(x_nchw, (0, 2, 3, 1)).astype(jnp.float32)

    # Global-average-pool branch: two M=1 matmuls would waste full MXU weight
    # pushes in-kernel, so compute its constant per-image contribution through
    # the final 1x1 conv here and fold the final BN bias into it.
    pooled = jnp.mean(x_nhwc, axis=(1, 2))                                 # (N, C)
    y5 = jnp.maximum(pooled @ prep["wg_t"] + prep["bg"][None, :], 0.0)     # (N, 256)
    cfin = (y5 @ prep["wc4_t"] + prep["bc"][None, :])[:, None, :]          # (N, 1, 256)
    cfin = cfin.astype(jnp.float32)

    # Channel-concatenated, column-shifted (zero-filled) input so each dilated
    # branch's 3 kx taps become one K=3*C matmul with a lane-aligned slice.
    cols = [_shift_cols(x_nhwc, dx) for dx in col_dxs]
    xcat = jnp.concatenate(cols, axis=-1).reshape(N, HW, NCOLS * C).astype(bf16)

    kernel_plans = [
        (br["col0"] * C, br["ncols"] * C,
         tuple((o0, i0, nr) for (_ky, o0, i0, nr) in br["bands"]))
        for br in branches]

    kernel = _make_aspp_kernel(HW, C, Cout, x_col * C, kernel_plans, row_tile)

    out = pl.pallas_call(
        kernel,
        out_shape=jax.ShapeDtypeStruct((N, HW, Cout), jnp.float32),
        grid_spec=pltpu.PrefetchScalarGridSpec(
            num_scalar_prefetch=0,
            grid=(N,),
            in_specs=[
                pl.BlockSpec((None, HW, NCOLS * C), lambda i: (i, 0, 0)),  # xcat
                pl.BlockSpec((C, Cout), lambda i: (0, 0)),                 # w aspp1
                pl.BlockSpec(prep["wd6"].shape, lambda i: (0, 0, 0)),      # w d=6
                pl.BlockSpec(prep["wd12"].shape, lambda i: (0, 0, 0)),     # w d=12
                pl.BlockSpec(prep["wd18"].shape, lambda i: (0, 0, 0)),     # w d=18
                pl.BlockSpec((4, C, Cout), lambda i: (0, 0, 0)),           # w final 1-4
                pl.BlockSpec((4, Cout), lambda i: (0, 0)),                 # BN biases 1-4
                pl.BlockSpec((None, 1, Cout), lambda i: (i, 0, 0)),        # GAP + bc row
            ],
            out_specs=pl.BlockSpec((None, HW, Cout), lambda i: (i, 0, 0)),
            scratch_shapes=[pltpu.VMEM((HW, Cout), jnp.float32)],
        ),
        compiler_params=pltpu.CompilerParams(
            dimension_semantics=("parallel",),
            # whole working set is ~8.5 MB; safe even on v7x's 64 MiB physical VMEM
            vmem_limit_bytes=32 * 1024 * 1024,
        ),
    )(xcat, prep["w1k"], prep["wd6"], prep["wd12"], prep["wd18"],
      prep["wck4"], prep["biases4"], cfin)

    out = out.reshape(N, H, W, Cout)
    return jnp.transpose(out, (0, 3, 1, 2))  # back to NCHW


# ----------------------------------------------------------------------------
# Pure-JAX reference (lax convolutions) for a sanity check
# ----------------------------------------------------------------------------
def reference(x_nchw, P):
    def conv(x, w, pad, dil):
        return jax.lax.conv_general_dilated(
            x, w, (1, 1), [(pad, pad), (pad, pad)],
            rhs_dilation=(dil, dil),
            dimension_numbers=("NCHW", "OIHW", "NCHW"),
        )

    def bnrelu(y, bn):
        g, b, m, v = bn
        s = g / jnp.sqrt(v + EPS)
        return jnp.maximum(
            y * s[None, :, None, None] + (b - m * s)[None, :, None, None], 0.0
        )

    x1 = bnrelu(conv(x_nchw, P["w1_oihw"], 0, 1), P["bn1"])
    x2 = bnrelu(conv(x_nchw, P["w2_oihw"], 6, 6), P["bn2"])
    x3 = bnrelu(conv(x_nchw, P["w3_oihw"], 12, 12), P["bn3"])
    x4 = bnrelu(conv(x_nchw, P["w4_oihw"], 18, 18), P["bn4"])
    pooled = jnp.mean(x_nchw, axis=(2, 3), keepdims=True)
    x5 = bnrelu(conv(pooled, P["wg_oihw"], 0, 1), P["bng"])
    x5 = jnp.broadcast_to(x5, (x_nchw.shape[0], 256) + x4.shape[2:])
    cat = jnp.concatenate([x1, x2, x3, x4, x5], axis=1)
    return bnrelu(conv(cat, P["wc_oihw"], 0, 1), P["bnc"])


if __name__ == "__main__":
    key = jax.random.PRNGKey(0)
    k_x, k_p = jax.random.split(key)

    N, C, H, W = 2, 256, 16, 16          # inplanes fixed to 256 by the module
    x = jax.random.normal(k_x, (N, C, H, W), jnp.float32)
    P = init_params(k_p)

    prep = prepare_params(P, H, W)       # one-time weight prep (hoisted out of jit)
    fwd = jax.jit(aspp_block_forward)
    out = jax.block_until_ready(fwd(x, prep))
    assert out.shape == (N, 256, H, W)

    ref = jax.block_until_ready(reference(x, P))
    # bf16 matmul operands (f32 accumulation) -> slightly looser tolerance.
    rel_err = float(jnp.max(jnp.abs(out - ref)) / (jnp.max(jnp.abs(ref)) + 1e-6))
    if rel_err > 3e-2:
        raise AssertionError(f"mismatch vs reference, rel_err={rel_err}")

    print("KERNEL_OK")
</pallas_src>

<mosaic_0001>
module attributes {stable_mosaic.version = 11 : i64} {
  func.func @kernel(%arg0: i32, %arg1: memref<1x256x1280xbf16, #tpu.memory_space<vmem>>, %arg2: memref<256x256xbf16, #tpu.memory_space<vmem>>, %arg3: memref<3x768x256xbf16, #tpu.memory_space<vmem>>, %arg4: memref<3x768x256xbf16, #tpu.memory_space<vmem>>, %arg5: memref<1x256x256xbf16, #tpu.memory_space<vmem>>, %arg6: memref<4x256x256xbf16, #tpu.memory_space<vmem>>, %arg7: memref<4x256xf32, #tpu.memory_space<vmem>>, %arg8: memref<1x1x256xf32, #tpu.memory_space<vmem>>, %arg9: memref<1x256x256xf32, #tpu.memory_space<vmem>>, %arg10: memref<256x256xf32, #tpu.memory_space<vmem>>) attributes {dimension_semantics = [#tpu.dimension_semantics<parallel>], iteration_bounds = array<i64: 2>, scalar_prefetch = 0 : i64, scratch_operands = 1 : i64, tpu.core_type = #tpu.core_type<tc>, window_params = [{transform_indices = @transform_0, window_bounds = array<i64: 1, 256, 1280>}, {pipeline_mode = #tpu.pipeline_mode<synchronous>, transform_indices = @transform_1, window_bounds = array<i64: 256, 256>}, {pipeline_mode = #tpu.pipeline_mode<synchronous>, transform_indices = @transform_2, window_bounds = array<i64: 3, 768, 256>}, {pipeline_mode = #tpu.pipeline_mode<synchronous>, transform_indices = @transform_3, window_bounds = array<i64: 3, 768, 256>}, {pipeline_mode = #tpu.pipeline_mode<synchronous>, transform_indices = @transform_4, window_bounds = array<i64: 1, 256, 256>}, {pipeline_mode = #tpu.pipeline_mode<synchronous>, transform_indices = @transform_5, window_bounds = array<i64: 4, 256, 256>}, {pipeline_mode = #tpu.pipeline_mode<synchronous>, transform_indices = @transform_6, window_bounds = array<i64: 4, 256>}, {transform_indices = @transform_7, window_bounds = array<i64: 1, 1, 256>}, {transform_indices = @transform_8, window_bounds = array<i64: 1, 256, 256>}]} {
    %c0 = arith.constant 0 : index
    %c0_0 = arith.constant 0 : index
    %c512 = arith.constant 512 : index
    %0 = vector.load %arg1[%c0, %c0_0, %c512] : memref<1x256x1280xbf16, #tpu.memory_space<vmem>>, vector<1x256x256xbf16>
    %1 = vector.shape_cast %0 : vector<1x256x256xbf16> to vector<256x256xbf16>
    %c0_1 = arith.constant 0 : index
    %c0_2 = arith.constant 0 : index
    %2 = vector.load %arg2[%c0_1, %c0_2] : memref<256x256xbf16, #tpu.memory_space<vmem>>, vector<256x256xbf16>
    %cst = arith.constant dense<0.000000e+00> : vector<256x256xf32>
    %3 = tpu.matmul %1, %2, %cst {dimension_numbers = #tpu.dot_dimension_numbers<[1], [0], [0], [1], [0, 0, 1, 1], [], []>} : vector<256x256xbf16>, vector<256x256xbf16>, vector<256x256xf32> -> vector<256x256xf32>
    %c0_3 = arith.constant 0 : index
    %c0_4 = arith.constant 0 : index
    %4 = vector.load %arg7[%c0_3, %c0_4] : memref<4x256xf32, #tpu.memory_space<vmem>>, vector<1x256xf32>
    %5 = vector.broadcast %4 : vector<1x256xf32> to vector<256x256xf32>
    %6 = arith.addf %3, %5 : vector<256x256xf32>
    %cst_5 = arith.constant 0.000000e+00 : f32
    %7 = vector.broadcast %cst_5 : f32 to vector<256x256xf32>
    %8 = arith.maximumf %6, %7 : vector<256x256xf32>
    %9 = arith.truncf %8 : vector<256x256xf32> to vector<256x256xbf16>
    %c0_6 = arith.constant 0 : index
    %c0_7 = arith.constant 0 : index
    %c0_8 = arith.constant 0 : index
    %10 = vector.load %arg6[%c0_6, %c0_7, %c0_8] : memref<4x256x256xbf16, #tpu.memory_space<vmem>>, vector<1x256x256xbf16>
    %11 = vector.shape_cast %10 : vector<1x256x256xbf16> to vector<256x256xbf16>
    %cst_9 = arith.constant dense<0.000000e+00> : vector<256x256xf32>
    %12 = tpu.matmul %9, %11, %cst_9 {dimension_numbers = #tpu.dot_dimension_numbers<[1], [0], [0], [1], [0, 0, 1, 1], [], []>} : vector<256x256xbf16>, vector<256x256xbf16>, vector<256x256xf32> -> vector<256x256xf32>
    %c0_10 = arith.constant 0 : index
    %c0_11 = arith.constant 0 : index
    %c0_12 = arith.constant 0 : index
    %13 = vector.load %arg9[%c0_10, %c0_11, %c0_12] : memref<1x256x256xf32, #tpu.memory_space<vmem>>, vector<1x256x256xf32>
    %14 = vector.shape_cast %13 : vector<1x256x256xf32> to vector<256x256xf32>
    %15 = vector.shape_cast %12 : vector<256x256xf32> to vector<1x256x256xf32>
    tpu.vector_store %arg9[%c0_10, %c0_11, %c0_12], %15 {strides = array<i32>} : memref<1x256x256xf32, #tpu.memory_space<vmem>>, vector<1x256x256xf32>,
    %c0_13 = arith.constant 0 : index
    %c0_14 = arith.constant 0 : index
    %c0_15 = arith.constant 0 : index
    %16 = vector.load %arg1[%c0_13, %c0_14, %c0_15] : memref<1x256x1280xbf16, #tpu.memory_space<vmem>>, vector<1x256x768xbf16>
    %17 = vector.shape_cast %16 : vector<1x256x768xbf16> to vector<256x768xbf16>
    %c0_16 = arith.constant 0 : index
    %c0_17 = arith.constant 0 : index
    %c0_18 = arith.constant 0 : index
    %18 = vector.load %arg3[%c0_16, %c0_17, %c0_18] : memref<3x768x256xbf16, #tpu.memory_space<vmem>>, vector<1x768x256xbf16>
    %19 = vector.shape_cast %18 : vector<1x768x256xbf16> to vector<768x256xbf16>
    %cst_19 = arith.constant dense<0.000000e+00> : vector<256x256xf32>
    %20 = tpu.matmul %17, %19, %cst_19 {dimension_numbers = #tpu.dot_dimension_numbers<[1], [0], [0], [1], [0, 0, 1, 1], [], []>} : vector<256x768xbf16>, vector<768x256xbf16>, vector<256x256xf32> -> vector<256x256xf32>
    %c0_20 = arith.constant 0 : index
    %c0_21 = arith.constant 0 : index
    %21 = vector.load %arg10[%c0_20, %c0_21] : memref<256x256xf32, #tpu.memory_space<vmem>>, vector<256x256xf32>
    tpu.vector_store %arg10[%c0_20, %c0_21], %20 {strides = array<i32>} : memref<256x256xf32, #tpu.memory_space<vmem>>, vector<256x256xf32>,
    %c0_22 = arith.constant 0 : index
    %c0_23 = arith.constant 0 : index
    %c0_24 = arith.constant 0 : index
    %22 = vector.load %arg1[%c0_22, %c0_23, %c0_24] : memref<1x256x1280xbf16, #tpu.memory_space<vmem>>, vector<1x160x768xbf16>
    %23 = vector.shape_cast %22 : vector<1x160x768xbf16> to vector<160x768xbf16>
    %c1 = arith.constant 1 : index
    %c0_25 = arith.constant 0 : index
    %c0_26 = arith.constant 0 : index
    %24 = vector.load %arg3[%c1, %c0_25, %c0_26] : memref<3x768x256xbf16, #tpu.memory_space<vmem>>, vector<1x768x256xbf16>
    %25 = vector.shape_cast %24 : vector<1x768x256xbf16> to vector<768x256xbf16>
    %cst_27 = arith.constant dense<0.000000e+00> : vector<160x256xf32>
    %26 = tpu.matmul %23, %25, %cst_27 {dimension_numbers = #tpu.dot_dimension_numbers<[1], [0], [0], [1], [0, 0, 1, 1], [], []>} : vector<160x768xbf16>, vector<768x256xbf16>, vector<160x256xf32> -> vector<160x256xf32>
    %c96 = arith.constant 96 : index
    %c0_28 = arith.constant 0 : index
    %27 = vector.load %arg10[%c96, %c0_28] : memref<256x256xf32, #tpu.memory_space<vmem>>, vector<160x256xf32>
    %28 = arith.addf %27, %26 : vector<160x256xf32>
    %c96_29 = arith.constant 96 : index
    %c0_30 = arith.constant 0 : index
    %29 = vector.load %arg10[%c96_29, %c0_30] : memref<256x256xf32, #tpu.memory_space<vmem>>, vector<160x256xf32>
    tpu.vector_store %arg10[%c96_29, %c0_30], %28 {strides = array<i32>} : memref<256x256xf32, #tpu.memory_space<vmem>>, vector<160x256xf32>,
    %c0_31 = arith.constant 0 : index
    %c96_32 = arith.constant 96 : index
    %c0_33 = arith.constant 0 : index
    %30 = vector.load %arg1[%c0_31, %c96_32, %c0_33] : memref<1x256x1280xbf16, #tpu.memory_space<vmem>>, vector<1x160x768xbf16>
    %31 = vector.shape_cast %30 : vector<1x160x768xbf16> to vector<160x768xbf16>
    %c2 = arith.constant 2 : index
    %c0_34 = arith.constant 0 : index
    %c0_35 = arith.constant 0 : index
    %32 = vector.load %arg3[%c2, %c0_34, %c0_35] : memref<3x768x256xbf16, #tpu.memory_space<vmem>>, vector<1x768x256xbf16>
    %33 = vector.shape_cast %32 : vector<1x768x256xbf16> to vector<768x256xbf16>
    %cst_36 = arith.constant dense<0.000000e+00> : vector<160x256xf32>
    %34 = tpu.matmul %31, %33, %cst_36 {dimension_numbers = #tpu.dot_dimension_numbers<[1], [0], [0], [1], [0, 0, 1, 1], [], []>} : vector<160x768xbf16>, vector<768x256xbf16>, vector<160x256xf32> -> vector<160x256xf32>
    %c0_37 = arith.constant 0 : index
    %c0_38 = arith.constant 0 : index
    %35 = vector.load %arg10[%c0_37, %c0_38] : memref<256x256xf32, #tpu.memory_space<vmem>>, vector<160x256xf32>
    %36 = arith.addf %35, %34 : vector<160x256xf32>
    %c0_39 = arith.constant 0 : index
    %c0_40 = arith.constant 0 : index
    %37 = vector.load %arg10[%c0_39, %c0_40] : memref<256x256xf32, #tpu.memory_space<vmem>>, vector<160x256xf32>
    tpu.vector_store %arg10[%c0_39, %c0_40], %36 {strides = array<i32>} : memref<256x256xf32, #tpu.memory_space<vmem>>, vector<160x256xf32>,
    %c1_41 = arith.constant 1 : index
    %c0_42 = arith.constant 0 : index
    %38 = vector.load %arg7[%c1_41, %c0_42] : memref<4x256xf32, #tpu.memory_space<vmem>>, vector<1x256xf32>
    %c0_43 = arith.constant 0 : index
    %c0_44 = arith.constant 0 : index
    %39 = vector.load %arg10[%c0_43, %c0_44] : memref<256x256xf32, #tpu.memory_space<vmem>>, vector<256x256xf32>
    %40 = vector.broadcast %38 : vector<1x256xf32> to vector<256x256xf32>
    %41 = arith.addf %39, %40 : vector<256x256xf32>
    %cst_45 = arith.constant 0.000000e+00 : f32
    %42 = vector.broadcast %cst_45 : f32 to vector<256x256xf32>
    %43 = arith.maximumf %41, %42 : vector<256x256xf32>
    %44 = arith.truncf %43 : vector<256x256xf32> to vector<256x256xbf16>
    %c1_46 = arith.constant 1 : index
    %c0_47 = arith.constant 0 : index
    %c0_48 = arith.constant 0 : index
    %45 = vector.load %arg6[%c1_46, %c0_47, %c0_48] : memref<4x256x256xbf16, #tpu.memory_space<vmem>>, vector<1x256x256xbf16>
    %46 = vector.shape_cast %45 : vector<1x256x256xbf16> to vector<256x256xbf16>
    %cst_49 = arith.constant dense<0.000000e+00> : vector<256x256xf32>
    %47 = tpu.matmul %44, %46, %cst_49 {dimension_numbers = #tpu.dot_dimension_numbers<[1], [0], [0], [1], [0, 0, 1, 1], [], []>} : vector<256x256xbf16>, vector<256x256xbf16>, vector<256x256xf32> -> vector<256x256xf32>
    %c0_50 = arith.constant 0 : index
    %c0_51 = arith.constant 0 : index
    %c0_52 = arith.constant 0 : index
    %48 = vector.load %arg9[%c0_50, %c0_51, %c0_52] : memref<1x256x256xf32, #tpu.memory_space<vmem>>, vector<1x256x256xf32>
    %49 = vector.shape_cast %48 : vector<1x256x256xf32> to vector<256x256xf32>
    %50 = arith.addf %49, %47 : vector<256x256xf32>
    %c0_53 = arith.constant 0 : index
    %c0_54 = arith.constant 0 : index
    %c0_55 = arith.constant 0 : index
    %51 = vector.load %arg9[%c0_53, %c0_54, %c0_55] : memref<1x256x256xf32, #tpu.memory_space<vmem>>, vector<1x256x256xf32>
    %52 = vector.shape_cast %51 : vector<1x256x256xf32> to vector<256x256xf32>
    %53 = vector.shape_cast %50 : vector<256x256xf32> to vector<1x256x256xf32>
    tpu.vector_store %arg9[%c0_53, %c0_54, %c0_55], %53 {strides = array<i32>} : memref<1x256x256xf32, #tpu.memory_space<vmem>>, vector<1x256x256xf32>,
    %c0_56 = arith.constant 0 : index
    %c0_57 = arith.constant 0 : index
    %c512_58 = arith.constant 512 : index
    %54 = vector.load %arg1[%c0_56, %c0_57, %c512_58] : memref<1x256x1280xbf16, #tpu.memory_space<vmem>>, vector<1x256x768xbf16>
    %55 = vector.shape_cast %54 : vector<1x256x768xbf16> to vector<256x768xbf16>
    %c0_59 = arith.constant 0 : index
    %c0_60 = arith.constant 0 : index
    %c0_61 = arith.constant 0 : index
    %56 = vector.load %arg4[%c0_59, %c0_60, %c0_61] : memref<3x768x256xbf16, #tpu.memory_space<vmem>>, vector<1x768x256xbf16>
    %57 = vector.shape_cast %56 : vector<1x768x256xbf16> to vector<768x256xbf16>
    %cst_62 = arith.constant dense<0.000000e+00> : vector<256x256xf32>
    %58 = tpu.matmul %55, %57, %cst_62 {dimension_numbers = #tpu.dot_dimension_numbers<[1], [0], [0], [1], [0, 0, 1, 1], [], []>} : vector<256x768xbf16>, vector<768x256xbf16>, vector<256x256xf32> -> vector<256x256xf32>
    %c0_63 = arith.constant 0 : index
    %c0_64 = arith.constant 0 : index
    %59 = vector.load %arg10[%c0_63, %c0_64] : memref<256x256xf32, #tpu.memory_space<vmem>>, vector<256x256xf32>
    tpu.vector_store %arg10[%c0_63, %c0_64], %58 {strides = array<i32>} : memref<256x256xf32, #tpu.memory_space<vmem>>, vector<256x256xf32>,
    %c0_65 = arith.constant 0 : index
    %c0_66 = arith.constant 0 : index
    %c512_67 = arith.constant 512 : index
    %60 = vector.load %arg1[%c0_65, %c0_66, %c512_67] : memref<1x256x1280xbf16, #tpu.memory_space<vmem>>, vector<1x64x768xbf16>
    %61 = vector.shape_cast %60 : vector<1x64x768xbf16> to vector<64x768xbf16>
    %c1_68 = arith.constant 1 : index
    %c0_69 = arith.constant 0 : index
    %c0_70 = arith.constant 0 : index
    %62 = vector.load %arg4[%c1_68, %c0_69, %c0_70] : memref<3x768x256xbf16, #tpu.memory_space<vmem>>, vector<1x768x256xbf16>
    %63 = vector.shape_cast %62 : vector<1x768x256xbf16> to vector<768x256xbf16>
    %cst_71 = arith.constant dense<0.000000e+00> : vector<64x256xf32>
    %64 = tpu.matmul %61, %63, %cst_71 {dimension_numbers = #tpu.dot_dimension_numbers<[1], [0], [0], [1], [0, 0, 1, 1], [], []>} : vector<64x768xbf16>, vector<768x256xbf16>, vector<64x256xf32> -> vector<64x256xf32>
    %c192 = arith.constant 192 : index
    %c0_72 = arith.constant 0 : index
    %65 = vector.load %arg10[%c192, %c0_72] : memref<256x256xf32, #tpu.memory_space<vmem>>, vector<64x256xf32>
    %66 = arith.addf %65, %64 : vector<64x256xf32>
    %c192_73 = arith.constant 192 : index
    %c0_74 = arith.constant 0 : index
    %67 = vector.load %arg10[%c192_73, %c0_74] : memref<256x256xf32, #tpu.memory_space<vmem>>, vector<64x256xf32>
    tpu.vector_store %arg10[%c192_73, %c0_74], %66 {strides = array<i32>} : memref<256x256xf32, #tpu.memory_space<vmem>>, vector<64x256xf32>,
    %c0_75 = arith.constant 0 : index
    %c192_76 = arith.constant 192 : index
    %c512_77 = arith.constant 512 : index
    %68 = vector.load %arg1[%c0_75, %c192_76, %c512_77] : memref<1x256x1280xbf16, #tpu.memory_space<vmem>>, vector<1x64x768xbf16>
    %69 = vector.shape_cast %68 : vector<1x64x768xbf16> to vector<64x768xbf16>
    %c2_78 = arith.constant 2 : index
    %c0_79 = arith.constant 0 : index
    %c0_80 = arith.constant 0 : index
    %70 = vector.load %arg4[%c2_78, %c0_79, %c0_80] : memref<3x768x256xbf16, #tpu.memory_space<vmem>>, vector<1x768x256xbf16>
    %71 = vector.shape_cast %70 : vector<1x768x256xbf16> to vector<768x256xbf16>
    %cst_81 = arith.constant dense<0.000000e+00> : vector<64x256xf32>
    %72 = tpu.matmul %69, %71, %cst_81 {dimension_numbers = #tpu.dot_dimension_numbers<[1], [0], [0], [1], [0, 0, 1, 1], [], []>} : vector<64x768xbf16>, vector<768x256xbf16>, vector<64x256xf32> -> vector<64x256xf32>
    %c0_82 = arith.constant 0 : index
    %c0_83 = arith.constant 0 : index
    %73 = vector.load %arg10[%c0_82, %c0_83] : memref<256x256xf32, #tpu.memory_space<vmem>>, vector<64x256xf32>
    %74 = arith.addf %73, %72 : vector<64x256xf32>
    %c0_84 = arith.constant 0 : index
    %c0_85 = arith.constant 0 : index
    %75 = vector.load %arg10[%c0_84, %c0_85] : memref<256x256xf32, #tpu.memory_space<vmem>>, vector<64x256xf32>
    tpu.vector_store %arg10[%c0_84, %c0_85], %74 {strides = array<i32>} : memref<256x256xf32, #tpu.memory_space<vmem>>, vector<64x256xf32>,
    %c2_86 = arith.constant 2 : index
    %c0_87 = arith.constant 0 : index
    %76 = vector.load %arg7[%c2_86, %c0_87] : memref<4x256xf32, #tpu.memory_space<vmem>>, vector<1x256xf32>
    %c0_88 = arith.constant 0 : index
    %c0_89 = arith.constant 0 : index
    %77 = vector.load %arg10[%c0_88, %c0_89] : memref<256x256xf32, #tpu.memory_space<vmem>>, vector<256x256xf32>
    %78 = vector.broadcast %76 : vector<1x256xf32> to vector<256x256xf32>
    %79 = arith.addf %77, %78 : vector<256x256xf32>
    %cst_90 = arith.constant 0.000000e+00 : f32
    %80 = vector.broadcast %cst_90 : f32 to vector<256x256xf32>
    %81 = arith.maximumf %79, %80 : vector<256x256xf32>
    %82 = arith.truncf %81 : vector<256x256xf32> to vector<256x256xbf16>
    %c2_91 = arith.constant 2 : index
    %c0_92 = arith.constant 0 : index
    %c0_93 = arith.constant 0 : index
    %83 = vector.load %arg6[%c2_91, %c0_92, %c0_93] : memref<4x256x256xbf16, #tpu.memory_space<vmem>>, vector<1x256x256xbf16>
    %84 = vector.shape_cast %83 : vector<1x256x256xbf16> to vector<256x256xbf16>
    %cst_94 = arith.constant dense<0.000000e+00> : vector<256x256xf32>
    %85 = tpu.matmul %82, %84, %cst_94 {dimension_numbers = #tpu.dot_dimension_numbers<[1], [0], [0], [1], [0, 0, 1, 1], [], []>} : vector<256x256xbf16>, vector<256x256xbf16>, vector<256x256xf32> -> vector<256x256xf32>
    %c0_95 = arith.constant 0 : index
    %c0_96 = arith.constant 0 : index
    %c0_97 = arith.constant 0 : index
    %86 = vector.load %arg9[%c0_95, %c0_96, %c0_97] : memref<1x256x256xf32, #tpu.memory_space<vmem>>, vector<1x256x256xf32>
    %87 = vector.shape_cast %86 : vector<1x256x256xf32> to vector<256x256xf32>
    %88 = arith.addf %87, %85 : vector<256x256xf32>
    %c0_98 = arith.constant 0 : index
    %c0_99 = arith.constant 0 : index
    %c0_100 = arith.constant 0 : index
    %89 = vector.load %arg9[%c0_98, %c0_99, %c0_100] : memref<1x256x256xf32, #tpu.memory_space<vmem>>, vector<1x256x256xf32>
    %90 = vector.shape_cast %89 : vector<1x256x256xf32> to vector<256x256xf32>
    %91 = vector.shape_cast %88 : vector<256x256xf32> to vector<1x256x256xf32>
    tpu.vector_store %arg9[%c0_98, %c0_99, %c0_100], %91 {strides = array<i32>} : memref<1x256x256xf32, #tpu.memory_space<vmem>>, vector<1x256x256xf32>,
    %c0_101 = arith.constant 0 : index
    %c0_102 = arith.constant 0 : index
    %c512_103 = arith.constant 512 : index
    %92 = vector.load %arg1[%c0_101, %c0_102, %c512_103] : memref<1x256x1280xbf16, #tpu.memory_space<vmem>>, vector<1x256x256xbf16>
    %93 = vector.shape_cast %92 : vector<1x256x256xbf16> to vector<256x256xbf16>
    %c0_104 = arith.constant 0 : index
    %c0_105 = arith.constant 0 : index
    %c0_106 = arith.constant 0 : index
    %94 = vector.load %arg5[%c0_104, %c0_105, %c0_106] : memref<1x256x256xbf16, #tpu.memory_space<vmem>>, vector<1x256x256xbf16>
    %95 = vector.shape_cast %94 : vector<1x256x256xbf16> to vector<256x256xbf16>
    %cst_107 = arith.constant dense<0.000000e+00> : vector<256x256xf32>
    %96 = tpu.matmul %93, %95, %cst_107 {dimension_numbers = #tpu.dot_dimension_numbers<[1], [0], [0], [1], [0, 0, 1, 1], [], []>} : vector<256x256xbf16>, vector<256x256xbf16>, vector<256x256xf32> -> vector<256x256xf32>
    %c0_108 = arith.constant 0 : index
    %c0_109 = arith.constant 0 : index
    %97 = vector.load %arg10[%c0_108, %c0_109] : memref<256x256xf32, #tpu.memory_space<vmem>>, vector<256x256xf32>
    tpu.vector_store %arg10[%c0_108, %c0_109], %96 {strides = array<i32>} : memref<256x256xf32, #tpu.memory_space<vmem>>, vector<256x256xf32>,
    %c3 = arith.constant 3 : index
    %c0_110 = arith.constant 0 : index
    %98 = vector.load %arg7[%c3, %c0_110] : memref<4x256xf32, #tpu.memory_space<vmem>>, vector<1x256xf32>
    %c0_111 = arith.constant 0 : index
    %c0_112 = arith.constant 0 : index
    %99 = vector.load %arg10[%c0_111, %c0_112] : memref<256x256xf32, #tpu.memory_space<vmem>>, vector<256x256xf32>
    %100 = vector.broadcast %98 : vector<1x256xf32> to vector<256x256xf32>
    %101 = arith.addf %99, %100 : vector<256x256xf32>
    %cst_113 = arith.constant 0.000000e+00 : f32
    %102 = vector.broadcast %cst_113 : f32 to vector<256x256xf32>
    %103 = arith.maximumf %101, %102 : vector<256x256xf32>
    %104 = arith.truncf %103 : vector<256x256xf32> to vector<256x256xbf16>
    %c3_114 = arith.constant 3 : index
    %c0_115 = arith.constant 0 : index
    %c0_116 = arith.constant 0 : index
    %105 = vector.load %arg6[%c3_114, %c0_115, %c0_116] : memref<4x256x256xbf16, #tpu.memory_space<vmem>>, vector<1x256x256xbf16>
    %106 = vector.shape_cast %105 : vector<1x256x256xbf16> to vector<256x256xbf16>
    %cst_117 = arith.constant dense<0.000000e+00> : vector<256x256xf32>
    %107 = tpu.matmul %104, %106, %cst_117 {dimension_numbers = #tpu.dot_dimension_numbers<[1], [0], [0], [1], [0, 0, 1, 1], [], []>} : vector<256x256xbf16>, vector<256x256xbf16>, vector<256x256xf32> -> vector<256x256xf32>
    %c0_118 = arith.constant 0 : index
    %c0_119 = arith.constant 0 : index
    %c0_120 = arith.constant 0 : index
    %108 = vector.load %arg9[%c0_118, %c0_119, %c0_120] : memref<1x256x256xf32, #tpu.memory_space<vmem>>, vector<1x256x256xf32>
    %109 = vector.shape_cast %108 : vector<1x256x256xf32> to vector<256x256xf32>
    %110 = arith.addf %109, %107 : vector<256x256xf32>
    %c0_121 = arith.constant 0 : index
    %c0_122 = arith.constant 0 : index
    %c0_123 = arith.constant 0 : index
    %111 = vector.load %arg8[%c0_121, %c0_122, %c0_123] : memref<1x1x256xf32, #tpu.memory_space<vmem>>, vector<1x1x256xf32>
    %112 = vector.shape_cast %111 : vector<1x1x256xf32> to vector<1x256xf32>
    %113 = vector.broadcast %112 : vector<1x256xf32> to vector<256x256xf32>
    %114 = arith.addf %110, %113 : vector<256x256xf32>
    %cst_124 = arith.constant 0.000000e+00 : f32
    %115 = vector.broadcast %cst_124 : f32 to vector<256x256xf32>
    %116 = arith.maximumf %114, %115 : vector<256x256xf32>
    %c0_125 = arith.constant 0 : index
    %c0_126 = arith.constant 0 : index
    %c0_127 = arith.constant 0 : index
    %117 = vector.load %arg9[%c0_125, %c0_126, %c0_127] : memref<1x256x256xf32, #tpu.memory_space<vmem>>, vector<1x256x256xf32>
    %118 = vector.shape_cast %117 : vector<1x256x256xf32> to vector<256x256xf32>
    %119 = vector.shape_cast %116 : vector<256x256xf32> to vector<1x256x256xf32>
    tpu.vector_store %arg9[%c0_125, %c0_126, %c0_127], %119 {strides = array<i32>} : memref<1x256x256xf32, #tpu.memory_space<vmem>>, vector<1x256x256xf32>,
    return
  }
  func.func @transform_0(%arg0: i32) -> (i32, i32, i32) {
    %c0_i32 = arith.constant 0 : i32
    %c0_i32_0 = arith.constant 0 : i32
    %c0_i32_1 = arith.constant 0 : i32
    return %arg0, %c0_i32, %c0_i32_0 : i32, i32, i32
  }
  func.func @transform_1(%arg0: i32) -> (i32, i32) {
    %c0_i32 = arith.constant 0 : i32
    %c0_i32_0 = arith.constant 0 : i32
    %c0_i32_1 = arith.constant 0 : i32
    return %c0_i32, %c0_i32_0 : i32, i32
  }
  func.func @transform_2(%arg0: i32) -> (i32, i32, i32) {
    %c0_i32 = arith.constant 0 : i32
    %c0_i32_0 = arith.constant 0 : i32
    %c0_i32_1 = arith.constant 0 : i32
    %c0_i32_2 = arith.constant 0 : i32
    return %c0_i32, %c0_i32_0, %c0_i32_1 : i32, i32, i32
  }
  func.func @transform_3(%arg0: i32) -> (i32, i32, i32) {
    %c0_i32 = arith.constant 0 : i32
    %c0_i32_0 = arith.constant 0 : i32
    %c0_i32_1 = arith.constant 0 : i32
    %c0_i32_2 = arith.constant 0 : i32
    return %c0_i32, %c0_i32_0, %c0_i32_1 : i32, i32, i32
  }
  func.func @transform_4(%arg0: i32) -> (i32, i32, i32) {
    %c0_i32 = arith.constant 0 : i32
    %c0_i32_0 = arith.constant 0 : i32
    %c0_i32_1 = arith.constant 0 : i32
    %c0_i32_2 = arith.constant 0 : i32
    return %c0_i32, %c0_i32_0, %c0_i32_1 : i32, i32, i32
  }
  func.func @transform_5(%arg0: i32) -> (i32, i32, i32) {
    %c0_i32 = arith.constant 0 : i32
    %c0_i32_0 = arith.constant 0 : i32
    %c0_i32_1 = arith.constant 0 : i32
    %c0_i32_2 = arith.constant 0 : i32
    return %c0_i32, %c0_i32_0, %c0_i32_1 : i32, i32, i32
  }
  func.func @transform_6(%arg0: i32) -> (i32, i32) {
    %c0_i32 = arith.constant 0 : i32
    %c0_i32_0 = arith.constant 0 : i32
    %c0_i32_1 = arith.constant 0 : i32
    return %c0_i32, %c0_i32_0 : i32, i32
  }
  func.func @transform_7(%arg0: i32) -> (i32, i32, i32) {
    %c0_i32 = arith.constant 0 : i32
    %c0_i32_0 = arith.constant 0 : i32
    %c0_i32_1 = arith.constant 0 : i32
    return %arg0, %c0_i32, %c0_i32_0 : i32, i32, i32
  }
  func.func @transform_8(%arg0: i32) -> (i32, i32, i32) {
    %c0_i32 = arith.constant 0 : i32
    %c0_i32_0 = arith.constant 0 : i32
    %c0_i32_1 = arith.constant 0 : i32
    return %arg0, %c0_i32, %c0_i32_0 : i32, i32, i32
  }
}

</mosaic_0001>

<bundles_post_ra>
// kernel: aspp_block_forward.1
= control target key start
LH: loop header
LB: loop body
LE: loop exit
PB: predicated region body
PF: predicated region fallthrough
CT: control target
= control target key end

     0   :  { %13 = vsyncpa [#allocation4], 0  ;;  %s21511_s0 = inlined_call_operand.vmem [shape: bf16[2,256,1280], index: 0, kind: input, shape index: {}]   ;;  %s21512_s1 = inlined_call_operand.vmem [shape: bf16[256,256], index: 1, kind: input, shape index: {}]   ;;  %s21513_s2 = inlined_call_operand.vmem [shape: bf16[3,768,256], index: 2, kind: input, shape index: {}]   ;;  %s21514_s3 = inlined_call_operand.vmem [shape: bf16[3,768,256], index: 3, kind: input, shape index: {}]   ;;  %s21515_s4 = inlined_call_operand.vmem [shape: bf16[1,256,256], index: 4, kind: input, shape index: {}]   ;;  %s21516_s5 = inlined_call_operand.vmem [shape: bf16[4,256,256], index: 5, kind: input, shape index: {}]   ;;  %s21517_s6 = inlined_call_operand.vmem [shape: f32[4,256], index: 6, kind: input, shape index: {}]   ;;  %s21518_s7 = inlined_call_operand.vmem [shape: f32[2,1,256], index: 7, kind: input, shape index: {}]   ;;  %s21519_s8 = inlined_call_operand.hbm [shape: f32[2,256,256], index: 8, kind: output, shape index: {}]  }
   0x1   :  { %15 = vsyncpa [#allocation4 + $0x1], 0  ;;  %s17727_s27 = smov 0   ;;  %s17729_s28 = smov 0  }
   0x2   :  { %s17731_s29 = smov 0   ;;  %s17733_s30 = smov 0  }
   0x3 LB: > { %s17748_s9 = sadd.s32 4294967295, %s17677_s30   ;;  %s13247_s10 = sadd.s32 4294967294, %s17677_s30   ;;  %s17677_s30 = sphi %s17733_s30, %s21525_s30   ;;  %s17673_s29 = sphi %s17731_s29, %s21524_s29   ;;  %s17669_s28 = sphi %s17729_s28, %s21523_s28   ;;  %s17665_s27 = sphi %s17727_s27, %s21522_s27  }
   0x4   : > { %s17752_s11 = sadd.s32 1, %s17677_s30   ;;  %s206_s12 = sadd.s32 1, %s17673_s29 }
   0x5   : > { %s203_s13 = ssub.s32 %s17677_s30, %s17752_s11  ;;  %p216_p0 = scmp.ne.s32.totalorder %s17673_s29, %s17669_s28 }
   0x6   : > { %p204_p1 = scmp.eq.s32.totalorder %s203_s13, 0  ;;  %p217_p2 = scmp.eq.s32.totalorder %s17748_s9, 1 }
   0x7   : > { %p222_p3 = scmp.ne.s32.totalorder %s17669_s28, %s17665_s27  ;;  %p223_p4 = scmp.eq.s32.totalorder %s13247_s10, 1 }
   0x8   : > { %s17763_s14 = scalar_select %p204_p1, %s17673_s29, %s206_s12  }
   0x9   : > { %p17765_p5 = por %p217_p2, %p216_p0  ;;  %p17769_p6 = por %p223_p4, %p222_p3 }
   0xa   : > { %p13250_p7 = scmp.ge.s32.totalorder %s17677_s30, 1  ;;  %p274_p8 = scmp.lt.s32.totalorder %s17677_s30, 3 }
   0xc   : > { %p275_p9 = pnand %p13250_p7, %p274_p8 }
   0xd   : > { %v15873_v0 = vld [vmem:[%s21512_s1 + $0x4] ss:$8 sps:$4 sm:$0xff] (!%p275_p9)   ;;  %v15875_v1 = vld [vmem:[%s21512_s1] ss:$8 sps:$4 sm:$0xff] (!%p275_p9)   ;;  %v15876_v2 = vld [vmem:[%s21512_s1 + $0x14] ss:$8 sps:$4 sm:$0xff] (!%p275_p9)  }
   0xe   : > { %278 = sbr.rel (%p275_p9) target bundleno = 2668 (0xa6c), region = 52  ;;  %717 = vmatprep.subr.bf16.mxu0 (!%p275_p9), %v15873_v0  ;;  %v15878_v3 = vld [vmem:[%s21512_s1 + $0x10] ss:$8 sps:$4 sm:$0xff] (!%p275_p9)   ;;  %v15879_v4 = vld [vmem:[%s21512_s1 + $0x24] ss:$8 sps:$4 sm:$0xff] (!%p275_p9)   ;;  %p312_p10 = scmp.lt.s32.totalorder (!%p275_p9), %s17748_s9, 1 }
   0xf   : > { %718 = vmatpush1.bf16.msra.mxu0 (!%p275_p9), %v15875_v1  ;;  %v15881_v5 = vld [vmem:[%s21512_s1 + $0x20] ss:$8 sps:$4 sm:$0xff] (!%p275_p9)   ;;  %v15882_v6 = vld [vmem:[%s21512_s1 + $0x34] ss:$8 sps:$4 sm:$0xff] (!%p275_p9)   ;;  %v15884_v7 = vld [vmem:[%s21512_s1 + $0x30] ss:$8 sps:$4 sm:$0xff] (!%p275_p9)  }
  0x10   : > { %719 = vmatprep.subr.bf16.mxu0 (!%p275_p9), %v15876_v2  ;;  %v15885_v8 = vld [vmem:[%s21512_s1 + $0x44] ss:$8 sps:$4 sm:$0xff] (!%p275_p9)   ;;  %v15887_v9 = vld [vmem:[%s21512_s1 + $0x40] ss:$8 sps:$4 sm:$0xff] (!%p275_p9)   ;;  %v15888_v10 = vld [vmem:[%s21512_s1 + $0x54] ss:$8 sps:$4 sm:$0xff] (!%p275_p9)  }
  0x11   : > { %v15890_v11 = vld [vmem:[%s21512_s1 + $0x50] ss:$8 sps:$4 sm:$0xff] (!%p275_p9)   ;;  %v15891_v12 = vld [vmem:[%s21512_s1 + $0x64] ss:$8 sps:$4 sm:$0xff] (!%p275_p9)   ;;  %v15893_v14 = vld [vmem:[%s21512_s1 + $0x60] ss:$8 sps:$4 sm:$0xff] (!%p275_p9)  }
  0x12   : > { %v15894_v15 = vld [vmem:[%s21512_s1 + $0x74] ss:$8 sps:$4 sm:$0xff] (!%p275_p9)   ;;  %v15896_v16 = vld [vmem:[%s21512_s1 + $0x70] ss:$8 sps:$4 sm:$0xff] (!%p275_p9)   ;;  %v15897_v17 = vld [vmem:[%s21512_s1 + $0x84] ss:$8 sps:$4 sm:$0xff] (!%p275_p9)  }
  0x13   : > { %720 = vmatpush1.bf16.msra.mxu0 (!%p275_p9), %v15878_v3  ;;  %v15899_v18 = vld [vmem:[%s21512_s1 + $0x80] ss:$8 sps:$4 sm:$0xff] (!%p275_p9)   ;;  %v15900_v19 = vld [vmem:[%s21512_s1 + $0x94] ss:$8 sps:$4 sm:$0xff] (!%p275_p9)   ;;  %v15902_v20 = vld [vmem:[%s21512_s1 + $0x90] ss:$8 sps:$4 sm:$0xff] (!%p275_p9)  }
  0x14   : > { %721 = vmatprep.subr.bf16.mxu0 (!%p275_p9), %v15879_v4  ;;  %v15903_v21 = vld [vmem:[%s21512_s1 + $0xa4] ss:$8 sps:$4 sm:$0xff] (!%p275_p9)   ;;  %v15905_v22 = vld [vmem:[%s21512_s1 + $0xa0] ss:$8 sps:$4 sm:$0xff] (!%p275_p9)   ;;  %v15906_v23 = vld [vmem:[%s21512_s1 + $0xb4] ss:$8 sps:$4 sm:$0xff] (!%p275_p9)  }
  0x15   : > { %s17801_s20 = scalar_select %p312_p10, %s17748_s9, 1  ;;  %v15908_v24 = vld [vmem:[%s21512_s1 + $0xb0] ss:$8 sps:$4 sm:$0xff]   ;;  %v15909_v25 = vld [vmem:[%s21512_s1 + $0xc4] ss:$8 sps:$4 sm:$0xff]  }
  0x16   : > { %v15911_v26 = vld [vmem:[%s21512_s1 + $0xc0] ss:$8 sps:$4 sm:$0xff]   ;;  %v15912_v27 = vld [vmem:[%s21512_s1 + $0xd4] ss:$8 sps:$4 sm:$0xff]   ;;  %v15914_v28 = vld [vmem:[%s21512_s1 + $0xd0] ss:$8 sps:$4 sm:$0xff]  }
  0x17   : > { %722 = vmatpush1.bf16.msra.mxu0 %v15881_v5  ;;  %s15831_s25 = smul.u32 1280, %s17801_s20  ;;  %v15915_v29 = vld [vmem:[%s21512_s1 + $0xe4] ss:$8 sps:$4 sm:$0xff]   ;;  %v15917_v30 = vld [vmem:[%s21512_s1 + $0xe0] ss:$8 sps:$4 sm:$0xff]   ;;  %s309_s18 = sand.u32 1, %s17669_s28  }
  0x18   : > { %723 = vmatprep.subr.bf16.mxu0 %v15882_v6  ;;  %v15918_v31 = vld [vmem:[%s21512_s1 + $0xf4] ss:$8 sps:$4 sm:$0xff]   ;;  %v15920_v32 = vld [vmem:[%s21512_s1 + $0xf0] ss:$8 sps:$4 sm:$0xff]   ;;  %v15926_v33 = vld [vmem:[%s21513_s2 + $0x4] ss:$8 sps:$4 sm:$0xff]  }
  0x19   : > { %s17819_s19 = scalar_lea.vmem %s21511_s0, %s15831_s25  ;;  %v15924_v35 = vld [vmem:[%s21513_s2] ss:$8 sps:$4 sm:$0xff]   ;;  %v15932_v37 = vld [vmem:[%s21513_s2 + $0x14] ss:$8 sps:$4 sm:$0xff]   ;;  %v15930_v38 = vld [vmem:[%s21513_s2 + $0x10] ss:$8 sps:$4 sm:$0xff]  }
  0x1a   : > { %v15923_v13 = vld [vmem:[%s17819_s19 + $0x14] ss:$40 sps:$4 sm:$0xff]   ;;  %v15921_v34 = vld [vmem:[%s17819_s19 + $0x10] ss:$40 sps:$4 sm:$0xff]   ;;  %v15927_v36 = vld [vmem:[%s17819_s19 + $0x64] ss:$40 sps:$4 sm:$0xff]  }
  0x1b   : > { %724 = vmatpush1.bf16.msra.mxu0 %v15884_v7  ;;  %749 = vmatprep.mubr.bf16.mxu0 %v15923_v13  ;;  %v15938_v39 = vld [vmem:[%s21513_s2 + $0x24] ss:$8 sps:$4 sm:$0xff]   ;;  %v15929_v40 = vld [vmem:[%s17819_s19 + $0x60] ss:$40 sps:$4 sm:$0xff]   ;;  %v15933_v41 = vld [vmem:[%s17819_s19 + $0xb4] ss:$40 sps:$4 sm:$0xff]  }
  0x1c   : > { %725 = vmatprep.subr.bf16.mxu0 %v15885_v8  ;;  %v15936_v42 = vld [vmem:[%s21513_s2 + $0x20] ss:$8 sps:$4 sm:$0xff]   ;;  %v15944_v43 = vld [vmem:[%s21513_s2 + $0x34] ss:$8 sps:$4 sm:$0xff]   ;;  %v15942_v44 = vld [vmem:[%s21513_s2 + $0x30] ss:$8 sps:$4 sm:$0xff]  }
  0x1d   : > { %v15950_v45 = vld [vmem:[%s21513_s2 + $0x44] ss:$8 sps:$4 sm:$0xff]   ;;  %v15935_v46 = vld [vmem:[%s17819_s19 + $0xb0] ss:$40 sps:$4 sm:$0xff]   ;;  %v15948_v48 = vld [vmem:[%s21513_s2 + $0x40] ss:$8 sps:$4 sm:$0xff]  }
  0x1e   : > { %v15939_v47 = vld [vmem:[%s17819_s19 + $0x104] ss:$40 sps:$4 sm:$0xff]   ;;  %v15956_v49 = vld [vmem:[%s21513_s2 + $0x54] ss:$8 sps:$4 sm:$0xff]   ;;  %v15954_v50 = vld [vmem:[%s21513_s2 + $0x50] ss:$8 sps:$4 sm:$0xff]  }
  0x1f   : > { %726 = vmatpush1.bf16.msra.mxu0 %v15887_v9  ;;  %v15962_v51 = vld [vmem:[%s21513_s2 + $0x64] ss:$8 sps:$4 sm:$0xff]   ;;  %v15941_v52 = vld [vmem:[%s17819_s19 + $0x100] ss:$40 sps:$4 sm:$0xff]   ;;  %v15945_v53 = vld [vmem:[%s17819_s19 + $0x154] ss:$40 sps:$4 sm:$0xff]  }
  0x20   : > { %727 = vmatprep.subr.bf16.mxu0 %v15888_v10  ;;  %v15960_v54 = vld [vmem:[%s21513_s2 + $0x60] ss:$8 sps:$4 sm:$0xff]   ;;  %v15968_v55 = vld [vmem:[%s21513_s2 + $0x74] ss:$8 sps:$4 sm:$0xff]   ;;  %v16041_v56 = vld [vmem:[%s21516_s5 + $0x4] ss:$8 sps:$4 sm:$0xff]  }
  0x21   : > { %v15966_v57 = vld [vmem:[%s21513_s2 + $0x70] ss:$8 sps:$4 sm:$0xff]   ;;  %v15974_v58 = vld [vmem:[%s21513_s2 + $0x84] ss:$8 sps:$4 sm:$0xff]   ;;  %v16043_v59 = vld [vmem:[%s21516_s5] ss:$8 sps:$4 sm:$0xff]   ;;  %1198 = vmatprep.subr.bf16.mxu1 %v16041_v56 }
  0x22   : > { %v15947_v60 = vld [vmem:[%s17819_s19 + $0x150] ss:$40 sps:$4 sm:$0xff]   ;;  %v15951_v61 = vld [vmem:[%s17819_s19 + $0x1a4] ss:$40 sps:$4 sm:$0xff]   ;;  %v15972_v62 = vld [vmem:[%s21513_s2 + $0x80] ss:$8 sps:$4 sm:$0xff]   ;;  %1199 = vmatpush1.bf16.msra.mxu1 %v16043_v59 }
  0x23   : > { %728 = vmatpush1.bf16.msra.mxu0 %v15890_v11  ;;  %v15980_v63 = vld [vmem:[%s21513_s2 + $0x94] ss:$8 sps:$4 sm:$0xff]   ;;  %v15978_v1 = vld [vmem:[%s21513_s2 + $0x90] ss:$8 sps:$4 sm:$0xff]   ;;  %v16053_v3 = vld [vmem:[%s21516_s5 + $0x24] ss:$8 sps:$4 sm:$0xff]  }
  0x24   : > { %729 = vmatprep.subr.bf16.mxu0 %v15891_v12  ;;  %v16050_v0 = vld [vmem:[%s21516_s5 + $0x14] ss:$8 sps:$4 sm:$0xff]   ;;  %v16052_v2 = vld [vmem:[%s21516_s5 + $0x10] ss:$8 sps:$4 sm:$0xff]   ;;  %v15953_v4 = vld [vmem:[%s17819_s19 + $0x1a0] ss:$40 sps:$4 sm:$0xff]  }
  0x25   : > { %v15986_v5 = vld [vmem:[%s21513_s2 + $0xa4] ss:$8 sps:$4 sm:$0xff]   ;;  %1200 = vmatprep.subr.bf16.mxu1 %v16050_v0  ;;  %v16055_v6 = vld [vmem:[%s21516_s5 + $0x20] ss:$8 sps:$4 sm:$0xff]   ;;  %v15957_v7 = vld [vmem:[%s17819_s19 + $0x1f4] ss:$40 sps:$4 sm:$0xff]  }
  0x26   : > { %v15984_v8 = vld [vmem:[%s21513_s2 + $0xa0] ss:$8 sps:$4 sm:$0xff]   ;;  %1201 = vmatpush1.bf16.msra.mxu1 %v16052_v2  ;;  %v15992_v9 = vld [vmem:[%s21513_s2 + $0xb4] ss:$8 sps:$4 sm:$0xff]   ;;  %v15990_v11 = vld [vmem:[%s21513_s2 + $0xb0] ss:$8 sps:$4 sm:$0xff]  }
  0x27   : > { %730 = vmatpush1.bf16.msra.mxu0 %v15893_v14  ;;  %1202 = vmatprep.subr.bf16.mxu1 %v16053_v3  ;;  %v16062_v10 = vld [vmem:[%s21516_s5 + $0x34] ss:$8 sps:$4 sm:$0xff]   ;;  %v16064_v12 = vld [vmem:[%s21516_s5 + $0x30] ss:$8 sps:$4 sm:$0xff]   ;;  %v16065_v13 = vld [vmem:[%s21516_s5 + $0x44] ss:$8 sps:$4 sm:$0xff]  }
  0x28   : > { %731 = vmatprep.subr.bf16.mxu0 %v15894_v15  ;;  %v15959_v14 = vld [vmem:[%s17819_s19 + $0x1f0] ss:$40 sps:$4 sm:$0xff]   ;;  %v15998_v15 = vld [vmem:[%s21513_s2 + $0xc4] ss:$8 sps:$4 sm:$0xff]   ;;  %v16134_v56 = vld [vmem:[%s21516_s5 + $0xf4] ss:$8 sps:$4 sm:$0xff]  }
  0x29   : > { %v15999_v59 = vld [vmem:[%s17819_s19 + $0x424] ss:$40 sps:$4 sm:$0xff]   ;;  %v16013_v0 = vld [vmem:[%s17819_s19 + $0x4c0] ss:$40 sps:$4 sm:$0xff]   ;;  %s13253_s25 = sshll.u32 %s17801_s20, 1  ;;  %s13251_s21 = sshll.u32 %s309_s18, 9 }
  0x2a   : > { %1203 = vmatpush1.bf16.msra.mxu1 %v16055_v6  ;;  %v16017_v2 = vld [vmem:[%s17819_s19] ss:$40 sps:$4 sm:$0xff]   ;;  %v16026_v6 = vld [vmem:[%s21513_s2 + $0x110] ss:$8 sps:$4 sm:$0xff]   ;;  %s320_s17 = scalar_lea.vmem %s21518_s7, %s13253_s25  ;;  %s21297_s20 = scalar_lea.vmem [#allocation3], %s13251_s21 }
  0x2b   : > { %732 = vmatpush1.bf16.msra.mxu0 %v15896_v16  ;;  %1204 = vmatprep.subr.bf16.mxu1 %v16062_v10  ;;  %v16067_v16 = vld [vmem:[%s21516_s5 + $0x40] ss:$8 sps:$4 sm:$0xff]   ;;  %s14934_s22 = sshll.u32 %s17748_s9, 13  ;;  %s13173_s23 = sshll.u32 %s21297_s20, 4  ;;  %s21463_s23 = int_to_ptr.vmem [resolvable:$true] %s13173_s23 }
  0x2c   : > { %733 = vmatprep.subr.bf16.mxu0 %v15897_v17  ;;  %v15963_v17 = vld [vmem:[%s17819_s19 + $0x244] ss:$40 sps:$4 sm:$0xff]   ;;  %v16020_v3 = vld [vmem:[%s21513_s2 + $0x100] ss:$8 sps:$4 sm:$0xff]   ;;  %s21470_s9 = scalar_lea.sflag [#allocation4], %s309_s18  ;;  %s17615_s10 = scalar_lea.vmem %s21463_s23, 8192 }
  0x2d   : > { %v16032_v10 = vld [vmem:[%s21513_s2 + $0x120] ss:$8 sps:$4 sm:$0xff]   ;;  %p17616_p11 = scmp.ne.s32.totalorder %s21463_s23, %s17615_s10  ;;  %s17679_s25 = smov [#allocation3]  }
  0x2e   : > { %1205 = vmatpush1.bf16.msra.mxu1 %v16064_v12  ;;  %v16038_v12 = vld [vmem:[%s21513_s2 + $0x130] ss:$8 sps:$4 sm:$0xff]   ;;  %s17619_s12 = sshll.u32 %s17679_s25, 4  ;;  %s17620_s12 = int_to_ptr.vmem [resolvable:$false] %s17619_s12 }
  0x2f   : > { %734 = vmatpush1.bf16.msra.mxu0 %v15899_v18  ;;  %v15996_v18 = vld [vmem:[%s21513_s2 + $0xc0] ss:$8 sps:$4 sm:$0xff]   ;;  %1206 = vmatprep.subr.bf16.mxu1 %v16065_v13  ;;  %v16049_v13 = vld [vmem:[%s21513_s2 + $0x144] ss:$8 sps:$4 sm:$0xff]   ;;  %p17617_p12 = pnand %p17616_p11, %p17765_p5  ;;  %s17621_s13 = scalar_lea.vmem %s17620_s12, 16384 }
  0x30   : > { %735 = vmatprep.subr.bf16.mxu0 %v15900_v19  ;;  %v16004_v19 = vld [vmem:[%s21513_s2 + $0xd4] ss:$8 sps:$4 sm:$0xff]   ;;  %p17622_p0 = scmp.lt.s32.totalorder %s21463_s23, %s17620_s12  ;;  %p17623_p1 = scmp.lt.s32.totalorder %s17621_s13, %s17615_s10 }
  0x31   : > { %p17618_p13 = pneg %p17617_p12 }
  0x32   : > { %1207 = vmatpush1.bf16.msra.mxu1 %v16067_v16  ;;  %v16047_v16 = vld [vmem:[%s21513_s2 + $0x140] ss:$8 sps:$4 sm:$0xff]   ;;  %p17624_p2 = por %p17623_p1, %p17622_p0 }
  0x33   : > { %736 = vmatpush1.bf16.msra.mxu0 %v15902_v20  ;;  %v16074_v20 = vld [vmem:[%s21516_s5 + $0x54] ss:$8 sps:$4 sm:$0xff]  }
  0x34   : > { %737 = vmatprep.subr.bf16.mxu0 %v15903_v21  ;;  %v16002_v21 = vld [vmem:[%s21513_s2 + $0xd0] ss:$8 sps:$4 sm:$0xff]   ;;  %1208 = vmatprep.subr.bf16.mxu1 %v16074_v20  ;;  %p17625_p3 = pnand %p17624_p2, %p17618_p13 }
  0x35   : > { %v16037_v20 = vld [vmem:[%s17819_s19 + $0xf0] ss:$40 sps:$4 sm:$0xff]  }
  0x37   : > { %738 = vmatpush1.bf16.msra.mxu0 %v15905_v22  ;;  %v16076_v22 = vld [vmem:[%s21516_s5 + $0x50] ss:$8 sps:$4 sm:$0xff]  }
  0x38   : > { %739 = vmatprep.subr.bf16.mxu0 %v15906_v23  ;;  %v16077_v23 = vld [vmem:[%s21516_s5 + $0x64] ss:$8 sps:$4 sm:$0xff]   ;;  %1209 = vmatpush1.bf16.msra.mxu1 %v16076_v22  ;;  %v16071_v22 = vld [vmem:[%s21513_s2 + $0x160] ss:$8 sps:$4 sm:$0xff]  }
  0x39   : > { %1210 = vmatprep.subr.bf16.mxu1 %v16077_v23  ;;  %v16085_v23 = vld [vmem:[%s21513_s2 + $0x174] ss:$8 sps:$4 sm:$0xff]  }
  0x3b   : > { %740 = vmatpush1.bf16.msra.mxu0 %v15908_v24  ;;  %v15965_v24 = vld [vmem:[%s17819_s19 + $0x240] ss:$40 sps:$4 sm:$0xff]  }
  0x3c   : > { %741 = vmatprep.subr.bf16.mxu0 %v15909_v25  ;;  %v16010_v25 = vld [vmem:[%s21513_s2 + $0xe4] ss:$8 sps:$4 sm:$0xff]  }
  0x3f   : > { %742 = vmatpush1.bf16.msra.mxu0 %v15911_v26  ;;  %v16079_v26 = vld [vmem:[%s21516_s5 + $0x60] ss:$8 sps:$4 sm:$0xff]  }
  0x40   : > { %743 = vmatprep.subr.bf16.mxu0 %v15912_v27  ;;  %v15969_v27 = vld [vmem:[%s17819_s19 + $0x294] ss:$40 sps:$4 sm:$0xff]   ;;  %1211 = vmatpush1.bf16.msra.mxu1 %v16079_v26  ;;  %v16046_v26 = vld [vmem:[%s17819_s19 + $0x140] ss:$40 sps:$4 sm:$0xff]  }
  0x43   : > { %744 = vmatpush1.bf16.msra.mxu0 %v15914_v28  ;;  %v16008_v28 = vld [vmem:[%s21513_s2 + $0xe0] ss:$8 sps:$4 sm:$0xff]  }
  0x44   : > { %745 = vmatprep.subr.bf16.mxu0 %v15915_v29  ;;  %v16016_v29 = vld [vmem:[%s21513_s2 + $0xf4] ss:$8 sps:$4 sm:$0xff]  }
  0x47   : > { %746 = vmatpush1.bf16.msra.mxu0 %v15917_v30  ;;  %v16086_v30 = vld [vmem:[%s21516_s5 + $0x74] ss:$8 sps:$4 sm:$0xff]  }
  0x48   : > { %747 = vmatprep.subr.bf16.mxu0 %v15918_v31  ;;  %v16014_v31 = vld [vmem:[%s21513_s2 + $0xf0] ss:$8 sps:$4 sm:$0xff]   ;;  %1212 = vmatprep.subr.bf16.mxu1 %v16086_v30 }
  0x49   : > { %v16107_v30 = vld [vmem:[%s21513_s2 + $0x190] ss:$8 sps:$4 sm:$0xff]  }
  0x4b   : > { %748 = vmatpush1.bf16.msra.mxu0 %v15920_v32  ;;  %v16088_v32 = vld [vmem:[%s21516_s5 + $0x70] ss:$8 sps:$4 sm:$0xff]  }
  0x4c   : > { %2607 = vmatprep.subr.bf16.mxu0 %v15926_v33  ;;  %v16089_v33 = vld [vmem:[%s21516_s5 + $0x84] ss:$8 sps:$4 sm:$0xff]   ;;  %1213 = vmatpush1.bf16.msra.mxu1 %v16088_v32  ;;  %v16058_v32 = vld [vmem:[%s17819_s19 + $0x190] ss:$40 sps:$4 sm:$0xff]  }
  0x4d   : > { %1214 = vmatprep.subr.bf16.mxu1 %v16089_v33  ;;  %v16068_v33 = vld [vmem:[%s17819_s19 + $0x1e4] ss:$40 sps:$4 sm:$0xff]  }
  0x4e   : > { %750 = vmatmul.mubr.bf16.vlgmr.msra.gmra.mrb[0].mxu0 %v15921_v34  ;;  %v15971_v34 = vld [vmem:[%s17819_s19 + $0x290] ss:$40 sps:$4 sm:$0xff]  }
  0x4f   : > { %2608 = vmatpush1.bf16.msra.mxu0 %v15924_v35  ;;  %759 = vmatprep.mubr.bf16.mxu0 %v15927_v36  ;;  %v16022_v35 = vld [vmem:[%s21513_s2 + $0x104] ss:$8 sps:$4 sm:$0xff]   ;;  %v16091_v36 = vld [vmem:[%s21516_s5 + $0x80] ss:$8 sps:$4 sm:$0xff]  }
  0x50   : > { %2609 = vmatprep.subr.bf16.mxu0 %v15932_v37  ;;  %v15975_v37 = vld [vmem:[%s17819_s19 + $0x2e4] ss:$40 sps:$4 sm:$0xff]   ;;  %1215 = vmatpush1.bf16.msra.mxu1 %v16091_v36  ;;  %v16131_v36 = vld [vmem:[%s21513_s2 + $0x1b0] ss:$8 sps:$4 sm:$0xff]  }
  0x53   : > { %2610 = vmatpush1.bf16.msra.mxu0 %v15930_v38  ;;  %v16098_v38 = vld [vmem:[%s21516_s5 + $0x94] ss:$8 sps:$4 sm:$0xff]  }
  0x54   : > { %2611 = vmatprep.subr.bf16.mxu0 %v15938_v39  ;;  %v16100_v39 = vld [vmem:[%s21516_s5 + $0x90] ss:$8 sps:$4 sm:$0xff]   ;;  %1216 = vmatprep.subr.bf16.mxu1 %v16098_v38  ;;  %v16070_v38 = vld [vmem:[%s17819_s19 + $0x1e0] ss:$40 sps:$4 sm:$0xff]  }
  0x55   : > { %1217 = vmatpush1.bf16.msra.mxu1 %v16100_v39  ;;  %v16080_v39 = vld [vmem:[%s17819_s19 + $0x234] ss:$40 sps:$4 sm:$0xff]  }
  0x56   : > { %760 = vmatmul.mubr.bf16.gmra.mrb[4].mxu0 %v15929_v40  ;;  %v16101_v40 = vld [vmem:[%s21516_s5 + $0xa4] ss:$8 sps:$4 sm:$0xff]  }
  0x57   : > { %769 = vmatprep.mubr.bf16.mxu0 %v15933_v41  ;;  %2612 = vmatpush1.bf16.msra.mxu0 %v15936_v42  ;;  %v15977_v41 = vld [vmem:[%s17819_s19 + $0x2e0] ss:$40 sps:$4 sm:$0xff]  }
  0x58   : > { %2613 = vmatprep.subr.bf16.mxu0 %v15944_v43  ;;  %v16103_v42 = vld [vmem:[%s21516_s5 + $0xa0] ss:$8 sps:$4 sm:$0xff]   ;;  %v15981_v43 = vld [vmem:[%s17819_s19 + $0x334] ss:$40 sps:$4 sm:$0xff]   ;;  %1218 = vmatprep.subr.bf16.mxu1 %v16101_v40 }
  0x59   : > { %1219 = vmatpush1.bf16.msra.mxu1 %v16103_v42  ;;  %v16140_v40 = vld [vmem:[%s21513_s2 + $0x1c0] ss:$8 sps:$4 sm:$0xff]   ;;  %v16146_v42 = vld [vmem:[%s21513_s2 + $0x1d0] ss:$8 sps:$4 sm:$0xff]  }
  0x5b   : > { %2614 = vmatpush1.bf16.msra.mxu0 %v15942_v44  ;;  %v16110_v44 = vld [vmem:[%s21516_s5 + $0xb4] ss:$8 sps:$4 sm:$0xff]  }
  0x5c   : > { %2615 = vmatprep.subr.bf16.mxu0 %v15950_v45  ;;  %v16112_v45 = vld [vmem:[%s21516_s5 + $0xb0] ss:$8 sps:$4 sm:$0xff]   ;;  %1220 = vmatprep.subr.bf16.mxu1 %v16110_v44 }
  0x5d   : > { %1221 = vmatpush1.bf16.msra.mxu1 %v16112_v45  ;;  %v16082_v44 = vld [vmem:[%s17819_s19 + $0x230] ss:$40 sps:$4 sm:$0xff]   ;;  %v16092_v45 = vld [vmem:[%s17819_s19 + $0x284] ss:$40 sps:$4 sm:$0xff]  }
  0x5e   : > { %770 = vmatmul.mubr.bf16.gmra.mrb[8].mxu0 %v15935_v46  ;;  %v16113_v46 = vld [vmem:[%s21516_s5 + $0xc4] ss:$8 sps:$4 sm:$0xff]  }
  0x5f   : > { %779 = vmatprep.mubr.bf16.mxu0 %v15939_v47  ;;  %2616 = vmatpush1.bf16.msra.mxu0 %v15948_v48  ;;  %v15983_v47 = vld [vmem:[%s17819_s19 + $0x330] ss:$40 sps:$4 sm:$0xff]   ;;  %v16115_v48 = vld [vmem:[%s21516_s5 + $0xc0] ss:$8 sps:$4 sm:$0xff]  }
  0x60   : > { %2617 = vmatprep.subr.bf16.mxu0 %v15956_v49  ;;  %v15987_v49 = vld [vmem:[%s17819_s19 + $0x384] ss:$40 sps:$4 sm:$0xff]   ;;  %1222 = vmatprep.subr.bf16.mxu1 %v16113_v46  ;;  %v16152_v46 = vld [vmem:[%s21513_s2 + $0x1e0] ss:$8 sps:$4 sm:$0xff]  }
  0x61   : > { %1223 = vmatpush1.bf16.msra.mxu1 %v16115_v48  ;;  %v16158_v48 = vld [vmem:[%s21513_s2 + $0x1f0] ss:$8 sps:$4 sm:$0xff]  }
  0x63   : > { %2618 = vmatpush1.bf16.msra.mxu0 %v15954_v50  ;;  %v16122_v50 = vld [vmem:[%s21516_s5 + $0xd4] ss:$8 sps:$4 sm:$0xff]  }
  0x64   : > { %2619 = vmatprep.subr.bf16.mxu0 %v15962_v51  ;;  %v16124_v51 = vld [vmem:[%s21516_s5 + $0xd0] ss:$8 sps:$4 sm:$0xff]   ;;  %1224 = vmatprep.subr.bf16.mxu1 %v16122_v50  ;;  %v16094_v50 = vld [vmem:[%s17819_s19 + $0x280] ss:$40 sps:$4 sm:$0xff]  }
  0x65   : > { %1225 = vmatpush1.bf16.msra.mxu1 %v16124_v51  ;;  %v16104_v51 = vld [vmem:[%s17819_s19 + $0x2d4] ss:$40 sps:$4 sm:$0xff]  }
  0x66   : > { %780 = vmatmul.mubr.bf16.gmra.mrb[12].mxu0 %v15941_v52  ;;  %v15989_v52 = vld [vmem:[%s17819_s19 + $0x380] ss:$40 sps:$4 sm:$0xff]  }
  0x67   : > { %789 = vmatprep.mubr.bf16.mxu0 %v15945_v53  ;;  %2620 = vmatpush1.bf16.msra.mxu0 %v15960_v54  ;;  %v16125_v53 = vld [vmem:[%s21516_s5 + $0xe4] ss:$8 sps:$4 sm:$0xff]   ;;  %v15993_v54 = vld [vmem:[%s17819_s19 + $0x3d4] ss:$40 sps:$4 sm:$0xff]  }
  0x68   : > { %2621 = vmatprep.subr.bf16.mxu0 %v15968_v55  ;;  %v16127_v55 = vld [vmem:[%s21516_s5 + $0xe0] ss:$8 sps:$4 sm:$0xff]   ;;  %1226 = vmatprep.subr.bf16.mxu1 %v16125_v53  ;;  %v387_v53 = vlaneseq }
  0x69   : > { %1227 = vmatpush1.bf16.msra.mxu1 %v16127_v55 }
  0x6a   : > { %1228 = vmatprep.subr.bf16.mxu1 %v16134_v56  ;;  %v388_v55 = vshrl.u32 %v387_v53, 7  ;;  %v16118_v56 = vld [vmem:[%s17819_s19 + $0x320] ss:$40 sps:$4 sm:$0xff]  }
  0x6b   : > { %2622 = vmatpush1.bf16.msra.mxu0 %v15966_v57  ;;  %v16136_v57 = vld [vmem:[%s21516_s5 + $0xf0] ss:$8 sps:$4 sm:$0xff]  }
  0x6c   : > { %2623 = vmatprep.subr.bf16.mxu0 %v15974_v58  ;;  %v15995_v58 = vld [vmem:[%s17819_s19 + $0x3d0] ss:$40 sps:$4 sm:$0xff]  }
  0x6d   : > { %1229 = vmatpush1.bf16.msra.mxu1 %v16136_v57  ;;  %v385_v57 = vld [vmem:[%s21517_s6] ss:$4 sm:$0x3] }
  0x6e   : > { %790 = vmatmul.mubr.bf16.gmra.mrb[16].mxu0 %v15947_v60  ;;  %v16001_v60 = vld [vmem:[%s17819_s19 + $0x420] ss:$40 sps:$4 sm:$0xff]  }
  0x6f   : > { %799 = vmatprep.mubr.bf16.mxu0 %v15951_v61  ;;  %2624 = vmatpush1.bf16.msra.mxu0 %v15972_v62  ;;  %v16005_v61 = vld [vmem:[%s17819_s19 + $0x474] ss:$40 sps:$4 sm:$0xff]   ;;  %v16007_v62 = vld [vmem:[%s17819_s19 + $0x470] ss:$40 sps:$4 sm:$0xff]  }
  0x70   : > { %2625 = vmatprep.subr.bf16.mxu0 %v15980_v63  ;;  %v16011_v63 = vld [vmem:[%s17819_s19 + $0x4c4] ss:$40 sps:$4 sm:$0xff]  }
  0x73   : > { %2626 = vmatpush1.bf16.msra.mxu0 %v15978_v1  ;;  %v16019_v1 = vld [vmem:[%s17819_s19 + $0x4] ss:$40 sps:$4 sm:$0xff]  }
  0x74   : > { %2627 = vmatprep.subr.bf16.mxu0 %v15986_v5  ;;  %v16028_v5 = vld [vmem:[%s21513_s2 + $0x114] ss:$8 sps:$4 sm:$0xff]  }
  0x76   : > { %800 = vmatmul.mubr.bf16.gmra.mrb[20].mxu0 %v15953_v4  ;;  %v16023_v4 = vld [vmem:[%s17819_s19 + $0x54] ss:$40 sps:$4 sm:$0xff]  }
  0x77   : > { %809 = vmatprep.mubr.bf16.mxu0 %v15957_v7  ;;  %2628 = vmatpush1.bf16.msra.mxu0 %v15984_v8  ;;  %v16034_v7 = vld [vmem:[%s21513_s2 + $0x124] ss:$8 sps:$4 sm:$0xff]   ;;  %v16025_v8 = vld [vmem:[%s17819_s19 + $0x50] ss:$40 sps:$4 sm:$0xff]  }
  0x78   : > { %2629 = vmatprep.subr.bf16.mxu0 %v15992_v9  ;;  %v16029_v9 = vld [vmem:[%s17819_s19 + $0xa4] ss:$40 sps:$4 sm:$0xff]  }
  0x7b   : > { %2630 = vmatpush1.bf16.msra.mxu0 %v15990_v11  ;;  %v16040_v11 = vld [vmem:[%s21513_s2 + $0x134] ss:$8 sps:$4 sm:$0xff]  }
  0x7c   : > { %2631 = vmatprep.subr.bf16.mxu0 %v15998_v15  ;;  %v16035_v15 = vld [vmem:[%s17819_s19 + $0xf4] ss:$40 sps:$4 sm:$0xff]  }
  0x7e   : > { %810 = vmatmul.mubr.bf16.gmra.mrb[24].mxu0 %v15959_v14  ;;  %v16031_v14 = vld [vmem:[%s17819_s19 + $0xa0] ss:$40 sps:$4 sm:$0xff]  }
  0x7f   : > { %819 = vmatprep.mubr.bf16.mxu0 %v15963_v17  ;;  %2632 = vmatpush1.bf16.msra.mxu0 %v15996_v18  ;;  %v16061_v17 = vld [vmem:[%s21513_s2 + $0x154] ss:$8 sps:$4 sm:$0xff]   ;;  %v16059_v18 = vld [vmem:[%s21513_s2 + $0x150] ss:$8 sps:$4 sm:$0xff]  }
  0x80   : > { %2633 = vmatprep.subr.bf16.mxu0 %v16004_v19  ;;  %v16073_v19 = vld [vmem:[%s21513_s2 + $0x164] ss:$8 sps:$4 sm:$0xff]  }
  0x83   : > { %2634 = vmatpush1.bf16.msra.mxu0 %v16002_v21  ;;  %v16044_v21 = vld [vmem:[%s17819_s19 + $0x144] ss:$40 sps:$4 sm:$0xff]  }
  0x84   : > { %2635 = vmatprep.subr.bf16.mxu0 %v16010_v25  ;;  %v16097_v25 = vld [vmem:[%s21513_s2 + $0x184] ss:$8 sps:$4 sm:$0xff]  }
  0x86   : > { %820 = vmatmul.mubr.bf16.gmra.mrb[28].mxu0 %v15965_v24  ;;  %v16083_v24 = vld [vmem:[%s21513_s2 + $0x170] ss:$8 sps:$4 sm:$0xff]  }
  0x87   : > { %829 = vmatprep.mubr.bf16.mxu0 %v15969_v27  ;;  %2636 = vmatpush1.bf16.msra.mxu0 %v16008_v28  ;;  %v16056_v27 = vld [vmem:[%s17819_s19 + $0x194] ss:$40 sps:$4 sm:$0xff]   ;;  %v16095_v28 = vld [vmem:[%s21513_s2 + $0x180] ss:$8 sps:$4 sm:$0xff]  }
  0x88   : > { %2637 = vmatprep.subr.bf16.mxu0 %v16016_v29  ;;  %v16109_v29 = vld [vmem:[%s21513_s2 + $0x194] ss:$8 sps:$4 sm:$0xff]  }
  0x8b   : > { %2638 = vmatpush1.bf16.msra.mxu0 %v16014_v31  ;;  %v16121_v31 = vld [vmem:[%s21513_s2 + $0x1a4] ss:$8 sps:$4 sm:$0xff]  }
  0x8c   : > { %2800 = vmatprep.subr.bf16.mxu0 %v16022_v35  ;;  %v16133_v35 = vld [vmem:[%s21513_s2 + $0x1b4] ss:$8 sps:$4 sm:$0xff]  }
  0x8e   : > { %830 = vmatmul.mubr.bf16.gmra.mrb[32].mxu0 %v15971_v34  ;;  %v16119_v34 = vld [vmem:[%s21513_s2 + $0x1a0] ss:$8 sps:$4 sm:$0xff]  }
  0x8f   : > { %839 = vmatprep.mubr.bf16.mxu0 %v15975_v37  ;;  %v16142_v37 = vld [vmem:[%s21513_s2 + $0x1c4] ss:$8 sps:$4 sm:$0xff]  }
  0x96   : > { %840 = vmatmul.mubr.bf16.gmra.mrb[36].mxu0 %v15977_v41  ;;  %v16148_v41 = vld [vmem:[%s21513_s2 + $0x1d4] ss:$8 sps:$4 sm:$0xff]  }
  0x97   : > { %849 = vmatprep.mubr.bf16.mxu0 %v15981_v43  ;;  %v16154_v43 = vld [vmem:[%s21513_s2 + $0x1e4] ss:$8 sps:$4 sm:$0xff]  }
  0x9e   : > { %850 = vmatmul.mubr.bf16.gmra.mrb[40].mxu0 %v15983_v47  ;;  %v16160_v47 = vld [vmem:[%s21513_s2 + $0x1f4] ss:$8 sps:$4 sm:$0xff]  }
  0x9f   : > { %859 = vmatprep.mubr.bf16.mxu0 %v15987_v49  ;;  %v16166_v49 = vld [vmem:[%s21513_s2 + $0x204] ss:$8 sps:$4 sm:$0xff]  }
  0xa6   : > { %860 = vmatmul.mubr.bf16.gmra.mrb[44].mxu0 %v15989_v52  ;;  %v16106_v52 = vld [vmem:[%s17819_s19 + $0x2d0] ss:$40 sps:$4 sm:$0xff]  }
  0xa7   : > { %869 = vmatprep.mubr.bf16.mxu0 %v15993_v54  ;;  %v16116_v54 = vld [vmem:[%s17819_s19 + $0x324] ss:$40 sps:$4 sm:$0xff]  }
  0xae   : > { %870 = vmatmul.mubr.bf16.gmra.mrb[48].mxu0 %v15995_v58  ;;  %v18229_v58 = vsub.s32 0, %v388_v55 }
  0xaf   : > { %879 = vmatprep.mubr.bf16.mxu0 %v15999_v59  ;;  %v18231_v59 = vsub.s32 1, %v388_v55 }
  0xb6   : > { %880 = vmatmul.mubr.bf16.gmra.mrb[52].mxu0 %v16001_v60  ;;  %v16128_v60 = vld [vmem:[%s17819_s19 + $0x374] ss:$40 sps:$4 sm:$0xff]  }
  0xb7   : > { %889 = vmatprep.mubr.bf16.mxu0 %v16005_v61  ;;  %v18235_v61 = vrot.slane %v385_v57, %v18229_v58 }
  0xbe   : > { %890 = vmatmul.mubr.bf16.gmra.mrb[56].mxu0 %v16007_v62  ;;  %v18238_v62 = vrot.slane %v385_v57, %v18231_v59 }
  0xbf   : > { %899 = vmatprep.mubr.bf16.mxu0 %v16011_v63 }
  0xc6   : > { %900 = vmatmul.mubr.bf16.gmra.mrb[60].mxu0 %v16013_v0  ;;  %v16130_v0 = vld [vmem:[%s17819_s19 + $0x370] ss:$40 sps:$4 sm:$0xff]  }
  0xc7   : > { %2639 = vmatprep.mubr.bf16.mxu0 %v16019_v1 }
  0xce   : > { %2640 = vmatmul.mubr.bf16.vlgmr.msra.gmra.mrb[64].mxu0 %v16017_v2 }
  0xcf   : > { %2801 = vmatpush1.bf16.msra.mxu0 %v16020_v3  ;;  %2649 = vmatprep.mubr.bf16.mxu0 %v16023_v4 }
  0xd0   : > { %2802 = vmatprep.subr.bf16.mxu0 %v16028_v5  ;;  %v16137_v5 = vld [vmem:[%s17819_s19 + $0x3c4] ss:$40 sps:$4 sm:$0xff]  }
  0xd3   : > { %2803 = vmatpush1.bf16.msra.mxu0 %v16026_v6 }
  0xd4   : > { %2804 = vmatprep.subr.bf16.mxu0 %v16034_v7 }
  0xd6   : > { %2650 = vmatmul.mubr.bf16.gmra.mrb[68].mxu0 %v16025_v8 }
  0xd7   : > { %2659 = vmatprep.mubr.bf16.mxu0 %v16029_v9  ;;  %2805 = vmatpush1.bf16.msra.mxu0 %v16032_v10 }
  0xd8   : > { %2806 = vmatprep.subr.bf16.mxu0 %v16040_v11 }
  0xdb   : > { %2807 = vmatpush1.bf16.msra.mxu0 %v16038_v12 }
  0xdc   : > { %2808 = vmatprep.subr.bf16.mxu0 %v16049_v13 }
  0xde   : > { %2660 = vmatmul.mubr.bf16.gmra.mrb[72].mxu0 %v16031_v14  ;;  %v16139_v14 = vld [vmem:[%s17819_s19 + $0x3c0] ss:$40 sps:$4 sm:$0xff]  }
  0xdf   : > { %2669 = vmatprep.mubr.bf16.mxu0 %v16035_v15  ;;  %2809 = vmatpush1.bf16.msra.mxu0 %v16047_v16 }
  0xe0   : > { %2810 = vmatprep.subr.bf16.mxu0 %v16061_v17  ;;  %v16143_v17 = vld [vmem:[%s17819_s19 + $0x414] ss:$40 sps:$4 sm:$0xff]  }
  0xe3   : > { %2811 = vmatpush1.bf16.msra.mxu0 %v16059_v18 }
  0xe4   : > { %2812 = vmatprep.subr.bf16.mxu0 %v16073_v19 }
  0xe6   : > { %2670 = vmatmul.mubr.bf16.gmra.mrb[76].mxu0 %v16037_v20 }
  0xe7   : > { %2679 = vmatprep.mubr.bf16.mxu0 %v16044_v21  ;;  %2813 = vmatpush1.bf16.msra.mxu0 %v16071_v22 }
  0xe8   : > { %2814 = vmatprep.subr.bf16.mxu0 %v16085_v23 }
  0xeb   : > { %2815 = vmatpush1.bf16.msra.mxu0 %v16083_v24 }
  0xec   : > { %2816 = vmatprep.subr.bf16.mxu0 %v16097_v25 }
  0xee   : > { %2680 = vmatmul.mubr.bf16.gmra.mrb[80].mxu0 %v16046_v26 }
  0xef   : > { %2689 = vmatprep.mubr.bf16.mxu0 %v16056_v27  ;;  %2817 = vmatpush1.bf16.msra.mxu0 %v16095_v28 }
  0xf0   : > { %2818 = vmatprep.subr.bf16.mxu0 %v16109_v29 }
  0xf3   : > { %2819 = vmatpush1.bf16.msra.mxu0 %v16107_v30  ;;  %v16145_v30 = vld [vmem:[%s17819_s19 + $0x410] ss:$40 sps:$4 sm:$0xff]  }
  0xf4   : > { %2820 = vmatprep.subr.bf16.mxu0 %v16121_v31 }
  0xf6   : > { %2690 = vmatmul.mubr.bf16.gmra.mrb[84].mxu0 %v16058_v32 }
  0xf7   : > { %2699 = vmatprep.mubr.bf16.mxu0 %v16068_v33  ;;  %2821 = vmatpush1.bf16.msra.mxu0 %v16119_v34  ;;  %v16149_v33 = vld [vmem:[%s17819_s19 + $0x464] ss:$40 sps:$4 sm:$0xff]  }
  0xf8   : > { %2822 = vmatprep.subr.bf16.mxu0 %v16133_v35 }
  0xfb   : > { %2823 = vmatpush1.bf16.msra.mxu0 %v16131_v36 }
  0xfc   : > { %2824 = vmatprep.subr.bf16.mxu0 %v16142_v37 }
  0xfe   : > { %2700 = vmatmul.mubr.bf16.gmra.mrb[88].mxu0 %v16070_v38 }
  0xff   : > { %2709 = vmatprep.mubr.bf16.mxu0 %v16080_v39  ;;  %2825 = vmatpush1.bf16.msra.mxu0 %v16140_v40 }
 0x100   : > { %2826 = vmatprep.subr.bf16.mxu0 %v16148_v41 }
 0x103   : > { %2827 = vmatpush1.bf16.msra.mxu0 %v16146_v42 }
 0x104   : > { %2828 = vmatprep.subr.bf16.mxu0 %v16154_v43 }
 0x106   : > { %2710 = vmatmul.mubr.bf16.gmra.mrb[92].mxu0 %v16082_v44 }
 0x107   : > { %2719 = vmatprep.mubr.bf16.mxu0 %v16092_v45  ;;  %2829 = vmatpush1.bf16.msra.mxu0 %v16152_v46  ;;  %v16151_v46 = vld [vmem:[%s17819_s19 + $0x460] ss:$40 sps:$4 sm:$0xff]  }
 0x108   : > { %2830 = vmatprep.subr.bf16.mxu0 %v16160_v47 }
 0x10b   : > { %2831 = vmatpush1.bf16.msra.mxu0 %v16158_v48 }
 0x10c   : > { %2993 = vmatprep.subr.bf16.mxu0 %v16166_v49  ;;  %v16155_v49 = vld [vmem:[%s17819_s19 + $0x4b4] ss:$40 sps:$4 sm:$0xff]  }
 0x10e   : > { %2720 = vmatmul.mubr.bf16.gmra.mrb[96].mxu0 %v16094_v50 }
 0x10f   : > { %2729 = vmatprep.mubr.bf16.mxu0 %v16104_v51 }
 0x116   : > { %2730 = vmatmul.mubr.bf16.gmra.mrb[100].mxu0 %v16106_v52 }
 0x117   : > { %2739 = vmatprep.mubr.bf16.mxu0 %v16116_v54 }
 0x11e   : > { %2740 = vmatmul.mubr.bf16.gmra.mrb[104].mxu0 %v16118_v56 }
 0x11f   : > { %2749 = vmatprep.mubr.bf16.mxu0 %v16128_v60 }
 0x121   : > { %v751_v63 = vpop.f32.mrb[0].mxu0 }
 0x122   : > { %v752_v1 = vadd.f32 %v751_v63, %v18235_v61  ;;  %v753_v2 = vpop.f32.mrb[1].mxu0 }
 0x123   : > { %v754_v3 = vadd.f32 %v753_v2, %v18238_v62  ;;  %v755_v4 = vpop.f32.mrb[2].mxu0  ;;  %v16157_v2 = vld [vmem:[%s17819_s19 + $0x4b0] ss:$40 sps:$4 sm:$0xff]  }
 0x124   : > { %v756_v6 = vadd.f32 %v755_v4, %v18235_v61  ;;  %v757_v7 = vpop.f32.mrb[3].mxu0  ;;  %v910_v9 = vmax.f32 %v752_v1, 0.0 }
 0x125   : > { %v758_v8 = vadd.f32 %v757_v7, %v18238_v62  ;;  %v911_v11 = vmax.f32 %v754_v3, 0.0 }
 0x126   : > { %v912_v10 = vmax.f32 %v756_v6, 0.0  ;;  %2750 = vmatmul.mubr.bf16.gmra.mrb[108].mxu0 %v16130_v0 }
 0x127   : > { %v913_v12 = vmax.f32 %v758_v8, 0.0  ;;  %2759 = vmatprep.mubr.bf16.mxu0 %v16137_v5  ;;  %v16163_v5 = vld [vmem:[%s17819_s19 + $0xc] ss:$40 sps:$4 sm:$0xff]  }
 0x128   : > { %v974_v13 = vpack.c.bf16 %v912_v10, %v910_v9 }
 0x129   : > { %v761_v15 = vpop.f32.mrb[4].mxu0  ;;  %v975_v16 = vpack.c.bf16 %v913_v12, %v911_v11 }
 0x12a   : > { %v762_v18 = vadd.f32 %v761_v15, %v18235_v61  ;;  %v763_v19 = vpop.f32.mrb[5].mxu0 }
 0x12b   : > { %v764_v20 = vadd.f32 %v763_v19, %v18238_v62  ;;  %v765_v21 = vpop.f32.mrb[6].mxu0  ;;  %1230 = vmatprep.mubr.bf16.mxu1 %v975_v16 }
 0x12c   : > { %v766_v22 = vadd.f32 %v765_v21, %v18235_v61  ;;  %v767_v23 = vpop.f32.mrb[7].mxu0  ;;  %1231 = vmatmul.mubr.bf16.vlgmr.msra.gmra.mrb[0].mxu1 %v974_v13  ;;  %v914_v25 = vmax.f32 %v762_v18, 0.0  ;;  %v16161_v18 = vld [vmem:[%s17819_s19 + $0x8] ss:$40 sps:$4 sm:$0xff]  }
 0x12d   : > { %v768_v24 = vadd.f32 %v767_v23, %v18238_v62  ;;  %v915_v27 = vmax.f32 %v764_v20, 0.0  ;;  %v16164_v21 = vld [vmem:[%s21513_s2 + $0x200] ss:$8 sps:$4 sm:$0xff]  }
 0x12e   : > { %v916_v26 = vmax.f32 %v766_v22, 0.0  ;;  %2760 = vmatmul.mubr.bf16.gmra.mrb[112].mxu0 %v16139_v14  ;;  %v16167_v22 = vld [vmem:[%s17819_s19 + $0x5c] ss:$40 sps:$4 sm:$0xff]  }
 0x12f   : > { %v917_v28 = vmax.f32 %v768_v24, 0.0  ;;  %2769 = vmatprep.mubr.bf16.mxu0 %v16143_v17 }
 0x130   : > { %v976_v29 = vpack.c.bf16 %v916_v26, %v914_v25  ;;  %v16172_v25 = vld [vmem:[%s21513_s2 + $0x214] ss:$8 sps:$4 sm:$0xff]  }
 0x131   : > { %v977_v31 = vpack.c.bf16 %v917_v28, %v915_v27  ;;  %v771_v32 = vpop.f32.mrb[8].mxu0 }
 0x132   : > { %v772_v34 = vadd.f32 %v771_v32, %v18235_v61  ;;  %v773_v35 = vpop.f32.mrb[9].mxu0 }
 0x133   : > { %v774_v36 = vadd.f32 %v773_v35, %v18238_v62  ;;  %v775_v37 = vpop.f32.mrb[10].mxu0  ;;  %1240 = vmatprep.mubr.bf16.mxu1 %v977_v31 }
 0x134   : > { %v776_v38 = vadd.f32 %v775_v37, %v18235_v61  ;;  %v777_v39 = vpop.f32.mrb[11].mxu0  ;;  %1241 = vmatmul.mubr.bf16.gmra.mrb[4].mxu1 %v976_v29  ;;  %v918_v41 = vmax.f32 %v772_v34, 0.0 }
 0x135   : > { %v778_v40 = vadd.f32 %v777_v39, %v18238_v62  ;;  %v919_v43 = vmax.f32 %v774_v36, 0.0  ;;  %v16178_v36 = vld [vmem:[%s21513_s2 + $0x224] ss:$8 sps:$4 sm:$0xff]  }
 0x136   : > { %v920_v42 = vmax.f32 %v776_v38, 0.0  ;;  %2770 = vmatmul.mubr.bf16.gmra.mrb[116].mxu0 %v16145_v30  ;;  %v16169_v38 = vld [vmem:[%s17819_s19 + $0x58] ss:$40 sps:$4 sm:$0xff]  }
 0x137   : > { %v921_v44 = vmax.f32 %v778_v40, 0.0  ;;  %2779 = vmatprep.mubr.bf16.mxu0 %v16149_v33  ;;  %v16170_v33 = vld [vmem:[%s21513_s2 + $0x210] ss:$8 sps:$4 sm:$0xff]  }
 0x138   : > { %v978_v45 = vpack.c.bf16 %v920_v42, %v918_v41  ;;  %v16173_v41 = vld [vmem:[%s17819_s19 + $0xac] ss:$40 sps:$4 sm:$0xff]   ;;  %v16176_v42 = vld [vmem:[%s21513_s2 + $0x220] ss:$8 sps:$4 sm:$0xff]  }
 0x139   : > { %v979_v47 = vpack.c.bf16 %v921_v44, %v919_v43  ;;  %v781_v48 = vpop.f32.mrb[12].mxu0 }
 0x13a   : > { %v782_v50 = vadd.f32 %v781_v48, %v18235_v61  ;;  %v783_v51 = vpop.f32.mrb[13].mxu0 }
 0x13b   : > { %v784_v52 = vadd.f32 %v783_v51, %v18238_v62  ;;  %v785_v53 = vpop.f32.mrb[14].mxu0  ;;  %1250 = vmatprep.mubr.bf16.mxu1 %v979_v47 }
 0x13c   : > { %v786_v54 = vadd.f32 %v785_v53, %v18235_v61  ;;  %v787_v55 = vpop.f32.mrb[15].mxu0  ;;  %1251 = vmatmul.mubr.bf16.gmra.mrb[8].mxu1 %v978_v45  ;;  %v922_v57 = vmax.f32 %v782_v50, 0.0  ;;  %v16184_v45 = vld [vmem:[%s21513_s2 + $0x234] ss:$8 sps:$4 sm:$0xff]   ;;  %v16182_v53 = vld [vmem:[%s21513_s2 + $0x230] ss:$8 sps:$4 sm:$0xff]  }
 0x13d   : > { %v788_v56 = vadd.f32 %v787_v55, %v18238_v62  ;;  %v923_v63 = vmax.f32 %v784_v52, 0.0 }
 0x13e   : > { %v924_v60 = vmax.f32 %v786_v54, 0.0  ;;  %2780 = vmatmul.mubr.bf16.gmra.mrb[120].mxu0 %v16151_v46 }
 0x13f   : > { %v925_v0 = vmax.f32 %v788_v56, 0.0  ;;  %2789 = vmatprep.mubr.bf16.mxu0 %v16155_v49  ;;  %v16190_v56 = vld [vmem:[%s21513_s2 + $0x244] ss:$8 sps:$4 sm:$0xff]  }
 0x140   : > { %v980_v1 = vpack.c.bf16 %v924_v60, %v922_v57  ;;  %v16175_v60 = vld [vmem:[%s17819_s19 + $0xa8] ss:$40 sps:$4 sm:$0xff]  }
 0x141   : > { %v981_v3 = vpack.c.bf16 %v925_v0, %v923_v63  ;;  %v791_v4 = vpop.f32.mrb[16].mxu0 }
 0x142   : > { %v792_v6 = vadd.f32 %v791_v4, %v18235_v61  ;;  %v793_v7 = vpop.f32.mrb[17].mxu0 }
 0x143   : > { %v794_v8 = vadd.f32 %v793_v7, %v18238_v62  ;;  %v795_v9 = vpop.f32.mrb[18].mxu0  ;;  %1260 = vmatprep.mubr.bf16.mxu1 %v981_v3 }
 0x144   : > { %v796_v10 = vadd.f32 %v795_v9, %v18235_v61  ;;  %v797_v11 = vpop.f32.mrb[19].mxu0  ;;  %1261 = vmatmul.mubr.bf16.gmra.mrb[12].mxu1 %v980_v1  ;;  %v926_v13 = vmax.f32 %v792_v6, 0.0  ;;  %v16179_v1 = vld [vmem:[%s17819_s19 + $0xfc] ss:$40 sps:$4 sm:$0xff]  }
 0x145   : > { %v798_v12 = vadd.f32 %v797_v11, %v18238_v62  ;;  %v927_v15 = vmax.f32 %v794_v8, 0.0 }
 0x146   : > { %v928_v14 = vmax.f32 %v796_v10, 0.0  ;;  %2790 = vmatmul.mubr.bf16.gmra.mrb[124].mxu0 %v16157_v2  ;;  %v16188_v2 = vld [vmem:[%s21513_s2 + $0x240] ss:$8 sps:$4 sm:$0xff]  }
 0x147   : > { %v929_v16 = vmax.f32 %v798_v12, 0.0  ;;  %2832 = vmatprep.mubr.bf16.mxu0 %v16163_v5  ;;  %v16196_v5 = vld [vmem:[%s21513_s2 + $0x254] ss:$8 sps:$4 sm:$0xff]  }
 0x148   : > { %v982_v17 = vpack.c.bf16 %v928_v14, %v926_v13  ;;  %v16194_v13 = vld [vmem:[%s21513_s2 + $0x250] ss:$8 sps:$4 sm:$0xff]  }
 0x149   : > { %v983_v19 = vpack.c.bf16 %v929_v16, %v927_v15  ;;  %v801_v20 = vpop.f32.mrb[20].mxu0  ;;  %v16202_v16 = vld [vmem:[%s21513_s2 + $0x264] ss:$8 sps:$4 sm:$0xff]  }
 0x14a   : > { %v802_v23 = vadd.f32 %v801_v20, %v18235_v61  ;;  %v803_v24 = vpop.f32.mrb[21].mxu0 }
 0x14b   : > { %v804_v26 = vadd.f32 %v803_v24, %v18238_v62  ;;  %v805_v27 = vpop.f32.mrb[22].mxu0  ;;  %1270 = vmatprep.mubr.bf16.mxu1 %v983_v19 }
 0x14c   : > { %v806_v28 = vadd.f32 %v805_v27, %v18235_v61  ;;  %v807_v29 = vpop.f32.mrb[23].mxu0  ;;  %1271 = vmatmul.mubr.bf16.gmra.mrb[16].mxu1 %v982_v17  ;;  %v930_v31 = vmax.f32 %v802_v23, 0.0 }
 0x14d   : > { %v808_v30 = vadd.f32 %v807_v29, %v18238_v62  ;;  %v931_v34 = vmax.f32 %v804_v26, 0.0 }
 0x14e   : > { %v932_v32 = vmax.f32 %v806_v28, 0.0  ;;  %2833 = vmatmul.mubr.bf16.vlgmr.msra.gmra.mrb[64].mxu0 %v16161_v18  ;;  %v16181_v18 = vld [vmem:[%s17819_s19 + $0xf8] ss:$40 sps:$4 sm:$0xff]  }
 0x14f   : > { %v933_v35 = vmax.f32 %v808_v30, 0.0  ;;  %2994 = vmatpush1.bf16.msra.mxu0 %v16164_v21  ;;  %2842 = vmatprep.mubr.bf16.mxu0 %v16167_v22  ;;  %v16185_v21 = vld [vmem:[%s17819_s19 + $0x14c] ss:$40 sps:$4 sm:$0xff]   ;;  %v16200_v22 = vld [vmem:[%s21513_s2 + $0x260] ss:$8 sps:$4 sm:$0xff]  }
 0x150   : > { %v984_v37 = vpack.c.bf16 %v932_v32, %v930_v31  ;;  %2995 = vmatprep.subr.bf16.mxu0 %v16172_v25  ;;  %v16208_v25 = vld [vmem:[%s21513_s2 + $0x274] ss:$8 sps:$4 sm:$0xff]  }
 0x151   : > { %v985_v39 = vpack.c.bf16 %v933_v35, %v931_v34  ;;  %v811_v40 = vpop.f32.mrb[24].mxu0 }
 0x152   : > { %v812_v43 = vadd.f32 %v811_v40, %v18235_v61  ;;  %v813_v44 = vpop.f32.mrb[25].mxu0 }
 0x153   : > { %v814_v46 = vadd.f32 %v813_v44, %v18238_v62  ;;  %v815_v47 = vpop.f32.mrb[26].mxu0  ;;  %1280 = vmatprep.mubr.bf16.mxu1 %v985_v39  ;;  %2996 = vmatpush1.bf16.msra.mxu0 %v16170_v33  ;;  %v16206_v33 = vld [vmem:[%s21513_s2 + $0x270] ss:$8 sps:$4 sm:$0xff]  }
 0x154   : > { %v816_v48 = vadd.f32 %v815_v47, %v18235_v61  ;;  %v817_v49 = vpop.f32.mrb[27].mxu0  ;;  %1281 = vmatmul.mubr.bf16.gmra.mrb[20].mxu1 %v984_v37  ;;  %2997 = vmatprep.subr.bf16.mxu0 %v16178_v36  ;;  %v934_v51 = vmax.f32 %v812_v43, 0.0  ;;  %v16214_v36 = vld [vmem:[%s21513_s2 + $0x284] ss:$8 sps:$4 sm:$0xff]  }
 0x155   : > { %v818_v50 = vadd.f32 %v817_v49, %v18238_v62  ;;  %v935_v54 = vmax.f32 %v814_v46, 0.0 }
 0x156   : > { %v936_v52 = vmax.f32 %v816_v48, 0.0  ;;  %2843 = vmatmul.mubr.bf16.gmra.mrb[68].mxu0 %v16169_v38  ;;  %v16187_v38 = vld [vmem:[%s17819_s19 + $0x148] ss:$40 sps:$4 sm:$0xff]  }
 0x157   : > { %v937_v55 = vmax.f32 %v818_v50, 0.0  ;;  %2852 = vmatprep.mubr.bf16.mxu0 %v16173_v41  ;;  %2998 = vmatpush1.bf16.msra.mxu0 %v16176_v42  ;;  %v16191_v41 = vld [vmem:[%s17819_s19 + $0x19c] ss:$40 sps:$4 sm:$0xff]   ;;  %v16212_v42 = vld [vmem:[%s21513_s2 + $0x280] ss:$8 sps:$4 sm:$0xff]  }
 0x158   : > { %v986_v57 = vpack.c.bf16 %v936_v52, %v934_v51  ;;  %2999 = vmatprep.subr.bf16.mxu0 %v16184_v45  ;;  %v16220_v45 = vld [vmem:[%s21513_s2 + $0x294] ss:$8 sps:$4 sm:$0xff]  }
 0x159   : > { %v987_v63 = vpack.c.bf16 %v937_v55, %v935_v54  ;;  %v821_v0 = vpop.f32.mrb[28].mxu0 }
 0x15a   : > { %v822_v3 = vadd.f32 %v821_v0, %v18235_v61  ;;  %v823_v4 = vpop.f32.mrb[29].mxu0 }
 0x15b   : > { %v824_v6 = vadd.f32 %v823_v4, %v18238_v62  ;;  %v825_v7 = vpop.f32.mrb[30].mxu0  ;;  %1290 = vmatprep.mubr.bf16.mxu1 %v987_v63  ;;  %3000 = vmatpush1.bf16.msra.mxu0 %v16182_v53  ;;  %v16218_v53 = vld [vmem:[%s21513_s2 + $0x290] ss:$8 sps:$4 sm:$0xff]  }
 0x15c   : > { %v826_v8 = vadd.f32 %v825_v7, %v18235_v61  ;;  %v827_v9 = vpop.f32.mrb[31].mxu0  ;;  %1291 = vmatmul.mubr.bf16.gmra.mrb[24].mxu1 %v986_v57  ;;  %3001 = vmatprep.subr.bf16.mxu0 %v16190_v56  ;;  %v938_v11 = vmax.f32 %v822_v3, 0.0  ;;  %v16226_v56 = vld [vmem:[%s21513_s2 + $0x2a4] ss:$8 sps:$4 sm:$0xff]  }
 0x15d   : > { %v828_v10 = vadd.f32 %v827_v9, %v18238_v62  ;;  %v939_v14 = vmax.f32 %v824_v6, 0.0 }
 0x15e   : > { %v940_v12 = vmax.f32 %v826_v8, 0.0  ;;  %2853 = vmatmul.mubr.bf16.gmra.mrb[72].mxu0 %v16175_v60  ;;  %v16193_v60 = vld [vmem:[%s17819_s19 + $0x198] ss:$40 sps:$4 sm:$0xff]  }
 0x15f   : > { %v941_v15 = vmax.f32 %v828_v10, 0.0  ;;  %2862 = vmatprep.mubr.bf16.mxu0 %v16179_v1  ;;  %3002 = vmatpush1.bf16.msra.mxu0 %v16188_v2  ;;  %v16197_v1 = vld [vmem:[%s17819_s19 + $0x1ec] ss:$40 sps:$4 sm:$0xff]   ;;  %v16224_v2 = vld [vmem:[%s21513_s2 + $0x2a0] ss:$8 sps:$4 sm:$0xff]  }
 0x160   : > { %v988_v17 = vpack.c.bf16 %v940_v12, %v938_v11  ;;  %3003 = vmatprep.subr.bf16.mxu0 %v16196_v5  ;;  %v16232_v5 = vld [vmem:[%s21513_s2 + $0x2b4] ss:$8 sps:$4 sm:$0xff]  }
 0x161   : > { %v989_v19 = vpack.c.bf16 %v941_v15, %v939_v14  ;;  %v831_v20 = vpop.f32.mrb[32].mxu0 }
 0x162   : > { %v832_v23 = vadd.f32 %v831_v20, %v18235_v61  ;;  %v833_v24 = vpop.f32.mrb[33].mxu0 }
 0x163   : > { %v834_v26 = vadd.f32 %v833_v24, %v18238_v62  ;;  %v835_v27 = vpop.f32.mrb[34].mxu0  ;;  %1300 = vmatprep.mubr.bf16.mxu1 %v989_v19  ;;  %3004 = vmatpush1.bf16.msra.mxu0 %v16194_v13  ;;  %v16230_v13 = vld [vmem:[%s21513_s2 + $0x2b0] ss:$8 sps:$4 sm:$0xff]  }
 0x164   : > { %v836_v28 = vadd.f32 %v835_v27, %v18235_v61  ;;  %v837_v29 = vpop.f32.mrb[35].mxu0  ;;  %1301 = vmatmul.mubr.bf16.gmra.mrb[28].mxu1 %v988_v17  ;;  %3005 = vmatprep.subr.bf16.mxu0 %v16202_v16  ;;  %v942_v31 = vmax.f32 %v832_v23, 0.0  ;;  %v16238_v16 = vld [vmem:[%s21513_s2 + $0x2c4] ss:$8 sps:$4 sm:$0xff]  }
 0x165   : > { %v838_v30 = vadd.f32 %v837_v29, %v18238_v62  ;;  %v943_v34 = vmax.f32 %v834_v26, 0.0 }
 0x166   : > { %v944_v32 = vmax.f32 %v836_v28, 0.0  ;;  %2863 = vmatmul.mubr.bf16.gmra.mrb[76].mxu0 %v16181_v18  ;;  %v16199_v18 = vld [vmem:[%s17819_s19 + $0x1e8] ss:$40 sps:$4 sm:$0xff]  }
 0x167   : > { %v945_v35 = vmax.f32 %v838_v30, 0.0  ;;  %2872 = vmatprep.mubr.bf16.mxu0 %v16185_v21  ;;  %3006 = vmatpush1.bf16.msra.mxu0 %v16200_v22  ;;  %v16203_v21 = vld [vmem:[%s17819_s19 + $0x23c] ss:$40 sps:$4 sm:$0xff]   ;;  %v16236_v22 = vld [vmem:[%s21513_s2 + $0x2c0] ss:$8 sps:$4 sm:$0xff]  }
 0x168   : > { %v990_v37 = vpack.c.bf16 %v944_v32, %v942_v31  ;;  %3007 = vmatprep.subr.bf16.mxu0 %v16208_v25  ;;  %v16244_v25 = vld [vmem:[%s21513_s2 + $0x2d4] ss:$8 sps:$4 sm:$0xff]  }
 0x169   : > { %v991_v39 = vpack.c.bf16 %v945_v35, %v943_v34  ;;  %v841_v40 = vpop.f32.mrb[36].mxu0 }
 0x16a   : > { %v842_v43 = vadd.f32 %v841_v40, %v18235_v61  ;;  %v843_v44 = vpop.f32.mrb[37].mxu0 }
 0x16b   : > { %v844_v46 = vadd.f32 %v843_v44, %v18238_v62  ;;  %v845_v47 = vpop.f32.mrb[38].mxu0  ;;  %1310 = vmatprep.mubr.bf16.mxu1 %v991_v39  ;;  %3008 = vmatpush1.bf16.msra.mxu0 %v16206_v33  ;;  %v16242_v33 = vld [vmem:[%s21513_s2 + $0x2d0] ss:$8 sps:$4 sm:$0xff]  }
 0x16c   : > { %v846_v48 = vadd.f32 %v845_v47, %v18235_v61  ;;  %v847_v49 = vpop.f32.mrb[39].mxu0  ;;  %1311 = vmatmul.mubr.bf16.gmra.mrb[32].mxu1 %v990_v37  ;;  %3009 = vmatprep.subr.bf16.mxu0 %v16214_v36  ;;  %v946_v51 = vmax.f32 %v842_v43, 0.0  ;;  %v16250_v36 = vld [vmem:[%s21513_s2 + $0x2e4] ss:$8 sps:$4 sm:$0xff]  }
 0x16d   : > { %v848_v50 = vadd.f32 %v847_v49, %v18238_v62  ;;  %v947_v54 = vmax.f32 %v844_v46, 0.0 }
 0x16e   : > { %v948_v52 = vmax.f32 %v846_v48, 0.0  ;;  %2873 = vmatmul.mubr.bf16.gmra.mrb[80].mxu0 %v16187_v38  ;;  %v16205_v38 = vld [vmem:[%s17819_s19 + $0x238] ss:$40 sps:$4 sm:$0xff]  }
 0x16f   : > { %v949_v55 = vmax.f32 %v848_v50, 0.0  ;;  %2882 = vmatprep.mubr.bf16.mxu0 %v16191_v41  ;;  %3010 = vmatpush1.bf16.msra.mxu0 %v16212_v42  ;;  %v16209_v41 = vld [vmem:[%s17819_s19 + $0x28c] ss:$40 sps:$4 sm:$0xff]   ;;  %v16248_v42 = vld [vmem:[%s21513_s2 + $0x2e0] ss:$8 sps:$4 sm:$0xff]  }
 0x170   : > { %v992_v57 = vpack.c.bf16 %v948_v52, %v946_v51  ;;  %3011 = vmatprep.subr.bf16.mxu0 %v16220_v45  ;;  %v16256_v45 = vld [vmem:[%s21513_s2 + $0x2f4] ss:$8 sps:$4 sm:$0xff]  }
 0x171   : > { %v993_v63 = vpack.c.bf16 %v949_v55, %v947_v54  ;;  %v851_v0 = vpop.f32.mrb[40].mxu0 }
 0x172   : > { %v852_v3 = vadd.f32 %v851_v0, %v18235_v61  ;;  %v853_v4 = vpop.f32.mrb[41].mxu0 }
 0x173   : > { %v854_v6 = vadd.f32 %v853_v4, %v18238_v62  ;;  %v855_v7 = vpop.f32.mrb[42].mxu0  ;;  %1320 = vmatprep.mubr.bf16.mxu1 %v993_v63  ;;  %3012 = vmatpush1.bf16.msra.mxu0 %v16218_v53  ;;  %v16254_v53 = vld [vmem:[%s21513_s2 + $0x2f0] ss:$8 sps:$4 sm:$0xff]  }
 0x174   : > { %v856_v8 = vadd.f32 %v855_v7, %v18235_v61  ;;  %v857_v9 = vpop.f32.mrb[43].mxu0  ;;  %1321 = vmatmul.mubr.bf16.gmra.mrb[36].mxu1 %v992_v57  ;;  %3013 = vmatprep.subr.bf16.mxu0 %v16226_v56  ;;  %v950_v11 = vmax.f32 %v852_v3, 0.0  ;;  %v16262_v56 = vld [vmem:[%s21513_s2 + $0x304] ss:$8 sps:$4 sm:$0xff]  }
 0x175   : > { %v858_v10 = vadd.f32 %v857_v9, %v18238_v62  ;;  %v951_v14 = vmax.f32 %v854_v6, 0.0 }
 0x176   : > { %v952_v12 = vmax.f32 %v856_v8, 0.0  ;;  %2883 = vmatmul.mubr.bf16.gmra.mrb[84].mxu0 %v16193_v60  ;;  %v16211_v60 = vld [vmem:[%s17819_s19 + $0x288] ss:$40 sps:$4 sm:$0xff]  }
 0x177   : > { %v953_v15 = vmax.f32 %v858_v10, 0.0  ;;  %2892 = vmatprep.mubr.bf16.mxu0 %v16197_v1  ;;  %3014 = vmatpush1.bf16.msra.mxu0 %v16224_v2  ;;  %v16215_v1 = vld [vmem:[%s17819_s19 + $0x2dc] ss:$40 sps:$4 sm:$0xff]  }
 0x178   : > { %v994_v17 = vpack.c.bf16 %v952_v12, %v950_v11  ;;  %3015 = vmatprep.subr.bf16.mxu0 %v16232_v5 }
 0x179   : > { %v995_v19 = vpack.c.bf16 %v953_v15, %v951_v14  ;;  %v861_v20 = vpop.f32.mrb[44].mxu0  ;;  %v16217_v14 = vld [vmem:[%s17819_s19 + $0x2d8] ss:$40 sps:$4 sm:$0xff]  }
 0x17a   : > { %v862_v23 = vadd.f32 %v861_v20, %v18235_v61  ;;  %v863_v24 = vpop.f32.mrb[45].mxu0 }
 0x17b   : > { %v864_v26 = vadd.f32 %v863_v24, %v18238_v62  ;;  %v865_v27 = vpop.f32.mrb[46].mxu0  ;;  %1330 = vmatprep.mubr.bf16.mxu1 %v995_v19  ;;  %3016 = vmatpush1.bf16.msra.mxu0 %v16230_v13 }
 0x17c   : > { %v866_v28 = vadd.f32 %v865_v27, %v18235_v61  ;;  %v867_v29 = vpop.f32.mrb[47].mxu0  ;;  %1331 = vmatmul.mubr.bf16.gmra.mrb[40].mxu1 %v994_v17  ;;  %3017 = vmatprep.subr.bf16.mxu0 %v16238_v16  ;;  %v954_v31 = vmax.f32 %v862_v23, 0.0  ;;  %v16221_v17 = vld [vmem:[%s17819_s19 + $0x32c] ss:$40 sps:$4 sm:$0xff]  }
 0x17d   : > { %v868_v30 = vadd.f32 %v867_v29, %v18238_v62  ;;  %v955_v34 = vmax.f32 %v864_v26, 0.0 }
 0x17e   : > { %v956_v32 = vmax.f32 %v866_v28, 0.0  ;;  %2893 = vmatmul.mubr.bf16.gmra.mrb[88].mxu0 %v16199_v18 }
 0x17f   : > { %v957_v35 = vmax.f32 %v868_v30, 0.0  ;;  %2902 = vmatprep.mubr.bf16.mxu0 %v16203_v21  ;;  %3018 = vmatpush1.bf16.msra.mxu0 %v16236_v22  ;;  %v16223_v30 = vld [vmem:[%s17819_s19 + $0x328] ss:$40 sps:$4 sm:$0xff]  }
 0x180   : > { %v996_v37 = vpack.c.bf16 %v956_v32, %v954_v31  ;;  %3019 = vmatprep.subr.bf16.mxu0 %v16244_v25 }
 0x181   : > { %v997_v39 = vpack.c.bf16 %v957_v35, %v955_v34  ;;  %v871_v40 = vpop.f32.mrb[48].mxu0 }
 0x182   : > { %v872_v43 = vadd.f32 %v871_v40, %v18235_v61  ;;  %v873_v44 = vpop.f32.mrb[49].mxu0 }
 0x183   : > { %v874_v46 = vadd.f32 %v873_v44, %v18238_v62  ;;  %v875_v47 = vpop.f32.mrb[50].mxu0  ;;  %1340 = vmatprep.mubr.bf16.mxu1 %v997_v39  ;;  %3020 = vmatpush1.bf16.msra.mxu0 %v16242_v33  ;;  %v16227_v33 = vld [vmem:[%s17819_s19 + $0x37c] ss:$40 sps:$4 sm:$0xff]  }
 0x184   : > { %v876_v48 = vadd.f32 %v875_v47, %v18235_v61  ;;  %v877_v49 = vpop.f32.mrb[51].mxu0  ;;  %1341 = vmatmul.mubr.bf16.gmra.mrb[44].mxu1 %v996_v37  ;;  %3021 = vmatprep.subr.bf16.mxu0 %v16250_v36  ;;  %v958_v51 = vmax.f32 %v872_v43, 0.0 }
 0x185   : > { %v878_v50 = vadd.f32 %v877_v49, %v18238_v62  ;;  %v959_v54 = vmax.f32 %v874_v46, 0.0  ;;  %v16229_v46 = vld [vmem:[%s17819_s19 + $0x378] ss:$40 sps:$4 sm:$0xff]  }
 0x186   : > { %v960_v52 = vmax.f32 %v876_v48, 0.0  ;;  %2903 = vmatmul.mubr.bf16.gmra.mrb[92].mxu0 %v16205_v38  ;;  %v16239_v48 = vld [vmem:[%s17819_s19 + $0x41c] ss:$40 sps:$4 sm:$0xff]   ;;  %v16241_v49 = vld [vmem:[%s17819_s19 + $0x418] ss:$40 sps:$4 sm:$0xff]  }
 0x187   : > { %v961_v55 = vmax.f32 %v878_v50, 0.0  ;;  %2912 = vmatprep.mubr.bf16.mxu0 %v16209_v41  ;;  %3022 = vmatpush1.bf16.msra.mxu0 %v16248_v42  ;;  %v16245_v50 = vld [vmem:[%s17819_s19 + $0x46c] ss:$40 sps:$4 sm:$0xff]  }
 0x188   : > { %v998_v57 = vpack.c.bf16 %v960_v52, %v958_v51  ;;  %3023 = vmatprep.subr.bf16.mxu0 %v16256_v45  ;;  %v16247_v51 = vld [vmem:[%s17819_s19 + $0x468] ss:$40 sps:$4 sm:$0xff]   ;;  %v16251_v52 = vld [vmem:[%s17819_s19 + $0x4bc] ss:$40 sps:$4 sm:$0xff]  }
 0x189   : > { %v999_v63 = vpack.c.bf16 %v961_v55, %v959_v54  ;;  %v881_v0 = vpop.f32.mrb[52].mxu0  ;;  %v18442_v54 = vld [vmem:[%s17819_s19 + $0x14] ss:$40 sps:$4 sm:$0xff]   ;;  %v18446_v55 = vld [vmem:[%s17819_s19 + $0x10] ss:$40 sps:$4 sm:$0xff]  }
 0x18a   : > { %v882_v2 = vadd.f32 %v881_v0, %v18235_v61  ;;  %v883_v3 = vpop.f32.mrb[53].mxu0  ;;  %v1469_v0 = vld [vmem:[%s17819_s19 + $0xb0] sm:$0xff] }
 0x18b   : > { %v884_v4 = vadd.f32 %v883_v3, %v18238_v62  ;;  %v885_v5 = vpop.f32.mrb[54].mxu0  ;;  %1350 = vmatprep.mubr.bf16.mxu1 %v999_v63  ;;  %3024 = vmatpush1.bf16.msra.mxu0 %v16254_v53  ;;  %v16253_v53 = vld [vmem:[%s17819_s19 + $0x4b8] ss:$40 sps:$4 sm:$0xff]  }
 0x18c   : > { %v886_v6 = vadd.f32 %v885_v5, %v18235_v61  ;;  %v887_v7 = vpop.f32.mrb[55].mxu0  ;;  %1351 = vmatmul.mubr.bf16.gmra.mrb[48].mxu1 %v998_v57  ;;  %4187 = vmatprep.subr.bf16.mxu0 %v16262_v56  ;;  %v962_v9 = vmax.f32 %v882_v2, 0.0  ;;  %v16260_v56 = vld [vmem:[%s21513_s2 + $0x300] ss:$8 sps:$4 sm:$0xff]   ;;  %v18452_v57 = vld [vmem:[%s17819_s19 + $0x64] ss:$40 sps:$4 sm:$0xff]  }
 0x18d   : > { %v888_v8 = vadd.f32 %v887_v7, %v18238_v62  ;;  %v963_v11 = vmax.f32 %v884_v4, 0.0  ;;  %v16266_v63 = vld [vmem:[%s21513_s2 + $0x310] ss:$8 sps:$4 sm:$0xff]   ;;  %v16273_v2 = vld [vmem:[%s21513_s2 + $0x324] ss:$8 sps:$4 sm:$0xff]  }
 0x18e   : > { %v964_v10 = vmax.f32 %v886_v6, 0.0  ;;  %2913 = vmatmul.mubr.bf16.gmra.mrb[96].mxu0 %v16211_v60  ;;  %v16268_v60 = vld [vmem:[%s21513_s2 + $0x314] ss:$8 sps:$4 sm:$0xff]   ;;  %v18468_v3 = vld [vmem:[%s17819_s19 + $0x60] ss:$40 sps:$4 sm:$0xff]  }
 0x18f   : > { %v965_v12 = vmax.f32 %v888_v8, 0.0  ;;  %2922 = vmatprep.mubr.bf16.mxu0 %v16215_v1  ;;  %v1472_v1 = vld [vmem:[%s17819_s19 + $0xd8] sm:$0xff]  ;;  %v16271_v5 = vld [vmem:[%s21513_s2 + $0x320] ss:$8 sps:$4 sm:$0xff]   ;;  %v16285_v8 = vld [vmem:[%s21513_s2 + $0x344] ss:$8 sps:$4 sm:$0xff]  }
 0x190   : > { %v1000_v13 = vpack.c.bf16 %v964_v10, %v962_v9  ;;  %v18470_v4 = vcombine.high %v1469_v0, %v1472_v1  ;;  %v16279_v6 = vld [vmem:[%s21513_s2 + $0x334] ss:$8 sps:$4 sm:$0xff]   ;;  %v16277_v7 = vld [vmem:[%s21513_s2 + $0x330] ss:$8 sps:$4 sm:$0xff]   ;;  %v16274_v9 = vld [vmem:[%s17819_s19 + $0x104] ss:$40 sps:$4 sm:$0xff]  }
 0x191   : > { %v1001_v15 = vpack.c.bf16 %v965_v12, %v963_v11  ;;  %v891_v16 = vpop.f32.mrb[56].mxu0  ;;  %v16283_v10 = vld [vmem:[%s21513_s2 + $0x340] ss:$8 sps:$4 sm:$0xff]   ;;  %v18490_v11 = vcombine.low %v1469_v0, %v1472_v1  ;;  %v16291_v12 = vld [vmem:[%s21513_s2 + $0x354] ss:$8 sps:$4 sm:$0xff]  }
 0x192   : > { %v892_v18 = vadd.f32 %v891_v16, %v18235_v61  ;;  %v893_v19 = vpop.f32.mrb[57].mxu0  ;;  %v16280_v16 = vld [vmem:[%s17819_s19 + $0x154] ss:$40 sps:$4 sm:$0xff]   ;;  %v16348_v0 = vld [vmem:[%s17819_s19 + $0x4c0] ss:$40 sps:$4 sm:$0xff]  }
 0x193   : > { %v894_v20 = vadd.f32 %v893_v19, %v18238_v62  ;;  %v895_v21 = vpop.f32.mrb[58].mxu0  ;;  %1360 = vmatprep.mubr.bf16.mxu1 %v1001_v15  ;;  %v16276_v15 = vld [vmem:[%s17819_s19 + $0x100] ss:$40 sps:$4 sm:$0xff]   ;;  %v16301_v19 = vld [vmem:[%s21513_s2 + $0x370] ss:$8 sps:$4 sm:$0xff]  }
 0x194   : > { %v896_v22 = vadd.f32 %v895_v21, %v18235_v61  ;;  %v897_v23 = vpop.f32.mrb[59].mxu0  ;;  %1361 = vmatmul.mubr.bf16.gmra.mrb[52].mxu1 %v1000_v13  ;;  %v966_v25 = vmax.f32 %v892_v18, 0.0  ;;  %v16289_v13 = vld [vmem:[%s21513_s2 + $0x350] ss:$8 sps:$4 sm:$0xff]   ;;  %v16303_v18 = vld [vmem:[%s21513_s2 + $0x374] ss:$8 sps:$4 sm:$0xff]  }
 0x195   : > { %v898_v24 = vadd.f32 %v897_v23, %v18238_v62  ;;  %v967_v27 = vmax.f32 %v894_v20, 0.0  ;;  %v16309_v20 = vld [vmem:[%s21513_s2 + $0x384] ss:$8 sps:$4 sm:$0xff]   ;;  %v16282_v21 = vld [vmem:[%s17819_s19 + $0x150] ss:$40 sps:$4 sm:$0xff]  }
 0x196   : > { %v968_v26 = vmax.f32 %v896_v22, 0.0  ;;  %2923 = vmatmul.mubr.bf16.gmra.mrb[100].mxu0 %v16217_v14  ;;  %v16297_v14 = vld [vmem:[%s21513_s2 + $0x364] ss:$8 sps:$4 sm:$0xff]   ;;  %v16307_v23 = vld [vmem:[%s21513_s2 + $0x380] ss:$8 sps:$4 sm:$0xff]  }
 0x197   : > { %v969_v28 = vmax.f32 %v898_v24, 0.0  ;;  %2932 = vmatprep.mubr.bf16.mxu0 %v16221_v17  ;;  %v16295_v17 = vld [vmem:[%s21513_s2 + $0x360] ss:$8 sps:$4 sm:$0xff]   ;;  %v16286_v22 = vld [vmem:[%s17819_s19 + $0x1a4] ss:$40 sps:$4 sm:$0xff]  }
 0x198   : > { %v1002_v29 = vpack.c.bf16 %v968_v26, %v966_v25  ;;  %v16315_v24 = vld [vmem:[%s21513_s2 + $0x394] ss:$8 sps:$4 sm:$0xff]   ;;  %v16313_v25 = vld [vmem:[%s21513_s2 + $0x390] ss:$8 sps:$4 sm:$0xff]   ;;  %v16321_v26 = vld [vmem:[%s21513_s2 + $0x3a4] ss:$8 sps:$4 sm:$0xff]  }
 0x199   : > { %v1003_v31 = vpack.c.bf16 %v969_v28, %v967_v27  ;;  %v901_v32 = vpop.f32.mrb[60].mxu0  ;;  %v16288_v27 = vld [vmem:[%s17819_s19 + $0x1a0] ss:$40 sps:$4 sm:$0xff]   ;;  %v16292_v28 = vld [vmem:[%s17819_s19 + $0x1f4] ss:$40 sps:$4 sm:$0xff]  }
 0x19a   : > { %v902_v34 = vadd.f32 %v901_v32, %v18235_v61  ;;  %v903_v35 = vpop.f32.mrb[61].mxu0  ;;  %v16333_v32 = vld [vmem:[%s21513_s2 + $0x3c4] ss:$8 sps:$4 sm:$0xff]  }
 0x19b   : > { %v904_v36 = vadd.f32 %v903_v35, %v18238_v62  ;;  %v905_v37 = vpop.f32.mrb[62].mxu0  ;;  %1370 = vmatprep.mubr.bf16.mxu1 %v1003_v31  ;;  %v16325_v31 = vld [vmem:[%s21513_s2 + $0x3b0] ss:$8 sps:$4 sm:$0xff]   ;;  %v16331_v35 = vld [vmem:[%s21513_s2 + $0x3c0] ss:$8 sps:$4 sm:$0xff]  }
 0x19c   : > { %v906_v38 = vadd.f32 %v905_v37, %v18235_v61  ;;  %v907_v39 = vpop.f32.mrb[63].mxu0  ;;  %1371 = vmatmul.mubr.bf16.gmra.mrb[56].mxu1 %v1002_v29  ;;  %v970_v41 = vmax.f32 %v902_v34, 0.0  ;;  %v16233_v61 = vld [vmem:[%s17819_s19 + $0x3cc] ss:$40 sps:$4 sm:$0xff]   ;;  %v16319_v29 = vld [vmem:[%s21513_s2 + $0x3a0] ss:$8 sps:$4 sm:$0xff]  }
 0x19d   : > { %v908_v40 = vadd.f32 %v907_v39, %v18238_v62  ;;  %v971_v43 = vmax.f32 %v904_v36, 0.0  ;;  %v16235_v62 = vld [vmem:[%s17819_s19 + $0x3c8] ss:$40 sps:$4 sm:$0xff]   ;;  %v16298_v34 = vld [vmem:[%s17819_s19 + $0x244] ss:$40 sps:$4 sm:$0xff]  }
 0x19e   : > { %v972_v42 = vmax.f32 %v906_v38, 0.0  ;;  %2933 = vmatmul.mubr.bf16.gmra.mrb[104].mxu0 %v16223_v30  ;;  %v16327_v30 = vld [vmem:[%s21513_s2 + $0x3b4] ss:$8 sps:$4 sm:$0xff]   ;;  %v16337_v37 = vld [vmem:[%s21513_s2 + $0x3d0] ss:$8 sps:$4 sm:$0xff]  }
 0x19f   : > { %v973_v44 = vmax.f32 %v908_v40, 0.0  ;;  %2942 = vmatprep.mubr.bf16.mxu0 %v16227_v33  ;;  %v16294_v33 = vld [vmem:[%s17819_s19 + $0x1f0] ss:$40 sps:$4 sm:$0xff]   ;;  %v16339_v36 = vld [vmem:[%s21513_s2 + $0x3d4] ss:$8 sps:$4 sm:$0xff]  }
 0x1a0   : > { %v1004_v45 = vpack.c.bf16 %v972_v42, %v970_v41  ;;  %v16345_v38 = vld [vmem:[%s21513_s2 + $0x3e4] ss:$8 sps:$4 sm:$0xff]   ;;  %v16300_v39 = vld [vmem:[%s17819_s19 + $0x240] ss:$40 sps:$4 sm:$0xff]   ;;  %v16304_v40 = vld [vmem:[%s17819_s19 + $0x294] ss:$40 sps:$4 sm:$0xff]  }
 0x1a1   : > { %v1005_v47 = vpack.c.bf16 %v973_v44, %v971_v43  ;;  %v16343_v41 = vld [vmem:[%s21513_s2 + $0x3e0] ss:$8 sps:$4 sm:$0xff]   ;;  %v16351_v42 = vld [vmem:[%s21513_s2 + $0x3f4] ss:$8 sps:$4 sm:$0xff]   ;;  %v16349_v43 = vld [vmem:[%s21513_s2 + $0x3f0] ss:$8 sps:$4 sm:$0xff]  }
 0x1a2   : > { %v16357_v44 = vld [vmem:[%s21513_s2 + $0x404] ss:$8 sps:$4 sm:$0xff]  }
 0x1a3   : > { %1380 = vmatprep.mubr.bf16.mxu1 %v1005_v47  ;;  %v16312_v47 = vld [vmem:[%s17819_s19 + $0x2e0] ss:$40 sps:$4 sm:$0xff]   ;;  %v16354_v1 = vld [vmem:[%s17819_s19 + $0x4] ss:$40 sps:$4 sm:$0xff]  }
 0x1a4   : > { %1381 = vmatmul.mubr.bf16.gmra.mrb[60].mxu1 %v1004_v45  ;;  %v16306_v45 = vld [vmem:[%s17819_s19 + $0x290] ss:$40 sps:$4 sm:$0xff]  }
 0x1a6   : > { %2943 = vmatmul.mubr.bf16.gmra.mrb[108].mxu0 %v16229_v46  ;;  %v16310_v46 = vld [vmem:[%s17819_s19 + $0x2e4] ss:$40 sps:$4 sm:$0xff]  }
 0x1a7   : > { %2952 = vmatprep.mubr.bf16.mxu0 %v16233_v61  ;;  %v16316_v61 = vld [vmem:[%s17819_s19 + $0x334] ss:$40 sps:$4 sm:$0xff]  }
 0x1ae   : > { %2953 = vmatmul.mubr.bf16.gmra.mrb[112].mxu0 %v16235_v62  ;;  %v16318_v62 = vld [vmem:[%s17819_s19 + $0x330] ss:$40 sps:$4 sm:$0xff]  }
 0x1af   : > { %2962 = vmatprep.mubr.bf16.mxu0 %v16239_v48  ;;  %v16322_v48 = vld [vmem:[%s17819_s19 + $0x384] ss:$40 sps:$4 sm:$0xff]  }
 0x1b6   : > { %2963 = vmatmul.mubr.bf16.gmra.mrb[116].mxu0 %v16241_v49  ;;  %v16324_v49 = vld [vmem:[%s17819_s19 + $0x380] ss:$40 sps:$4 sm:$0xff]  }
 0x1b7   : > { %2972 = vmatprep.mubr.bf16.mxu0 %v16245_v50  ;;  %v16328_v50 = vld [vmem:[%s17819_s19 + $0x3d4] ss:$40 sps:$4 sm:$0xff]  }
 0x1be   : > { %2973 = vmatmul.mubr.bf16.gmra.mrb[120].mxu0 %v16247_v51  ;;  %v16330_v51 = vld [vmem:[%s17819_s19 + $0x3d0] ss:$40 sps:$4 sm:$0xff]  }
 0x1bf   : > { %2982 = vmatprep.mubr.bf16.mxu0 %v16251_v52  ;;  %v16334_v52 = vld [vmem:[%s17819_s19 + $0x424] ss:$40 sps:$4 sm:$0xff]  }
 0x1c6   : > { %2983 = vmatmul.mubr.bf16.gmra.mrb[124].mxu0 %v16253_v53  ;;  %v16336_v53 = vld [vmem:[%s17819_s19 + $0x420] ss:$40 sps:$4 sm:$0xff]  }
 0x1c7   : > { %3025 = vmatprep.mubr.bf16.mxu0 %v18442_v54 }
 0x1ce   : > { %3026 = vmatmul.mubr.bf16.vlgmr.msra.gmra.mrb[64].mxu0 %v18446_v55 }
 0x1cf   : > { %4188 = vmatpush1.bf16.msra.mxu0 %v16260_v56  ;;  %3035 = vmatprep.mubr.bf16.mxu0 %v18452_v57  ;;  %v16340_v56 = vld [vmem:[%s17819_s19 + $0x474] ss:$40 sps:$4 sm:$0xff]  }
 0x1d0   : > { %4189 = vmatprep.subr.bf16.mxu0 %v16268_v60  ;;  %v16342_v60 = vld [vmem:[%s17819_s19 + $0x470] ss:$40 sps:$4 sm:$0xff]  }
 0x1d3   : > { %4190 = vmatpush1.bf16.msra.mxu0 %v16266_v63  ;;  %v16346_v63 = vld [vmem:[%s17819_s19 + $0x4c4] ss:$40 sps:$4 sm:$0xff]  }
 0x1d4   : > { %4191 = vmatprep.subr.bf16.mxu0 %v16273_v2  ;;  %v16352_v2 = vld [vmem:[%s17819_s19] ss:$40 sps:$4 sm:$0xff]  }
 0x1d6   : > { %3036 = vmatmul.mubr.bf16.gmra.mrb[68].mxu0 %v18468_v3 }
 0x1d7   : > { %3045 = vmatprep.mubr.bf16.mxu0 %v18470_v4  ;;  %4192 = vmatpush1.bf16.msra.mxu0 %v16271_v5  ;;  %v16355_v5 = vld [vmem:[%s21513_s2 + $0x400] ss:$8 sps:$4 sm:$0xff]  }
 0x1d8   : > { %4193 = vmatprep.subr.bf16.mxu0 %v16279_v6  ;;  %v16361_v6 = vld [vmem:[%s17819_s19 + $0x54] ss:$40 sps:$4 sm:$0xff]  }
 0x1db   : > { %4194 = vmatpush1.bf16.msra.mxu0 %v16277_v7  ;;  %v16360_v7 = vld [vmem:[%s21513_s2 + $0x414] ss:$8 sps:$4 sm:$0xff]  }
 0x1dc   : > { %4195 = vmatprep.subr.bf16.mxu0 %v16285_v8  ;;  %v16358_v8 = vld [vmem:[%s21513_s2 + $0x410] ss:$8 sps:$4 sm:$0xff]  }
 0x1de   : > { %3046 = vmatmul.mubr.bf16.gmra.mrb[72].mxu0 %v18490_v11 }
 0x1df   : > { %3055 = vmatprep.mubr.bf16.mxu0 %v16274_v9  ;;  %4196 = vmatpush1.bf16.msra.mxu0 %v16283_v10  ;;  %v16366_v9 = vld [vmem:[%s21513_s2 + $0x424] ss:$8 sps:$4 sm:$0xff]   ;;  %v16363_v10 = vld [vmem:[%s17819_s19 + $0x50] ss:$40 sps:$4 sm:$0xff]  }
 0x1e0   : > { %4197 = vmatprep.subr.bf16.mxu0 %v16291_v12  ;;  %v16364_v12 = vld [vmem:[%s21513_s2 + $0x420] ss:$8 sps:$4 sm:$0xff]  }
 0x1e3   : > { %4198 = vmatpush1.bf16.msra.mxu0 %v16289_v13  ;;  %v16367_v13 = vld [vmem:[%s17819_s19 + $0xa4] ss:$40 sps:$4 sm:$0xff]  }
 0x1e4   : > { %4199 = vmatprep.subr.bf16.mxu0 %v16297_v14  ;;  %v16371_v14 = vld [vmem:[%s21513_s2 + $0x434] ss:$8 sps:$4 sm:$0xff]  }
 0x1e6   : > { %3056 = vmatmul.mubr.bf16.gmra.mrb[76].mxu0 %v16276_v15  ;;  %v16369_v15 = vld [vmem:[%s21513_s2 + $0x430] ss:$8 sps:$4 sm:$0xff]  }
 0x1e7   : > { %3065 = vmatprep.mubr.bf16.mxu0 %v16280_v16  ;;  %4200 = vmatpush1.bf16.msra.mxu0 %v16295_v17  ;;  %v16375_v16 = vld [vmem:[%s21513_s2 + $0x444] ss:$8 sps:$4 sm:$0xff]   ;;  %v16372_v17 = vld [vmem:[%s17819_s19 + $0xa0] ss:$40 sps:$4 sm:$0xff]  }
 0x1e8   : > { %4201 = vmatprep.subr.bf16.mxu0 %v16303_v18  ;;  %v16373_v18 = vld [vmem:[%s21513_s2 + $0x440] ss:$8 sps:$4 sm:$0xff]  }
 0x1eb   : > { %4202 = vmatpush1.bf16.msra.mxu0 %v16301_v19  ;;  %v16376_v19 = vld [vmem:[%s17819_s19 + $0xf4] ss:$40 sps:$4 sm:$0xff]  }
 0x1ec   : > { %4203 = vmatprep.subr.bf16.mxu0 %v16309_v20  ;;  %v16381_v20 = vld [vmem:[%s21513_s2 + $0x454] ss:$8 sps:$4 sm:$0xff]  }
 0x1ee   : > { %3066 = vmatmul.mubr.bf16.gmra.mrb[80].mxu0 %v16282_v21  ;;  %v16379_v21 = vld [vmem:[%s21513_s2 + $0x450] ss:$8 sps:$4 sm:$0xff]  }
 0x1ef   : > { %3075 = vmatprep.mubr.bf16.mxu0 %v16286_v22  ;;  %4204 = vmatpush1.bf16.msra.mxu0 %v16307_v23  ;;  %v16384_v22 = vld [vmem:[%s21513_s2 + $0x464] ss:$8 sps:$4 sm:$0xff]   ;;  %v16378_v23 = vld [vmem:[%s17819_s19 + $0xf0] ss:$40 sps:$4 sm:$0xff]  }
 0x1f0   : > { %4205 = vmatprep.subr.bf16.mxu0 %v16315_v24  ;;  %v16382_v24 = vld [vmem:[%s21513_s2 + $0x460] ss:$8 sps:$4 sm:$0xff]  }
 0x1f3   : > { %4206 = vmatpush1.bf16.msra.mxu0 %v16313_v25  ;;  %v16385_v25 = vld [vmem:[%s17819_s19 + $0x144] ss:$40 sps:$4 sm:$0xff]  }
 0x1f4   : > { %4207 = vmatprep.subr.bf16.mxu0 %v16321_v26  ;;  %v16390_v26 = vld [vmem:[%s21513_s2 + $0x474] ss:$8 sps:$4 sm:$0xff]  }
 0x1f6   : > { %3076 = vmatmul.mubr.bf16.gmra.mrb[84].mxu0 %v16288_v27  ;;  %v16388_v27 = vld [vmem:[%s21513_s2 + $0x470] ss:$8 sps:$4 sm:$0xff]  }
 0x1f7   : > { %3085 = vmatprep.mubr.bf16.mxu0 %v16292_v28  ;;  %4208 = vmatpush1.bf16.msra.mxu0 %v16319_v29  ;;  %v16396_v28 = vld [vmem:[%s21513_s2 + $0x484] ss:$8 sps:$4 sm:$0xff]   ;;  %v16387_v29 = vld [vmem:[%s17819_s19 + $0x140] ss:$40 sps:$4 sm:$0xff]  }
 0x1f8   : > { %4209 = vmatprep.subr.bf16.mxu0 %v16327_v30  ;;  %v16391_v30 = vld [vmem:[%s17819_s19 + $0x194] ss:$40 sps:$4 sm:$0xff]  }
 0x1fb   : > { %4210 = vmatpush1.bf16.msra.mxu0 %v16325_v31  ;;  %v16394_v31 = vld [vmem:[%s21513_s2 + $0x480] ss:$8 sps:$4 sm:$0xff]  }
 0x1fc   : > { %4211 = vmatprep.subr.bf16.mxu0 %v16333_v32  ;;  %v16399_v32 = vld [vmem:[%s21513_s2 + $0x494] ss:$8 sps:$4 sm:$0xff]  }
 0x1fe   : > { %3086 = vmatmul.mubr.bf16.gmra.mrb[88].mxu0 %v16294_v33  ;;  %v16397_v33 = vld [vmem:[%s21513_s2 + $0x490] ss:$8 sps:$4 sm:$0xff]  }
 0x1ff   : > { %3095 = vmatprep.mubr.bf16.mxu0 %v16298_v34  ;;  %4212 = vmatpush1.bf16.msra.mxu0 %v16331_v35  ;;  %v16405_v34 = vld [vmem:[%s21513_s2 + $0x4a4] ss:$8 sps:$4 sm:$0xff]   ;;  %v16393_v35 = vld [vmem:[%s17819_s19 + $0x190] ss:$40 sps:$4 sm:$0xff]  }
 0x200   : > { %4213 = vmatprep.subr.bf16.mxu0 %v16339_v36  ;;  %v18660_v36 = vld [vmem:[%s17819_s19 + $0x1e4] ss:$40 sps:$4 sm:$0xff]  }
 0x203   : > { %4214 = vmatpush1.bf16.msra.mxu0 %v16337_v37  ;;  %v16403_v37 = vld [vmem:[%s21513_s2 + $0x4a0] ss:$8 sps:$4 sm:$0xff]  }
 0x204   : > { %4215 = vmatprep.subr.bf16.mxu0 %v16345_v38  ;;  %v16410_v38 = vld [vmem:[%s21513_s2 + $0x4b4] ss:$8 sps:$4 sm:$0xff]  }
 0x206   : > { %3096 = vmatmul.mubr.bf16.gmra.mrb[92].mxu0 %v16300_v39  ;;  %v16408_v39 = vld [vmem:[%s21513_s2 + $0x4b0] ss:$8 sps:$4 sm:$0xff]  }
 0x207   : > { %3105 = vmatprep.mubr.bf16.mxu0 %v16304_v40  ;;  %4216 = vmatpush1.bf16.msra.mxu0 %v16343_v41  ;;  %v16414_v40 = vld [vmem:[%s21513_s2 + $0x4c4] ss:$8 sps:$4 sm:$0xff]   ;;  %v18676_v41 = vld [vmem:[%s17819_s19 + $0x1e0] ss:$40 sps:$4 sm:$0xff]  }
 0x208   : > { %4217 = vmatprep.subr.bf16.mxu0 %v16351_v42  ;;  %v18679_v42 = vld [vmem:[%s17819_s19 + $0x234] ss:$40 sps:$4 sm:$0xff]  }
 0x20b   : > { %4218 = vmatpush1.bf16.msra.mxu0 %v16349_v43  ;;  %v16412_v43 = vld [vmem:[%s21513_s2 + $0x4c0] ss:$8 sps:$4 sm:$0xff]  }
 0x20c   : > { %4320 = vmatprep.subr.bf16.mxu0 %v16357_v44  ;;  %v16420_v44 = vld [vmem:[%s21513_s2 + $0x4d4] ss:$8 sps:$4 sm:$0xff]  }
 0x20e   : > { %3106 = vmatmul.mubr.bf16.gmra.mrb[96].mxu0 %v16306_v45  ;;  %v16418_v45 = vld [vmem:[%s21513_s2 + $0x4d0] ss:$8 sps:$4 sm:$0xff]  }
 0x20f   : > { %3115 = vmatprep.mubr.bf16.mxu0 %v16310_v46  ;;  %v16423_v46 = vld [vmem:[%s21513_s2 + $0x4e4] ss:$8 sps:$4 sm:$0xff]  }
 0x216   : > { %3116 = vmatmul.mubr.bf16.gmra.mrb[100].mxu0 %v16312_v47  ;;  %v18696_v47 = vld [vmem:[%s17819_s19 + $0x230] ss:$40 sps:$4 sm:$0xff]  }
 0x217   : > { %3125 = vmatprep.mubr.bf16.mxu0 %v16316_v61  ;;  %v18699_v61 = vld [vmem:[%s17819_s19 + $0x284] ss:$40 sps:$4 sm:$0xff]  }
 0x21e   : > { %3126 = vmatmul.mubr.bf16.gmra.mrb[104].mxu0 %v16318_v62  ;;  %v16421_v62 = vld [vmem:[%s21513_s2 + $0x4e0] ss:$8 sps:$4 sm:$0xff]  }
 0x21f   : > { %3135 = vmatprep.mubr.bf16.mxu0 %v16322_v48  ;;  %v16429_v48 = vld [vmem:[%s21513_s2 + $0x4f4] ss:$8 sps:$4 sm:$0xff]  }
 0x226   : > { %3136 = vmatmul.mubr.bf16.gmra.mrb[108].mxu0 %v16324_v49  ;;  %v16427_v49 = vld [vmem:[%s21513_s2 + $0x4f0] ss:$8 sps:$4 sm:$0xff]  }
 0x227   : > { %3145 = vmatprep.mubr.bf16.mxu0 %v16328_v50  ;;  %v16435_v50 = vld [vmem:[%s21513_s2 + $0x504] ss:$8 sps:$4 sm:$0xff]  }
 0x22e   : > { %3146 = vmatmul.mubr.bf16.gmra.mrb[112].mxu0 %v16330_v51  ;;  %v18716_v51 = vld [vmem:[%s17819_s19 + $0x280] ss:$40 sps:$4 sm:$0xff]  }
 0x22f   : > { %3155 = vmatprep.mubr.bf16.mxu0 %v16334_v52  ;;  %v18719_v52 = vld [vmem:[%s17819_s19 + $0x2d4] ss:$40 sps:$4 sm:$0xff]  }
 0x236   : > { %3156 = vmatmul.mubr.bf16.gmra.mrb[116].mxu0 %v16336_v53  ;;  %v18724_v53 = vld [vmem:[%s17819_s19 + $0x2d0] ss:$40 sps:$4 sm:$0xff]  }
 0x237   : > { %3165 = vmatprep.mubr.bf16.mxu0 %v16340_v56  ;;  %v16432_v56 = vld [vmem:[%s17819_s19 + $0xc] ss:$40 sps:$4 sm:$0xff]  }
 0x23e   : > { %3166 = vmatmul.mubr.bf16.gmra.mrb[120].mxu0 %v16342_v60  ;;  %v16430_v60 = vld [vmem:[%s17819_s19 + $0x8] ss:$40 sps:$4 sm:$0xff]  }
 0x23f   : > { %3175 = vmatprep.mubr.bf16.mxu0 %v16346_v63  ;;  %v16433_v63 = vld [vmem:[%s21513_s2 + $0x500] ss:$8 sps:$4 sm:$0xff]  }
 0x246   : > { %3176 = vmatmul.mubr.bf16.gmra.mrb[124].mxu0 %v16348_v0  ;;  %v16439_v0 = vld [vmem:[%s17819_s19 + $0x5c] ss:$40 sps:$4 sm:$0xff]  }
 0x247   : > { %4219 = vmatprep.mubr.bf16.mxu0 %v16354_v1  ;;  %v16438_v1 = vld [vmem:[%s21513_s2 + $0x514] ss:$8 sps:$4 sm:$0xff]  }
 0x24e   : > { %4220 = vmatmul.mubr.bf16.vlgmr.msra.gmra.mrb[88].mxu0 %v16352_v2  ;;  %v16436_v2 = vld [vmem:[%s21513_s2 + $0x510] ss:$8 sps:$4 sm:$0xff]  }
 0x24f   : > { %4321 = vmatpush1.bf16.msra.mxu0 %v16355_v5  ;;  %4229 = vmatprep.mubr.bf16.mxu0 %v16361_v6  ;;  %v16444_v5 = vld [vmem:[%s21513_s2 + $0x524] ss:$8 sps:$4 sm:$0xff]   ;;  %v16441_v6 = vld [vmem:[%s17819_s19 + $0x58] ss:$40 sps:$4 sm:$0xff]  }
 0x250   : > { %4322 = vmatprep.subr.bf16.mxu0 %v16360_v7  ;;  %v16442_v7 = vld [vmem:[%s21513_s2 + $0x520] ss:$8 sps:$4 sm:$0xff]  }
 0x253   : > { %4323 = vmatpush1.bf16.msra.mxu0 %v16358_v8  ;;  %v16445_v8 = vld [vmem:[%s17819_s19 + $0xac] ss:$40 sps:$4 sm:$0xff]  }
 0x254   : > { %4324 = vmatprep.subr.bf16.mxu0 %v16366_v9  ;;  %v16449_v9 = vld [vmem:[%s21513_s2 + $0x534] ss:$8 sps:$4 sm:$0xff]  }
 0x256   : > { %4230 = vmatmul.mubr.bf16.gmra.mrb[92].mxu0 %v16363_v10  ;;  %v16447_v10 = vld [vmem:[%s21513_s2 + $0x530] ss:$8 sps:$4 sm:$0xff]  }
 0x257   : > { %4325 = vmatpush1.bf16.msra.mxu0 %v16364_v12  ;;  %4239 = vmatprep.mubr.bf16.mxu0 %v16367_v13  ;;  %v16453_v12 = vld [vmem:[%s21513_s2 + $0x544] ss:$8 sps:$4 sm:$0xff]   ;;  %v16450_v13 = vld [vmem:[%s17819_s19 + $0xa8] ss:$40 sps:$4 sm:$0xff]  }
 0x258   : > { %4326 = vmatprep.subr.bf16.mxu0 %v16371_v14  ;;  %v16451_v14 = vld [vmem:[%s21513_s2 + $0x540] ss:$8 sps:$4 sm:$0xff]  }
 0x25b   : > { %4327 = vmatpush1.bf16.msra.mxu0 %v16369_v15  ;;  %v16454_v15 = vld [vmem:[%s17819_s19 + $0xfc] ss:$40 sps:$4 sm:$0xff]  }
 0x25c   : > { %4328 = vmatprep.subr.bf16.mxu0 %v16375_v16  ;;  %v16459_v16 = vld [vmem:[%s21513_s2 + $0x554] ss:$8 sps:$4 sm:$0xff]  }
 0x25e   : > { %4240 = vmatmul.mubr.bf16.gmra.mrb[96].mxu0 %v16372_v17  ;;  %v16457_v17 = vld [vmem:[%s21513_s2 + $0x550] ss:$8 sps:$4 sm:$0xff]  }
 0x25f   : > { %4329 = vmatpush1.bf16.msra.mxu0 %v16373_v18  ;;  %4249 = vmatprep.mubr.bf16.mxu0 %v16376_v19  ;;  %v16462_v18 = vld [vmem:[%s21513_s2 + $0x564] ss:$8 sps:$4 sm:$0xff]   ;;  %v16456_v19 = vld [vmem:[%s17819_s19 + $0xf8] ss:$40 sps:$4 sm:$0xff]  }
 0x260   : > { %4330 = vmatprep.subr.bf16.mxu0 %v16381_v20  ;;  %v16460_v20 = vld [vmem:[%s21513_s2 + $0x560] ss:$8 sps:$4 sm:$0xff]  }
 0x263   : > { %4331 = vmatpush1.bf16.msra.mxu0 %v16379_v21  ;;  %v16463_v21 = vld [vmem:[%s17819_s19 + $0x14c] ss:$40 sps:$4 sm:$0xff]  }
 0x264   : > { %4332 = vmatprep.subr.bf16.mxu0 %v16384_v22  ;;  %v16468_v22 = vld [vmem:[%s21513_s2 + $0x574] ss:$8 sps:$4 sm:$0xff]  }
 0x266   : > { %4250 = vmatmul.mubr.bf16.gmra.mrb[100].mxu0 %v16378_v23  ;;  %v16466_v23 = vld [vmem:[%s21513_s2 + $0x570] ss:$8 sps:$4 sm:$0xff]  }
 0x267   : > { %4259 = vmatprep.mubr.bf16.mxu0 %v16385_v25  ;;  %4333 = vmatpush1.bf16.msra.mxu0 %v16382_v24  ;;  %v16474_v24 = vld [vmem:[%s21513_s2 + $0x584] ss:$8 sps:$4 sm:$0xff]   ;;  %v16465_v25 = vld [vmem:[%s17819_s19 + $0x148] ss:$40 sps:$4 sm:$0xff]  }
 0x268   : > { %4334 = vmatprep.subr.bf16.mxu0 %v16390_v26  ;;  %v16469_v26 = vld [vmem:[%s17819_s19 + $0x19c] ss:$40 sps:$4 sm:$0xff]  }
 0x26b   : > { %4335 = vmatpush1.bf16.msra.mxu0 %v16388_v27  ;;  %v16472_v27 = vld [vmem:[%s21513_s2 + $0x580] ss:$8 sps:$4 sm:$0xff]  }
 0x26c   : > { %4336 = vmatprep.subr.bf16.mxu0 %v16396_v28  ;;  %v16477_v28 = vld [vmem:[%s21513_s2 + $0x594] ss:$8 sps:$4 sm:$0xff]  }
 0x26e   : > { %4260 = vmatmul.mubr.bf16.gmra.mrb[104].mxu0 %v16387_v29  ;;  %v16475_v29 = vld [vmem:[%s21513_s2 + $0x590] ss:$8 sps:$4 sm:$0xff]  }
 0x26f   : > { %4269 = vmatprep.mubr.bf16.mxu0 %v16391_v30  ;;  %4337 = vmatpush1.bf16.msra.mxu0 %v16394_v31  ;;  %v16483_v30 = vld [vmem:[%s21513_s2 + $0x5a4] ss:$8 sps:$4 sm:$0xff]   ;;  %v16471_v31 = vld [vmem:[%s17819_s19 + $0x198] ss:$40 sps:$4 sm:$0xff]  }
 0x270   : > { %4338 = vmatprep.subr.bf16.mxu0 %v16399_v32  ;;  %v18800_v32 = vld [vmem:[%s17819_s19 + $0x1ec] ss:$40 sps:$4 sm:$0xff]  }
 0x273   : > { %4339 = vmatpush1.bf16.msra.mxu0 %v16397_v33  ;;  %v16481_v33 = vld [vmem:[%s21513_s2 + $0x5a0] ss:$8 sps:$4 sm:$0xff]  }
 0x274   : > { %4340 = vmatprep.subr.bf16.mxu0 %v16405_v34  ;;  %v16488_v34 = vld [vmem:[%s21513_s2 + $0x5b4] ss:$8 sps:$4 sm:$0xff]  }
 0x276   : > { %4270 = vmatmul.mubr.bf16.gmra.mrb[108].mxu0 %v16393_v35  ;;  %v16486_v35 = vld [vmem:[%s21513_s2 + $0x5b0] ss:$8 sps:$4 sm:$0xff]  }
 0x277   : > { %4279 = vmatprep.mubr.bf16.mxu0 %v18660_v36  ;;  %4341 = vmatpush1.bf16.msra.mxu0 %v16403_v37  ;;  %v16492_v37 = vld [vmem:[%s21513_s2 + $0x5c4] ss:$8 sps:$4 sm:$0xff]  }
 0x278   : > { %4342 = vmatprep.subr.bf16.mxu0 %v16410_v38  ;;  %v18816_v38 = vld [vmem:[%s17819_s19 + $0x1e8] ss:$40 sps:$4 sm:$0xff]  }
 0x27b   : > { %4343 = vmatpush1.bf16.msra.mxu0 %v16408_v39  ;;  %v18819_v39 = vld [vmem:[%s17819_s19 + $0x23c] ss:$40 sps:$4 sm:$0xff]  }
 0x27c   : > { %4344 = vmatprep.subr.bf16.mxu0 %v16414_v40  ;;  %v16490_v40 = vld [vmem:[%s21513_s2 + $0x5c0] ss:$8 sps:$4 sm:$0xff]  }
 0x27e   : > { %4280 = vmatmul.mubr.bf16.gmra.mrb[112].mxu0 %v18676_v41 }
 0x27f   : > { %4289 = vmatprep.mubr.bf16.mxu0 %v18679_v42  ;;  %4345 = vmatpush1.bf16.msra.mxu0 %v16412_v43  ;;  %v16498_v43 = vld [vmem:[%s21513_s2 + $0x5d4] ss:$8 sps:$4 sm:$0xff]  }
 0x280   : > { %4346 = vmatprep.subr.bf16.mxu0 %v16420_v44  ;;  %v16496_v44 = vld [vmem:[%s21513_s2 + $0x5d0] ss:$8 sps:$4 sm:$0xff]  }
 0x283   : > { %4347 = vmatpush1.bf16.msra.mxu0 %v16418_v45  ;;  %v16501_v45 = vld [vmem:[%s21513_s2 + $0x5e4] ss:$8 sps:$4 sm:$0xff]  }
 0x284   : > { %4348 = vmatprep.subr.bf16.mxu0 %v16423_v46  ;;  %v18836_v46 = vld [vmem:[%s17819_s19 + $0x238] ss:$40 sps:$4 sm:$0xff]  }
 0x286   : > { %4290 = vmatmul.mubr.bf16.gmra.mrb[116].mxu0 %v18696_v47 }
 0x287   : > { %4299 = vmatprep.mubr.bf16.mxu0 %v18699_v61  ;;  %4349 = vmatpush1.bf16.msra.mxu0 %v16421_v62  ;;  %v18839_v62 = vld [vmem:[%s17819_s19 + $0x28c] ss:$40 sps:$4 sm:$0xff]  }
 0x288   : > { %4350 = vmatprep.subr.bf16.mxu0 %v16429_v48  ;;  %v16499_v48 = vld [vmem:[%s21513_s2 + $0x5e0] ss:$8 sps:$4 sm:$0xff]  }
 0x28b   : > { %4351 = vmatpush1.bf16.msra.mxu0 %v16427_v49  ;;  %v16507_v49 = vld [vmem:[%s21513_s2 + $0x5f4] ss:$8 sps:$4 sm:$0xff]  }
 0x28c   : > { %4453 = vmatprep.subr.bf16.mxu0 %v16435_v50  ;;  %v16505_v50 = vld [vmem:[%s21513_s2 + $0x5f0] ss:$8 sps:$4 sm:$0xff]  }
 0x28e   : > { %4300 = vmatmul.mubr.bf16.gmra.mrb[120].mxu0 %v18716_v51 }
 0x28f   : > { %4309 = vmatprep.mubr.bf16.mxu0 %v18719_v52 }
 0x296   : > { %4310 = vmatmul.mubr.bf16.gmra.mrb[124].mxu0 %v18724_v53 }
 0x297   : > { %4352 = vmatprep.mubr.bf16.mxu0 %v16432_v56  ;;  %v16510_v56 = vld [vmem:[%s21513_s2 + $0x604] ss:$8 sps:$4 sm:$0xff]  }
 0x29e   : > { %4353 = vmatmul.mubr.bf16.vlgmr.msra.gmra.mrb[88].mxu0 %v16430_v60  ;;  %v18856_v60 = vld [vmem:[%s17819_s19 + $0x288] ss:$40 sps:$4 sm:$0xff]  }
 0x29f   : > { %4454 = vmatpush1.bf16.msra.mxu0 %v16433_v63  ;;  %4362 = vmatprep.mubr.bf16.mxu0 %v16439_v0  ;;  %v18859_v63 = vld [vmem:[%s17819_s19 + $0x2dc] ss:$40 sps:$4 sm:$0xff]   ;;  %v18864_v0 = vld [vmem:[%s17819_s19 + $0x2d8] ss:$40 sps:$4 sm:$0xff]  }
 0x2a0   : > { %4455 = vmatprep.subr.bf16.mxu0 %v16438_v1  ;;  %v16508_v1 = vld [vmem:[%s21513_s2 + $0x600] ss:$8 sps:$4 sm:$0xff]  }
 0x2a3   : > { %4456 = vmatpush1.bf16.msra.mxu0 %v16436_v2  ;;  %v16513_v2 = vld [vmem:[%s21513_s2 + $0x614] ss:$8 sps:$4 sm:$0xff]  }
 0x2a4   : > { %4457 = vmatprep.subr.bf16.mxu0 %v16444_v5  ;;  %v16511_v5 = vld [vmem:[%s21513_s2 + $0x610] ss:$8 sps:$4 sm:$0xff]  }
 0x2a6   : > { %4363 = vmatmul.mubr.bf16.gmra.mrb[92].mxu0 %v16441_v6  ;;  %v16514_v6 = vld [vmem:[%s21513_s2 + $0x620] ss:$8 sps:$4 sm:$0xff]  }
 0x2a7   : > { %4458 = vmatpush1.bf16.msra.mxu0 %v16442_v7  ;;  %4372 = vmatprep.mubr.bf16.mxu0 %v16445_v8  ;;  %v16523_v7 = vld [vmem:[%s21513_s2 + $0x644] ss:$8 sps:$4 sm:$0xff]   ;;  %v16521_v8 = vld [vmem:[%s21513_s2 + $0x640] ss:$8 sps:$4 sm:$0xff]  }
 0x2a8   : > { %4459 = vmatprep.subr.bf16.mxu0 %v16449_v9  ;;  %v16527_v9 = vld [vmem:[%s21513_s2 + $0x650] ss:$8 sps:$4 sm:$0xff]  }
 0x2ab   : > { %4460 = vmatpush1.bf16.msra.mxu0 %v16447_v10  ;;  %v16532_v10 = vld [vmem:[%s21513_s2 + $0x664] ss:$8 sps:$4 sm:$0xff]  }
 0x2ac   : > { %4461 = vmatprep.subr.bf16.mxu0 %v16453_v12  ;;  %v16526_v12 = vld [vmem:[%s17819_s19 + $0x100] ss:$40 sps:$4 sm:$0xff]  }
 0x2ae   : > { %4373 = vmatmul.mubr.bf16.gmra.mrb[96].mxu0 %v16450_v13  ;;  %v16530_v13 = vld [vmem:[%s21513_s2 + $0x660] ss:$8 sps:$4 sm:$0xff]  }
 0x2af   : > { %4462 = vmatpush1.bf16.msra.mxu0 %v16451_v14  ;;  %4382 = vmatprep.mubr.bf16.mxu0 %v16454_v15  ;;  %v16538_v14 = vld [vmem:[%s21513_s2 + $0x674] ss:$8 sps:$4 sm:$0xff]   ;;  %v16536_v15 = vld [vmem:[%s21513_s2 + $0x670] ss:$8 sps:$4 sm:$0xff]  }
 0x2b0   : > { %4463 = vmatprep.subr.bf16.mxu0 %v16459_v16  ;;  %v16544_v16 = vld [vmem:[%s21513_s2 + $0x684] ss:$8 sps:$4 sm:$0xff]  }
 0x2b3   : > { %4464 = vmatpush1.bf16.msra.mxu0 %v16457_v17  ;;  %v16535_v17 = vld [vmem:[%s17819_s19 + $0x150] ss:$40 sps:$4 sm:$0xff]  }
 0x2b4   : > { %4465 = vmatprep.subr.bf16.mxu0 %v16462_v18  ;;  %v16539_v18 = vld [vmem:[%s17819_s19 + $0x1a4] ss:$40 sps:$4 sm:$0xff]  }
 0x2b6   : > { %4383 = vmatmul.mubr.bf16.gmra.mrb[100].mxu0 %v16456_v19  ;;  %v16542_v19 = vld [vmem:[%s21513_s2 + $0x680] ss:$8 sps:$4 sm:$0xff]  }
 0x2b7   : > { %4392 = vmatprep.mubr.bf16.mxu0 %v16463_v21  ;;  %4466 = vmatpush1.bf16.msra.mxu0 %v16460_v20  ;;  %v16547_v20 = vld [vmem:[%s21513_s2 + $0x694] ss:$8 sps:$4 sm:$0xff]   ;;  %v16545_v21 = vld [vmem:[%s21513_s2 + $0x690] ss:$8 sps:$4 sm:$0xff]  }
 0x2b8   : > { %4467 = vmatprep.subr.bf16.mxu0 %v16468_v22  ;;  %v16553_v22 = vld [vmem:[%s21513_s2 + $0x6a4] ss:$8 sps:$4 sm:$0xff]  }
 0x2bb   : > { %4468 = vmatpush1.bf16.msra.mxu0 %v16466_v23  ;;  %v16541_v23 = vld [vmem:[%s17819_s19 + $0x1a0] ss:$40 sps:$4 sm:$0xff]  }
 0x2bc   : > { %4469 = vmatprep.subr.bf16.mxu0 %v16474_v24  ;;  %v18940_v24 = vld [vmem:[%s17819_s19 + $0x1f4] ss:$40 sps:$4 sm:$0xff]  }
 0x2be   : > { %4393 = vmatmul.mubr.bf16.gmra.mrb[104].mxu0 %v16465_v25  ;;  %v16551_v25 = vld [vmem:[%s21513_s2 + $0x6a0] ss:$8 sps:$4 sm:$0xff]  }
 0x2bf   : > { %4402 = vmatprep.mubr.bf16.mxu0 %v16469_v26  ;;  %4470 = vmatpush1.bf16.msra.mxu0 %v16472_v27  ;;  %v16558_v26 = vld [vmem:[%s21513_s2 + $0x6b4] ss:$8 sps:$4 sm:$0xff]   ;;  %v16556_v27 = vld [vmem:[%s21513_s2 + $0x6b0] ss:$8 sps:$4 sm:$0xff]  }
 0x2c0   : > { %4471 = vmatprep.subr.bf16.mxu0 %v16477_v28  ;;  %v16562_v28 = vld [vmem:[%s21513_s2 + $0x6c4] ss:$8 sps:$4 sm:$0xff]  }
 0x2c3   : > { %4472 = vmatpush1.bf16.msra.mxu0 %v16475_v29  ;;  %v18956_v29 = vld [vmem:[%s17819_s19 + $0x1f0] ss:$40 sps:$4 sm:$0xff]  }
 0x2c4   : > { %4473 = vmatprep.subr.bf16.mxu0 %v16483_v30  ;;  %v18959_v30 = vld [vmem:[%s17819_s19 + $0x244] ss:$40 sps:$4 sm:$0xff]  }
 0x2c6   : > { %4403 = vmatmul.mubr.bf16.gmra.mrb[108].mxu0 %v16471_v31  ;;  %v16560_v31 = vld [vmem:[%s21513_s2 + $0x6c0] ss:$8 sps:$4 sm:$0xff]  }
 0x2c7   : > { %4412 = vmatprep.mubr.bf16.mxu0 %v18800_v32  ;;  %4474 = vmatpush1.bf16.msra.mxu0 %v16481_v33  ;;  %v16568_v33 = vld [vmem:[%s21513_s2 + $0x6d4] ss:$8 sps:$4 sm:$0xff]  }
 0x2c8   : > { %4475 = vmatprep.subr.bf16.mxu0 %v16488_v34  ;;  %v16566_v34 = vld [vmem:[%s21513_s2 + $0x6d0] ss:$8 sps:$4 sm:$0xff]  }
 0x2cb   : > { %4476 = vmatpush1.bf16.msra.mxu0 %v16486_v35  ;;  %v16571_v35 = vld [vmem:[%s21513_s2 + $0x6e4] ss:$8 sps:$4 sm:$0xff]  }
 0x2cc   : > { %4477 = vmatprep.subr.bf16.mxu0 %v16492_v37  ;;  %v18976_v37 = vld [vmem:[%s17819_s19 + $0x240] ss:$40 sps:$4 sm:$0xff]  }
 0x2ce   : > { %4413 = vmatmul.mubr.bf16.gmra.mrb[112].mxu0 %v18816_v38 }
 0x2cf   : > { %4422 = vmatprep.mubr.bf16.mxu0 %v18819_v39  ;;  %4478 = vmatpush1.bf16.msra.mxu0 %v16490_v40  ;;  %v18979_v40 = vld [vmem:[%s17819_s19 + $0x294] ss:$40 sps:$4 sm:$0xff]  }
 0x2d0   : > { %4479 = vmatprep.subr.bf16.mxu0 %v16498_v43  ;;  %v16569_v43 = vld [vmem:[%s21513_s2 + $0x6e0] ss:$8 sps:$4 sm:$0xff]  }
 0x2d3   : > { %4480 = vmatpush1.bf16.msra.mxu0 %v16496_v44  ;;  %v16577_v44 = vld [vmem:[%s21513_s2 + $0x6f4] ss:$8 sps:$4 sm:$0xff]  }
 0x2d4   : > { %4481 = vmatprep.subr.bf16.mxu0 %v16501_v45  ;;  %v16575_v45 = vld [vmem:[%s21513_s2 + $0x6f0] ss:$8 sps:$4 sm:$0xff]  }
 0x2d6   : > { %4423 = vmatmul.mubr.bf16.gmra.mrb[116].mxu0 %v18836_v46 }
 0x2d7   : > { %4432 = vmatprep.mubr.bf16.mxu0 %v18839_v62  ;;  %4482 = vmatpush1.bf16.msra.mxu0 %v16499_v48  ;;  %v16580_v48 = vld [vmem:[%s21513_s2 + $0x704] ss:$8 sps:$4 sm:$0xff]  }
 0x2d8   : > { %4483 = vmatprep.subr.bf16.mxu0 %v16507_v49  ;;  %v18996_v49 = vld [vmem:[%s17819_s19 + $0x290] ss:$40 sps:$4 sm:$0xff]  }
 0x2db   : > { %4484 = vmatpush1.bf16.msra.mxu0 %v16505_v50  ;;  %v18999_v50 = vld [vmem:[%s17819_s19 + $0x2e4] ss:$40 sps:$4 sm:$0xff]  }
 0x2dc   : > { %5643 = vmatprep.subr.bf16.mxu0 %v16510_v56  ;;  %v19004_v56 = vld [vmem:[%s17819_s19 + $0x2e0] ss:$40 sps:$4 sm:$0xff]  }
 0x2de   : > { %4433 = vmatmul.mubr.bf16.gmra.mrb[120].mxu0 %v18856_v60 }
 0x2df   : > { %4442 = vmatprep.mubr.bf16.mxu0 %v18859_v63 }
 0x2e6   : > { %4443 = vmatmul.mubr.bf16.gmra.mrb[124].mxu0 %v18864_v0 }
 0x2e7   : > { %4485 = vmatprep.mubr.bf16.mxu0 %v18442_v54  ;;  %v16516_v54 = vld [vmem:[%s21513_s2 + $0x624] ss:$8 sps:$4 sm:$0xff]  }
 0x2ee   : > { %4486 = vmatmul.mubr.bf16.vlgmr.msra.gmra.mrb[88].mxu0 %v18446_v55  ;;  %v16519_v55 = vld [vmem:[%s21513_s2 + $0x634] ss:$8 sps:$4 sm:$0xff]  }
 0x2ef   : > { %5644 = vmatpush1.bf16.msra.mxu0 %v16508_v1  ;;  %4495 = vmatprep.mubr.bf16.mxu0 %v18452_v57  ;;  %v16517_v57 = vld [vmem:[%s21513_s2 + $0x630] ss:$8 sps:$4 sm:$0xff]   ;;  %v16578_v1 = vld [vmem:[%s21513_s2 + $0x700] ss:$8 sps:$4 sm:$0xff]  }
 0x2f0   : > { %5645 = vmatprep.subr.bf16.mxu0 %v16513_v2  ;;  %v16583_v2 = vld [vmem:[%s21513_s2 + $0x714] ss:$8 sps:$4 sm:$0xff]  }
 0x2f3   : > { %5646 = vmatpush1.bf16.msra.mxu0 %v16511_v5  ;;  %v16581_v5 = vld [vmem:[%s21513_s2 + $0x710] ss:$8 sps:$4 sm:$0xff]  }
 0x2f4   : > { %5647 = vmatprep.subr.bf16.mxu0 %v16516_v54  ;;  %v16584_v54 = vld [vmem:[%s21513_s2 + $0x720] ss:$8 sps:$4 sm:$0xff]  }
 0x2f6   : > { %4496 = vmatmul.mubr.bf16.gmra.mrb[92].mxu0 %v18468_v3  ;;  %v16524_v3 = vld [vmem:[%s17819_s19 + $0x104] ss:$40 sps:$4 sm:$0xff]  }
 0x2f7   : > { %5648 = vmatpush1.bf16.msra.mxu0 %v16514_v6  ;;  %4505 = vmatprep.mubr.bf16.mxu0 %v18470_v4  ;;  %v16529_v4 = vld [vmem:[%s21513_s2 + $0x654] ss:$8 sps:$4 sm:$0xff]   ;;  %v16592_v6 = vld [vmem:[%s21513_s2 + $0x744] ss:$8 sps:$4 sm:$0xff]  }
 0x2f8   : > { %5649 = vmatprep.subr.bf16.mxu0 %v16519_v55  ;;  %v16590_v55 = vld [vmem:[%s21513_s2 + $0x740] ss:$8 sps:$4 sm:$0xff]  }
 0x2fb   : > { %5650 = vmatpush1.bf16.msra.mxu0 %v16517_v57  ;;  %v16598_v57 = vld [vmem:[%s21513_s2 + $0x764] ss:$8 sps:$4 sm:$0xff]  }
 0x2fc   : > { %5651 = vmatprep.subr.bf16.mxu0 %v16523_v7  ;;  %v16596_v7 = vld [vmem:[%s21513_s2 + $0x760] ss:$8 sps:$4 sm:$0xff]  }
 0x2fe   : > { %4506 = vmatmul.mubr.bf16.gmra.mrb[96].mxu0 %v18490_v11  ;;  %v16533_v11 = vld [vmem:[%s17819_s19 + $0x154] ss:$40 sps:$4 sm:$0xff]  }
 0x2ff   : > { %5652 = vmatpush1.bf16.msra.mxu0 %v16521_v8  ;;  %4515 = vmatprep.mubr.bf16.mxu0 %v16524_v3  ;;  %v16602_v8 = vld [vmem:[%s21513_s2 + $0x770] ss:$8 sps:$4 sm:$0xff]   ;;  %v16610_v3 = vld [vmem:[%s21513_s2 + $0x784] ss:$8 sps:$4 sm:$0xff]  }
 0x300   : > { %5653 = vmatprep.subr.bf16.mxu0 %v16529_v4  ;;  %v16601_v4 = vld [vmem:[%s17819_s19 + $0x320] ss:$40 sps:$4 sm:$0xff]  }
 0x303   : > { %5654 = vmatpush1.bf16.msra.mxu0 %v16527_v9  ;;  %v16605_v9 = vld [vmem:[%s17819_s19 + $0x374] ss:$40 sps:$4 sm:$0xff]  }
 0x304   : > { %5655 = vmatprep.subr.bf16.mxu0 %v16532_v10  ;;  %v16613_v10 = vld [vmem:[%s21513_s2 + $0x794] ss:$8 sps:$4 sm:$0xff]  }
 0x306   : > { %4516 = vmatmul.mubr.bf16.gmra.mrb[100].mxu0 %v16526_v12  ;;  %v16611_v12 = vld [vmem:[%s21513_s2 + $0x790] ss:$8 sps:$4 sm:$0xff]  }
 0x307   : > { %4525 = vmatprep.mubr.bf16.mxu0 %v16533_v11  ;;  %5656 = vmatpush1.bf16.msra.mxu0 %v16530_v13  ;;  %v16619_v13 = vld [vmem:[%s21513_s2 + $0x7a4] ss:$8 sps:$4 sm:$0xff]   ;;  %v16607_v11 = vld [vmem:[%s17819_s19 + $0x370] ss:$40 sps:$4 sm:$0xff]  }
 0x308   : > { %5657 = vmatprep.subr.bf16.mxu0 %v16538_v14  ;;  %v16614_v14 = vld [vmem:[%s17819_s19 + $0x3c4] ss:$40 sps:$4 sm:$0xff]  }
 0x30b   : > { %5658 = vmatpush1.bf16.msra.mxu0 %v16536_v15  ;;  %v16617_v15 = vld [vmem:[%s21513_s2 + $0x7a0] ss:$8 sps:$4 sm:$0xff]  }
 0x30c   : > { %5659 = vmatprep.subr.bf16.mxu0 %v16544_v16  ;;  %v16624_v16 = vld [vmem:[%s21513_s2 + $0x7b4] ss:$8 sps:$4 sm:$0xff]  }
 0x30e   : > { %4526 = vmatmul.mubr.bf16.gmra.mrb[104].mxu0 %v16535_v17  ;;  %v16622_v17 = vld [vmem:[%s21513_s2 + $0x7b0] ss:$8 sps:$4 sm:$0xff]  }
 0x30f   : > { %4535 = vmatprep.mubr.bf16.mxu0 %v16539_v18  ;;  %5660 = vmatpush1.bf16.msra.mxu0 %v16542_v19  ;;  %v16628_v18 = vld [vmem:[%s21513_s2 + $0x7c4] ss:$8 sps:$4 sm:$0xff]   ;;  %v16616_v19 = vld [vmem:[%s17819_s19 + $0x3c0] ss:$40 sps:$4 sm:$0xff]  }
 0x310   : > { %5661 = vmatprep.subr.bf16.mxu0 %v16547_v20  ;;  %v16620_v20 = vld [vmem:[%s17819_s19 + $0x414] ss:$40 sps:$4 sm:$0xff]  }
 0x313   : > { %5662 = vmatpush1.bf16.msra.mxu0 %v16545_v21  ;;  %v16626_v21 = vld [vmem:[%s21513_s2 + $0x7c0] ss:$8 sps:$4 sm:$0xff]  }
 0x314   : > { %5663 = vmatprep.subr.bf16.mxu0 %v16553_v22  ;;  %v16634_v22 = vld [vmem:[%s21513_s2 + $0x7d4] ss:$8 sps:$4 sm:$0xff]  }
 0x316   : > { %4536 = vmatmul.mubr.bf16.gmra.mrb[108].mxu0 %v16541_v23  ;;  %v16632_v23 = vld [vmem:[%s21513_s2 + $0x7d0] ss:$8 sps:$4 sm:$0xff]  }
 0x317   : > { %4545 = vmatprep.mubr.bf16.mxu0 %v18940_v24  ;;  %5664 = vmatpush1.bf16.msra.mxu0 %v16551_v25  ;;  %v16637_v25 = vld [vmem:[%s21513_s2 + $0x7e4] ss:$8 sps:$4 sm:$0xff]  }
 0x318   : > { %5665 = vmatprep.subr.bf16.mxu0 %v16558_v26  ;;  %v16625_v26 = vld [vmem:[%s17819_s19 + $0x410] ss:$40 sps:$4 sm:$0xff]  }
 0x31b   : > { %5666 = vmatpush1.bf16.msra.mxu0 %v16556_v27  ;;  %v16629_v27 = vld [vmem:[%s17819_s19 + $0x464] ss:$40 sps:$4 sm:$0xff]  }
 0x31c   : > { %5667 = vmatprep.subr.bf16.mxu0 %v16562_v28  ;;  %v16635_v28 = vld [vmem:[%s21513_s2 + $0x7e0] ss:$8 sps:$4 sm:$0xff]  }
 0x31e   : > { %4546 = vmatmul.mubr.bf16.gmra.mrb[112].mxu0 %v18956_v29 }
 0x31f   : > { %4555 = vmatprep.mubr.bf16.mxu0 %v18959_v30  ;;  %5668 = vmatpush1.bf16.msra.mxu0 %v16560_v31  ;;  %v16643_v31 = vld [vmem:[%s21513_s2 + $0x7f4] ss:$8 sps:$4 sm:$0xff]  }
 0x320   : > { %5669 = vmatprep.subr.bf16.mxu0 %v16568_v33  ;;  %v16641_v33 = vld [vmem:[%s21513_s2 + $0x7f0] ss:$8 sps:$4 sm:$0xff]  }
 0x323   : > { %5670 = vmatpush1.bf16.msra.mxu0 %v16566_v34  ;;  %v16646_v34 = vld [vmem:[%s21513_s2 + $0x804] ss:$8 sps:$4 sm:$0xff]  }
 0x324   : > { %5671 = vmatprep.subr.bf16.mxu0 %v16571_v35  ;;  %v16631_v35 = vld [vmem:[%s17819_s19 + $0x460] ss:$40 sps:$4 sm:$0xff]  }
 0x326   : > { %4556 = vmatmul.mubr.bf16.gmra.mrb[116].mxu0 %v18976_v37 }
 0x327   : > { %4565 = vmatprep.mubr.bf16.mxu0 %v18979_v40  ;;  %5672 = vmatpush1.bf16.msra.mxu0 %v16569_v43  ;;  %v16638_v43 = vld [vmem:[%s17819_s19 + $0x4b4] ss:$40 sps:$4 sm:$0xff]  }
 0x328   : > { %5673 = vmatprep.subr.bf16.mxu0 %v16577_v44  ;;  %v16640_v44 = vld [vmem:[%s17819_s19 + $0x4b0] ss:$40 sps:$4 sm:$0xff]  }
 0x32b   : > { %5674 = vmatpush1.bf16.msra.mxu0 %v16575_v45  ;;  %v16644_v45 = vld [vmem:[%s21513_s2 + $0x800] ss:$8 sps:$4 sm:$0xff]  }
 0x32c   : > { %5776 = vmatprep.subr.bf16.mxu0 %v16580_v48  ;;  %v16649_v48 = vld [vmem:[%s21513_s2 + $0x814] ss:$8 sps:$4 sm:$0xff]  }
 0x32e   : > { %4566 = vmatmul.mubr.bf16.gmra.mrb[120].mxu0 %v18996_v49 }
 0x32f   : > { %4575 = vmatprep.mubr.bf16.mxu0 %v18999_v50 }
 0x336   : > { %4576 = vmatmul.mubr.bf16.gmra.mrb[124].mxu0 %v19004_v56 }
 0x337   : > { %5675 = vmatprep.mubr.bf16.mxu0 %v18660_v36  ;;  %v16586_v36 = vld [vmem:[%s21513_s2 + $0x724] ss:$8 sps:$4 sm:$0xff]  }
 0x33e   : > { %5676 = vmatmul.mubr.bf16.vlgmr.msra.gmra.mrb[64].mxu0 %v18676_v41  ;;  %v16589_v41 = vld [vmem:[%s21513_s2 + $0x734] ss:$8 sps:$4 sm:$0xff]  }
 0x33f   : > { %5777 = vmatpush1.bf16.msra.mxu0 %v16578_v1  ;;  %5685 = vmatprep.mubr.bf16.mxu0 %v18679_v42  ;;  %v16587_v42 = vld [vmem:[%s21513_s2 + $0x730] ss:$8 sps:$4 sm:$0xff]  }
 0x340   : > { %5778 = vmatprep.subr.bf16.mxu0 %v16583_v2  ;;  %v16647_v1 = vld [vmem:[%s21513_s2 + $0x810] ss:$8 sps:$4 sm:$0xff]   ;;  %v16650_v2 = vld [vmem:[%s21513_s2 + $0x820] ss:$8 sps:$4 sm:$0xff]  }
 0x343   : > { %5779 = vmatpush1.bf16.msra.mxu0 %v16581_v5  ;;  %v16658_v5 = vld [vmem:[%s21513_s2 + $0x844] ss:$8 sps:$4 sm:$0xff]  }
 0x344   : > { %5780 = vmatprep.subr.bf16.mxu0 %v16586_v36  ;;  %v16656_v36 = vld [vmem:[%s21513_s2 + $0x840] ss:$8 sps:$4 sm:$0xff]  }
 0x346   : > { %5686 = vmatmul.mubr.bf16.gmra.mrb[68].mxu0 %v18696_v47  ;;  %v16595_v47 = vld [vmem:[%s21513_s2 + $0x754] ss:$8 sps:$4 sm:$0xff]  }
 0x347   : > { %5781 = vmatpush1.bf16.msra.mxu0 %v16584_v54  ;;  %5695 = vmatprep.mubr.bf16.mxu0 %v18699_v61  ;;  %v16593_v61 = vld [vmem:[%s21513_s2 + $0x750] ss:$8 sps:$4 sm:$0xff]   ;;  %v16664_v54 = vld [vmem:[%s21513_s2 + $0x864] ss:$8 sps:$4 sm:$0xff]  }
 0x348   : > { %5782 = vmatprep.subr.bf16.mxu0 %v16589_v41  ;;  %v16662_v41 = vld [vmem:[%s21513_s2 + $0x860] ss:$8 sps:$4 sm:$0xff]  }
 0x34b   : > { %5783 = vmatpush1.bf16.msra.mxu0 %v16587_v42  ;;  %v16665_v42 = vld [vmem:[%s17819_s19 + $0x32c] ss:$40 sps:$4 sm:$0xff]  }
 0x34c   : > { %5784 = vmatprep.subr.bf16.mxu0 %v16592_v6  ;;  %v16730_v6 = vld [vmem:[%s21516_s5 + $0x104] ss:$8 sps:$4 sm:$0xff]  }
 0x34d   : > { %6592 = vmatprep.subr.bf16.mxu1 %v16730_v6  ;;  %v16767_v6 = vld [vmem:[%s21516_s5 + $0x1d0] ss:$8 sps:$4 sm:$0xff]  }
 0x34e   : > { %5696 = vmatmul.mubr.bf16.gmra.mrb[72].mxu0 %v18716_v51  ;;  %v16599_v51 = vld [vmem:[%s17819_s19 + $0x324] ss:$40 sps:$4 sm:$0xff]  }
 0x34f   : > { %5785 = vmatpush1.bf16.msra.mxu0 %v16590_v55  ;;  %5705 = vmatprep.mubr.bf16.mxu0 %v18719_v52  ;;  %v16604_v52 = vld [vmem:[%s21513_s2 + $0x774] ss:$8 sps:$4 sm:$0xff]   ;;  %v16668_v55 = vld [vmem:[%s21513_s2 + $0x870] ss:$8 sps:$4 sm:$0xff]  }
 0x350   : > { %5786 = vmatprep.subr.bf16.mxu0 %v16595_v47  ;;  %v16733_v47 = vld [vmem:[%s21516_s5 + $0x114] ss:$8 sps:$4 sm:$0xff]  }
 0x353   : > { %5787 = vmatpush1.bf16.msra.mxu0 %v16593_v61  ;;  %v16731_v61 = vld [vmem:[%s21516_s5 + $0x110] ss:$8 sps:$4 sm:$0xff]  }
 0x354   : > { %5788 = vmatprep.subr.bf16.mxu0 %v16598_v57  ;;  %v16667_v57 = vld [vmem:[%s17819_s19 + $0x328] ss:$40 sps:$4 sm:$0xff]  }
 0x356   : > { %5706 = vmatmul.mubr.bf16.gmra.mrb[76].mxu0 %v18724_v53  ;;  %v16608_v53 = vld [vmem:[%s21513_s2 + $0x780] ss:$8 sps:$4 sm:$0xff]  }
 0x357   : > { %5715 = vmatprep.mubr.bf16.mxu0 %v16599_v51  ;;  %5789 = vmatpush1.bf16.msra.mxu0 %v16596_v7  ;;  %v16736_v7 = vld [vmem:[%s21516_s5 + $0x124] ss:$8 sps:$4 sm:$0xff]  }
 0x358   : > { %5790 = vmatprep.subr.bf16.mxu0 %v16604_v52  ;;  %v16671_v51 = vld [vmem:[%s17819_s19 + $0x37c] ss:$40 sps:$4 sm:$0xff]   ;;  %v16674_v52 = vld [vmem:[%s21513_s2 + $0x880] ss:$8 sps:$4 sm:$0xff]  }
 0x35b   : > { %5791 = vmatpush1.bf16.msra.mxu0 %v16602_v8  ;;  %v16679_v8 = vld [vmem:[%s21513_s2 + $0x894] ss:$8 sps:$4 sm:$0xff]  }
 0x35c   : > { %5792 = vmatprep.subr.bf16.mxu0 %v16610_v3  ;;  %v16734_v3 = vld [vmem:[%s21516_s5 + $0x120] ss:$8 sps:$4 sm:$0xff]  }
 0x35e   : > { %5716 = vmatmul.mubr.bf16.gmra.mrb[80].mxu0 %v16601_v4  ;;  %v16739_v4 = vld [vmem:[%s21516_s5 + $0x134] ss:$8 sps:$4 sm:$0xff]  }
 0x35f   : > { %5725 = vmatprep.mubr.bf16.mxu0 %v16605_v9  ;;  %5793 = vmatpush1.bf16.msra.mxu0 %v16608_v53  ;;  %v16677_v9 = vld [vmem:[%s21513_s2 + $0x890] ss:$8 sps:$4 sm:$0xff]   ;;  %v16685_v53 = vld [vmem:[%s21513_s2 + $0x8a4] ss:$8 sps:$4 sm:$0xff]  }
 0x360   : > { %5794 = vmatprep.subr.bf16.mxu0 %v16613_v10  ;;  %v16737_v10 = vld [vmem:[%s21516_s5 + $0x130] ss:$8 sps:$4 sm:$0xff]  }
 0x363   : > { %5795 = vmatpush1.bf16.msra.mxu0 %v16611_v12  ;;  %v16673_v12 = vld [vmem:[%s17819_s19 + $0x378] ss:$40 sps:$4 sm:$0xff]  }
 0x364   : > { %5796 = vmatprep.subr.bf16.mxu0 %v16619_v13  ;;  %v16742_v13 = vld [vmem:[%s21516_s5 + $0x144] ss:$8 sps:$4 sm:$0xff]  }
 0x366   : > { %5726 = vmatmul.mubr.bf16.gmra.mrb[84].mxu0 %v16607_v11  ;;  %v16680_v11 = vld [vmem:[%s17819_s19 + $0x3cc] ss:$40 sps:$4 sm:$0xff]  }
 0x367   : > { %5735 = vmatprep.mubr.bf16.mxu0 %v16614_v14  ;;  %5797 = vmatpush1.bf16.msra.mxu0 %v16617_v15  ;;  %v16683_v14 = vld [vmem:[%s21513_s2 + $0x8a0] ss:$8 sps:$4 sm:$0xff]   ;;  %v16690_v15 = vld [vmem:[%s21513_s2 + $0x8b4] ss:$8 sps:$4 sm:$0xff]  }
 0x368   : > { %5798 = vmatprep.subr.bf16.mxu0 %v16624_v16  ;;  %v16740_v16 = vld [vmem:[%s21516_s5 + $0x140] ss:$8 sps:$4 sm:$0xff]  }
 0x36b   : > { %5799 = vmatpush1.bf16.msra.mxu0 %v16622_v17  ;;  %v16745_v17 = vld [vmem:[%s21516_s5 + $0x154] ss:$8 sps:$4 sm:$0xff]  }
 0x36c   : > { %5800 = vmatprep.subr.bf16.mxu0 %v16628_v18  ;;  %v16688_v18 = vld [vmem:[%s21513_s2 + $0x8b0] ss:$8 sps:$4 sm:$0xff]  }
 0x36e   : > { %5736 = vmatmul.mubr.bf16.gmra.mrb[88].mxu0 %v16616_v19  ;;  %v16694_v19 = vld [vmem:[%s21513_s2 + $0x8c4] ss:$8 sps:$4 sm:$0xff]  }
 0x36f   : > { %5745 = vmatprep.mubr.bf16.mxu0 %v16620_v20  ;;  %5801 = vmatpush1.bf16.msra.mxu0 %v16626_v21  ;;  %v16743_v20 = vld [vmem:[%s21516_s5 + $0x150] ss:$8 sps:$4 sm:$0xff]  }
 0x370   : > { %5802 = vmatprep.subr.bf16.mxu0 %v16634_v22  ;;  %v16682_v21 = vld [vmem:[%s17819_s19 + $0x3c8] ss:$40 sps:$4 sm:$0xff]   ;;  %v16748_v22 = vld [vmem:[%s21516_s5 + $0x164] ss:$8 sps:$4 sm:$0xff]  }
 0x373   : > { %5803 = vmatpush1.bf16.msra.mxu0 %v16632_v23  ;;  %v16686_v23 = vld [vmem:[%s17819_s19 + $0x41c] ss:$40 sps:$4 sm:$0xff]  }
 0x374   : > { %5804 = vmatprep.subr.bf16.mxu0 %v16637_v25  ;;  %v16692_v25 = vld [vmem:[%s21513_s2 + $0x8c0] ss:$8 sps:$4 sm:$0xff]  }
 0x376   : > { %5746 = vmatmul.mubr.bf16.gmra.mrb[92].mxu0 %v16625_v26  ;;  %v16700_v26 = vld [vmem:[%s21513_s2 + $0x8d4] ss:$8 sps:$4 sm:$0xff]  }
 0x377   : > { %5755 = vmatprep.mubr.bf16.mxu0 %v16629_v27  ;;  %5805 = vmatpush1.bf16.msra.mxu0 %v16635_v28  ;;  %v16746_v27 = vld [vmem:[%s21516_s5 + $0x160] ss:$8 sps:$4 sm:$0xff]   ;;  %v16751_v28 = vld [vmem:[%s21516_s5 + $0x174] ss:$8 sps:$4 sm:$0xff]  }
 0x378   : > { %5806 = vmatprep.subr.bf16.mxu0 %v16643_v31  ;;  %v16698_v31 = vld [vmem:[%s21513_s2 + $0x8d0] ss:$8 sps:$4 sm:$0xff]  }
 0x37b   : > { %5807 = vmatpush1.bf16.msra.mxu0 %v16641_v33  ;;  %v16703_v33 = vld [vmem:[%s21513_s2 + $0x8e4] ss:$8 sps:$4 sm:$0xff]  }
 0x37c   : > { %5909 = vmatprep.subr.bf16.mxu0 %v16646_v34  ;;  %v16749_v34 = vld [vmem:[%s21516_s5 + $0x170] ss:$8 sps:$4 sm:$0xff]  }
 0x37e   : > { %5756 = vmatmul.mubr.bf16.gmra.mrb[96].mxu0 %v16631_v35  ;;  %v16691_v35 = vld [vmem:[%s17819_s19 + $0x418] ss:$40 sps:$4 sm:$0xff]  }
 0x37f   : > { %5765 = vmatprep.mubr.bf16.mxu0 %v16638_v43  ;;  %v16754_v43 = vld [vmem:[%s21516_s5 + $0x184] ss:$8 sps:$4 sm:$0xff]  }
 0x386   : > { %5766 = vmatmul.mubr.bf16.gmra.mrb[100].mxu0 %v16640_v44  ;;  %v16695_v44 = vld [vmem:[%s17819_s19 + $0x46c] ss:$40 sps:$4 sm:$0xff]  }
 0x387   : > { %5808 = vmatprep.mubr.bf16.mxu0 %v18800_v32  ;;  %v16652_v32 = vld [vmem:[%s21513_s2 + $0x824] ss:$8 sps:$4 sm:$0xff]  }
 0x38e   : > { %5809 = vmatmul.mubr.bf16.vlgmr.msra.gmra.mrb[64].mxu0 %v18816_v38  ;;  %v16655_v38 = vld [vmem:[%s21513_s2 + $0x834] ss:$8 sps:$4 sm:$0xff]  }
 0x38f   : > { %5910 = vmatpush1.bf16.msra.mxu0 %v16644_v45  ;;  %5818 = vmatprep.mubr.bf16.mxu0 %v18819_v39  ;;  %v16653_v39 = vld [vmem:[%s21513_s2 + $0x830] ss:$8 sps:$4 sm:$0xff]   ;;  %v16701_v45 = vld [vmem:[%s21513_s2 + $0x8e0] ss:$8 sps:$4 sm:$0xff]  }
 0x390   : > { %5911 = vmatprep.subr.bf16.mxu0 %v16649_v48  ;;  %v16709_v48 = vld [vmem:[%s21513_s2 + $0x8f4] ss:$8 sps:$4 sm:$0xff]  }
 0x393   : > { %5912 = vmatpush1.bf16.msra.mxu0 %v16647_v1  ;;  %v16752_v1 = vld [vmem:[%s21516_s5 + $0x180] ss:$8 sps:$4 sm:$0xff]  }
 0x394   : > { %5913 = vmatprep.subr.bf16.mxu0 %v16652_v32  ;;  %v16757_v32 = vld [vmem:[%s21516_s5 + $0x194] ss:$8 sps:$4 sm:$0xff]  }
 0x396   : > { %5819 = vmatmul.mubr.bf16.gmra.mrb[68].mxu0 %v18836_v46  ;;  %v16661_v46 = vld [vmem:[%s21513_s2 + $0x854] ss:$8 sps:$4 sm:$0xff]  }
 0x397   : > { %5914 = vmatpush1.bf16.msra.mxu0 %v16650_v2  ;;  %5828 = vmatprep.mubr.bf16.mxu0 %v18839_v62  ;;  %v16659_v62 = vld [vmem:[%s21513_s2 + $0x850] ss:$8 sps:$4 sm:$0xff]  }
 0x398   : > { %5915 = vmatprep.subr.bf16.mxu0 %v16655_v38  ;;  %v16707_v2 = vld [vmem:[%s21513_s2 + $0x8f0] ss:$8 sps:$4 sm:$0xff]  }
 0x399   : > { %v16755_v38 = vld [vmem:[%s21516_s5 + $0x190] ss:$8 sps:$4 sm:$0xff]  }
 0x39b   : > { %5916 = vmatpush1.bf16.msra.mxu0 %v16653_v39  ;;  %v16697_v39 = vld [vmem:[%s17819_s19 + $0x468] ss:$40 sps:$4 sm:$0xff]  }
 0x39c   : > { %5917 = vmatprep.subr.bf16.mxu0 %v16658_v5  ;;  %v16760_v5 = vld [vmem:[%s21516_s5 + $0x1a4] ss:$8 sps:$4 sm:$0xff]  }
 0x39e   : > { %5829 = vmatmul.mubr.bf16.gmra.mrb[72].mxu0 %v18856_v60  ;;  %v16670_v60 = vld [vmem:[%s21513_s2 + $0x874] ss:$8 sps:$4 sm:$0xff]  }
 0x39f   : > { %5918 = vmatpush1.bf16.msra.mxu0 %v16656_v36  ;;  %5838 = vmatprep.mubr.bf16.mxu0 %v18859_v63  ;;  %v16728_v63 = vld [vmem:[%s21516_s5 + $0x100] ss:$8 sps:$4 sm:$0xff]   ;;  %v16704_v36 = vld [vmem:[%s17819_s19 + $0x4bc] ss:$40 sps:$4 sm:$0xff]  }
 0x3a0   : > { %5919 = vmatprep.subr.bf16.mxu0 %v16661_v46  ;;  %6593 = vmatpush1.bf16.msra.mxu1 %v16728_v63  ;;  %v16758_v46 = vld [vmem:[%s21516_s5 + $0x1a0] ss:$8 sps:$4 sm:$0xff]   ;;  %v16769_v63 = vld [vmem:[%s21516_s5 + $0x1d4] ss:$8 sps:$4 sm:$0xff]  }
 0x3a1   : > { %6594 = vmatprep.subr.bf16.mxu1 %v16733_v47  ;;  %v14046_v47 = vld [vmem:[%s21517_s6 + $0x1] ss:$4 sm:$0x3] }
 0x3a3   : > { %5920 = vmatpush1.bf16.msra.mxu0 %v16659_v62  ;;  %v16763_v62 = vld [vmem:[%s21516_s5 + $0x1b4] ss:$8 sps:$4 sm:$0xff]  }
 0x3a4   : > { %5921 = vmatprep.subr.bf16.mxu0 %v16664_v54  ;;  %6595 = vmatpush1.bf16.msra.mxu1 %v16731_v61  ;;  %v16761_v54 = vld [vmem:[%s21516_s5 + $0x1b0] ss:$8 sps:$4 sm:$0xff]   ;;  %v19335_v61 = vrot.slane %v14046_v47, %v18231_v59 }
 0x3a5   : > { %6596 = vmatprep.subr.bf16.mxu1 %v16736_v7 }
 0x3a6   : > { %5839 = vmatmul.mubr.bf16.gmra.mrb[76].mxu0 %v18864_v0  ;;  %v16676_v0 = vld [vmem:[%s21513_s2 + $0x884] ss:$8 sps:$4 sm:$0xff]  }
 0x3a7   : > { %5848 = vmatprep.mubr.bf16.mxu0 %v16665_v42  ;;  %5922 = vmatpush1.bf16.msra.mxu0 %v16662_v41  ;;  %v16706_v41 = vld [vmem:[%s17819_s19 + $0x4b8] ss:$40 sps:$4 sm:$0xff]   ;;  %v16766_v42 = vld [vmem:[%s21516_s5 + $0x1c4] ss:$8 sps:$4 sm:$0xff]  }
 0x3a8   : > { %5923 = vmatprep.subr.bf16.mxu0 %v16670_v60  ;;  %6597 = vmatpush1.bf16.msra.mxu1 %v16734_v3  ;;  %v16764_v60 = vld [vmem:[%s21516_s5 + $0x1c0] ss:$8 sps:$4 sm:$0xff]  }
 0x3a9   : > { %6598 = vmatprep.subr.bf16.mxu1 %v16739_v4 }
 0x3ab   : > { %5924 = vmatpush1.bf16.msra.mxu0 %v16668_v55  ;;  %v16772_v55 = vld [vmem:[%s21516_s5 + $0x1e4] ss:$8 sps:$4 sm:$0xff]  }
 0x3ac   : > { %5925 = vmatprep.subr.bf16.mxu0 %v16676_v0  ;;  %6599 = vmatpush1.bf16.msra.mxu1 %v16737_v10  ;;  %v16770_v0 = vld [vmem:[%s21516_s5 + $0x1e0] ss:$8 sps:$4 sm:$0xff]  }
 0x3ad   : > { %6600 = vmatprep.subr.bf16.mxu1 %v16742_v13 }
 0x3ae   : > { %5849 = vmatmul.mubr.bf16.gmra.mrb[80].mxu0 %v16667_v57 }
 0x3af   : > { %5858 = vmatprep.mubr.bf16.mxu0 %v16671_v51  ;;  %5926 = vmatpush1.bf16.msra.mxu0 %v16674_v52 }
 0x3b0   : > { %5927 = vmatprep.subr.bf16.mxu0 %v16679_v8  ;;  %6601 = vmatpush1.bf16.msra.mxu1 %v16740_v16 }
 0x3b1   : > { %6602 = vmatprep.subr.bf16.mxu1 %v16745_v17 }
 0x3b3   : > { %5928 = vmatpush1.bf16.msra.mxu0 %v16677_v9 }
 0x3b4   : > { %5929 = vmatprep.subr.bf16.mxu0 %v16685_v53  ;;  %6603 = vmatpush1.bf16.msra.mxu1 %v16743_v20 }
 0x3b5   : > { %6604 = vmatprep.subr.bf16.mxu1 %v16748_v22 }
 0x3b6   : > { %5859 = vmatmul.mubr.bf16.gmra.mrb[84].mxu0 %v16673_v12 }
 0x3b7   : > { %5868 = vmatprep.mubr.bf16.mxu0 %v16680_v11  ;;  %5930 = vmatpush1.bf16.msra.mxu0 %v16683_v14 }
 0x3b8   : > { %5931 = vmatprep.subr.bf16.mxu0 %v16690_v15  ;;  %6605 = vmatpush1.bf16.msra.mxu1 %v16746_v27 }
 0x3b9   : > { %6606 = vmatprep.subr.bf16.mxu1 %v16751_v28 }
 0x3bb   : > { %5932 = vmatpush1.bf16.msra.mxu0 %v16688_v18 }
 0x3bc   : > { %5933 = vmatprep.subr.bf16.mxu0 %v16694_v19  ;;  %6607 = vmatpush1.bf16.msra.mxu1 %v16749_v34  ;;  %v16710_v34 = vld [vmem:[%s17819_s19 + $0x334] ss:$40 sps:$4 sm:$0xff]  }
 0x3bd   : > { %6608 = vmatprep.subr.bf16.mxu1 %v16754_v43 }
 0x3be   : > { %5869 = vmatmul.mubr.bf16.gmra.mrb[88].mxu0 %v16682_v21 }
 0x3bf   : > { %5878 = vmatprep.mubr.bf16.mxu0 %v16686_v23  ;;  %5934 = vmatpush1.bf16.msra.mxu0 %v16692_v25 }
 0x3c0   : > { %5935 = vmatprep.subr.bf16.mxu0 %v16700_v26  ;;  %6609 = vmatpush1.bf16.msra.mxu1 %v16752_v1 }
 0x3c1   : > { %6610 = vmatprep.subr.bf16.mxu1 %v16757_v32 }
 0x3c3   : > { %5936 = vmatpush1.bf16.msra.mxu0 %v16698_v31 }
 0x3c4   : > { %5937 = vmatprep.subr.bf16.mxu0 %v16703_v33  ;;  %6611 = vmatpush1.bf16.msra.mxu1 %v16755_v38 }
 0x3c5   : > { %6612 = vmatprep.subr.bf16.mxu1 %v16760_v5  ;;  %v16712_v5 = vld [vmem:[%s17819_s19 + $0x330] ss:$40 sps:$4 sm:$0xff]  }
 0x3c6   : > { %5879 = vmatmul.mubr.bf16.gmra.mrb[92].mxu0 %v16691_v35 }
 0x3c7   : > { %5888 = vmatprep.mubr.bf16.mxu0 %v16695_v44  ;;  %5938 = vmatpush1.bf16.msra.mxu0 %v16701_v45 }
 0x3c8   : > { %5939 = vmatprep.subr.bf16.mxu0 %v16709_v48  ;;  %6613 = vmatpush1.bf16.msra.mxu1 %v16758_v46 }
 0x3c9   : > { %6614 = vmatprep.subr.bf16.mxu1 %v16763_v62  ;;  %v16713_v62 = vld [vmem:[%s17819_s19 + $0x384] ss:$40 sps:$4 sm:$0xff]  }
 0x3cb   : > { %5940 = vmatpush1.bf16.msra.mxu0 %v16707_v2 }
 0x3cc   : > { %6615 = vmatpush1.bf16.msra.mxu1 %v16761_v54 }
 0x3cd   : > { %6616 = vmatprep.subr.bf16.mxu1 %v16766_v42 }
 0x3ce   : > { %5889 = vmatmul.mubr.bf16.gmra.mrb[96].mxu0 %v16697_v39 }
 0x3cf   : > { %5898 = vmatprep.mubr.bf16.mxu0 %v16704_v36 }
 0x3d0   : > { %6617 = vmatpush1.bf16.msra.mxu1 %v16764_v60 }
 0x3d1   : > { %6618 = vmatprep.subr.bf16.mxu1 %v16769_v63 }
 0x3d4   : > { %6619 = vmatpush1.bf16.msra.mxu1 %v16767_v6 }
 0x3d5   : > { %6620 = vmatprep.subr.bf16.mxu1 %v16772_v55 }
 0x3d6   : > { %5899 = vmatmul.mubr.bf16.gmra.mrb[100].mxu0 %v16706_v41 }
 0x3d7   : > { %5941 = vmatprep.mubr.bf16.mxu0 %v18940_v24  ;;  %v19332_v24 = vrot.slane %v14046_v47, %v18229_v58 }
 0x3d8   : > { %6621 = vmatpush1.bf16.msra.mxu1 %v16770_v0 }
 0x3de   : > { %5942 = vmatmul.mubr.bf16.vlgmr.msra.gmra.mrb[64].mxu0 %v18956_v29 }
 0x3df   : > { %5951 = vmatprep.mubr.bf16.mxu0 %v18959_v30 }
 0x3e1   : > { %v4527_v57 = vpop.f32.mrb[104].mxu0 }
 0x3e2   : > { %v6279_v7 = vadd.f32 %v19332_v24, %v4527_v57  ;;  %v4529_v51 = vpop.f32.mrb[105].mxu0 }
 0x3e3   : > { %v6280_v52 = vadd.f32 %v19335_v61, %v4529_v51  ;;  %v4531_v8 = vpop.f32.mrb[106].mxu0  ;;  %v16715_v51 = vld [vmem:[%s17819_s19 + $0x380] ss:$40 sps:$4 sm:$0xff]  }
 0x3e4   : > { %v6281_v3 = vadd.f32 %v19332_v24, %v4531_v8  ;;  %v4533_v29 = vpop.f32.mrb[107].mxu0  ;;  %v6343_v9 = vmax.f32 %v6279_v7, 0.0 }
 0x3e5   : > { %v6282_v4 = vadd.f32 %v19335_v61, %v4533_v29  ;;  %v6344_v10 = vmax.f32 %v6280_v52, 0.0 }
 0x3e6   : > { %v6345_v53 = vmax.f32 %v6281_v3, 0.0  ;;  %5952 = vmatmul.mubr.bf16.gmra.mrb[68].mxu0 %v18976_v37  ;;  %v16716_v3 = vld [vmem:[%s17819_s19 + $0x3d4] ss:$40 sps:$4 sm:$0xff]  }
 0x3e7   : > { %v6346_v12 = vmax.f32 %v6282_v4, 0.0  ;;  %5961 = vmatprep.mubr.bf16.mxu0 %v18979_v40 }
 0x3e8   : > { %v19344_v30 = vpack.c.bf16 %v6345_v53, %v6343_v9 }
 0x3e9   : > { %v19346_v13 = vpack.c.bf16 %v6346_v12, %v6344_v10  ;;  %v4537_v11 = vpop.f32.mrb[108].mxu0 }
 0x3ea   : > { %v6283_v14 = vadd.f32 %v19332_v24, %v4537_v11  ;;  %v4539_v15 = vpop.f32.mrb[109].mxu0 }
 0x3eb   : > { %v6284_v16 = vadd.f32 %v19335_v61, %v4539_v15  ;;  %v4541_v17 = vpop.f32.mrb[110].mxu0 }
 0x3ec   : > { %v6285_v18 = vadd.f32 %v19332_v24, %v4541_v17  ;;  %v4543_v19 = vpop.f32.mrb[111].mxu0  ;;  %v6347_v20 = vmax.f32 %v6283_v14, 0.0 }
 0x3ed   : > { %v6286_v37 = vadd.f32 %v19335_v61, %v4543_v19  ;;  %v6348_v40 = vmax.f32 %v6284_v16, 0.0  ;;  %v16718_v19 = vld [vmem:[%s17819_s19 + $0x3d0] ss:$40 sps:$4 sm:$0xff]  }
 0x3ee   : > { %v6349_v21 = vmax.f32 %v6285_v18, 0.0  ;;  %5962 = vmatmul.mubr.bf16.gmra.mrb[72].mxu0 %v18996_v49 }
 0x3ef   : > { %v6350_v22 = vmax.f32 %v6286_v37, 0.0  ;;  %5971 = vmatprep.mubr.bf16.mxu0 %v18999_v50 }
 0x3f0   : > { %v19354_v23 = vpack.c.bf16 %v6349_v21, %v6347_v20  ;;  %v16719_v21 = vld [vmem:[%s17819_s19 + $0x424] ss:$40 sps:$4 sm:$0xff]  }
 0x3f1   : > { %v19356_v25 = vpack.c.bf16 %v6350_v22, %v6348_v40  ;;  %v4547_v26 = vpop.f32.mrb[112].mxu0 }
 0x3f2   : > { %v6287_v27 = vadd.f32 %v19332_v24, %v4547_v26  ;;  %v4549_v28 = vpop.f32.mrb[113].mxu0 }
 0x3f3   : > { %v6288_v31 = vadd.f32 %v19335_v61, %v4549_v28  ;;  %v4551_v33 = vpop.f32.mrb[114].mxu0 }
 0x3f4   : > { %v6289_v35 = vadd.f32 %v19332_v24, %v4551_v33  ;;  %v4553_v49 = vpop.f32.mrb[115].mxu0  ;;  %v6351_v50 = vmax.f32 %v6287_v27, 0.0 }
 0x3f5   : > { %v6290_v43 = vadd.f32 %v19335_v61, %v4553_v49  ;;  %v6352_v45 = vmax.f32 %v6288_v31, 0.0  ;;  %v16721_v49 = vld [vmem:[%s17819_s19 + $0x420] ss:$40 sps:$4 sm:$0xff]  }
 0x3f6   : > { %v6353_v44 = vmax.f32 %v6289_v35, 0.0  ;;  %5972 = vmatmul.mubr.bf16.gmra.mrb[76].mxu0 %v19004_v56 }
 0x3f7   : > { %v6354_v48 = vmax.f32 %v6290_v43, 0.0  ;;  %5981 = vmatprep.mubr.bf16.mxu0 %v16710_v34  ;;  %v16722_v43 = vld [vmem:[%s17819_s19 + $0x474] ss:$40 sps:$4 sm:$0xff]  }
 0x3f8   : > { %v19364_v1 = vpack.c.bf16 %v6353_v44, %v6351_v50  ;;  %v16724_v50 = vld [vmem:[%s17819_s19 + $0x470] ss:$40 sps:$4 sm:$0xff]   ;;  %v16725_v44 = vld [vmem:[%s17819_s19 + $0x4c4] ss:$40 sps:$4 sm:$0xff]  }
 0x3f9   : > { %v19366_v32 = vpack.c.bf16 %v6354_v48, %v6352_v45  ;;  %v4557_v2 = vpop.f32.mrb[116].mxu0  ;;  %v16727_v45 = vld [vmem:[%s17819_s19 + $0x4c0] ss:$40 sps:$4 sm:$0xff]   ;;  %v16775_v48 = vld [vmem:[%s21516_s5 + $0x1f4] ss:$8 sps:$4 sm:$0xff]  }
 0x3fa   : > { %v6291_v38 = vadd.f32 %v19332_v24, %v4557_v2  ;;  %v4559_v39 = vpop.f32.mrb[117].mxu0  ;;  %v16773_v2 = vld [vmem:[%s21516_s5 + $0x1f0] ss:$8 sps:$4 sm:$0xff]   ;;  %6622 = vmatprep.subr.bf16.mxu1 %v16775_v48  ;;  %v16790_v48 = vld [vmem:[%s21514_s3 + $0x44] ss:$8 sps:$4 sm:$0xff]  }
 0x3fb   : > { %v6292_v36 = vadd.f32 %v19335_v61, %v4559_v39  ;;  %v4561_v46 = vpop.f32.mrb[118].mxu0  ;;  %6623 = vmatpush1.bf16.msra.mxu1 %v16773_v2 }
 0x3fc   : > { %v6293_v54 = vadd.f32 %v19332_v24, %v4561_v46  ;;  %v4563_v56 = vpop.f32.mrb[119].mxu0  ;;  %v6355_v42 = vmax.f32 %v6291_v38, 0.0  ;;  %v16778_v38 = vld [vmem:[%s21514_s3 + $0x4] ss:$8 sps:$4 sm:$0xff]  }
 0x3fd   : > { %v6294_v41 = vadd.f32 %v19335_v61, %v4563_v56  ;;  %v6356_v63 = vmax.f32 %v6292_v36, 0.0  ;;  %8129 = vmatprep.subr.bf16.mxu1 %v16778_v38 }
 0x3fe   : > { %v6357_v60 = vmax.f32 %v6293_v54, 0.0  ;;  %5982 = vmatmul.mubr.bf16.gmra.mrb[80].mxu0 %v16712_v5 }
 0x3ff   : > { %v6358_v6 = vmax.f32 %v6294_v41, 0.0  ;;  %5991 = vmatprep.mubr.bf16.mxu0 %v16713_v62 }
 0x400   : > { %v19374_v55 = vpack.c.bf16 %v6357_v60, %v6355_v42 }
 0x401   : > { %v19376_v47 = vpack.c.bf16 %v6358_v6, %v6356_v63  ;;  %v4567_v0 = vpop.f32.mrb[120].mxu0 }
 0x402   : > { %v6295_v57 = vadd.f32 %v19332_v24, %v4567_v0  ;;  %v4569_v7 = vpop.f32.mrb[121].mxu0 }
 0x403   : > { %v6296_v52 = vadd.f32 %v19335_v61, %v4569_v7  ;;  %v4571_v8 = vpop.f32.mrb[122].mxu0 }
 0x404   : > { %v6297_v29 = vadd.f32 %v19332_v24, %v4571_v8  ;;  %v4573_v4 = vpop.f32.mrb[123].mxu0  ;;  %v6359_v53 = vmax.f32 %v6295_v57, 0.0 }
 0x405   : > { %v6298_v9 = vadd.f32 %v19335_v61, %v4573_v4  ;;  %v6360_v12 = vmax.f32 %v6296_v52, 0.0 }
 0x406   : > { %v6361_v10 = vmax.f32 %v6297_v29, 0.0  ;;  %5992 = vmatmul.mubr.bf16.gmra.mrb[84].mxu0 %v16715_v51  ;;  %v16776_v51 = vld [vmem:[%s21514_s3] ss:$8 sps:$4 sm:$0xff]  }
 0x407   : > { %v6362_v11 = vmax.f32 %v6298_v9, 0.0  ;;  %6001 = vmatprep.mubr.bf16.mxu0 %v16716_v3  ;;  %v16781_v3 = vld [vmem:[%s21514_s3 + $0x14] ss:$8 sps:$4 sm:$0xff]  }
 0x408   : > { %v19384_v14 = vpack.c.bf16 %v6361_v10, %v6359_v53 }
 0x409   : > { %v19386_v15 = vpack.c.bf16 %v6362_v11, %v6360_v12  ;;  %v4577_v16 = vpop.f32.mrb[124].mxu0  ;;  %v16779_v12 = vld [vmem:[%s21514_s3 + $0x10] ss:$8 sps:$4 sm:$0xff]  }
 0x40a   : > { %v6299_v17 = vadd.f32 %v19332_v24, %v4577_v16  ;;  %v4579_v18 = vpop.f32.mrb[125].mxu0 }
 0x40b   : > { %v6300_v37 = vadd.f32 %v19335_v61, %v4579_v18  ;;  %v4581_v20 = vpop.f32.mrb[126].mxu0 }
 0x40c   : > { %v6301_v40 = vadd.f32 %v19332_v24, %v4581_v20  ;;  %v4583_v22 = vpop.f32.mrb[127].mxu0  ;;  %v6363_v27 = vmax.f32 %v6299_v17, 0.0  ;;  %v16784_v17 = vld [vmem:[%s21514_s3 + $0x24] ss:$8 sps:$4 sm:$0xff]  }
 0x40d   : > { %v6302_v26 = vadd.f32 %v19335_v61, %v4583_v22  ;;  %v6364_v31 = vmax.f32 %v6300_v37, 0.0 }
 0x40e   : > { %v6365_v28 = vmax.f32 %v6301_v40, 0.0  ;;  %6002 = vmatmul.mubr.bf16.gmra.mrb[88].mxu0 %v16718_v19  ;;  %v16782_v40 = vld [vmem:[%s21514_s3 + $0x20] ss:$8 sps:$4 sm:$0xff]  }
 0x40f   : > { %v6366_v33 = vmax.f32 %v6302_v26, 0.0  ;;  %6011 = vmatprep.mubr.bf16.mxu0 %v16719_v21 }
 0x410   : > { %v19394_v34 = vpack.c.bf16 %v6365_v28, %v6363_v27  ;;  %v16787_v27 = vld [vmem:[%s21514_s3 + $0x34] ss:$8 sps:$4 sm:$0xff]  }
 0x411   : > { %v19396_v35 = vpack.c.bf16 %v6366_v33, %v6364_v31 }
 0x416   : > { %6012 = vmatmul.mubr.bf16.gmra.mrb[92].mxu0 %v16721_v49 }
 0x417   : > { %6021 = vmatprep.mubr.bf16.mxu0 %v16722_v43 }
 0x41e   : > { %6022 = vmatmul.mubr.bf16.gmra.mrb[96].mxu0 %v16724_v50  ;;  %v16785_v50 = vld [vmem:[%s21514_s3 + $0x30] ss:$8 sps:$4 sm:$0xff]  }
 0x41f   : > { %6031 = vmatprep.mubr.bf16.mxu0 %v16725_v44 }
 0x426   : > { %6032 = vmatmul.mubr.bf16.gmra.mrb[100].mxu0 %v16727_v45 }
 0x4b1   : > { %v5943_v39 = vpop.f32.mrb[64].mxu0 }
 0x4b2   : > { %v6239_v5 = vadd.f32 %v19332_v24, %v5943_v39  ;;  %v5945_v36 = vpop.f32.mrb[65].mxu0 }
 0x4b3   : > { %v6240_v46 = vadd.f32 %v19335_v61, %v5945_v36  ;;  %v5947_v62 = vpop.f32.mrb[66].mxu0 }
 0x4b4   : > { %v6241_v54 = vadd.f32 %v19332_v24, %v5947_v62  ;;  %v5949_v56 = vpop.f32.mrb[67].mxu0  ;;  %v6303_v42 = vmax.f32 %v6239_v5, 0.0 }
 0x4b5   : > { %v6242_v41 = vadd.f32 %v19335_v61, %v5949_v56  ;;  %v6304_v63 = vmax.f32 %v6240_v46, 0.0  ;;  %v16788_v46 = vld [vmem:[%s21514_s3 + $0x40] ss:$8 sps:$4 sm:$0xff]   ;;  %v16793_v56 = vld [vmem:[%s21514_s3 + $0x54] ss:$8 sps:$4 sm:$0xff]  }
 0x4b6   : > { %v6305_v60 = vmax.f32 %v6241_v54, 0.0 }
 0x4b7   : > { %v6306_v6 = vmax.f32 %v6242_v41, 0.0 }
 0x4b8   : > { %v6367_v0 = vpack.c.bf16 %v6305_v60, %v6303_v42 }
 0x4b9   : > { %v6368_v57 = vpack.c.bf16 %v6306_v6, %v6304_v63  ;;  %v5953_v7 = vpop.f32.mrb[68].mxu0 }
 0x4ba   : > { %v6243_v52 = vadd.f32 %v19332_v24, %v5953_v7  ;;  %v5955_v8 = vpop.f32.mrb[69].mxu0 }
 0x4bb   : > { %v6244_v29 = vadd.f32 %v19335_v61, %v5955_v8  ;;  %v5957_v4 = vpop.f32.mrb[70].mxu0  ;;  %6624 = vmatprep.mubr.bf16.mxu1 %v6368_v57 }
 0x4bc   : > { %v6245_v9 = vadd.f32 %v19332_v24, %v5957_v4  ;;  %v5959_v53 = vpop.f32.mrb[71].mxu0  ;;  %6625 = vmatmul.mubr.bf16.vlgmr.msra.gmra.mrb[0].mxu1 %v6367_v0  ;;  %v6307_v11 = vmax.f32 %v6243_v52, 0.0  ;;  %v16791_v0 = vld [vmem:[%s21514_s3 + $0x50] ss:$8 sps:$4 sm:$0xff]  }
 0x4bd   : > { %v6246_v10 = vadd.f32 %v19335_v61, %v5959_v53  ;;  %8130 = vmatpush1.bf16.msra.mxu1 %v16776_v51  ;;  %v6308_v18 = vmax.f32 %v6244_v29, 0.0  ;;  %v16796_v51 = vld [vmem:[%s21514_s3 + $0x64] ss:$8 sps:$4 sm:$0xff]  }
 0x4be   : > { %v6309_v16 = vmax.f32 %v6245_v9, 0.0  ;;  %8131 = vmatprep.subr.bf16.mxu1 %v16781_v3  ;;  %v16794_v9 = vld [vmem:[%s21514_s3 + $0x60] ss:$8 sps:$4 sm:$0xff]  }
 0x4bf   : > { %v6310_v19 = vmax.f32 %v6246_v10, 0.0 }
 0x4c0   : > { %v6369_v37 = vpack.c.bf16 %v6309_v16, %v6307_v11 }
 0x4c1   : > { %v6370_v20 = vpack.c.bf16 %v6310_v19, %v6308_v18  ;;  %v5963_v21 = vpop.f32.mrb[72].mxu0  ;;  %8132 = vmatpush1.bf16.msra.mxu1 %v16779_v12  ;;  %v16799_v12 = vld [vmem:[%s21514_s3 + $0x74] ss:$8 sps:$4 sm:$0xff]  }
 0x4c2   : > { %v6247_v22 = vadd.f32 %v19332_v24, %v5963_v21  ;;  %v5965_v26 = vpop.f32.mrb[73].mxu0  ;;  %8133 = vmatprep.subr.bf16.mxu1 %v16784_v17 }
 0x4c3   : > { %v6248_v28 = vadd.f32 %v19335_v61, %v5965_v26  ;;  %v5967_v31 = vpop.f32.mrb[74].mxu0  ;;  %6634 = vmatprep.mubr.bf16.mxu1 %v6370_v20 }
 0x4c4   : > { %v6249_v33 = vadd.f32 %v19332_v24, %v5967_v31  ;;  %v5969_v49 = vpop.f32.mrb[75].mxu0  ;;  %6635 = vmatmul.mubr.bf16.gmra.mrb[4].mxu1 %v6369_v37  ;;  %v6311_v44 = vmax.f32 %v6247_v22, 0.0  ;;  %v16797_v37 = vld [vmem:[%s21514_s3 + $0x70] ss:$8 sps:$4 sm:$0xff]  }
 0x4c5   : > { %v6250_v43 = vadd.f32 %v19335_v61, %v5969_v49  ;;  %8134 = vmatpush1.bf16.msra.mxu1 %v16782_v40  ;;  %v6312_v2 = vmax.f32 %v6248_v28, 0.0  ;;  %v16802_v40 = vld [vmem:[%s21514_s3 + $0x84] ss:$8 sps:$4 sm:$0xff]  }
 0x4c6   : > { %v6313_v45 = vmax.f32 %v6249_v33, 0.0  ;;  %8135 = vmatprep.subr.bf16.mxu1 %v16787_v27  ;;  %v16800_v33 = vld [vmem:[%s21514_s3 + $0x80] ss:$8 sps:$4 sm:$0xff]  }
 0x4c7   : > { %v6314_v38 = vmax.f32 %v6250_v43, 0.0 }
 0x4c8   : > { %v6371_v39 = vpack.c.bf16 %v6313_v45, %v6311_v44 }
 0x4c9   : > { %v6372_v5 = vpack.c.bf16 %v6314_v38, %v6312_v2  ;;  %v5973_v36 = vpop.f32.mrb[76].mxu0  ;;  %8136 = vmatpush1.bf16.msra.mxu1 %v16785_v50  ;;  %v16805_v50 = vld [vmem:[%s21514_s3 + $0x94] ss:$8 sps:$4 sm:$0xff]  }
 0x4ca   : > { %v6251_v62 = vadd.f32 %v19332_v24, %v5973_v36  ;;  %v5975_v54 = vpop.f32.mrb[77].mxu0  ;;  %8137 = vmatprep.subr.bf16.mxu1 %v16790_v48 }
 0x4cb   : > { %v6252_v41 = vadd.f32 %v19335_v61, %v5975_v54  ;;  %v5977_v42 = vpop.f32.mrb[78].mxu0  ;;  %6644 = vmatprep.mubr.bf16.mxu1 %v6372_v5 }
 0x4cc   : > { %v6253_v60 = vadd.f32 %v19332_v24, %v5977_v42  ;;  %v5979_v63 = vpop.f32.mrb[79].mxu0  ;;  %6645 = vmatmul.mubr.bf16.gmra.mrb[8].mxu1 %v6371_v39  ;;  %v6315_v57 = vmax.f32 %v6251_v62, 0.0  ;;  %v16803_v39 = vld [vmem:[%s21514_s3 + $0x90] ss:$8 sps:$4 sm:$0xff]  }
 0x4cd   : > { %v6254_v6 = vadd.f32 %v19335_v61, %v5979_v63  ;;  %8138 = vmatpush1.bf16.msra.mxu1 %v16788_v46  ;;  %v6316_v52 = vmax.f32 %v6252_v41, 0.0  ;;  %v16808_v46 = vld [vmem:[%s21514_s3 + $0xa4] ss:$8 sps:$4 sm:$0xff]  }
 0x4ce   : > { %v6317_v7 = vmax.f32 %v6253_v60, 0.0  ;;  %8139 = vmatprep.subr.bf16.mxu1 %v16793_v56  ;;  %v16806_v60 = vld [vmem:[%s21514_s3 + $0xa0] ss:$8 sps:$4 sm:$0xff]  }
 0x4cf   : > { %v6318_v8 = vmax.f32 %v6254_v6, 0.0 }
 0x4d0   : > { %v6373_v3 = vpack.c.bf16 %v6317_v7, %v6315_v57 }
 0x4d1   : > { %v6374_v29 = vpack.c.bf16 %v6318_v8, %v6316_v52  ;;  %v5983_v4 = vpop.f32.mrb[80].mxu0  ;;  %8140 = vmatpush1.bf16.msra.mxu1 %v16791_v0  ;;  %v16811_v0 = vld [vmem:[%s21514_s3 + $0xb4] ss:$8 sps:$4 sm:$0xff]  }
 0x4d2   : > { %v6255_v53 = vadd.f32 %v19332_v24, %v5983_v4  ;;  %v5985_v10 = vpop.f32.mrb[81].mxu0  ;;  %8141 = vmatprep.subr.bf16.mxu1 %v16796_v51 }
 0x4d3   : > { %v6256_v11 = vadd.f32 %v19335_v61, %v5985_v10  ;;  %v5987_v16 = vpop.f32.mrb[82].mxu0  ;;  %6654 = vmatprep.mubr.bf16.mxu1 %v6374_v29 }
 0x4d4   : > { %v6257_v17 = vadd.f32 %v19332_v24, %v5987_v16  ;;  %v5989_v18 = vpop.f32.mrb[83].mxu0  ;;  %6655 = vmatmul.mubr.bf16.gmra.mrb[12].mxu1 %v6373_v3  ;;  %v6319_v20 = vmax.f32 %v6255_v53, 0.0  ;;  %v16809_v3 = vld [vmem:[%s21514_s3 + $0xb0] ss:$8 sps:$4 sm:$0xff]  }
 0x4d5   : > { %v6258_v19 = vadd.f32 %v19335_v61, %v5989_v18  ;;  %8142 = vmatpush1.bf16.msra.mxu1 %v16794_v9  ;;  %v6320_v22 = vmax.f32 %v6256_v11, 0.0  ;;  %v16814_v9 = vld [vmem:[%s21514_s3 + $0xc4] ss:$8 sps:$4 sm:$0xff]  }
 0x4d6   : > { %v6321_v21 = vmax.f32 %v6257_v17, 0.0  ;;  %8143 = vmatprep.subr.bf16.mxu1 %v16799_v12  ;;  %v16812_v17 = vld [vmem:[%s21514_s3 + $0xc0] ss:$8 sps:$4 sm:$0xff]  }
 0x4d7   : > { %v6322_v26 = vmax.f32 %v6258_v19, 0.0 }
 0x4d8   : > { %v6375_v27 = vpack.c.bf16 %v6321_v21, %v6319_v20 }
 0x4d9   : > { %v6376_v28 = vpack.c.bf16 %v6322_v26, %v6320_v22  ;;  %v5993_v31 = vpop.f32.mrb[84].mxu0  ;;  %8144 = vmatpush1.bf16.msra.mxu1 %v16797_v37  ;;  %v16817_v37 = vld [vmem:[%s21514_s3 + $0xd4] ss:$8 sps:$4 sm:$0xff]  }
 0x4da   : > { %v6259_v49 = vadd.f32 %v19332_v24, %v5993_v31  ;;  %v5995_v43 = vpop.f32.mrb[85].mxu0  ;;  %8145 = vmatprep.subr.bf16.mxu1 %v16802_v40 }
 0x4db   : > { %v6260_v44 = vadd.f32 %v19335_v61, %v5995_v43  ;;  %v5997_v45 = vpop.f32.mrb[86].mxu0  ;;  %6664 = vmatprep.mubr.bf16.mxu1 %v6376_v28 }
 0x4dc   : > { %v6261_v48 = vadd.f32 %v19332_v24, %v5997_v45  ;;  %v5999_v2 = vpop.f32.mrb[87].mxu0  ;;  %6665 = vmatmul.mubr.bf16.gmra.mrb[16].mxu1 %v6375_v27  ;;  %v6323_v5 = vmax.f32 %v6259_v49, 0.0  ;;  %v16815_v27 = vld [vmem:[%s21514_s3 + $0xd0] ss:$8 sps:$4 sm:$0xff]  }
 0x4dd   : > { %v6262_v38 = vadd.f32 %v19335_v61, %v5999_v2  ;;  %8146 = vmatpush1.bf16.msra.mxu1 %v16800_v33  ;;  %v6324_v62 = vmax.f32 %v6260_v44, 0.0  ;;  %v16820_v33 = vld [vmem:[%s21514_s3 + $0xe4] ss:$8 sps:$4 sm:$0xff]  }
 0x4de   : > { %v6325_v36 = vmax.f32 %v6261_v48, 0.0  ;;  %8147 = vmatprep.subr.bf16.mxu1 %v16805_v50  ;;  %v16818_v48 = vld [vmem:[%s21514_s3 + $0xe0] ss:$8 sps:$4 sm:$0xff]  }
 0x4df   : > { %v6326_v54 = vmax.f32 %v6262_v38, 0.0 }
 0x4e0   : > { %v6377_v56 = vpack.c.bf16 %v6325_v36, %v6323_v5 }
 0x4e1   : > { %v6378_v41 = vpack.c.bf16 %v6326_v54, %v6324_v62  ;;  %v6003_v42 = vpop.f32.mrb[88].mxu0  ;;  %8148 = vmatpush1.bf16.msra.mxu1 %v16803_v39  ;;  %v16823_v39 = vld [vmem:[%s21514_s3 + $0xf4] ss:$8 sps:$4 sm:$0xff]  }
 0x4e2   : > { %v6263_v63 = vadd.f32 %v19332_v24, %v6003_v42  ;;  %v6005_v6 = vpop.f32.mrb[89].mxu0  ;;  %8149 = vmatprep.subr.bf16.mxu1 %v16808_v46 }
 0x4e3   : > { %v6264_v57 = vadd.f32 %v19335_v61, %v6005_v6  ;;  %v6007_v7 = vpop.f32.mrb[90].mxu0  ;;  %6674 = vmatprep.mubr.bf16.mxu1 %v6378_v41 }
 0x4e4   : > { %v6265_v51 = vadd.f32 %v19332_v24, %v6007_v7  ;;  %v6009_v52 = vpop.f32.mrb[91].mxu0  ;;  %6675 = vmatmul.mubr.bf16.gmra.mrb[20].mxu1 %v6377_v56  ;;  %v6327_v29 = vmax.f32 %v6263_v63, 0.0  ;;  %v16821_v56 = vld [vmem:[%s21514_s3 + $0xf0] ss:$8 sps:$4 sm:$0xff]  }
 0x4e5   : > { %v6266_v8 = vadd.f32 %v19335_v61, %v6009_v52  ;;  %8150 = vmatpush1.bf16.msra.mxu1 %v16806_v60  ;;  %v6328_v53 = vmax.f32 %v6264_v57, 0.0  ;;  %v16829_v60 = vld [vmem:[%s21514_s3 + $0x104] ss:$8 sps:$4 sm:$0xff]  }
 0x4e6   : > { %v6329_v4 = vmax.f32 %v6265_v51, 0.0  ;;  %8151 = vmatprep.subr.bf16.mxu1 %v16811_v0 }
 0x4e7   : > { %v6330_v10 = vmax.f32 %v6266_v8, 0.0 }
 0x4e8   : > { %v6379_v12 = vpack.c.bf16 %v6329_v4, %v6327_v29 }
 0x4e9   : > { %v6380_v11 = vpack.c.bf16 %v6330_v10, %v6328_v53  ;;  %v6013_v16 = vpop.f32.mrb[92].mxu0  ;;  %8152 = vmatpush1.bf16.msra.mxu1 %v16809_v3 }
 0x4ea   : > { %v6267_v18 = vadd.f32 %v19332_v24, %v6013_v16  ;;  %v6015_v19 = vpop.f32.mrb[93].mxu0  ;;  %8153 = vmatprep.subr.bf16.mxu1 %v16814_v9 }
 0x4eb   : > { %v6268_v20 = vadd.f32 %v19335_v61, %v6015_v19  ;;  %v6017_v21 = vpop.f32.mrb[94].mxu0  ;;  %6684 = vmatprep.mubr.bf16.mxu1 %v6380_v11  ;;  %v16851_v19 = vld [vmem:[%s21514_s3 + $0x140] ss:$8 sps:$4 sm:$0xff]  }
 0x4ec   : > { %v6269_v40 = vadd.f32 %v19332_v24, %v6017_v21  ;;  %v6019_v22 = vpop.f32.mrb[95].mxu0  ;;  %6685 = vmatmul.mubr.bf16.gmra.mrb[24].mxu1 %v6379_v12  ;;  %v6331_v28 = vmax.f32 %v6267_v18, 0.0  ;;  %v16842_v18 = vld [vmem:[%s17819_s19 + $0x104] ss:$40 sps:$4 sm:$0xff]  }
 0x4ed   : > { %v6270_v26 = vadd.f32 %v19335_v61, %v6019_v22  ;;  %8154 = vmatpush1.bf16.msra.mxu1 %v16812_v17  ;;  %v6332_v49 = vmax.f32 %v6268_v20, 0.0  ;;  %v16857_v20 = vld [vmem:[%s21514_s3 + $0x150] ss:$8 sps:$4 sm:$0xff]   ;;  %v16865_v21 = vld [vmem:[%s21514_s3 + $0x164] ss:$8 sps:$4 sm:$0xff]  }
 0x4ee   : > { %v6333_v31 = vmax.f32 %v6269_v40, 0.0  ;;  %8155 = vmatprep.subr.bf16.mxu1 %v16817_v37  ;;  %v16859_v37 = vld [vmem:[%s21514_s3 + $0x154] ss:$8 sps:$4 sm:$0xff]   ;;  %v16844_v40 = vld [vmem:[%s17819_s19 + $0x100] ss:$40 sps:$4 sm:$0xff]  }
 0x4ef   : > { %v6334_v43 = vmax.f32 %v6270_v26, 0.0  ;;  %v16848_v22 = vld [vmem:[%s17819_s19 + $0x154] ss:$40 sps:$4 sm:$0xff]   ;;  %v16863_v26 = vld [vmem:[%s21514_s3 + $0x160] ss:$8 sps:$4 sm:$0xff]  }
 0x4f0   : > { %v6381_v50 = vpack.c.bf16 %v6333_v31, %v6331_v28  ;;  %v16869_v28 = vld [vmem:[%s21514_s3 + $0x170] ss:$8 sps:$4 sm:$0xff]   ;;  %v16877_v31 = vld [vmem:[%s21514_s3 + $0x184] ss:$8 sps:$4 sm:$0xff]  }
 0x4f1   : > { %v6382_v44 = vpack.c.bf16 %v6334_v43, %v6332_v49  ;;  %v6023_v45 = vpop.f32.mrb[96].mxu0  ;;  %8156 = vmatpush1.bf16.msra.mxu1 %v16815_v27  ;;  %v16871_v27 = vld [vmem:[%s21514_s3 + $0x174] ss:$8 sps:$4 sm:$0xff]   ;;  %v16854_v49 = vld [vmem:[%s17819_s19 + $0x1a4] ss:$40 sps:$4 sm:$0xff]  }
 0x4f2   : > { %v6271_v2 = vadd.f32 %v19332_v24, %v6023_v45  ;;  %v6025_v38 = vpop.f32.mrb[97].mxu0  ;;  %8157 = vmatprep.subr.bf16.mxu1 %v16820_v33  ;;  %v16850_v33 = vld [vmem:[%s17819_s19 + $0x150] ss:$40 sps:$4 sm:$0xff]   ;;  %v16875_v43 = vld [vmem:[%s21514_s3 + $0x180] ss:$8 sps:$4 sm:$0xff]  }
 0x4f3   : > { %v6272_v5 = vadd.f32 %v19335_v61, %v6025_v38  ;;  %v6027_v36 = vpop.f32.mrb[98].mxu0  ;;  %6694 = vmatprep.mubr.bf16.mxu1 %v6382_v44  ;;  %v16881_v44 = vld [vmem:[%s21514_s3 + $0x190] ss:$8 sps:$4 sm:$0xff]   ;;  %v16889_v45 = vld [vmem:[%s21514_s3 + $0x1a4] ss:$8 sps:$4 sm:$0xff]  }
 0x4f4   : > { %v6273_v46 = vadd.f32 %v19332_v24, %v6027_v36  ;;  %v6029_v62 = vpop.f32.mrb[99].mxu0  ;;  %6695 = vmatmul.mubr.bf16.gmra.mrb[28].mxu1 %v6381_v50  ;;  %v6335_v41 = vmax.f32 %v6271_v2, 0.0  ;;  %v16883_v50 = vld [vmem:[%s21514_s3 + $0x194] ss:$8 sps:$4 sm:$0xff]   ;;  %v16887_v38 = vld [vmem:[%s21514_s3 + $0x1a0] ss:$8 sps:$4 sm:$0xff]  }
 0x4f5   : > { %v6274_v54 = vadd.f32 %v19335_v61, %v6029_v62  ;;  %8158 = vmatpush1.bf16.msra.mxu1 %v16818_v48  ;;  %v6336_v63 = vmax.f32 %v6272_v5, 0.0  ;;  %v16856_v48 = vld [vmem:[%s17819_s19 + $0x1a0] ss:$40 sps:$4 sm:$0xff]   ;;  %v16860_v2 = vld [vmem:[%s17819_s19 + $0x1f4] ss:$40 sps:$4 sm:$0xff]  }
 0x4f6   : > { %v6337_v42 = vmax.f32 %v6273_v46, 0.0  ;;  %8159 = vmatprep.subr.bf16.mxu1 %v16823_v39  ;;  %v16895_v39 = vld [vmem:[%s21514_s3 + $0x1b4] ss:$8 sps:$4 sm:$0xff]   ;;  %v16893_v5 = vld [vmem:[%s21514_s3 + $0x1b0] ss:$8 sps:$4 sm:$0xff]  }
 0x4f7   : > { %v6338_v6 = vmax.f32 %v6274_v54, 0.0  ;;  %v16901_v36 = vld [vmem:[%s21514_s3 + $0x1c4] ss:$8 sps:$4 sm:$0xff]   ;;  %v16862_v46 = vld [vmem:[%s17819_s19 + $0x1f0] ss:$40 sps:$4 sm:$0xff]  }
 0x4f8   : > { %v6383_v0 = vpack.c.bf16 %v6337_v42, %v6335_v41  ;;  %v16866_v62 = vld [vmem:[%s17819_s19 + $0x244] ss:$40 sps:$4 sm:$0xff]   ;;  %v16899_v54 = vld [vmem:[%s21514_s3 + $0x1c0] ss:$8 sps:$4 sm:$0xff]   ;;  %v16905_v41 = vld [vmem:[%s21514_s3 + $0x1d0] ss:$8 sps:$4 sm:$0xff]  }
 0x4f9   : > { %v6384_v57 = vpack.c.bf16 %v6338_v6, %v6336_v63  ;;  %v6033_v7 = vpop.f32.mrb[100].mxu0  ;;  %8160 = vmatpush1.bf16.msra.mxu1 %v16821_v56  ;;  %v16907_v56 = vld [vmem:[%s21514_s3 + $0x1d4] ss:$8 sps:$4 sm:$0xff]   ;;  %v16913_v42 = vld [vmem:[%s21514_s3 + $0x1e4] ss:$8 sps:$4 sm:$0xff]  }
 0x4fa   : > { %v6275_v51 = vadd.f32 %v19332_v24, %v6033_v7  ;;  %v6035_v52 = vpop.f32.mrb[101].mxu0  ;;  %8322 = vmatprep.subr.bf16.mxu1 %v16829_v60  ;;  %v16868_v60 = vld [vmem:[%s17819_s19 + $0x240] ss:$40 sps:$4 sm:$0xff]   ;;  %v16872_v63 = vld [vmem:[%s17819_s19 + $0x294] ss:$40 sps:$4 sm:$0xff]  }
 0x4fb   : > { %v6276_v8 = vadd.f32 %v19335_v61, %v6035_v52  ;;  %v6037_v3 = vpop.f32.mrb[102].mxu0  ;;  %6704 = vmatprep.mubr.bf16.mxu1 %v6384_v57  ;;  %v16911_v6 = vld [vmem:[%s21514_s3 + $0x1e0] ss:$8 sps:$4 sm:$0xff]   ;;  %v16917_v57 = vld [vmem:[%s21514_s3 + $0x1f0] ss:$8 sps:$4 sm:$0xff]  }
 0x4fc   : > { %v6277_v29 = vadd.f32 %v19332_v24, %v6037_v3  ;;  %v6039_v4 = vpop.f32.mrb[103].mxu0  ;;  %6705 = vmatmul.mubr.bf16.gmra.mrb[32].mxu1 %v6383_v0  ;;  %v6339_v53 = vmax.f32 %v6275_v51, 0.0  ;;  %v16826_v24 = vld [vmem:[%s17819_s19 + $0x14] ss:$40 sps:$4 sm:$0xff]   ;;  %v16925_v7 = vld [vmem:[%s21514_s3 + $0x204] ss:$8 sps:$4 sm:$0xff]  }
 0x4fd   : > { %v6278_v9 = vadd.f32 %v19335_v61, %v6039_v4  ;;  %v6340_v12 = vmax.f32 %v6276_v8, 0.0  ;;  %v16824_v61 = vld [vmem:[%s17819_s19 + $0x10] ss:$40 sps:$4 sm:$0xff]   ;;  %v16919_v0 = vld [vmem:[%s21514_s3 + $0x1f4] ss:$8 sps:$4 sm:$0xff]  }
 0x4fe   : > { %v6341_v10 = vmax.f32 %v6277_v29, 0.0  ;;  %v16874_v51 = vld [vmem:[%s17819_s19 + $0x290] ss:$40 sps:$4 sm:$0xff]   ;;  %v16878_v52 = vld [vmem:[%s17819_s19 + $0x2e4] ss:$40 sps:$4 sm:$0xff]  }
 0x4ff   : > { %v6342_v11 = vmax.f32 %v6278_v9, 0.0  ;;  %v16880_v8 = vld [vmem:[%s17819_s19 + $0x2e0] ss:$40 sps:$4 sm:$0xff]   ;;  %v16884_v3 = vld [vmem:[%s17819_s19 + $0x334] ss:$40 sps:$4 sm:$0xff]  }
 0x500   : > { %v6385_v16 = vpack.c.bf16 %v6341_v10, %v6339_v53  ;;  %v16886_v29 = vld [vmem:[%s17819_s19 + $0x330] ss:$40 sps:$4 sm:$0xff]   ;;  %v16890_v4 = vld [vmem:[%s17819_s19 + $0x384] ss:$40 sps:$4 sm:$0xff]   ;;  %v16892_v9 = vld [vmem:[%s17819_s19 + $0x380] ss:$40 sps:$4 sm:$0xff]  }
 0x501   : > { %v6386_v17 = vpack.c.bf16 %v6342_v11, %v6340_v12  ;;  %v16896_v53 = vld [vmem:[%s17819_s19 + $0x3d4] ss:$40 sps:$4 sm:$0xff]   ;;  %v16898_v10 = vld [vmem:[%s17819_s19 + $0x3d0] ss:$40 sps:$4 sm:$0xff]   ;;  %v16902_v12 = vld [vmem:[%s17819_s19 + $0x424] ss:$40 sps:$4 sm:$0xff]  }
 0x502   : > { %v16904_v11 = vld [vmem:[%s17819_s19 + $0x420] ss:$40 sps:$4 sm:$0xff]  }
 0x503   : > { %6714 = vmatprep.mubr.bf16.mxu1 %v6386_v17  ;;  %v16910_v17 = vld [vmem:[%s17819_s19 + $0x470] ss:$40 sps:$4 sm:$0xff]  }
 0x504   : > { %6715 = vmatmul.mubr.bf16.gmra.mrb[36].mxu1 %v6385_v16  ;;  %v16908_v16 = vld [vmem:[%s17819_s19 + $0x474] ss:$40 sps:$4 sm:$0xff]  }
 0x505   : > { %6724 = vmatprep.mubr.bf16.mxu1 %v19346_v13  ;;  %v16830_v13 = vld [vmem:[%s17819_s19 + $0x64] ss:$40 sps:$4 sm:$0xff]  }
 0x50c   : > { %6725 = vmatmul.mubr.bf16.gmra.mrb[40].mxu1 %v19344_v30  ;;  %v16827_v30 = vld [vmem:[%s21514_s3 + $0x100] ss:$8 sps:$4 sm:$0xff]  }
 0x50d   : > { %6734 = vmatprep.mubr.bf16.mxu1 %v19356_v25  ;;  %v16833_v25 = vld [vmem:[%s21514_s3 + $0x110] ss:$8 sps:$4 sm:$0xff]  }
 0x514   : > { %6735 = vmatmul.mubr.bf16.gmra.mrb[44].mxu1 %v19354_v23  ;;  %v16835_v23 = vld [vmem:[%s21514_s3 + $0x114] ss:$8 sps:$4 sm:$0xff]  }
 0x515   : > { %6744 = vmatprep.mubr.bf16.mxu1 %v19366_v32  ;;  %v16832_v32 = vld [vmem:[%s17819_s19 + $0x60] ss:$40 sps:$4 sm:$0xff]  }
 0x51c   : > { %6745 = vmatmul.mubr.bf16.gmra.mrb[48].mxu1 %v19364_v1  ;;  %v16841_v1 = vld [vmem:[%s21514_s3 + $0x124] ss:$8 sps:$4 sm:$0xff]  }
 0x51d   : > { %6754 = vmatprep.mubr.bf16.mxu1 %v19376_v47  ;;  %v16839_v47 = vld [vmem:[%s21514_s3 + $0x120] ss:$8 sps:$4 sm:$0xff]  }
 0x524   : > { %6755 = vmatmul.mubr.bf16.gmra.mrb[52].mxu1 %v19374_v55  ;;  %v16836_v55 = vld [vmem:[%s17819_s19 + $0xb4] ss:$40 sps:$4 sm:$0xff]  }
 0x525   : > { %6764 = vmatprep.mubr.bf16.mxu1 %v19386_v15  ;;  %v16845_v15 = vld [vmem:[%s21514_s3 + $0x130] ss:$8 sps:$4 sm:$0xff]  }
 0x52c   : > { %6765 = vmatmul.mubr.bf16.gmra.mrb[56].mxu1 %v19384_v14  ;;  %v16847_v14 = vld [vmem:[%s21514_s3 + $0x134] ss:$8 sps:$4 sm:$0xff]  }
 0x52d   : > { %6774 = vmatprep.mubr.bf16.mxu1 %v19396_v35  ;;  %v16838_v35 = vld [vmem:[%s17819_s19 + $0xb0] ss:$40 sps:$4 sm:$0xff]  }
 0x534   : > { %6775 = vmatmul.mubr.bf16.gmra.mrb[60].mxu1 %v19394_v34  ;;  %v16853_v34 = vld [vmem:[%s21514_s3 + $0x144] ss:$8 sps:$4 sm:$0xff]  }
 0x535   : > { %8161 = vmatprep.mubr.bf16.mxu1 %v16826_v24  ;;  %v16914_v24 = vld [vmem:[%s17819_s19 + $0x4c4] ss:$40 sps:$4 sm:$0xff]  }
 0x53c   : > { %8162 = vmatmul.mubr.bf16.vlgmr.msra.gmra.mrb[64].mxu1 %v16824_v61  ;;  %v16916_v61 = vld [vmem:[%s17819_s19 + $0x4c0] ss:$40 sps:$4 sm:$0xff]  }
 0x53d   : > { %8323 = vmatpush1.bf16.msra.mxu1 %v16827_v30  ;;  %8171 = vmatprep.mubr.bf16.mxu1 %v16830_v13  ;;  %v19689_v30 = vld [vmem:[%s17819_s19 + $0x1c] ss:$40 sps:$4 sm:$0xff]   ;;  %v19693_v13 = vld [vmem:[%s17819_s19 + $0x18] ss:$40 sps:$4 sm:$0xff]  }
 0x53e   : > { %8324 = vmatprep.subr.bf16.mxu1 %v16835_v23  ;;  %v16923_v23 = vld [vmem:[%s21514_s3 + $0x200] ss:$8 sps:$4 sm:$0xff]  }
 0x541   : > { %8325 = vmatpush1.bf16.msra.mxu1 %v16833_v25  ;;  %v16926_v25 = vld [vmem:[%s17819_s19 + $0x6c] ss:$40 sps:$4 sm:$0xff]  }
 0x542   : > { %8326 = vmatprep.subr.bf16.mxu1 %v16841_v1  ;;  %v16931_v1 = vld [vmem:[%s21514_s3 + $0x214] ss:$8 sps:$4 sm:$0xff]  }
 0x544   : > { %8172 = vmatmul.mubr.bf16.gmra.mrb[68].mxu1 %v16832_v32  ;;  %v16929_v32 = vld [vmem:[%s21514_s3 + $0x210] ss:$8 sps:$4 sm:$0xff]  }
 0x545   : > { %8181 = vmatprep.mubr.bf16.mxu1 %v16836_v55  ;;  %8327 = vmatpush1.bf16.msra.mxu1 %v16839_v47  ;;  %v16937_v55 = vld [vmem:[%s21514_s3 + $0x224] ss:$8 sps:$4 sm:$0xff]   ;;  %v16928_v47 = vld [vmem:[%s17819_s19 + $0x68] ss:$40 sps:$4 sm:$0xff]  }
 0x546   : > { %8328 = vmatprep.subr.bf16.mxu1 %v16847_v14  ;;  %v16932_v14 = vld [vmem:[%s17819_s19 + $0xbc] ss:$40 sps:$4 sm:$0xff]  }
 0x549   : > { %8329 = vmatpush1.bf16.msra.mxu1 %v16845_v15  ;;  %v16935_v15 = vld [vmem:[%s21514_s3 + $0x220] ss:$8 sps:$4 sm:$0xff]  }
 0x54a   : > { %8330 = vmatprep.subr.bf16.mxu1 %v16853_v34  ;;  %v16943_v34 = vld [vmem:[%s21514_s3 + $0x234] ss:$8 sps:$4 sm:$0xff]  }
 0x54c   : > { %8182 = vmatmul.mubr.bf16.gmra.mrb[72].mxu1 %v16838_v35  ;;  %v16941_v35 = vld [vmem:[%s21514_s3 + $0x230] ss:$8 sps:$4 sm:$0xff]  }
 0x54d   : > { %8191 = vmatprep.mubr.bf16.mxu1 %v16842_v18  ;;  %8331 = vmatpush1.bf16.msra.mxu1 %v16851_v19  ;;  %v16949_v18 = vld [vmem:[%s21514_s3 + $0x244] ss:$8 sps:$4 sm:$0xff]   ;;  %v16934_v19 = vld [vmem:[%s17819_s19 + $0xb8] ss:$40 sps:$4 sm:$0xff]  }
 0x54e   : > { %8332 = vmatprep.subr.bf16.mxu1 %v16859_v37  ;;  %v16938_v37 = vld [vmem:[%s17819_s19 + $0x10c] ss:$40 sps:$4 sm:$0xff]  }
 0x551   : > { %8333 = vmatpush1.bf16.msra.mxu1 %v16857_v20  ;;  %v16947_v20 = vld [vmem:[%s21514_s3 + $0x240] ss:$8 sps:$4 sm:$0xff]  }
 0x552   : > { %8334 = vmatprep.subr.bf16.mxu1 %v16865_v21  ;;  %v16955_v21 = vld [vmem:[%s21514_s3 + $0x254] ss:$8 sps:$4 sm:$0xff]  }
 0x554   : > { %8192 = vmatmul.mubr.bf16.gmra.mrb[76].mxu1 %v16844_v40  ;;  %v16953_v40 = vld [vmem:[%s21514_s3 + $0x250] ss:$8 sps:$4 sm:$0xff]  }
 0x555   : > { %8201 = vmatprep.mubr.bf16.mxu1 %v16848_v22  ;;  %8335 = vmatpush1.bf16.msra.mxu1 %v16863_v26  ;;  %v16961_v22 = vld [vmem:[%s21514_s3 + $0x264] ss:$8 sps:$4 sm:$0xff]   ;;  %v16940_v26 = vld [vmem:[%s17819_s19 + $0x108] ss:$40 sps:$4 sm:$0xff]  }
 0x556   : > { %8336 = vmatprep.subr.bf16.mxu1 %v16871_v27  ;;  %v16944_v27 = vld [vmem:[%s17819_s19 + $0x15c] ss:$40 sps:$4 sm:$0xff]  }
 0x559   : > { %8337 = vmatpush1.bf16.msra.mxu1 %v16869_v28  ;;  %v16959_v28 = vld [vmem:[%s21514_s3 + $0x260] ss:$8 sps:$4 sm:$0xff]  }
 0x55a   : > { %8338 = vmatprep.subr.bf16.mxu1 %v16877_v31  ;;  %v16967_v31 = vld [vmem:[%s21514_s3 + $0x274] ss:$8 sps:$4 sm:$0xff]  }
 0x55c   : > { %8202 = vmatmul.mubr.bf16.gmra.mrb[80].mxu1 %v16850_v33  ;;  %v16965_v33 = vld [vmem:[%s21514_s3 + $0x270] ss:$8 sps:$4 sm:$0xff]  }
 0x55d   : > { %8211 = vmatprep.mubr.bf16.mxu1 %v16854_v49  ;;  %8339 = vmatpush1.bf16.msra.mxu1 %v16875_v43  ;;  %v16973_v49 = vld [vmem:[%s21514_s3 + $0x284] ss:$8 sps:$4 sm:$0xff]   ;;  %v16946_v43 = vld [vmem:[%s17819_s19 + $0x158] ss:$40 sps:$4 sm:$0xff]  }
 0x55e   : > { %8340 = vmatprep.subr.bf16.mxu1 %v16883_v50  ;;  %v16950_v50 = vld [vmem:[%s17819_s19 + $0x1ac] ss:$40 sps:$4 sm:$0xff]  }
 0x561   : > { %8341 = vmatpush1.bf16.msra.mxu1 %v16881_v44  ;;  %v16971_v44 = vld [vmem:[%s21514_s3 + $0x280] ss:$8 sps:$4 sm:$0xff]  }
 0x562   : > { %8342 = vmatprep.subr.bf16.mxu1 %v16889_v45  ;;  %v16979_v45 = vld [vmem:[%s21514_s3 + $0x294] ss:$8 sps:$4 sm:$0xff]  }
 0x564   : > { %8212 = vmatmul.mubr.bf16.gmra.mrb[84].mxu1 %v16856_v48  ;;  %v16977_v48 = vld [vmem:[%s21514_s3 + $0x290] ss:$8 sps:$4 sm:$0xff]  }
 0x565   : > { %8221 = vmatprep.mubr.bf16.mxu1 %v16860_v2  ;;  %8343 = vmatpush1.bf16.msra.mxu1 %v16887_v38  ;;  %v16985_v2 = vld [vmem:[%s21514_s3 + $0x2a4] ss:$8 sps:$4 sm:$0xff]   ;;  %v16952_v38 = vld [vmem:[%s17819_s19 + $0x1a8] ss:$40 sps:$4 sm:$0xff]  }
 0x566   : > { %8344 = vmatprep.subr.bf16.mxu1 %v16895_v39  ;;  %v16956_v39 = vld [vmem:[%s17819_s19 + $0x1fc] ss:$40 sps:$4 sm:$0xff]  }
 0x569   : > { %8345 = vmatpush1.bf16.msra.mxu1 %v16893_v5  ;;  %v16983_v5 = vld [vmem:[%s21514_s3 + $0x2a0] ss:$8 sps:$4 sm:$0xff]  }
 0x56a   : > { %8346 = vmatprep.subr.bf16.mxu1 %v16901_v36  ;;  %v16991_v36 = vld [vmem:[%s21514_s3 + $0x2b4] ss:$8 sps:$4 sm:$0xff]  }
 0x56c   : > { %8222 = vmatmul.mubr.bf16.gmra.mrb[88].mxu1 %v16862_v46  ;;  %v16989_v46 = vld [vmem:[%s21514_s3 + $0x2b0] ss:$8 sps:$4 sm:$0xff]  }
 0x56d   : > { %8231 = vmatprep.mubr.bf16.mxu1 %v16866_v62  ;;  %8347 = vmatpush1.bf16.msra.mxu1 %v16899_v54  ;;  %v16997_v62 = vld [vmem:[%s21514_s3 + $0x2c4] ss:$8 sps:$4 sm:$0xff]   ;;  %v16958_v54 = vld [vmem:[%s17819_s19 + $0x1f8] ss:$40 sps:$4 sm:$0xff]  }
 0x56e   : > { %8348 = vmatprep.subr.bf16.mxu1 %v16907_v56  ;;  %v16962_v56 = vld [vmem:[%s17819_s19 + $0x24c] ss:$40 sps:$4 sm:$0xff]  }
 0x571   : > { %8349 = vmatpush1.bf16.msra.mxu1 %v16905_v41  ;;  %v16995_v41 = vld [vmem:[%s21514_s3 + $0x2c0] ss:$8 sps:$4 sm:$0xff]  }
 0x572   : > { %8350 = vmatprep.subr.bf16.mxu1 %v16913_v42  ;;  %v17003_v42 = vld [vmem:[%s21514_s3 + $0x2d4] ss:$8 sps:$4 sm:$0xff]  }
 0x574   : > { %8232 = vmatmul.mubr.bf16.gmra.mrb[92].mxu1 %v16868_v60  ;;  %v17001_v60 = vld [vmem:[%s21514_s3 + $0x2d0] ss:$8 sps:$4 sm:$0xff]  }
 0x575   : > { %8241 = vmatprep.mubr.bf16.mxu1 %v16872_v63  ;;  %8351 = vmatpush1.bf16.msra.mxu1 %v16911_v6  ;;  %v17009_v63 = vld [vmem:[%s21514_s3 + $0x2e4] ss:$8 sps:$4 sm:$0xff]   ;;  %v16964_v6 = vld [vmem:[%s17819_s19 + $0x248] ss:$40 sps:$4 sm:$0xff]  }
 0x576   : > { %8352 = vmatprep.subr.bf16.mxu1 %v16919_v0  ;;  %v16968_v0 = vld [vmem:[%s17819_s19 + $0x29c] ss:$40 sps:$4 sm:$0xff]  }
 0x579   : > { %8353 = vmatpush1.bf16.msra.mxu1 %v16917_v57  ;;  %v17007_v57 = vld [vmem:[%s21514_s3 + $0x2e0] ss:$8 sps:$4 sm:$0xff]  }
 0x57a   : > { %8515 = vmatprep.subr.bf16.mxu1 %v16925_v7  ;;  %v17015_v7 = vld [vmem:[%s21514_s3 + $0x2f4] ss:$8 sps:$4 sm:$0xff]  }
 0x57c   : > { %8242 = vmatmul.mubr.bf16.gmra.mrb[96].mxu1 %v16874_v51  ;;  %v17013_v51 = vld [vmem:[%s21514_s3 + $0x2f0] ss:$8 sps:$4 sm:$0xff]  }
 0x57d   : > { %8251 = vmatprep.mubr.bf16.mxu1 %v16878_v52  ;;  %v17021_v52 = vld [vmem:[%s21514_s3 + $0x304] ss:$8 sps:$4 sm:$0xff]  }
 0x584   : > { %8252 = vmatmul.mubr.bf16.gmra.mrb[100].mxu1 %v16880_v8  ;;  %v16970_v8 = vld [vmem:[%s17819_s19 + $0x298] ss:$40 sps:$4 sm:$0xff]  }
 0x585   : > { %8261 = vmatprep.mubr.bf16.mxu1 %v16884_v3  ;;  %v16974_v3 = vld [vmem:[%s17819_s19 + $0x2ec] ss:$40 sps:$4 sm:$0xff]  }
 0x58c   : > { %8262 = vmatmul.mubr.bf16.gmra.mrb[104].mxu1 %v16886_v29  ;;  %v16976_v29 = vld [vmem:[%s17819_s19 + $0x2e8] ss:$40 sps:$4 sm:$0xff]  }
 0x58d   : > { %8271 = vmatprep.mubr.bf16.mxu1 %v16890_v4  ;;  %v16980_v4 = vld [vmem:[%s17819_s19 + $0x33c] ss:$40 sps:$4 sm:$0xff]  }
 0x594   : > { %8272 = vmatmul.mubr.bf16.gmra.mrb[108].mxu1 %v16892_v9  ;;  %v16982_v9 = vld [vmem:[%s17819_s19 + $0x338] ss:$40 sps:$4 sm:$0xff]  }
 0x595   : > { %8281 = vmatprep.mubr.bf16.mxu1 %v16896_v53  ;;  %v16986_v53 = vld [vmem:[%s17819_s19 + $0x38c] ss:$40 sps:$4 sm:$0xff]  }
 0x59c   : > { %8282 = vmatmul.mubr.bf16.gmra.mrb[112].mxu1 %v16898_v10  ;;  %v16988_v10 = vld [vmem:[%s17819_s19 + $0x388] ss:$40 sps:$4 sm:$0xff]  }
 0x59d   : > { %8291 = vmatprep.mubr.bf16.mxu1 %v16902_v12  ;;  %v16992_v12 = vld [vmem:[%s17819_s19 + $0x3dc] ss:$40 sps:$4 sm:$0xff]  }
 0x5a4   : > { %8292 = vmatmul.mubr.bf16.gmra.mrb[116].mxu1 %v16904_v11  ;;  %v16994_v11 = vld [vmem:[%s17819_s19 + $0x3d8] ss:$40 sps:$4 sm:$0xff]  }
 0x5a5   : > { %8301 = vmatprep.mubr.bf16.mxu1 %v16908_v16  ;;  %v16998_v16 = vld [vmem:[%s17819_s19 + $0x42c] ss:$40 sps:$4 sm:$0xff]  }
 0x5ac   : > { %8302 = vmatmul.mubr.bf16.gmra.mrb[120].mxu1 %v16910_v17  ;;  %v17000_v17 = vld [vmem:[%s17819_s19 + $0x428] ss:$40 sps:$4 sm:$0xff]  }
 0x5ad   : > { %8311 = vmatprep.mubr.bf16.mxu1 %v16914_v24  ;;  %v17004_v24 = vld [vmem:[%s17819_s19 + $0x47c] ss:$40 sps:$4 sm:$0xff]  }
 0x5b4   : > { %8312 = vmatmul.mubr.bf16.gmra.mrb[124].mxu1 %v16916_v61  ;;  %v17006_v61 = vld [vmem:[%s17819_s19 + $0x478] ss:$40 sps:$4 sm:$0xff]  }
 0x5b5   : > { %8354 = vmatprep.mubr.bf16.mxu1 %v19689_v30 }
 0x5bc   : > { %8355 = vmatmul.mubr.bf16.vlgmr.msra.gmra.mrb[64].mxu1 %v19693_v13 }
 0x5bd   : > { %8516 = vmatpush1.bf16.msra.mxu1 %v16923_v23  ;;  %8364 = vmatprep.mubr.bf16.mxu1 %v16926_v25  ;;  %v17010_v23 = vld [vmem:[%s17819_s19 + $0x4cc] ss:$40 sps:$4 sm:$0xff]   ;;  %v17012_v25 = vld [vmem:[%s17819_s19 + $0x4c8] ss:$40 sps:$4 sm:$0xff]  }
 0x5be   : > { %8517 = vmatprep.subr.bf16.mxu1 %v16931_v1  ;;  %v19823_v1 = vld [vmem:[%s17819_s19 + $0x24] ss:$40 sps:$4 sm:$0xff]  }
 0x5c1   : > { %8518 = vmatpush1.bf16.msra.mxu1 %v16929_v32  ;;  %v19827_v32 = vld [vmem:[%s17819_s19 + $0x20] ss:$40 sps:$4 sm:$0xff]  }
 0x5c2   : > { %8519 = vmatprep.subr.bf16.mxu1 %v16937_v55  ;;  %v17019_v55 = vld [vmem:[%s21514_s3 + $0x300] ss:$8 sps:$4 sm:$0xff]  }
 0x5c4   : > { %8365 = vmatmul.mubr.bf16.gmra.mrb[68].mxu1 %v16928_v47  ;;  %v19833_v47 = vld [vmem:[%s17819_s19 + $0x74] ss:$40 sps:$4 sm:$0xff]  }
 0x5c5   : > { %8374 = vmatprep.mubr.bf16.mxu1 %v16932_v14  ;;  %8520 = vmatpush1.bf16.msra.mxu1 %v16935_v15  ;;  %v17027_v14 = vld [vmem:[%s21514_s3 + $0x314] ss:$8 sps:$4 sm:$0xff]   ;;  %v17025_v15 = vld [vmem:[%s21514_s3 + $0x310] ss:$8 sps:$4 sm:$0xff]  }
 0x5c6   : > { %8521 = vmatprep.subr.bf16.mxu1 %v16943_v34  ;;  %v17033_v34 = vld [vmem:[%s21514_s3 + $0x324] ss:$8 sps:$4 sm:$0xff]  }
 0x5c9   : > { %8522 = vmatpush1.bf16.msra.mxu1 %v16941_v35  ;;  %v19847_v35 = vld [vmem:[%s17819_s19 + $0x70] ss:$40 sps:$4 sm:$0xff]  }
 0x5ca   : > { %8523 = vmatprep.subr.bf16.mxu1 %v16949_v18  ;;  %v19850_v18 = vld [vmem:[%s17819_s19 + $0xc4] ss:$40 sps:$4 sm:$0xff]  }
 0x5cc   : > { %8375 = vmatmul.mubr.bf16.gmra.mrb[72].mxu1 %v16934_v19  ;;  %v17031_v19 = vld [vmem:[%s21514_s3 + $0x320] ss:$8 sps:$4 sm:$0xff]  }
 0x5cd   : > { %8384 = vmatprep.mubr.bf16.mxu1 %v16938_v37  ;;  %8524 = vmatpush1.bf16.msra.mxu1 %v16947_v20  ;;  %v17039_v37 = vld [vmem:[%s21514_s3 + $0x334] ss:$8 sps:$4 sm:$0xff]   ;;  %v17037_v20 = vld [vmem:[%s21514_s3 + $0x330] ss:$8 sps:$4 sm:$0xff]  }
 0x5ce   : > { %8525 = vmatprep.subr.bf16.mxu1 %v16955_v21  ;;  %v17045_v21 = vld [vmem:[%s21514_s3 + $0x344] ss:$8 sps:$4 sm:$0xff]  }
 0x5d1   : > { %8526 = vmatpush1.bf16.msra.mxu1 %v16953_v40  ;;  %v19867_v40 = vld [vmem:[%s17819_s19 + $0xc0] ss:$40 sps:$4 sm:$0xff]  }
 0x5d2   : > { %8527 = vmatprep.subr.bf16.mxu1 %v16961_v22  ;;  %v17034_v22 = vld [vmem:[%s17819_s19 + $0x114] ss:$40 sps:$4 sm:$0xff]  }
 0x5d4   : > { %8385 = vmatmul.mubr.bf16.gmra.mrb[76].mxu1 %v16940_v26  ;;  %v17043_v26 = vld [vmem:[%s21514_s3 + $0x340] ss:$8 sps:$4 sm:$0xff]  }
 0x5d5   : > { %8394 = vmatprep.mubr.bf16.mxu1 %v16944_v27  ;;  %8528 = vmatpush1.bf16.msra.mxu1 %v16959_v28  ;;  %v17051_v27 = vld [vmem:[%s21514_s3 + $0x354] ss:$8 sps:$4 sm:$0xff]   ;;  %v17049_v28 = vld [vmem:[%s21514_s3 + $0x350] ss:$8 sps:$4 sm:$0xff]  }
 0x5d6   : > { %8529 = vmatprep.subr.bf16.mxu1 %v16967_v31  ;;  %v17057_v31 = vld [vmem:[%s21514_s3 + $0x364] ss:$8 sps:$4 sm:$0xff]  }
 0x5d9   : > { %8530 = vmatpush1.bf16.msra.mxu1 %v16965_v33  ;;  %v17036_v33 = vld [vmem:[%s17819_s19 + $0x110] ss:$40 sps:$4 sm:$0xff]  }
 0x5da   : > { %8531 = vmatprep.subr.bf16.mxu1 %v16973_v49  ;;  %v17040_v49 = vld [vmem:[%s17819_s19 + $0x164] ss:$40 sps:$4 sm:$0xff]  }
 0x5dc   : > { %8395 = vmatmul.mubr.bf16.gmra.mrb[80].mxu1 %v16946_v43  ;;  %v17055_v43 = vld [vmem:[%s21514_s3 + $0x360] ss:$8 sps:$4 sm:$0xff]  }
 0x5dd   : > { %8404 = vmatprep.mubr.bf16.mxu1 %v16950_v50  ;;  %8532 = vmatpush1.bf16.msra.mxu1 %v16971_v44  ;;  %v17063_v50 = vld [vmem:[%s21514_s3 + $0x374] ss:$8 sps:$4 sm:$0xff]   ;;  %v17061_v44 = vld [vmem:[%s21514_s3 + $0x370] ss:$8 sps:$4 sm:$0xff]  }
 0x5de   : > { %8533 = vmatprep.subr.bf16.mxu1 %v16979_v45  ;;  %v17069_v45 = vld [vmem:[%s21514_s3 + $0x384] ss:$8 sps:$4 sm:$0xff]  }
 0x5e1   : > { %8534 = vmatpush1.bf16.msra.mxu1 %v16977_v48  ;;  %v17042_v48 = vld [vmem:[%s17819_s19 + $0x160] ss:$40 sps:$4 sm:$0xff]  }
 0x5e2   : > { %8535 = vmatprep.subr.bf16.mxu1 %v16985_v2  ;;  %v17046_v2 = vld [vmem:[%s17819_s19 + $0x1b4] ss:$40 sps:$4 sm:$0xff]  }
 0x5e4   : > { %8405 = vmatmul.mubr.bf16.gmra.mrb[84].mxu1 %v16952_v38  ;;  %v17067_v38 = vld [vmem:[%s21514_s3 + $0x380] ss:$8 sps:$4 sm:$0xff]  }
 0x5e5   : > { %8414 = vmatprep.mubr.bf16.mxu1 %v16956_v39  ;;  %8536 = vmatpush1.bf16.msra.mxu1 %v16983_v5  ;;  %v17075_v39 = vld [vmem:[%s21514_s3 + $0x394] ss:$8 sps:$4 sm:$0xff]   ;;  %v17073_v5 = vld [vmem:[%s21514_s3 + $0x390] ss:$8 sps:$4 sm:$0xff]  }
 0x5e6   : > { %8537 = vmatprep.subr.bf16.mxu1 %v16991_v36  ;;  %v17081_v36 = vld [vmem:[%s21514_s3 + $0x3a4] ss:$8 sps:$4 sm:$0xff]  }
 0x5e9   : > { %8538 = vmatpush1.bf16.msra.mxu1 %v16989_v46  ;;  %v17048_v46 = vld [vmem:[%s17819_s19 + $0x1b0] ss:$40 sps:$4 sm:$0xff]  }
 0x5ea   : > { %8539 = vmatprep.subr.bf16.mxu1 %v16997_v62  ;;  %v17052_v62 = vld [vmem:[%s17819_s19 + $0x204] ss:$40 sps:$4 sm:$0xff]  }
 0x5ec   : > { %8415 = vmatmul.mubr.bf16.gmra.mrb[88].mxu1 %v16958_v54  ;;  %v17079_v54 = vld [vmem:[%s21514_s3 + $0x3a0] ss:$8 sps:$4 sm:$0xff]  }
 0x5ed   : > { %8424 = vmatprep.mubr.bf16.mxu1 %v16962_v56  ;;  %8540 = vmatpush1.bf16.msra.mxu1 %v16995_v41  ;;  %v17087_v56 = vld [vmem:[%s21514_s3 + $0x3b4] ss:$8 sps:$4 sm:$0xff]   ;;  %v17085_v41 = vld [vmem:[%s21514_s3 + $0x3b0] ss:$8 sps:$4 sm:$0xff]  }
 0x5ee   : > { %8541 = vmatprep.subr.bf16.mxu1 %v17003_v42  ;;  %v17093_v42 = vld [vmem:[%s21514_s3 + $0x3c4] ss:$8 sps:$4 sm:$0xff]  }
 0x5f1   : > { %8542 = vmatpush1.bf16.msra.mxu1 %v17001_v60  ;;  %v17054_v60 = vld [vmem:[%s17819_s19 + $0x200] ss:$40 sps:$4 sm:$0xff]  }
 0x5f2   : > { %8543 = vmatprep.subr.bf16.mxu1 %v17009_v63  ;;  %v17058_v63 = vld [vmem:[%s17819_s19 + $0x254] ss:$40 sps:$4 sm:$0xff]  }
 0x5f4   : > { %8425 = vmatmul.mubr.bf16.gmra.mrb[92].mxu1 %v16964_v6  ;;  %v17091_v6 = vld [vmem:[%s21514_s3 + $0x3c0] ss:$8 sps:$4 sm:$0xff]  }
 0x5f5   : > { %8434 = vmatprep.mubr.bf16.mxu1 %v16968_v0  ;;  %8544 = vmatpush1.bf16.msra.mxu1 %v17007_v57  ;;  %v17099_v0 = vld [vmem:[%s21514_s3 + $0x3d4] ss:$8 sps:$4 sm:$0xff]   ;;  %v17097_v57 = vld [vmem:[%s21514_s3 + $0x3d0] ss:$8 sps:$4 sm:$0xff]  }
 0x5f6   : > { %8545 = vmatprep.subr.bf16.mxu1 %v17015_v7  ;;  %v17105_v7 = vld [vmem:[%s21514_s3 + $0x3e4] ss:$8 sps:$4 sm:$0xff]  }
 0x5f9   : > { %8546 = vmatpush1.bf16.msra.mxu1 %v17013_v51  ;;  %v17060_v51 = vld [vmem:[%s17819_s19 + $0x250] ss:$40 sps:$4 sm:$0xff]  }
 0x5fa   : > { %9493 = vmatprep.subr.bf16.mxu1 %v17021_v52  ;;  %v17064_v52 = vld [vmem:[%s17819_s19 + $0x2a4] ss:$40 sps:$4 sm:$0xff]  }
 0x5fc   : > { %8435 = vmatmul.mubr.bf16.gmra.mrb[96].mxu1 %v16970_v8  ;;  %v17103_v8 = vld [vmem:[%s21514_s3 + $0x3e0] ss:$8 sps:$4 sm:$0xff]  }
 0x5fd   : > { %8444 = vmatprep.mubr.bf16.mxu1 %v16974_v3  ;;  %v17111_v3 = vld [vmem:[%s21514_s3 + $0x3f4] ss:$8 sps:$4 sm:$0xff]  }
 0x604   : > { %8445 = vmatmul.mubr.bf16.gmra.mrb[100].mxu1 %v16976_v29  ;;  %v17109_v29 = vld [vmem:[%s21514_s3 + $0x3f0] ss:$8 sps:$4 sm:$0xff]  }
 0x605   : > { %8454 = vmatprep.mubr.bf16.mxu1 %v16980_v4  ;;  %v17117_v4 = vld [vmem:[%s21514_s3 + $0x404] ss:$8 sps:$4 sm:$0xff]  }
 0x60c   : > { %8455 = vmatmul.mubr.bf16.gmra.mrb[104].mxu1 %v16982_v9  ;;  %v17066_v9 = vld [vmem:[%s17819_s19 + $0x2a0] ss:$40 sps:$4 sm:$0xff]  }
 0x60d   : > { %8464 = vmatprep.mubr.bf16.mxu1 %v16986_v53  ;;  %v17070_v53 = vld [vmem:[%s17819_s19 + $0x2f4] ss:$40 sps:$4 sm:$0xff]  }
 0x614   : > { %8465 = vmatmul.mubr.bf16.gmra.mrb[108].mxu1 %v16988_v10  ;;  %v17072_v10 = vld [vmem:[%s17819_s19 + $0x2f0] ss:$40 sps:$4 sm:$0xff]  }
 0x615   : > { %8474 = vmatprep.mubr.bf16.mxu1 %v16992_v12  ;;  %v17076_v12 = vld [vmem:[%s17819_s19 + $0x344] ss:$40 sps:$4 sm:$0xff]  }
 0x61c   : > { %8475 = vmatmul.mubr.bf16.gmra.mrb[112].mxu1 %v16994_v11  ;;  %v17078_v11 = vld [vmem:[%s17819_s19 + $0x340] ss:$40 sps:$4 sm:$0xff]  }
 0x61d   : > { %8484 = vmatprep.mubr.bf16.mxu1 %v16998_v16  ;;  %v17082_v16 = vld [vmem:[%s17819_s19 + $0x394] ss:$40 sps:$4 sm:$0xff]  }
 0x624   : > { %8485 = vmatmul.mubr.bf16.gmra.mrb[116].mxu1 %v17000_v17  ;;  %v17084_v17 = vld [vmem:[%s17819_s19 + $0x390] ss:$40 sps:$4 sm:$0xff]  }
 0x625   : > { %8494 = vmatprep.mubr.bf16.mxu1 %v17004_v24  ;;  %v17088_v24 = vld [vmem:[%s17819_s19 + $0x3e4] ss:$40 sps:$4 sm:$0xff]  }
 0x62c   : > { %8495 = vmatmul.mubr.bf16.gmra.mrb[120].mxu1 %v17006_v61  ;;  %v17090_v61 = vld [vmem:[%s17819_s19 + $0x3e0] ss:$40 sps:$4 sm:$0xff]  }
 0x62d   : > { %8504 = vmatprep.mubr.bf16.mxu1 %v17010_v23  ;;  %v17094_v23 = vld [vmem:[%s17819_s19 + $0x434] ss:$40 sps:$4 sm:$0xff]  }
 0x634   : > { %8505 = vmatmul.mubr.bf16.gmra.mrb[124].mxu1 %v17012_v25  ;;  %v17096_v25 = vld [vmem:[%s17819_s19 + $0x430] ss:$40 sps:$4 sm:$0xff]  }
 0x635   : > { %8547 = vmatprep.mubr.bf16.mxu1 %v19823_v1 }
 0x63c   : > { %8548 = vmatmul.mubr.bf16.vlgmr.msra.gmra.mrb[64].mxu1 %v19827_v32 }
 0x63d   : > { %9494 = vmatpush1.bf16.msra.mxu1 %v17019_v55  ;;  %8557 = vmatprep.mubr.bf16.mxu1 %v19833_v47  ;;  %v17100_v55 = vld [vmem:[%s17819_s19 + $0x484] ss:$40 sps:$4 sm:$0xff]  }
 0x63e   : > { %9495 = vmatprep.subr.bf16.mxu1 %v17027_v14  ;;  %v17102_v14 = vld [vmem:[%s17819_s19 + $0x480] ss:$40 sps:$4 sm:$0xff]  }
 0x641   : > { %9496 = vmatpush1.bf16.msra.mxu1 %v17025_v15  ;;  %v17106_v15 = vld [vmem:[%s17819_s19 + $0x4d4] ss:$40 sps:$4 sm:$0xff]  }
 0x642   : > { %9497 = vmatprep.subr.bf16.mxu1 %v17033_v34  ;;  %v17108_v34 = vld [vmem:[%s17819_s19 + $0x4d0] ss:$40 sps:$4 sm:$0xff]  }
 0x644   : > { %8558 = vmatmul.mubr.bf16.gmra.mrb[68].mxu1 %v19847_v35 }
 0x645   : > { %8567 = vmatprep.mubr.bf16.mxu1 %v19850_v18  ;;  %9498 = vmatpush1.bf16.msra.mxu1 %v17031_v19  ;;  %v17114_v19 = vld [vmem:[%s17819_s19 + $0x14] ss:$40 sps:$4 sm:$0xff]  }
 0x646   : > { %9499 = vmatprep.subr.bf16.mxu1 %v17039_v37  ;;  %v17112_v37 = vld [vmem:[%s17819_s19 + $0x10] ss:$40 sps:$4 sm:$0xff]  }
 0x649   : > { %9500 = vmatpush1.bf16.msra.mxu1 %v17037_v20  ;;  %v17115_v20 = vld [vmem:[%s21514_s3 + $0x400] ss:$8 sps:$4 sm:$0xff]  }
 0x64a   : > { %9501 = vmatprep.subr.bf16.mxu1 %v17045_v21  ;;  %v17145_v21 = vld [vmem:[%s17819_s19 + $0x64] ss:$40 sps:$4 sm:$0xff]  }
 0x64c   : > { %8568 = vmatmul.mubr.bf16.gmra.mrb[72].mxu1 %v19867_v40 }
 0x64d   : > { %8577 = vmatprep.mubr.bf16.mxu1 %v17034_v22  ;;  %9502 = vmatpush1.bf16.msra.mxu1 %v17043_v26  ;;  %v17120_v22 = vld [vmem:[%s21514_s3 + $0x414] ss:$8 sps:$4 sm:$0xff]   ;;  %v17118_v26 = vld [vmem:[%s21514_s3 + $0x410] ss:$8 sps:$4 sm:$0xff]  }
 0x64e   : > { %9503 = vmatprep.subr.bf16.mxu1 %v17051_v27  ;;  %v17123_v27 = vld [vmem:[%s21514_s3 + $0x424] ss:$8 sps:$4 sm:$0xff]  }
 0x651   : > { %9504 = vmatpush1.bf16.msra.mxu1 %v17049_v28  ;;  %v17150_v28 = vld [vmem:[%s17819_s19 + $0x60] ss:$40 sps:$4 sm:$0xff]  }
 0x652   : > { %9505 = vmatprep.subr.bf16.mxu1 %v17057_v31  ;;  %v17121_v31 = vld [vmem:[%s21514_s3 + $0x420] ss:$8 sps:$4 sm:$0xff]  }
 0x654   : > { %8578 = vmatmul.mubr.bf16.gmra.mrb[76].mxu1 %v17036_v33  ;;  %v17154_v33 = vld [vmem:[%s17819_s19 + $0xb4] ss:$40 sps:$4 sm:$0xff]  }
 0x655   : > { %8587 = vmatprep.mubr.bf16.mxu1 %v17040_v49  ;;  %9506 = vmatpush1.bf16.msra.mxu1 %v17055_v43  ;;  %v17126_v49 = vld [vmem:[%s21514_s3 + $0x434] ss:$8 sps:$4 sm:$0xff]   ;;  %v17124_v43 = vld [vmem:[%s21514_s3 + $0x430] ss:$8 sps:$4 sm:$0xff]  }
 0x656   : > { %9507 = vmatprep.subr.bf16.mxu1 %v17063_v50  ;;  %v17129_v50 = vld [vmem:[%s21514_s3 + $0x444] ss:$8 sps:$4 sm:$0xff]  }
 0x659   : > { %9508 = vmatpush1.bf16.msra.mxu1 %v17061_v44  ;;  %v17159_v44 = vld [vmem:[%s17819_s19 + $0xb0] ss:$40 sps:$4 sm:$0xff]  }
 0x65a   : > { %9509 = vmatprep.subr.bf16.mxu1 %v17069_v45  ;;  %v17127_v45 = vld [vmem:[%s21514_s3 + $0x440] ss:$8 sps:$4 sm:$0xff]  }
 0x65c   : > { %8588 = vmatmul.mubr.bf16.gmra.mrb[80].mxu1 %v17042_v48  ;;  %v17163_v48 = vld [vmem:[%s17819_s19 + $0x104] ss:$40 sps:$4 sm:$0xff]  }
 0x65d   : > { %8597 = vmatprep.mubr.bf16.mxu1 %v17046_v2  ;;  %9510 = vmatpush1.bf16.msra.mxu1 %v17067_v38  ;;  %v17132_v2 = vld [vmem:[%s21514_s3 + $0x454] ss:$8 sps:$4 sm:$0xff]   ;;  %v17130_v38 = vld [vmem:[%s21514_s3 + $0x450] ss:$8 sps:$4 sm:$0xff]  }
 0x65e   : > { %9511 = vmatprep.subr.bf16.mxu1 %v17075_v39  ;;  %v17135_v39 = vld [vmem:[%s21514_s3 + $0x464] ss:$8 sps:$4 sm:$0xff]  }
 0x661   : > { %9512 = vmatpush1.bf16.msra.mxu1 %v17073_v5  ;;  %v17168_v5 = vld [vmem:[%s17819_s19 + $0x100] ss:$40 sps:$4 sm:$0xff]  }
 0x662   : > { %9513 = vmatprep.subr.bf16.mxu1 %v17081_v36  ;;  %v17133_v36 = vld [vmem:[%s21514_s3 + $0x460] ss:$8 sps:$4 sm:$0xff]  }
 0x664   : > { %8598 = vmatmul.mubr.bf16.gmra.mrb[84].mxu1 %v17048_v46  ;;  %v17138_v46 = vld [vmem:[%s21514_s3 + $0x474] ss:$8 sps:$4 sm:$0xff]  }
 0x665   : > { %8607 = vmatprep.mubr.bf16.mxu1 %v17052_v62  ;;  %9514 = vmatpush1.bf16.msra.mxu1 %v17079_v54  ;;  %v17136_v62 = vld [vmem:[%s21514_s3 + $0x470] ss:$8 sps:$4 sm:$0xff]   ;;  %v17141_v54 = vld [vmem:[%s21514_s3 + $0x484] ss:$8 sps:$4 sm:$0xff]  }
 0x666   : > { %9515 = vmatprep.subr.bf16.mxu1 %v17087_v56  ;;  %v17139_v56 = vld [vmem:[%s21514_s3 + $0x480] ss:$8 sps:$4 sm:$0xff]  }
 0x669   : > { %9516 = vmatpush1.bf16.msra.mxu1 %v17085_v41  ;;  %v17144_v41 = vld [vmem:[%s21514_s3 + $0x494] ss:$8 sps:$4 sm:$0xff]  }
 0x66a   : > { %9517 = vmatprep.subr.bf16.mxu1 %v17093_v42  ;;  %v17149_v42 = vld [vmem:[%s21514_s3 + $0x4a4] ss:$8 sps:$4 sm:$0xff]  }
 0x66c   : > { %8608 = vmatmul.mubr.bf16.gmra.mrb[88].mxu1 %v17054_v60  ;;  %v17147_v60 = vld [vmem:[%s21514_s3 + $0x4a0] ss:$8 sps:$4 sm:$0xff]  }
 0x66d   : > { %8617 = vmatprep.mubr.bf16.mxu1 %v17058_v63  ;;  %9518 = vmatpush1.bf16.msra.mxu1 %v17091_v6  ;;  %v17153_v63 = vld [vmem:[%s21514_s3 + $0x4b4] ss:$8 sps:$4 sm:$0xff]   ;;  %v17151_v6 = vld [vmem:[%s21514_s3 + $0x4b0] ss:$8 sps:$4 sm:$0xff]  }
 0x66e   : > { %9519 = vmatprep.subr.bf16.mxu1 %v17099_v0  ;;  %v17158_v0 = vld [vmem:[%s21514_s3 + $0x4c4] ss:$8 sps:$4 sm:$0xff]  }
 0x671   : > { %9520 = vmatpush1.bf16.msra.mxu1 %v17097_v57  ;;  %v17156_v57 = vld [vmem:[%s21514_s3 + $0x4c0] ss:$8 sps:$4 sm:$0xff]  }
 0x672   : > { %9521 = vmatprep.subr.bf16.mxu1 %v17105_v7  ;;  %v17162_v7 = vld [vmem:[%s21514_s3 + $0x4d4] ss:$8 sps:$4 sm:$0xff]  }
 0x674   : > { %8618 = vmatmul.mubr.bf16.gmra.mrb[92].mxu1 %v17060_v51  ;;  %v17160_v51 = vld [vmem:[%s21514_s3 + $0x4d0] ss:$8 sps:$4 sm:$0xff]  }
 0x675   : > { %8627 = vmatprep.mubr.bf16.mxu1 %v17064_v52  ;;  %9522 = vmatpush1.bf16.msra.mxu1 %v17103_v8  ;;  %v17167_v52 = vld [vmem:[%s21514_s3 + $0x4e4] ss:$8 sps:$4 sm:$0xff]   ;;  %v17165_v8 = vld [vmem:[%s21514_s3 + $0x4e0] ss:$8 sps:$4 sm:$0xff]  }
 0x676   : > { %9523 = vmatprep.subr.bf16.mxu1 %v17111_v3  ;;  %v17171_v3 = vld [vmem:[%s21514_s3 + $0x4f4] ss:$8 sps:$4 sm:$0xff]  }
 0x679   : > { %9524 = vmatpush1.bf16.msra.mxu1 %v17109_v29  ;;  %v17169_v29 = vld [vmem:[%s21514_s3 + $0x4f0] ss:$8 sps:$4 sm:$0xff]  }
 0x67a   : > { %9566 = vmatprep.subr.bf16.mxu1 %v17117_v4  ;;  %v17174_v4 = vld [vmem:[%s21514_s3 + $0x504] ss:$8 sps:$4 sm:$0xff]  }
 0x67c   : > { %8628 = vmatmul.mubr.bf16.gmra.mrb[96].mxu1 %v17066_v9  ;;  %v17172_v9 = vld [vmem:[%s21514_s3 + $0x500] ss:$8 sps:$4 sm:$0xff]  }
 0x67d   : > { %8637 = vmatprep.mubr.bf16.mxu1 %v17070_v53  ;;  %v17202_v53 = vld [vmem:[%s17819_s19 + $0x6c] ss:$40 sps:$4 sm:$0xff]  }
 0x684   : > { %8638 = vmatmul.mubr.bf16.gmra.mrb[100].mxu1 %v17072_v10  ;;  %v17177_v10 = vld [vmem:[%s21514_s3 + $0x514] ss:$8 sps:$4 sm:$0xff]  }
 0x685   : > { %8647 = vmatprep.mubr.bf16.mxu1 %v17076_v12  ;;  %v17175_v12 = vld [vmem:[%s21514_s3 + $0x510] ss:$8 sps:$4 sm:$0xff]  }
 0x68c   : > { %8648 = vmatmul.mubr.bf16.gmra.mrb[104].mxu1 %v17078_v11  ;;  %v17180_v11 = vld [vmem:[%s21514_s3 + $0x524] ss:$8 sps:$4 sm:$0xff]  }
 0x68d   : > { %8657 = vmatprep.mubr.bf16.mxu1 %v17082_v16  ;;  %v17204_v16 = vld [vmem:[%s17819_s19 + $0x68] ss:$40 sps:$4 sm:$0xff]  }
 0x694   : > { %8658 = vmatmul.mubr.bf16.gmra.mrb[108].mxu1 %v17084_v17  ;;  %v17178_v17 = vld [vmem:[%s21514_s3 + $0x520] ss:$8 sps:$4 sm:$0xff]  }
 0x695   : > { %8667 = vmatprep.mubr.bf16.mxu1 %v17088_v24  ;;  %v17183_v24 = vld [vmem:[%s21514_s3 + $0x534] ss:$8 sps:$4 sm:$0xff]  }
 0x69c   : > { %8668 = vmatmul.mubr.bf16.gmra.mrb[112].mxu1 %v17090_v61  ;;  %v17181_v61 = vld [vmem:[%s21514_s3 + $0x530] ss:$8 sps:$4 sm:$0xff]  }
 0x69d   : > { %8677 = vmatprep.mubr.bf16.mxu1 %v17094_v23  ;;  %v17186_v23 = vld [vmem:[%s21514_s3 + $0x544] ss:$8 sps:$4 sm:$0xff]  }
 0x6a4   : > { %8678 = vmatmul.mubr.bf16.gmra.mrb[116].mxu1 %v17096_v25  ;;  %v17213_v25 = vld [vmem:[%s17819_s19 + $0xb8] ss:$40 sps:$4 sm:$0xff]  }
 0x6a5   : > { %8687 = vmatprep.mubr.bf16.mxu1 %v17100_v55  ;;  %v17184_v55 = vld [vmem:[%s21514_s3 + $0x540] ss:$8 sps:$4 sm:$0xff]  }
 0x6ac   : > { %8688 = vmatmul.mubr.bf16.gmra.mrb[120].mxu1 %v17102_v14  ;;  %v17220_v14 = vld [vmem:[%s17819_s19 + $0x10c] ss:$40 sps:$4 sm:$0xff]  }
 0x6ad   : > { %8697 = vmatprep.mubr.bf16.mxu1 %v17106_v15  ;;  %v17189_v15 = vld [vmem:[%s21514_s3 + $0x554] ss:$8 sps:$4 sm:$0xff]  }
 0x6b4   : > { %8698 = vmatmul.mubr.bf16.gmra.mrb[124].mxu1 %v17108_v34  ;;  %v17187_v34 = vld [vmem:[%s21514_s3 + $0x550] ss:$8 sps:$4 sm:$0xff]  }
 0x6b5   : > { %9525 = vmatprep.mubr.bf16.mxu1 %v17114_v19  ;;  %v17192_v19 = vld [vmem:[%s21514_s3 + $0x564] ss:$8 sps:$4 sm:$0xff]  }
 0x6bc   : > { %9526 = vmatmul.mubr.bf16.vlgmr.msra.gmra.mrb[112].mxu1 %v17112_v37  ;;  %v17222_v37 = vld [vmem:[%s17819_s19 + $0x108] ss:$40 sps:$4 sm:$0xff]  }
 0x6bd   : > { %9567 = vmatpush1.bf16.msra.mxu1 %v17115_v20  ;;  %9535 = vmatprep.mubr.bf16.mxu1 %v17145_v21  ;;  %v17190_v20 = vld [vmem:[%s21514_s3 + $0x560] ss:$8 sps:$4 sm:$0xff]   ;;  %v17195_v21 = vld [vmem:[%s21514_s3 + $0x574] ss:$8 sps:$4 sm:$0xff]  }
 0x6be   : > { %9568 = vmatprep.subr.bf16.mxu1 %v17120_v22  ;;  %v17193_v22 = vld [vmem:[%s21514_s3 + $0x570] ss:$8 sps:$4 sm:$0xff]  }
 0x6c1   : > { %9569 = vmatpush1.bf16.msra.mxu1 %v17118_v26  ;;  %v17198_v26 = vld [vmem:[%s21514_s3 + $0x584] ss:$8 sps:$4 sm:$0xff]  }
 0x6c2   : > { %9570 = vmatprep.subr.bf16.mxu1 %v17123_v27  ;;  %v17196_v27 = vld [vmem:[%s21514_s3 + $0x580] ss:$8 sps:$4 sm:$0xff]  }
 0x6c4   : > { %9536 = vmatmul.mubr.bf16.gmra.mrb[116].mxu1 %v17150_v28  ;;  %v17201_v28 = vld [vmem:[%s21514_s3 + $0x594] ss:$8 sps:$4 sm:$0xff]  }
 0x6c5   : > { %9571 = vmatpush1.bf16.msra.mxu1 %v17121_v31  ;;  %9545 = vmatprep.mubr.bf16.mxu1 %v17154_v33  ;;  %v17207_v31 = vld [vmem:[%s21514_s3 + $0x5a4] ss:$8 sps:$4 sm:$0xff]   ;;  %v17205_v33 = vld [vmem:[%s21514_s3 + $0x5a0] ss:$8 sps:$4 sm:$0xff]  }
 0x6c6   : > { %9572 = vmatprep.subr.bf16.mxu1 %v17126_v49  ;;  %v17210_v49 = vld [vmem:[%s21514_s3 + $0x5b4] ss:$8 sps:$4 sm:$0xff]  }
 0x6c9   : > { %9573 = vmatpush1.bf16.msra.mxu1 %v17124_v43  ;;  %v17208_v43 = vld [vmem:[%s21514_s3 + $0x5b0] ss:$8 sps:$4 sm:$0xff]  }
 0x6ca   : > { %9574 = vmatprep.subr.bf16.mxu1 %v17129_v50  ;;  %v17216_v50 = vld [vmem:[%s21514_s3 + $0x5c4] ss:$8 sps:$4 sm:$0xff]  }
 0x6cc   : > { %9546 = vmatmul.mubr.bf16.gmra.mrb[120].mxu1 %v17159_v44  ;;  %v17214_v44 = vld [vmem:[%s21514_s3 + $0x5c0] ss:$8 sps:$4 sm:$0xff]  }
 0x6cd   : > { %9575 = vmatpush1.bf16.msra.mxu1 %v17127_v45  ;;  %9555 = vmatprep.mubr.bf16.mxu1 %v17163_v48  ;;  %v14735_v45 = vld [vmem:[%s21517_s6 + $0x2] ss:$4 sm:$0x3]  ;;  %v17219_v48 = vld [vmem:[%s21514_s3 + $0x5d4] ss:$8 sps:$4 sm:$0xff]  }
 0x6ce   : > { %9576 = vmatprep.subr.bf16.mxu1 %v17132_v2  ;;  %v20163_v2 = vrot.slane %v14735_v45, %v18229_v58 }
 0x6d1   : > { %9577 = vmatpush1.bf16.msra.mxu1 %v17130_v38  ;;  %v17217_v38 = vld [vmem:[%s21514_s3 + $0x5d0] ss:$8 sps:$4 sm:$0xff]  }
 0x6d2   : > { %9578 = vmatprep.subr.bf16.mxu1 %v17135_v39  ;;  %v20169_v39 = vrot.slane %v14735_v45, %v18231_v59 }
 0x6d4   : > { %9556 = vmatmul.mubr.bf16.gmra.mrb[124].mxu1 %v17168_v5  ;;  %v17225_v5 = vld [vmem:[%s21514_s3 + $0x5e4] ss:$8 sps:$4 sm:$0xff]  }
 0x6d5   : > { %9579 = vmatpush1.bf16.msra.mxu1 %v17133_v36  ;;  %9598 = vmatprep.mubr.bf16.mxu1 %v19689_v30  ;;  %v17142_v30 = vld [vmem:[%s21514_s3 + $0x490] ss:$8 sps:$4 sm:$0xff]  }
 0x6d6   : > { %9580 = vmatprep.subr.bf16.mxu1 %v17138_v46 }
 0x6d9   : > { %9581 = vmatpush1.bf16.msra.mxu1 %v17136_v62 }
 0x6da   : > { %9582 = vmatprep.subr.bf16.mxu1 %v17141_v54 }
 0x6dd   : > { %9583 = vmatpush1.bf16.msra.mxu1 %v17139_v56 }
 0x6de   : > { %9584 = vmatprep.subr.bf16.mxu1 %v17144_v41  ;;  %v17223_v41 = vld [vmem:[%s21514_s3 + $0x5e0] ss:$8 sps:$4 sm:$0xff]  }
 0x6e1   : > { %9585 = vmatpush1.bf16.msra.mxu1 %v17142_v30 }
 0x6e2   : > { %9586 = vmatprep.subr.bf16.mxu1 %v17149_v42 }
 0x6e5   : > { %9587 = vmatpush1.bf16.msra.mxu1 %v17147_v60  ;;  %v17228_v60 = vld [vmem:[%s21514_s3 + $0x5f4] ss:$8 sps:$4 sm:$0xff]  }
 0x6e6   : > { %9588 = vmatprep.subr.bf16.mxu1 %v17153_v63 }
 0x6e9   : > { %9589 = vmatpush1.bf16.msra.mxu1 %v17151_v6 }
 0x6ea   : > { %9590 = vmatprep.subr.bf16.mxu1 %v17158_v0 }
 0x6ed   : > { %9591 = vmatpush1.bf16.msra.mxu1 %v17156_v57 }
 0x6ee   : > { %9592 = vmatprep.subr.bf16.mxu1 %v17162_v7 }
 0x6f1   : > { %9593 = vmatpush1.bf16.msra.mxu1 %v17160_v51  ;;  %v17226_v51 = vld [vmem:[%s21514_s3 + $0x5f0] ss:$8 sps:$4 sm:$0xff]  }
 0x6f2   : > { %9594 = vmatprep.subr.bf16.mxu1 %v17167_v52 }
 0x6f5   : > { %9595 = vmatpush1.bf16.msra.mxu1 %v17165_v8  ;;  %v17231_v8 = vld [vmem:[%s21514_s3 + $0x604] ss:$8 sps:$4 sm:$0xff]  }
 0x6f6   : > { %9596 = vmatprep.subr.bf16.mxu1 %v17171_v3 }
 0x6f9   : > { %9597 = vmatpush1.bf16.msra.mxu1 %v17169_v29 }
 0x6fa   : > { %9639 = vmatprep.subr.bf16.mxu1 %v17174_v4 }
 0x6fc   : > { %9599 = vmatmul.mubr.bf16.vlgmr.msra.gmra.mrb[112].mxu1 %v19693_v13  ;;  %v17211_v13 = vld [vmem:[%s17819_s19 + $0xbc] ss:$40 sps:$4 sm:$0xff]  }
 0x6fd   : > { %9640 = vmatpush1.bf16.msra.mxu1 %v17172_v9  ;;  %9608 = vmatprep.mubr.bf16.mxu1 %v17202_v53 }
 0x6fe   : > { %9641 = vmatprep.subr.bf16.mxu1 %v17177_v10 }
 0x701   : > { %9642 = vmatpush1.bf16.msra.mxu1 %v17175_v12  ;;  %v17229_v12 = vld [vmem:[%s21514_s3 + $0x600] ss:$8 sps:$4 sm:$0xff]  }
 0x702   : > { %9643 = vmatprep.subr.bf16.mxu1 %v17180_v11 }
 0x704   : > { %9609 = vmatmul.mubr.bf16.gmra.mrb[116].mxu1 %v17204_v16 }
 0x705   : > { %9644 = vmatpush1.bf16.msra.mxu1 %v17178_v17  ;;  %9618 = vmatprep.mubr.bf16.mxu1 %v17211_v13  ;;  %v17234_v17 = vld [vmem:[%s21514_s3 + $0x614] ss:$8 sps:$4 sm:$0xff]  }
 0x706   : > { %9645 = vmatprep.subr.bf16.mxu1 %v17183_v24  ;;  %v17352_v24 = vld [vmem:[%s21515_s4] ss:$8 sps:$4 sm:$0xff]  }
 0x709   : > { %9646 = vmatpush1.bf16.msra.mxu1 %v17181_v61  ;;  %v17354_v61 = vld [vmem:[%s21515_s4 + $0x4] ss:$8 sps:$4 sm:$0xff]  }
 0x70a   : > { %9647 = vmatprep.subr.bf16.mxu1 %v17186_v23  ;;  %11947 = vmatprep.subr.bf16.mxu0 %v17354_v61 }
 0x70b   : > { %11948 = vmatpush1.bf16.msra.mxu0 %v17352_v24 }
 0x70c   : > { %9619 = vmatmul.mubr.bf16.gmra.mrb[120].mxu1 %v17213_v25 }
 0x70d   : > { %9648 = vmatpush1.bf16.msra.mxu1 %v17184_v55  ;;  %9628 = vmatprep.mubr.bf16.mxu1 %v17220_v14 }
 0x70e   : > { %9649 = vmatprep.subr.bf16.mxu1 %v17189_v15  ;;  %v17232_v15 = vld [vmem:[%s21514_s3 + $0x610] ss:$8 sps:$4 sm:$0xff]  }
 0x711   : > { %9650 = vmatpush1.bf16.msra.mxu1 %v17187_v34 }
 0x712   : > { %9651 = vmatprep.subr.bf16.mxu1 %v17192_v19  ;;  %v17237_v19 = vld [vmem:[%s21514_s3 + $0x624] ss:$8 sps:$4 sm:$0xff]  }
 0x714   : > { %9629 = vmatmul.mubr.bf16.gmra.mrb[124].mxu1 %v17222_v37 }
 0x715   : > { %9652 = vmatpush1.bf16.msra.mxu1 %v17190_v20  ;;  %9671 = vmatprep.mubr.bf16.mxu1 %v19823_v1  ;;  %v17199_v1 = vld [vmem:[%s21514_s3 + $0x590] ss:$8 sps:$4 sm:$0xff]  }
 0x716   : > { %9653 = vmatprep.subr.bf16.mxu1 %v17195_v21 }
 0x719   : > { %9654 = vmatpush1.bf16.msra.mxu1 %v17193_v22 }
 0x71a   : > { %9655 = vmatprep.subr.bf16.mxu1 %v17198_v26 }
 0x71d   : > { %9656 = vmatpush1.bf16.msra.mxu1 %v17196_v27 }
 0x71e   : > { %9657 = vmatprep.subr.bf16.mxu1 %v17201_v28  ;;  %v17235_v28 = vld [vmem:[%s21514_s3 + $0x620] ss:$8 sps:$4 sm:$0xff]  }
 0x721   : > { %9658 = vmatpush1.bf16.msra.mxu1 %v17199_v1 }
 0x722   : > { %9659 = vmatprep.subr.bf16.mxu1 %v17207_v31 }
 0x725   : > { %9660 = vmatpush1.bf16.msra.mxu1 %v17205_v33  ;;  %v17240_v33 = vld [vmem:[%s21514_s3 + $0x634] ss:$8 sps:$4 sm:$0xff]  }
 0x726   : > { %9661 = vmatprep.subr.bf16.mxu1 %v17210_v49  ;;  %v17366_v49 = vld [vmem:[%s21515_s4 + $0x24] ss:$8 sps:$4 sm:$0xff]  }
 0x729   : > { %9662 = vmatpush1.bf16.msra.mxu1 %v17208_v43 }
 0x72a   : > { %9663 = vmatprep.subr.bf16.mxu1 %v17216_v50  ;;  %v17364_v50 = vld [vmem:[%s21515_s4 + $0x20] ss:$8 sps:$4 sm:$0xff]  }
 0x72d   : > { %9664 = vmatpush1.bf16.msra.mxu1 %v17214_v44 }
 0x72e   : > { %9665 = vmatprep.subr.bf16.mxu1 %v17219_v48 }
 0x72f   : > { %v8589_v36 = vpop.f32.mrb[80].mxu1 }
 0x730   : > { %v10841_v46 = vadd.f32 %v20163_v2, %v8589_v36  ;;  %v8591_v62 = vpop.f32.mrb[81].mxu1 }
 0x731   : > { %v10842_v54 = vadd.f32 %v20169_v39, %v8591_v62  ;;  %9666 = vmatpush1.bf16.msra.mxu1 %v17217_v38  ;;  %v8593_v56 = vpop.f32.mrb[82].mxu1 }
 0x732   : > { %v10843_v30 = vadd.f32 %v20163_v2, %v8593_v56  ;;  %v8595_v42 = vpop.f32.mrb[83].mxu1  ;;  %9667 = vmatprep.subr.bf16.mxu1 %v17225_v5  ;;  %v10905_v6 = vmax.f32 %v10841_v46, 0.0  ;;  %v17238_v5 = vld [vmem:[%s21514_s3 + $0x630] ss:$8 sps:$4 sm:$0xff]   ;;  %v17243_v46 = vld [vmem:[%s21514_s3 + $0x644] ss:$8 sps:$4 sm:$0xff]  }
 0x733   : > { %v10844_v63 = vadd.f32 %v20169_v39, %v8595_v42  ;;  %v10906_v57 = vmax.f32 %v10842_v54, 0.0 }
 0x734   : > { %v10907_v0 = vmax.f32 %v10843_v30, 0.0 }
 0x735   : > { %v10908_v7 = vmax.f32 %v10844_v63, 0.0  ;;  %9668 = vmatpush1.bf16.msra.mxu1 %v17223_v41  ;;  %v17247_v63 = vld [vmem:[%s17819_s19 + $0x114] ss:$40 sps:$4 sm:$0xff]  }
 0x736   : > { %v20187_v52 = vpack.c.bf16 %v10907_v0, %v10905_v6  ;;  %9669 = vmatprep.subr.bf16.mxu1 %v17228_v60  ;;  %v17241_v60 = vld [vmem:[%s21514_s3 + $0x640] ss:$8 sps:$4 sm:$0xff]  }
 0x737   : > { %v20192_v3 = vpack.c.bf16 %v10908_v7, %v10906_v57  ;;  %v8599_v29 = vpop.f32.mrb[84].mxu1  ;;  %v17246_v57 = vld [vmem:[%s21514_s3 + $0x654] ss:$8 sps:$4 sm:$0xff]   ;;  %v17378_v7 = vld [vmem:[%s21515_s4 + $0x44] ss:$8 sps:$4 sm:$0xff]  }
 0x738   : > { %v10845_v4 = vadd.f32 %v20163_v2, %v8599_v29  ;;  %v8601_v9 = vpop.f32.mrb[85].mxu1 }
 0x739   : > { %v10846_v53 = vadd.f32 %v20169_v39, %v8601_v9  ;;  %9670 = vmatpush1.bf16.msra.mxu1 %v17226_v51  ;;  %v8603_v10 = vpop.f32.mrb[86].mxu1 }
 0x73a   : > { %v10847_v11 = vadd.f32 %v20163_v2, %v8603_v10  ;;  %v8605_v16 = vpop.f32.mrb[87].mxu1  ;;  %10481 = vmatprep.subr.bf16.mxu1 %v17231_v8  ;;  %v10909_v23 = vmax.f32 %v10845_v4, 0.0  ;;  %v17376_v8 = vld [vmem:[%s21515_s4 + $0x40] ss:$8 sps:$4 sm:$0xff]   ;;  %v17244_v10 = vld [vmem:[%s21514_s3 + $0x650] ss:$8 sps:$4 sm:$0xff]  }
 0x73b   : > { %v10848_v13 = vadd.f32 %v20169_v39, %v8605_v16  ;;  %v10910_v55 = vmax.f32 %v10846_v53, 0.0 }
 0x73c   : > { %v10911_v25 = vmax.f32 %v10847_v11, 0.0  ;;  %9672 = vmatmul.mubr.bf16.vlgmr.msra.gmra.mrb[112].mxu1 %v19827_v32  ;;  %v17360_v32 = vld [vmem:[%s21515_s4 + $0x14] ss:$8 sps:$4 sm:$0xff]   ;;  %v17252_v11 = vld [vmem:[%s21514_s3 + $0x664] ss:$8 sps:$4 sm:$0xff]  }
 0x73d   : > { %v10912_v14 = vmax.f32 %v10848_v13, 0.0  ;;  %10482 = vmatpush1.bf16.msra.mxu1 %v17229_v12  ;;  %9681 = vmatprep.mubr.bf16.mxu1 %v19833_v47  ;;  %v17358_v47 = vld [vmem:[%s21515_s4 + $0x10] ss:$8 sps:$4 sm:$0xff]  }
 0x73e   : > { %v20215_v34 = vpack.c.bf16 %v10911_v25, %v10909_v23  ;;  %10483 = vmatprep.subr.bf16.mxu1 %v17234_v17  ;;  %11949 = vmatprep.subr.bf16.mxu0 %v17360_v32  ;;  %v17382_v13 = vld [vmem:[%s21515_s4 + $0x50] ss:$8 sps:$4 sm:$0xff]  }
 0x73f   : > { %v20223_v37 = vpack.c.bf16 %v10912_v14, %v10910_v55  ;;  %v8609_v20 = vpop.f32.mrb[88].mxu1  ;;  %11950 = vmatpush1.bf16.msra.mxu0 %v17358_v47  ;;  %v17249_v23 = vld [vmem:[%s17819_s19 + $0x110] ss:$40 sps:$4 sm:$0xff]   ;;  %v17250_v14 = vld [vmem:[%s21514_s3 + $0x660] ss:$8 sps:$4 sm:$0xff]  }
 0x740   : > { %v10849_v21 = vadd.f32 %v20163_v2, %v8609_v20  ;;  %v8611_v22 = vpop.f32.mrb[89].mxu1  ;;  %11951 = vmatprep.subr.bf16.mxu0 %v17366_v49  ;;  %v17255_v20 = vld [vmem:[%s21514_s3 + $0x674] ss:$8 sps:$4 sm:$0xff]   ;;  %v17390_v47 = vld [vmem:[%s21515_s4 + $0x64] ss:$8 sps:$4 sm:$0xff]  }
 0x741   : > { %v10850_v26 = vadd.f32 %v20169_v39, %v8611_v22  ;;  %10484 = vmatpush1.bf16.msra.mxu1 %v17232_v15  ;;  %v8613_v27 = vpop.f32.mrb[90].mxu1  ;;  %v20303_v15 = vld [vmem:[%s17819_s19 + $0x3d4] ss:$40 sps:$4 sm:$0xff]   ;;  %v17388_v22 = vld [vmem:[%s21515_s4 + $0x60] ss:$8 sps:$4 sm:$0xff]  }
 0x742   : > { %v10851_v1 = vadd.f32 %v20163_v2, %v8613_v27  ;;  %v8615_v31 = vpop.f32.mrb[91].mxu1  ;;  %10485 = vmatprep.subr.bf16.mxu1 %v17237_v19  ;;  %v10913_v44 = vmax.f32 %v10849_v21, 0.0  ;;  %v17258_v49 = vld [vmem:[%s21514_s3 + $0x684] ss:$8 sps:$4 sm:$0xff]  }
 0x743   : > { %v10852_v43 = vadd.f32 %v20169_v39, %v8615_v31  ;;  %v10914_v48 = vmax.f32 %v10850_v26, 0.0  ;;  %11952 = vmatpush1.bf16.msra.mxu0 %v17364_v50  ;;  %v17253_v31 = vld [vmem:[%s21514_s3 + $0x670] ss:$8 sps:$4 sm:$0xff]  }
 0x744   : > { %v10915_v45 = vmax.f32 %v10851_v1, 0.0  ;;  %9682 = vmatmul.mubr.bf16.gmra.mrb[116].mxu1 %v19847_v35  ;;  %v17372_v35 = vld [vmem:[%s21515_s4 + $0x34] ss:$8 sps:$4 sm:$0xff]  }
 0x745   : > { %v10916_v38 = vmax.f32 %v10852_v43, 0.0  ;;  %10486 = vmatpush1.bf16.msra.mxu1 %v17235_v28  ;;  %9691 = vmatprep.mubr.bf16.mxu1 %v19850_v18  ;;  %v17370_v18 = vld [vmem:[%s21515_s4 + $0x30] ss:$8 sps:$4 sm:$0xff]   ;;  %v17396_v43 = vld [vmem:[%s21515_s4 + $0x74] ss:$8 sps:$4 sm:$0xff]  }
 0x746   : > { %v20249_v36 = vpack.c.bf16 %v10915_v45, %v10913_v44  ;;  %10487 = vmatprep.subr.bf16.mxu1 %v17240_v33  ;;  %11953 = vmatprep.subr.bf16.mxu0 %v17372_v35  ;;  %v17394_v45 = vld [vmem:[%s21515_s4 + $0x70] ss:$8 sps:$4 sm:$0xff]   ;;  %v17256_v35 = vld [vmem:[%s21514_s3 + $0x680] ss:$8 sps:$4 sm:$0xff]  }
 0x747   : > { %v20257_v62 = vpack.c.bf16 %v10916_v38, %v10914_v48  ;;  %v8619_v54 = vpop.f32.mrb[92].mxu1  ;;  %11954 = vmatpush1.bf16.msra.mxu0 %v17370_v18 }
 0x748   : > { %v10853_v56 = vadd.f32 %v20163_v2, %v8619_v54  ;;  %v8621_v41 = vpop.f32.mrb[93].mxu1  ;;  %11955 = vmatprep.subr.bf16.mxu0 %v17378_v7 }
 0x749   : > { %v10854_v30 = vadd.f32 %v20169_v39, %v8621_v41  ;;  %10488 = vmatpush1.bf16.msra.mxu1 %v17238_v5  ;;  %v8623_v42 = vpop.f32.mrb[94].mxu1  ;;  %v17405_v41 = vld [vmem:[%s21515_s4 + $0x84] ss:$8 sps:$4 sm:$0xff]  }
 0x74a   : > { %v10855_v6 = vadd.f32 %v20163_v2, %v8623_v42  ;;  %v8625_v0 = vpop.f32.mrb[95].mxu1  ;;  %10489 = vmatprep.subr.bf16.mxu1 %v17243_v46  ;;  %v10917_v29 = vmax.f32 %v10853_v56, 0.0  ;;  %v17261_v56 = vld [vmem:[%s21514_s3 + $0x694] ss:$8 sps:$4 sm:$0xff]   ;;  %v17403_v42 = vld [vmem:[%s21515_s4 + $0x80] ss:$8 sps:$4 sm:$0xff]  }
 0x74b   : > { %v10856_v51 = vadd.f32 %v20169_v39, %v8625_v0  ;;  %v10918_v9 = vmax.f32 %v10854_v30, 0.0  ;;  %11956 = vmatpush1.bf16.msra.mxu0 %v17376_v8  ;;  %v17411_v8 = vld [vmem:[%s21515_s4 + $0x94] ss:$8 sps:$4 sm:$0xff]  }
 0x74c   : > { %v10919_v4 = vmax.f32 %v10855_v6, 0.0  ;;  %9692 = vmatmul.mubr.bf16.gmra.mrb[120].mxu1 %v19867_v40  ;;  %v17384_v40 = vld [vmem:[%s21515_s4 + $0x54] ss:$8 sps:$4 sm:$0xff]  }
 0x74d   : > { %v10920_v53 = vmax.f32 %v10856_v51, 0.0  ;;  %10490 = vmatpush1.bf16.msra.mxu1 %v17241_v60  ;;  %9701 = vmatprep.mubr.bf16.mxu1 %v17247_v63  ;;  %v17264_v51 = vld [vmem:[%s21514_s3 + $0x6a4] ss:$8 sps:$4 sm:$0xff]  }
 0x74e   : > { %v20283_v12 = vpack.c.bf16 %v10919_v4, %v10917_v29  ;;  %10491 = vmatprep.subr.bf16.mxu1 %v17246_v57  ;;  %11957 = vmatprep.subr.bf16.mxu0 %v17384_v40  ;;  %v17259_v57 = vld [vmem:[%s21514_s3 + $0x690] ss:$8 sps:$4 sm:$0xff]  }
 0x74f   : > { %v20291_v16 = vpack.c.bf16 %v10920_v53, %v10918_v9  ;;  %v8629_v17 = vpop.f32.mrb[96].mxu1  ;;  %11958 = vmatpush1.bf16.msra.mxu0 %v17382_v13  ;;  %v17409_v9 = vld [vmem:[%s21515_s4 + $0x90] ss:$8 sps:$4 sm:$0xff]  }
 0x750   : > { %v10857_v24 = vadd.f32 %v20163_v2, %v8629_v17  ;;  %v8631_v61 = vpop.f32.mrb[97].mxu1  ;;  %11959 = vmatprep.subr.bf16.mxu0 %v17390_v47  ;;  %v17262_v17 = vld [vmem:[%s21514_s3 + $0x6a0] ss:$8 sps:$4 sm:$0xff]   ;;  %v17265_v47 = vld [vmem:[%s21514_s3 + $0x6b0] ss:$8 sps:$4 sm:$0xff]  }
 0x751   : > { %v10858_v25 = vadd.f32 %v20169_v39, %v8631_v61  ;;  %10492 = vmatpush1.bf16.msra.mxu1 %v17244_v10  ;;  %v8633_v55 = vpop.f32.mrb[98].mxu1  ;;  %v17267_v61 = vld [vmem:[%s21514_s3 + $0x6b4] ss:$8 sps:$4 sm:$0xff]  }
 0x752   : > { %v10859_v19 = vadd.f32 %v20163_v2, %v8633_v55  ;;  %v8635_v32 = vpop.f32.mrb[99].mxu1  ;;  %10493 = vmatprep.subr.bf16.mxu1 %v17252_v11  ;;  %v10921_v26 = vmax.f32 %v10857_v24, 0.0  ;;  %v17420_v55 = vld [vmem:[%s21515_s4 + $0xa4] ss:$8 sps:$4 sm:$0xff]  }
 0x753   : > { %v10860_v21 = vadd.f32 %v20169_v39, %v8635_v32  ;;  %v10922_v28 = vmax.f32 %v10858_v25, 0.0  ;;  %11960 = vmatpush1.bf16.msra.mxu0 %v17388_v22  ;;  %v17418_v25 = vld [vmem:[%s21515_s4 + $0xa0] ss:$8 sps:$4 sm:$0xff]   ;;  %v17270_v22 = vld [vmem:[%s21514_s3 + $0x6c4] ss:$8 sps:$4 sm:$0xff]  }
 0x754   : > { %v10923_v27 = vmax.f32 %v10859_v19, 0.0  ;;  %9702 = vmatmul.mubr.bf16.gmra.mrb[124].mxu1 %v17249_v23  ;;  %11961 = vmatprep.subr.bf16.mxu0 %v17396_v43 }
 0x755   : > { %v10924_v1 = vmax.f32 %v10860_v21, 0.0  ;;  %10494 = vmatpush1.bf16.msra.mxu1 %v17250_v14  ;;  %10513 = vmatprep.mubr.bf16.mxu1 %v20303_v15 }
 0x756   : > { %v20320_v33 = vpack.c.bf16 %v10923_v27, %v10921_v26  ;;  %10495 = vmatprep.subr.bf16.mxu1 %v17255_v20  ;;  %v17426_v26 = vld [vmem:[%s21515_s4 + $0xb4] ss:$8 sps:$4 sm:$0xff]  }
 0x757   : > { %v20328_v50 = vpack.c.bf16 %v10924_v1, %v10922_v28  ;;  %v8639_v44 = vpop.f32.mrb[100].mxu1  ;;  %11962 = vmatpush1.bf16.msra.mxu0 %v17394_v45  ;;  %v17424_v1 = vld [vmem:[%s21515_s4 + $0xb0] ss:$8 sps:$4 sm:$0xff]   ;;  %v17268_v45 = vld [vmem:[%s21514_s3 + $0x6c0] ss:$8 sps:$4 sm:$0xff]  }
 0x758   : > { %v10861_v48 = vadd.f32 %v20163_v2, %v8639_v44  ;;  %v8641_v38 = vpop.f32.mrb[101].mxu1  ;;  %11963 = vmatprep.subr.bf16.mxu0 %v17405_v41 }
 0x759   : > { %v10862_v5 = vadd.f32 %v20169_v39, %v8641_v38  ;;  %10496 = vmatpush1.bf16.msra.mxu1 %v17253_v31  ;;  %v8643_v46 = vpop.f32.mrb[102].mxu1 }
 0x75a   : > { %v10863_v54 = vadd.f32 %v20163_v2, %v8643_v46  ;;  %v8645_v18 = vpop.f32.mrb[103].mxu1  ;;  %10497 = vmatprep.subr.bf16.mxu1 %v17258_v49  ;;  %v10925_v60 = vmax.f32 %v10861_v48, 0.0 }
 0x75b   : > { %v10864_v30 = vadd.f32 %v20169_v39, %v8645_v18  ;;  %v10926_v6 = vmax.f32 %v10862_v5, 0.0  ;;  %11964 = vmatpush1.bf16.msra.mxu0 %v17403_v42  ;;  %v17273_v5 = vld [vmem:[%s21514_s3 + $0x6d4] ss:$8 sps:$4 sm:$0xff]   ;;  %v17271_v42 = vld [vmem:[%s21514_s3 + $0x6d0] ss:$8 sps:$4 sm:$0xff]  }
 0x75c   : > { %v10927_v63 = vmax.f32 %v10863_v54, 0.0  ;;  %11965 = vmatprep.subr.bf16.mxu0 %v17411_v8  ;;  %v17435_v54 = vld [vmem:[%s21515_s4 + $0xc4] ss:$8 sps:$4 sm:$0xff]   ;;  %v17279_v8 = vld [vmem:[%s21514_s3 + $0x6f4] ss:$8 sps:$4 sm:$0xff]  }
 0x75d   : > { %v10928_v0 = vmax.f32 %v10864_v30, 0.0  ;;  %10498 = vmatpush1.bf16.msra.mxu1 %v17256_v35  ;;  %v17433_v35 = vld [vmem:[%s21515_s4 + $0xc0] ss:$8 sps:$4 sm:$0xff]  }
 0x75e   : > { %v20352_v7 = vpack.c.bf16 %v10927_v63, %v10925_v60  ;;  %10499 = vmatprep.subr.bf16.mxu1 %v17261_v56  ;;  %v17276_v63 = vld [vmem:[%s21514_s3 + $0x6e4] ss:$8 sps:$4 sm:$0xff]  }
 0x75f   : > { %v20360_v29 = vpack.c.bf16 %v10928_v0, %v10926_v6  ;;  %v8649_v4 = vpop.f32.mrb[104].mxu1  ;;  %11966 = vmatpush1.bf16.msra.mxu0 %v17409_v9  ;;  %v17441_v6 = vld [vmem:[%s21515_s4 + $0xd4] ss:$8 sps:$4 sm:$0xff]   ;;  %v17445_v9 = vld [vmem:[%s21515_s4 + $0xe0] ss:$8 sps:$4 sm:$0xff]  }
 0x760   : > { %v10865_v53 = vadd.f32 %v20163_v2, %v8649_v4  ;;  %v8651_v10 = vpop.f32.mrb[105].mxu1  ;;  %11967 = vmatprep.subr.bf16.mxu0 %v17420_v55  ;;  %v17447_v4 = vld [vmem:[%s21515_s4 + $0xe4] ss:$8 sps:$4 sm:$0xff]   ;;  %v17286_v55 = vld [vmem:[%s21514_s3 + $0x710] ss:$8 sps:$4 sm:$0xff]  }
 0x761   : > { %v10866_v11 = vadd.f32 %v20169_v39, %v8651_v10  ;;  %10500 = vmatpush1.bf16.msra.mxu1 %v17259_v57  ;;  %v8653_v40 = vpop.f32.mrb[106].mxu1  ;;  %v17439_v57 = vld [vmem:[%s21515_s4 + $0xd0] ss:$8 sps:$4 sm:$0xff]   ;;  %v17285_v10 = vld [vmem:[%s21514_s3 + $0x704] ss:$8 sps:$4 sm:$0xff]  }
 0x762   : > { %v10867_v13 = vadd.f32 %v20163_v2, %v8653_v40  ;;  %v8655_v24 = vpop.f32.mrb[107].mxu1  ;;  %10501 = vmatprep.subr.bf16.mxu1 %v17264_v51  ;;  %v10929_v14 = vmax.f32 %v10865_v53, 0.0  ;;  %v17274_v51 = vld [vmem:[%s21514_s3 + $0x6e0] ss:$8 sps:$4 sm:$0xff]   ;;  %v17277_v53 = vld [vmem:[%s21514_s3 + $0x6f0] ss:$8 sps:$4 sm:$0xff]  }
 0x763   : > { %v10868_v23 = vadd.f32 %v20169_v39, %v8655_v24  ;;  %v10930_v32 = vmax.f32 %v10866_v11, 0.0  ;;  %11968 = vmatpush1.bf16.msra.mxu0 %v17418_v25  ;;  %v17450_v11 = vld [vmem:[%s21515_s4 + $0xf4] ss:$8 sps:$4 sm:$0xff]   ;;  %v17448_v40 = vld [vmem:[%s21515_s4 + $0xf0] ss:$8 sps:$4 sm:$0xff]  }
 0x764   : > { %v10931_v19 = vmax.f32 %v10867_v13, 0.0  ;;  %11969 = vmatprep.subr.bf16.mxu0 %v17426_v26  ;;  %v17283_v13 = vld [vmem:[%s21514_s3 + $0x700] ss:$8 sps:$4 sm:$0xff]   ;;  %v20460_v24 = vld [vmem:[%s17819_s19 + $0x424] ss:$40 sps:$4 sm:$0xff]  }
 0x765   : > { %v10932_v20 = vmax.f32 %v10868_v23, 0.0  ;;  %10502 = vmatpush1.bf16.msra.mxu1 %v17262_v17  ;;  %v20454_v17 = vld [vmem:[%s17819_s19 + $0x3d0] ss:$40 sps:$4 sm:$0xff]   ;;  %v17288_v23 = vld [vmem:[%s21514_s3 + $0x714] ss:$8 sps:$4 sm:$0xff]  }
 0x766   : > { %v20384_v21 = vpack.c.bf16 %v10931_v19, %v10929_v14  ;;  %10503 = vmatprep.subr.bf16.mxu1 %v17267_v61  ;;  %v17455_v61 = vld [vmem:[%s17819_s19 + $0x14] ss:$40 sps:$4 sm:$0xff]   ;;  %v17453_v25 = vld [vmem:[%s17819_s19 + $0x10] ss:$40 sps:$4 sm:$0xff]   ;;  %v17291_v14 = vld [vmem:[%s21514_s3 + $0x724] ss:$8 sps:$4 sm:$0xff]  }
 0x767   : > { %v20392_v27 = vpack.c.bf16 %v10932_v20, %v10930_v32  ;;  %v8659_v28 = vpop.f32.mrb[108].mxu1  ;;  %11970 = vmatpush1.bf16.msra.mxu0 %v17424_v1  ;;  %11979 = vmatprep.mubr.bf16.mxu0 %v17455_v61  ;;  %v20476_v19 = vld [vmem:[%s17819_s19 + $0x420] ss:$40 sps:$4 sm:$0xff]   ;;  %v20482_v20 = vld [vmem:[%s17819_s19 + $0x474] ss:$40 sps:$4 sm:$0xff]  }
 0x768   : > { %v10869_v31 = vadd.f32 %v20163_v2, %v8659_v28  ;;  %v8661_v49 = vpop.f32.mrb[109].mxu1  ;;  %11971 = vmatprep.subr.bf16.mxu0 %v17435_v54  ;;  %v17289_v32 = vld [vmem:[%s21514_s3 + $0x720] ss:$8 sps:$4 sm:$0xff]   ;;  %v17292_v28 = vld [vmem:[%s21514_s3 + $0x730] ss:$8 sps:$4 sm:$0xff]  }
 0x769   : > { %v10870_v43 = vadd.f32 %v20169_v39, %v8661_v49  ;;  %10504 = vmatpush1.bf16.msra.mxu1 %v17265_v47  ;;  %v8663_v44 = vpop.f32.mrb[110].mxu1  ;;  %v17459_v47 = vld [vmem:[%s17819_s19 + $0x64] ss:$40 sps:$4 sm:$0xff]   ;;  %v17462_v26 = vld [vmem:[%s17819_s19 + $0x60] ss:$40 sps:$4 sm:$0xff]  }
 0x76a   : > { %v10871_v48 = vadd.f32 %v20163_v2, %v8663_v44  ;;  %v8665_v38 = vpop.f32.mrb[111].mxu1  ;;  %10505 = vmatprep.subr.bf16.mxu1 %v17270_v22  ;;  %v10933_v18 = vmax.f32 %v10869_v31, 0.0  ;;  %v17294_v22 = vld [vmem:[%s21514_s3 + $0x734] ss:$8 sps:$4 sm:$0xff]   ;;  %v17297_v1 = vld [vmem:[%s21514_s3 + $0x744] ss:$8 sps:$4 sm:$0xff]  }
 0x76b   : > { %v10872_v46 = vadd.f32 %v20169_v39, %v8665_v38  ;;  %v10934_v41 = vmax.f32 %v10870_v43, 0.0  ;;  %11972 = vmatpush1.bf16.msra.mxu0 %v17433_v35  ;;  %v20498_v31 = vld [vmem:[%s17819_s19 + $0x470] ss:$40 sps:$4 sm:$0xff]   ;;  %v17295_v49 = vld [vmem:[%s21514_s3 + $0x740] ss:$8 sps:$4 sm:$0xff]  }
 0x76c   : > { %v10935_v56 = vmax.f32 %v10871_v48, 0.0  ;;  %11973 = vmatprep.subr.bf16.mxu0 %v17441_v6  ;;  %v20504_v43 = vld [vmem:[%s17819_s19 + $0x4c4] ss:$40 sps:$4 sm:$0xff]   ;;  %v17465_v44 = vld [vmem:[%s17819_s19 + $0xb4] ss:$40 sps:$4 sm:$0xff]  }
 0x76d   : > { %v10936_v30 = vmax.f32 %v10872_v46, 0.0  ;;  %10506 = vmatpush1.bf16.msra.mxu1 %v17268_v45  ;;  %v17300_v45 = vld [vmem:[%s21514_s3 + $0x754] ss:$8 sps:$4 sm:$0xff]   ;;  %v17468_v48 = vld [vmem:[%s17819_s19 + $0xb0] ss:$40 sps:$4 sm:$0xff]  }
 0x76e   : > { %v20416_v60 = vpack.c.bf16 %v10935_v56, %v10933_v18  ;;  %10507 = vmatprep.subr.bf16.mxu1 %v17273_v5  ;;  %v17298_v38 = vld [vmem:[%s21514_s3 + $0x750] ss:$8 sps:$4 sm:$0xff]   ;;  %v17303_v5 = vld [vmem:[%s21514_s3 + $0x764] ss:$8 sps:$4 sm:$0xff]   ;;  %v20520_v46 = vld [vmem:[%s17819_s19 + $0x4c0] ss:$40 sps:$4 sm:$0xff]  }
 0x76f   : > { %v20424_v0 = vpack.c.bf16 %v10936_v30, %v10934_v41  ;;  %11974 = vmatpush1.bf16.msra.mxu0 %v17439_v57  ;;  %v17301_v35 = vld [vmem:[%s21514_s3 + $0x760] ss:$8 sps:$4 sm:$0xff]   ;;  %v17342_v54 = vld [vmem:[%s17819_s19 + $0x3dc] ss:$40 sps:$4 sm:$0xff]   ;;  %v17304_v30 = vld [vmem:[%s21514_s3 + $0x770] ss:$8 sps:$4 sm:$0xff]  }
 0x770   : > { %11975 = vmatprep.subr.bf16.mxu0 %v17447_v4  ;;  %v17469_v18 = vld [vmem:[%s17819_s19 + $0x104] ss:$40 sps:$4 sm:$0xff]   ;;  %v17306_v56 = vld [vmem:[%s21514_s3 + $0x774] ss:$8 sps:$4 sm:$0xff]   ;;  %v17471_v41 = vld [vmem:[%s17819_s19 + $0x100] ss:$40 sps:$4 sm:$0xff]  }
 0x771   : > { %10508 = vmatpush1.bf16.msra.mxu1 %v17271_v42  ;;  %v17309_v42 = vld [vmem:[%s21514_s3 + $0x784] ss:$8 sps:$4 sm:$0xff]   ;;  %v17472_v6 = vld [vmem:[%s17819_s19 + $0x154] ss:$40 sps:$4 sm:$0xff]   ;;  %v17324_v61 = vld [vmem:[%s21514_s3 + $0x7c0] ss:$8 sps:$4 sm:$0xff]  }
 0x772   : > { %10509 = vmatprep.subr.bf16.mxu1 %v17276_v63  ;;  %v17307_v63 = vld [vmem:[%s21514_s3 + $0x780] ss:$8 sps:$4 sm:$0xff]   ;;  %v17312_v57 = vld [vmem:[%s21514_s3 + $0x794] ss:$8 sps:$4 sm:$0xff]   ;;  %v17317_v4 = vld [vmem:[%s21514_s3 + $0x7a4] ss:$8 sps:$4 sm:$0xff]  }
 0x773   : > { %11976 = vmatpush1.bf16.msra.mxu0 %v17445_v9  ;;  %v17315_v9 = vld [vmem:[%s21514_s3 + $0x7a0] ss:$8 sps:$4 sm:$0xff]  }
 0x774   : > { %11977 = vmatprep.subr.bf16.mxu0 %v17450_v11  ;;  %v17477_v11 = vld [vmem:[%s17819_s19 + $0x1a0] ss:$40 sps:$4 sm:$0xff]  }
 0x775   : > { %10510 = vmatpush1.bf16.msra.mxu1 %v17274_v51  ;;  %v17474_v51 = vld [vmem:[%s17819_s19 + $0x150] ss:$40 sps:$4 sm:$0xff]  }
 0x776   : > { %10511 = vmatprep.subr.bf16.mxu1 %v17279_v8  ;;  %v17310_v8 = vld [vmem:[%s21514_s3 + $0x790] ss:$8 sps:$4 sm:$0xff]  }
 0x777   : > { %11978 = vmatpush1.bf16.msra.mxu0 %v17448_v40  ;;  %v17319_v40 = vld [vmem:[%s21514_s3 + $0x7b0] ss:$8 sps:$4 sm:$0xff]  }
 0x779   : > { %10512 = vmatpush1.bf16.msra.mxu1 %v17277_v53  ;;  %v17475_v53 = vld [vmem:[%s17819_s19 + $0x1a4] ss:$40 sps:$4 sm:$0xff]  }
 0x77a   : > { %10554 = vmatprep.subr.bf16.mxu1 %v17285_v10  ;;  %11980 = vmatmul.mubr.bf16.vlgmr.msra.gmra.mrb[128].mxu0 %v17453_v25  ;;  %v17321_v10 = vld [vmem:[%s21514_s3 + $0x7b4] ss:$8 sps:$4 sm:$0xff]  }
 0x77b   : > { %11989 = vmatprep.mubr.bf16.mxu0 %v17459_v47  ;;  %v17330_v25 = vld [vmem:[%s21514_s3 + $0x7d4] ss:$8 sps:$4 sm:$0xff]   ;;  %v17481_v47 = vld [vmem:[%s17819_s19 + $0x244] ss:$40 sps:$4 sm:$0xff]  }
 0x77c   : > { %10514 = vmatmul.mubr.bf16.vlgmr.msra.gmra.mrb[64].mxu1 %v20454_v17 }
 0x77d   : > { %10555 = vmatpush1.bf16.msra.mxu1 %v17283_v13  ;;  %10523 = vmatprep.mubr.bf16.mxu1 %v20460_v24  ;;  %v17326_v13 = vld [vmem:[%s21514_s3 + $0x7c4] ss:$8 sps:$4 sm:$0xff]  }
 0x77e   : > { %10556 = vmatprep.subr.bf16.mxu1 %v17288_v23  ;;  %v17478_v23 = vld [vmem:[%s17819_s19 + $0x1f4] ss:$40 sps:$4 sm:$0xff]  }
 0x781   : > { %10557 = vmatpush1.bf16.msra.mxu1 %v17286_v55  ;;  %v17480_v55 = vld [vmem:[%s17819_s19 + $0x1f0] ss:$40 sps:$4 sm:$0xff]  }
 0x782   : > { %10558 = vmatprep.subr.bf16.mxu1 %v17291_v14  ;;  %11990 = vmatmul.mubr.bf16.gmra.mrb[132].mxu0 %v17462_v26  ;;  %v17328_v14 = vld [vmem:[%s21514_s3 + $0x7d0] ss:$8 sps:$4 sm:$0xff]   ;;  %v17339_v26 = vld [vmem:[%s21514_s3 + $0x7f4] ss:$8 sps:$4 sm:$0xff]  }
 0x783   : > { %11999 = vmatprep.mubr.bf16.mxu0 %v17465_v44  ;;  %v20595_v44 = vld [vmem:[%s21516_s5 + $0x304] ss:$8 sps:$4 sm:$0xff]  }
 0x784   : > { %10524 = vmatmul.mubr.bf16.gmra.mrb[68].mxu1 %v20476_v19  ;;  %12634 = vmatprep.subr.bf16.mxu0 %v20595_v44 }
 0x785   : > { %10559 = vmatpush1.bf16.msra.mxu1 %v17289_v32  ;;  %10533 = vmatprep.mubr.bf16.mxu1 %v20482_v20  ;;  %v17335_v32 = vld [vmem:[%s21514_s3 + $0x7e4] ss:$8 sps:$4 sm:$0xff]  }
 0x786   : > { %10560 = vmatprep.subr.bf16.mxu1 %v17294_v22  ;;  %v17333_v22 = vld [vmem:[%s21514_s3 + $0x7e0] ss:$8 sps:$4 sm:$0xff]  }
 0x789   : > { %10561 = vmatpush1.bf16.msra.mxu1 %v17292_v28  ;;  %v17483_v28 = vld [vmem:[%s17819_s19 + $0x240] ss:$40 sps:$4 sm:$0xff]  }
 0x78a   : > { %10562 = vmatprep.subr.bf16.mxu1 %v17297_v1  ;;  %12000 = vmatmul.mubr.bf16.gmra.mrb[136].mxu0 %v17468_v48  ;;  %v17484_v1 = vld [vmem:[%s17819_s19 + $0x294] ss:$40 sps:$4 sm:$0xff]   ;;  %v17345_v48 = vld [vmem:[%s21514_s3 + $0x804] ss:$8 sps:$4 sm:$0xff]  }
 0x78b   : > { %12009 = vmatprep.mubr.bf16.mxu0 %v17469_v18  ;;  %v17397_v18 = vld [vmem:[%s17819_s19 + $0x42c] ss:$40 sps:$4 sm:$0xff]  }
 0x78c   : > { %10534 = vmatmul.mubr.bf16.gmra.mrb[72].mxu1 %v20498_v31 }
 0x78d   : > { %10563 = vmatpush1.bf16.msra.mxu1 %v17295_v49  ;;  %10543 = vmatprep.mubr.bf16.mxu1 %v20504_v43  ;;  %v17505_v49 = vld [vmem:[%s21516_s5 + $0x300] ss:$8 sps:$4 sm:$0xff]  }
 0x78e   : > { %10564 = vmatprep.subr.bf16.mxu1 %v17300_v45  ;;  %v17337_v45 = vld [vmem:[%s21514_s3 + $0x7f0] ss:$8 sps:$4 sm:$0xff]   ;;  %12635 = vmatpush1.bf16.msra.mxu0 %v17505_v49  ;;  %v17543_v49 = vld [vmem:[%s21516_s5 + $0x364] ss:$8 sps:$4 sm:$0xff]  }
 0x791   : > { %10565 = vmatpush1.bf16.msra.mxu1 %v17298_v38  ;;  %v17513_v38 = vld [vmem:[%s21516_s5 + $0x314] ss:$8 sps:$4 sm:$0xff]  }
 0x792   : > { %10566 = vmatprep.subr.bf16.mxu1 %v17303_v5  ;;  %12010 = vmatmul.mubr.bf16.gmra.mrb[140].mxu0 %v17471_v41  ;;  %v17340_v5 = vld [vmem:[%s17819_s19 + $0x3d8] ss:$40 sps:$4 sm:$0xff]  }
 0x793   : > { %12019 = vmatprep.mubr.bf16.mxu0 %v17472_v6  ;;  %12636 = vmatprep.subr.bf16.mxu0 %v17513_v38  ;;  %v17486_v41 = vld [vmem:[%s17819_s19 + $0x290] ss:$40 sps:$4 sm:$0xff]   ;;  %v17549_v38 = vld [vmem:[%s21516_s5 + $0x374] ss:$8 sps:$4 sm:$0xff]  }
 0x794   : > { %10544 = vmatmul.mubr.bf16.gmra.mrb[76].mxu1 %v20520_v46  ;;  %v17346_v6 = vld [vmem:[%s21514_s3 + $0x810] ss:$8 sps:$4 sm:$0xff]  }
 0x795   : > { %10567 = vmatpush1.bf16.msra.mxu1 %v17301_v35  ;;  %10586 = vmatprep.mubr.bf16.mxu1 %v17342_v54  ;;  %v17511_v35 = vld [vmem:[%s21516_s5 + $0x310] ss:$8 sps:$4 sm:$0xff]   ;;  %v17343_v54 = vld [vmem:[%s21514_s3 + $0x800] ss:$8 sps:$4 sm:$0xff]  }
 0x796   : > { %10568 = vmatprep.subr.bf16.mxu1 %v17306_v56  ;;  %v17348_v56 = vld [vmem:[%s21514_s3 + $0x814] ss:$8 sps:$4 sm:$0xff]   ;;  %12637 = vmatpush1.bf16.msra.mxu0 %v17511_v35  ;;  %v17429_v35 = vld [vmem:[%s17819_s19 + $0x4c8] ss:$40 sps:$4 sm:$0xff]  }
 0x799   : > { %10569 = vmatpush1.bf16.msra.mxu1 %v17304_v30  ;;  %v17487_v30 = vld [vmem:[%s17819_s19 + $0x2e4] ss:$40 sps:$4 sm:$0xff]  }
 0x79a   : > { %10570 = vmatprep.subr.bf16.mxu1 %v17309_v42  ;;  %12020 = vmatmul.mubr.bf16.gmra.mrb[144].mxu0 %v17474_v51  ;;  %v17519_v42 = vld [vmem:[%s21516_s5 + $0x324] ss:$8 sps:$4 sm:$0xff]  }
 0x79b   : > { %12029 = vmatprep.mubr.bf16.mxu0 %v17475_v53  ;;  %v17351_v51 = vld [vmem:[%s21514_s3 + $0x824] ss:$8 sps:$4 sm:$0xff]   ;;  %12638 = vmatprep.subr.bf16.mxu0 %v17519_v42 }
 0x79c   : > { %v17412_v53 = vld [vmem:[%s17819_s19 + $0x47c] ss:$40 sps:$4 sm:$0xff]  }
 0x79d   : > { %10571 = vmatpush1.bf16.msra.mxu1 %v17307_v63  ;;  %v17517_v63 = vld [vmem:[%s21516_s5 + $0x320] ss:$8 sps:$4 sm:$0xff]   ;;  %v17555_v42 = vld [vmem:[%s21516_s5 + $0x384] ss:$8 sps:$4 sm:$0xff]  }
 0x79e   : > { %10572 = vmatprep.subr.bf16.mxu1 %v17312_v57  ;;  %v17525_v57 = vld [vmem:[%s21516_s5 + $0x334] ss:$8 sps:$4 sm:$0xff]   ;;  %12639 = vmatpush1.bf16.msra.mxu0 %v17517_v63  ;;  %v17553_v63 = vld [vmem:[%s21516_s5 + $0x380] ss:$8 sps:$4 sm:$0xff]  }
 0x79f   : > { %12640 = vmatprep.subr.bf16.mxu0 %v17525_v57  ;;  %v17561_v57 = vld [vmem:[%s21516_s5 + $0x394] ss:$8 sps:$4 sm:$0xff]  }
 0x7a1   : > { %10573 = vmatpush1.bf16.msra.mxu1 %v17310_v8  ;;  %v17399_v8 = vld [vmem:[%s17819_s19 + $0x428] ss:$40 sps:$4 sm:$0xff]  }
 0x7a2   : > { %10574 = vmatprep.subr.bf16.mxu1 %v17317_v4  ;;  %12030 = vmatmul.mubr.bf16.gmra.mrb[148].mxu0 %v17477_v11  ;;  %v17523_v4 = vld [vmem:[%s21516_s5 + $0x330] ss:$8 sps:$4 sm:$0xff]   ;;  %v17489_v11 = vld [vmem:[%s17819_s19 + $0x2e0] ss:$40 sps:$4 sm:$0xff]  }
 0x7a3   : > { %12039 = vmatprep.mubr.bf16.mxu0 %v17478_v23  ;;  %12641 = vmatpush1.bf16.msra.mxu0 %v17523_v4  ;;  %v17355_v23 = vld [vmem:[%s21514_s3 + $0x830] ss:$8 sps:$4 sm:$0xff]   ;;  %v17385_v4 = vld [vmem:[%s21514_s3 + $0x880] ss:$8 sps:$4 sm:$0xff]  }
 0x7a5   : > { %10575 = vmatpush1.bf16.msra.mxu1 %v17315_v9  ;;  %v17349_v9 = vld [vmem:[%s21514_s3 + $0x820] ss:$8 sps:$4 sm:$0xff]  }
 0x7a6   : > { %10576 = vmatprep.subr.bf16.mxu1 %v17321_v10  ;;  %v17357_v10 = vld [vmem:[%s21514_s3 + $0x834] ss:$8 sps:$4 sm:$0xff]  }
 0x7a9   : > { %10577 = vmatpush1.bf16.msra.mxu1 %v17319_v40  ;;  %v17490_v40 = vld [vmem:[%s17819_s19 + $0x334] ss:$40 sps:$4 sm:$0xff]  }
 0x7aa   : > { %10578 = vmatprep.subr.bf16.mxu1 %v17326_v13  ;;  %12040 = vmatmul.mubr.bf16.gmra.mrb[152].mxu0 %v17480_v55  ;;  %v17531_v13 = vld [vmem:[%s21516_s5 + $0x344] ss:$8 sps:$4 sm:$0xff]  }
 0x7ab   : > { %12049 = vmatprep.mubr.bf16.mxu0 %v17481_v47  ;;  %v17363_v55 = vld [vmem:[%s21514_s3 + $0x844] ss:$8 sps:$4 sm:$0xff]   ;;  %12642 = vmatprep.subr.bf16.mxu0 %v17531_v13  ;;  %v17361_v47 = vld [vmem:[%s21514_s3 + $0x840] ss:$8 sps:$4 sm:$0xff]   ;;  %v17571_v13 = vld [vmem:[%s21516_s5 + $0x3b0] ss:$8 sps:$4 sm:$0xff]  }
 0x7ad   : > { %10579 = vmatpush1.bf16.msra.mxu1 %v17324_v61  ;;  %v17529_v61 = vld [vmem:[%s21516_s5 + $0x340] ss:$8 sps:$4 sm:$0xff]  }
 0x7ae   : > { %10580 = vmatprep.subr.bf16.mxu1 %v17330_v25  ;;  %v17537_v25 = vld [vmem:[%s21516_s5 + $0x354] ss:$8 sps:$4 sm:$0xff]   ;;  %12643 = vmatpush1.bf16.msra.mxu0 %v17529_v61  ;;  %v17400_v61 = vld [vmem:[%s21514_s3 + $0x8a0] ss:$8 sps:$4 sm:$0xff]  }
 0x7af   : > { %12644 = vmatprep.subr.bf16.mxu0 %v17537_v25  ;;  %v17415_v25 = vld [vmem:[%s21514_s3 + $0x8c0] ss:$8 sps:$4 sm:$0xff]  }
 0x7b1   : > { %10581 = vmatpush1.bf16.msra.mxu1 %v17328_v14  ;;  %v17414_v14 = vld [vmem:[%s17819_s19 + $0x478] ss:$40 sps:$4 sm:$0xff]  }
 0x7b2   : > { %10582 = vmatprep.subr.bf16.mxu1 %v17335_v32  ;;  %12050 = vmatmul.mubr.bf16.gmra.mrb[156].mxu0 %v17483_v28  ;;  %v17535_v32 = vld [vmem:[%s21516_s5 + $0x350] ss:$8 sps:$4 sm:$0xff]  }
 0x7b3   : > { %12059 = vmatprep.mubr.bf16.mxu0 %v17484_v1  ;;  %v17492_v28 = vld [vmem:[%s17819_s19 + $0x330] ss:$40 sps:$4 sm:$0xff]   ;;  %v17493_v1 = vld [vmem:[%s17819_s19 + $0x384] ss:$40 sps:$4 sm:$0xff]   ;;  %12645 = vmatpush1.bf16.msra.mxu0 %v17535_v32  ;;  %v17438_v32 = vld [vmem:[%s21514_s3 + $0x8f4] ss:$8 sps:$4 sm:$0xff]  }
 0x7b4   : > { %12646 = vmatprep.subr.bf16.mxu0 %v17543_v49  ;;  %v17456_v49 = vld [vmem:[%s17819_s19 + $0x430] ss:$40 sps:$4 sm:$0xff]  }
 0x7b5   : > { %10583 = vmatpush1.bf16.msra.mxu1 %v17333_v22  ;;  %v17427_v22 = vld [vmem:[%s17819_s19 + $0x4cc] ss:$40 sps:$4 sm:$0xff]  }
 0x7b6   : > { %10584 = vmatprep.subr.bf16.mxu1 %v17339_v26  ;;  %v17369_v26 = vld [vmem:[%s21514_s3 + $0x854] ss:$8 sps:$4 sm:$0xff]  }
 0x7b9   : > { %10585 = vmatpush1.bf16.msra.mxu1 %v17337_v45  ;;  %v17541_v45 = vld [vmem:[%s21516_s5 + $0x360] ss:$8 sps:$4 sm:$0xff]  }
 0x7ba   : > { %10627 = vmatprep.subr.bf16.mxu1 %v17345_v48  ;;  %12060 = vmatmul.mubr.bf16.gmra.mrb[160].mxu0 %v17486_v41  ;;  %v17367_v48 = vld [vmem:[%s21514_s3 + $0x850] ss:$8 sps:$4 sm:$0xff]   ;;  %v17381_v41 = vld [vmem:[%s21514_s3 + $0x874] ss:$8 sps:$4 sm:$0xff]  }
 0x7bb   : > { %12069 = vmatprep.mubr.bf16.mxu0 %v17487_v30  ;;  %12647 = vmatpush1.bf16.msra.mxu0 %v17541_v45  ;;  %v17495_v30 = vld [vmem:[%s17819_s19 + $0x380] ss:$40 sps:$4 sm:$0xff]   ;;  %v17457_v45 = vld [vmem:[%s17819_s19 + $0x484] ss:$40 sps:$4 sm:$0xff]  }
 0x7bc   : > { %10587 = vmatmul.mubr.bf16.vlgmr.msra.gmra.mrb[64].mxu1 %v17340_v5  ;;  %v17375_v5 = vld [vmem:[%s21514_s3 + $0x864] ss:$8 sps:$4 sm:$0xff]   ;;  %12648 = vmatprep.subr.bf16.mxu0 %v17549_v38  ;;  %v17510_v38 = vld [vmem:[%s21516_s5 + $0x234] ss:$8 sps:$4 sm:$0xff]  }
 0x7bd   : > { %10628 = vmatpush1.bf16.msra.mxu1 %v17343_v54  ;;  %10596 = vmatprep.mubr.bf16.mxu1 %v17397_v18  ;;  %v17547_v54 = vld [vmem:[%s21516_s5 + $0x370] ss:$8 sps:$4 sm:$0xff]   ;;  %v17373_v18 = vld [vmem:[%s21514_s3 + $0x860] ss:$8 sps:$4 sm:$0xff]  }
 0x7be   : > { %10629 = vmatprep.subr.bf16.mxu1 %v17348_v56  ;;  %v17444_v56 = vld [vmem:[%s17819_s19 + $0x3e4] ss:$40 sps:$4 sm:$0xff]  }
 0x7bf   : > { %12649 = vmatpush1.bf16.msra.mxu0 %v17547_v54  ;;  %v17461_v54 = vld [vmem:[%s17819_s19 + $0x480] ss:$40 sps:$4 sm:$0xff]  }
 0x7c0   : > { %12650 = vmatprep.subr.bf16.mxu0 %v17555_v42  ;;  %v17528_v42 = vld [vmem:[%s21516_s5 + $0x264] ss:$8 sps:$4 sm:$0xff]  }
 0x7c1   : > { %10630 = vmatpush1.bf16.msra.mxu1 %v17346_v6  ;;  %v17379_v6 = vld [vmem:[%s21514_s3 + $0x870] ss:$8 sps:$4 sm:$0xff]  }
 0x7c2   : > { %10631 = vmatprep.subr.bf16.mxu1 %v17351_v51  ;;  %12070 = vmatmul.mubr.bf16.gmra.mrb[164].mxu0 %v17489_v11  ;;  %v17387_v51 = vld [vmem:[%s21514_s3 + $0x884] ss:$8 sps:$4 sm:$0xff]   ;;  %v17573_v11 = vld [vmem:[%s21516_s5 + $0x3b4] ss:$8 sps:$4 sm:$0xff]  }
 0x7c3   : > { %12079 = vmatprep.mubr.bf16.mxu0 %v17490_v40  ;;  %12651 = vmatpush1.bf16.msra.mxu0 %v17553_v63  ;;  %v17402_v40 = vld [vmem:[%s21514_s3 + $0x8a4] ss:$8 sps:$4 sm:$0xff]  }
 0x7c4   : > { %10597 = vmatmul.mubr.bf16.gmra.mrb[68].mxu1 %v17399_v8  ;;  %v17559_v8 = vld [vmem:[%s21516_s5 + $0x390] ss:$8 sps:$4 sm:$0xff]   ;;  %12652 = vmatprep.subr.bf16.mxu0 %v17561_v57 }
 0x7c5   : > { %10632 = vmatpush1.bf16.msra.mxu1 %v17349_v9  ;;  %10606 = vmatprep.mubr.bf16.mxu1 %v17412_v53  ;;  %v17567_v9 = vld [vmem:[%s21516_s5 + $0x3a4] ss:$8 sps:$4 sm:$0xff]   ;;  %v17565_v53 = vld [vmem:[%s21516_s5 + $0x3a0] ss:$8 sps:$4 sm:$0xff]  }
 0x7c6   : > { %10633 = vmatprep.subr.bf16.mxu1 %v17357_v10  ;;  %v17391_v10 = vld [vmem:[%s21514_s3 + $0x890] ss:$8 sps:$4 sm:$0xff]  }
 0x7c7   : > { %12653 = vmatpush1.bf16.msra.mxu0 %v17559_v8 }
 0x7c8   : > { %12654 = vmatprep.subr.bf16.mxu0 %v17567_v9  ;;  %v17526_v9 = vld [vmem:[%s21516_s5 + $0x260] ss:$8 sps:$4 sm:$0xff]  }
 0x7c9   : > { %10634 = vmatpush1.bf16.msra.mxu1 %v17355_v23  ;;  %v17408_v23 = vld [vmem:[%s21514_s3 + $0x8b4] ss:$8 sps:$4 sm:$0xff]  }
 0x7ca   : > { %10635 = vmatprep.subr.bf16.mxu1 %v17363_v55  ;;  %12080 = vmatmul.mubr.bf16.gmra.mrb[168].mxu0 %v17492_v28  ;;  %v17423_v55 = vld [vmem:[%s21514_s3 + $0x8d4] ss:$8 sps:$4 sm:$0xff]  }
 0x7cb   : > { %12089 = vmatprep.mubr.bf16.mxu0 %v17493_v1  ;;  %12655 = vmatpush1.bf16.msra.mxu0 %v17565_v53  ;;  %v17501_v28 = vld [vmem:[%s21516_s5 + $0x214] ss:$8 sps:$4 sm:$0xff]   ;;  %v17504_v1 = vld [vmem:[%s21516_s5 + $0x224] ss:$8 sps:$4 sm:$0xff]  }
 0x7cc   : > { %10607 = vmatmul.mubr.bf16.gmra.mrb[72].mxu1 %v17414_v14  ;;  %12656 = vmatprep.subr.bf16.mxu0 %v17573_v11  ;;  %v17421_v14 = vld [vmem:[%s21514_s3 + $0x8d0] ss:$8 sps:$4 sm:$0xff]  }
 0x7cd   : > { %10636 = vmatpush1.bf16.msra.mxu1 %v17361_v47  ;;  %10616 = vmatprep.mubr.bf16.mxu1 %v17427_v22  ;;  %v17436_v47 = vld [vmem:[%s21514_s3 + $0x8f0] ss:$8 sps:$4 sm:$0xff]   ;;  %v17451_v22 = vld [vmem:[%s17819_s19 + $0x434] ss:$40 sps:$4 sm:$0xff]  }
 0x7ce   : > { %10637 = vmatprep.subr.bf16.mxu1 %v17369_v26  ;;  %v17496_v26 = vld [vmem:[%s21516_s5 + $0x200] ss:$8 sps:$4 sm:$0xff]  }
 0x7cf   : > { %12657 = vmatpush1.bf16.msra.mxu0 %v17571_v13 }
 0x7d1   : > { %10638 = vmatpush1.bf16.msra.mxu1 %v17367_v48  ;;  %v17502_v48 = vld [vmem:[%s21516_s5 + $0x220] ss:$8 sps:$4 sm:$0xff]  }
 0x7d2   : > { %10639 = vmatprep.subr.bf16.mxu1 %v17375_v5  ;;  %12090 = vmatmul.mubr.bf16.gmra.mrb[172].mxu0 %v17495_v30  ;;  %v17508_v5 = vld [vmem:[%s21516_s5 + $0x230] ss:$8 sps:$4 sm:$0xff]  }
 0x7d3   : > { %12099 = vmatprep.mubr.bf16.mxu0 %v20303_v15  ;;  %v17393_v15 = vld [vmem:[%s21514_s3 + $0x894] ss:$8 sps:$4 sm:$0xff]   ;;  %v17520_v30 = vld [vmem:[%s21516_s5 + $0x250] ss:$8 sps:$4 sm:$0xff]  }
 0x7d4   : > { %10617 = vmatmul.mubr.bf16.gmra.mrb[76].mxu1 %v17429_v35  ;;  %v17516_v35 = vld [vmem:[%s21516_s5 + $0x244] ss:$8 sps:$4 sm:$0xff]  }
 0x7d5   : > { %10640 = vmatpush1.bf16.msra.mxu1 %v17373_v18  ;;  %10659 = vmatprep.mubr.bf16.mxu1 %v17444_v56  ;;  %v17463_v18 = vld [vmem:[%s17819_s19 + $0x4d4] ss:$40 sps:$4 sm:$0xff]   ;;  %v17514_v56 = vld [vmem:[%s21516_s5 + $0x240] ss:$8 sps:$4 sm:$0xff]  }
 0x7d6   : > { %10641 = vmatprep.subr.bf16.mxu1 %v17381_v41  ;;  %v17522_v41 = vld [vmem:[%s21516_s5 + $0x254] ss:$8 sps:$4 sm:$0xff]  }
 0x7d9   : > { %10642 = vmatpush1.bf16.msra.mxu1 %v17379_v6 }
 0x7da   : > { %10643 = vmatprep.subr.bf16.mxu1 %v17387_v51  ;;  %12100 = vmatmul.mubr.bf16.gmra.mrb[176].mxu0 %v20454_v17  ;;  %v17406_v17 = vld [vmem:[%s21514_s3 + $0x8b0] ss:$8 sps:$4 sm:$0xff]  }
 0x7db   : > { %12109 = vmatprep.mubr.bf16.mxu0 %v20460_v24  ;;  %v17417_v24 = vld [vmem:[%s21514_s3 + $0x8c4] ss:$8 sps:$4 sm:$0xff]   ;;  %v17467_v51 = vld [vmem:[%s17819_s19 + $0x4d0] ss:$40 sps:$4 sm:$0xff]  }
 0x7dd   : > { %10644 = vmatpush1.bf16.msra.mxu1 %v17385_v4 }
 0x7de   : > { %10645 = vmatprep.subr.bf16.mxu1 %v17393_v15 }
 0x7e1   : > { %10646 = vmatpush1.bf16.msra.mxu1 %v17391_v10  ;;  %v17534_v10 = vld [vmem:[%s21516_s5 + $0x274] ss:$8 sps:$4 sm:$0xff]  }
 0x7e2   : > { %10647 = vmatprep.subr.bf16.mxu1 %v17402_v40  ;;  %12110 = vmatmul.mubr.bf16.gmra.mrb[180].mxu0 %v20476_v19  ;;  %v17432_v19 = vld [vmem:[%s21514_s3 + $0x8e4] ss:$8 sps:$4 sm:$0xff]  }
 0x7e3   : > { %12119 = vmatprep.mubr.bf16.mxu0 %v20482_v20  ;;  %v17430_v20 = vld [vmem:[%s21514_s3 + $0x8e0] ss:$8 sps:$4 sm:$0xff]  }
 0x7e5   : > { %10648 = vmatpush1.bf16.msra.mxu1 %v17400_v61 }
 0x7e6   : > { %10649 = vmatprep.subr.bf16.mxu1 %v17408_v23 }
 0x7e9   : > { %10650 = vmatpush1.bf16.msra.mxu1 %v17406_v17  ;;  %v17532_v17 = vld [vmem:[%s21516_s5 + $0x270] ss:$8 sps:$4 sm:$0xff]  }
 0x7ea   : > { %10651 = vmatprep.subr.bf16.mxu1 %v17417_v24  ;;  %12120 = vmatmul.mubr.bf16.gmra.mrb[184].mxu0 %v20498_v31  ;;  %v17498_v31 = vld [vmem:[%s21516_s5 + $0x204] ss:$8 sps:$4 sm:$0xff]  }
 0x7eb   : > { %12129 = vmatprep.mubr.bf16.mxu0 %v20504_v43  ;;  %v17442_v43 = vld [vmem:[%s17819_s19 + $0x3e0] ss:$40 sps:$4 sm:$0xff]   ;;  %s21461_s19 = scalar_lea.hbm %s21519_s8, %s14934_s22 }
 0x7ed   : > { %10652 = vmatpush1.bf16.msra.mxu1 %v17415_v25  ;;  %v17540_v25 = vld [vmem:[%s21516_s5 + $0x284] ss:$8 sps:$4 sm:$0xff]  }
 0x7ee   : > { %10653 = vmatprep.subr.bf16.mxu1 %v17423_v55 }
 0x7f1   : > { %10654 = vmatpush1.bf16.msra.mxu1 %v17421_v14 }
 0x7f2   : > { %10655 = vmatprep.subr.bf16.mxu1 %v17432_v19  ;;  %12130 = vmatmul.mubr.bf16.gmra.mrb[188].mxu0 %v20520_v46  ;;  %v17499_v46 = vld [vmem:[%s21516_s5 + $0x210] ss:$8 sps:$4 sm:$0xff]  }
 0x7f5   : > { %10656 = vmatpush1.bf16.msra.mxu1 %v17430_v20 }
 0x7f6   : > { %10657 = vmatprep.subr.bf16.mxu1 %v17438_v32 }
 0x7f9   : > { %10658 = vmatpush1.bf16.msra.mxu1 %v17436_v47 }
 0x7fa   : > { %11178 = vmatprep.subr.bf16.mxu1 %v17498_v31  ;;  %v17538_v31 = vld [vmem:[%s21516_s5 + $0x280] ss:$8 sps:$4 sm:$0xff]  }
 0x7fc   : > { %10660 = vmatmul.mubr.bf16.vlgmr.msra.gmra.mrb[64].mxu1 %v17442_v43 }
 0x7fd   : > { %10669 = vmatprep.mubr.bf16.mxu1 %v17451_v22  ;;  %11179 = vmatpush1.bf16.msra.mxu1 %v17496_v26  ;;  %v17546_v26 = vld [vmem:[%s21516_s5 + $0x294] ss:$8 sps:$4 sm:$0xff]  }
 0x7fe   : > { %11180 = vmatprep.subr.bf16.mxu1 %v17501_v28 }
 0x801   : > { %11181 = vmatpush1.bf16.msra.mxu1 %v17499_v46 }
 0x802   : > { %11182 = vmatprep.subr.bf16.mxu1 %v17504_v1 }
 0x804   : > { %10670 = vmatmul.mubr.bf16.gmra.mrb[68].mxu1 %v17456_v49 }
 0x805   : > { %10679 = vmatprep.mubr.bf16.mxu1 %v17457_v45  ;;  %11183 = vmatpush1.bf16.msra.mxu1 %v17502_v48  ;;  %v17544_v48 = vld [vmem:[%s21516_s5 + $0x290] ss:$8 sps:$4 sm:$0xff]  }
 0x806   : > { %11184 = vmatprep.subr.bf16.mxu1 %v17510_v38 }
 0x809   : > { %11185 = vmatpush1.bf16.msra.mxu1 %v17508_v5  ;;  %v17552_v5 = vld [vmem:[%s21516_s5 + $0x2a4] ss:$8 sps:$4 sm:$0xff]  }
 0x80a   : > { %11186 = vmatprep.subr.bf16.mxu1 %v17516_v35 }
 0x80c   : > { %10680 = vmatmul.mubr.bf16.gmra.mrb[72].mxu1 %v17461_v54 }
 0x80d   : > { %10689 = vmatprep.mubr.bf16.mxu1 %v17463_v18  ;;  %11187 = vmatpush1.bf16.msra.mxu1 %v17514_v56 }
 0x80e   : > { %11188 = vmatprep.subr.bf16.mxu1 %v17522_v41 }
 0x80f   : > { %v9673_v63 = vpop.f32.mrb[112].mxu1 }
 0x810   : > { %v10873_v6 = vadd.f32 %v20163_v2, %v9673_v63  ;;  %v9675_v57 = vpop.f32.mrb[113].mxu1 }
 0x811   : > { %v10874_v8 = vadd.f32 %v20169_v39, %v9675_v57  ;;  %v9677_v4 = vpop.f32.mrb[114].mxu1  ;;  %11189 = vmatpush1.bf16.msra.mxu1 %v17520_v30  ;;  %v17558_v57 = vld [vmem:[%s21516_s5 + $0x2b4] ss:$8 sps:$4 sm:$0xff]  }
 0x812   : > { %v10875_v15 = vadd.f32 %v20163_v2, %v9677_v4  ;;  %v9679_v53 = vpop.f32.mrb[115].mxu1  ;;  %11190 = vmatprep.subr.bf16.mxu1 %v17528_v42  ;;  %v10937_v40 = vmax.f32 %v10873_v6, 0.0  ;;  %v17550_v42 = vld [vmem:[%s21516_s5 + $0x2a0] ss:$8 sps:$4 sm:$0xff]  }
 0x813   : > { %v10876_v11 = vadd.f32 %v20169_v39, %v9679_v53  ;;  %v10938_v61 = vmax.f32 %v10874_v8, 0.0  ;;  %v17556_v53 = vld [vmem:[%s21516_s5 + $0x2b0] ss:$8 sps:$4 sm:$0xff]  }
 0x814   : > { %v10939_v13 = vmax.f32 %v10875_v15, 0.0  ;;  %10690 = vmatmul.mubr.bf16.gmra.mrb[76].mxu1 %v17467_v51 }
 0x815   : > { %v10940_v23 = vmax.f32 %v10876_v11, 0.0  ;;  %11191 = vmatpush1.bf16.msra.mxu1 %v17526_v9  ;;  %v17564_v11 = vld [vmem:[%s21516_s5 + $0x2c4] ss:$8 sps:$4 sm:$0xff]  }
 0x816   : > { %v20845_v24 = vpack.c.bf16 %v10939_v13, %v10937_v40  ;;  %11192 = vmatprep.subr.bf16.mxu1 %v17534_v10 }
 0x817   : > { %v20850_v55 = vpack.c.bf16 %v10940_v23, %v10938_v61  ;;  %v9683_v14 = vpop.f32.mrb[116].mxu1 }
 0x818   : > { %v10877_v19 = vadd.f32 %v20163_v2, %v9683_v14  ;;  %v9685_v20 = vpop.f32.mrb[117].mxu1  ;;  %v17562_v14 = vld [vmem:[%s21516_s5 + $0x2c0] ss:$8 sps:$4 sm:$0xff]  }
 0x819   : > { %v10878_v32 = vadd.f32 %v20169_v39, %v9685_v20  ;;  %v9687_v47 = vpop.f32.mrb[118].mxu1  ;;  %11193 = vmatpush1.bf16.msra.mxu1 %v17532_v17 }
 0x81a   : > { %v10879_v43 = vadd.f32 %v20163_v2, %v9687_v47  ;;  %v9689_v22 = vpop.f32.mrb[119].mxu1  ;;  %11194 = vmatprep.subr.bf16.mxu1 %v17540_v25  ;;  %v10941_v46 = vmax.f32 %v10877_v19, 0.0 }
 0x81b   : > { %v10880_v28 = vadd.f32 %v20169_v39, %v9689_v22  ;;  %v10942_v49 = vmax.f32 %v10878_v32, 0.0  ;;  %v17570_v32 = vld [vmem:[%s21516_s5 + $0x2d4] ss:$8 sps:$4 sm:$0xff]  }
 0x81c   : > { %v10943_v1 = vmax.f32 %v10879_v43, 0.0 }
 0x81d   : > { %v10944_v45 = vmax.f32 %v10880_v28, 0.0  ;;  %11195 = vmatpush1.bf16.msra.mxu1 %v17538_v31  ;;  %v17568_v28 = vld [vmem:[%s21516_s5 + $0x2d0] ss:$8 sps:$4 sm:$0xff]  }
 0x81e   : > { %v20865_v38 = vpack.c.bf16 %v10943_v1, %v10941_v46  ;;  %11196 = vmatprep.subr.bf16.mxu1 %v17546_v26 }
 0x81f   : > { %v20870_v35 = vpack.c.bf16 %v10944_v45, %v10942_v49  ;;  %v9693_v54 = vpop.f32.mrb[120].mxu1  ;;  %v20912_v49 = vld [vmem:[%s21516_s5 + $0x3c4] ss:$8 sps:$4 sm:$0xff]   ;;  %v20917_v45 = vld [vmem:[%s21516_s5 + $0x3c0] ss:$8 sps:$4 sm:$0xff]  }
 0x820   : > { %v10881_v18 = vadd.f32 %v20163_v2, %v9693_v54  ;;  %v9695_v56 = vpop.f32.mrb[121].mxu1  ;;  %12658 = vmatprep.subr.bf16.mxu0 %v20912_v49  ;;  %v17576_v54 = vld [vmem:[%s21516_s5 + $0x2e4] ss:$8 sps:$4 sm:$0xff]  }
 0x821   : > { %v10882_v41 = vadd.f32 %v20169_v39, %v9695_v56  ;;  %v9697_v30 = vpop.f32.mrb[122].mxu1  ;;  %11197 = vmatpush1.bf16.msra.mxu1 %v17544_v48  ;;  %12659 = vmatpush1.bf16.msra.mxu0 %v20917_v45  ;;  %v20924_v48 = vld [vmem:[%s21516_s5 + $0x3d4] ss:$8 sps:$4 sm:$0xff]   ;;  %v17574_v56 = vld [vmem:[%s21516_s5 + $0x2e0] ss:$8 sps:$4 sm:$0xff]  }
 0x822   : > { %v10883_v63 = vadd.f32 %v20163_v2, %v9697_v30  ;;  %v9699_v6 = vpop.f32.mrb[123].mxu1  ;;  %11198 = vmatprep.subr.bf16.mxu1 %v17552_v5  ;;  %v10945_v8 = vmax.f32 %v10881_v18, 0.0  ;;  %v20929_v5 = vld [vmem:[%s21516_s5 + $0x3d0] ss:$8 sps:$4 sm:$0xff]   ;;  %12660 = vmatprep.subr.bf16.mxu0 %v20924_v48 }
 0x823   : > { %v10884_v51 = vadd.f32 %v20169_v39, %v9699_v6  ;;  %v10946_v9 = vmax.f32 %v10882_v41, 0.0  ;;  %v14864_v18 = vld [vmem:[%s21517_s6 + $0x3] ss:$4 sm:$0x3] }
 0x824   : > { %v10947_v4 = vmax.f32 %v10883_v63, 0.0  ;;  %v20943_v30 = vrot.slane %v14864_v18, %v18231_v59  ;;  %v20951_v63 = vrot.slane %v14864_v18, %v18229_v58 }
 0x825   : > { %v10948_v15 = vmax.f32 %v10884_v51, 0.0  ;;  %11199 = vmatpush1.bf16.msra.mxu1 %v17550_v42  ;;  %12661 = vmatpush1.bf16.msra.mxu0 %v20929_v5  ;;  %v20948_v42 = vld [vmem:[%s21516_s5 + $0x3e0] ss:$8 sps:$4 sm:$0xff]  }
 0x826   : > { %v20885_v10 = vpack.c.bf16 %v10947_v4, %v10945_v8  ;;  %11200 = vmatprep.subr.bf16.mxu1 %v17558_v57  ;;  %v20956_v57 = vld [vmem:[%s21516_s5 + $0x3e4] ss:$8 sps:$4 sm:$0xff]   ;;  %v17582_v4 = vld [vmem:[%s21516_s5 + $0x2f4] ss:$8 sps:$4 sm:$0xff]  }
 0x827   : > { %v20890_v40 = vpack.c.bf16 %v10948_v15, %v10946_v9  ;;  %v9703_v13 = vpop.f32.mrb[124].mxu1  ;;  %12662 = vmatprep.subr.bf16.mxu0 %v20956_v57 }
 0x828   : > { %v10885_v61 = vadd.f32 %v20163_v2, %v9703_v13  ;;  %v9705_v23 = vpop.f32.mrb[125].mxu1  ;;  %v17580_v13 = vld [vmem:[%s21516_s5 + $0x2f0] ss:$8 sps:$4 sm:$0xff]  }
 0x829   : > { %v10886_v17 = vadd.f32 %v20169_v39, %v9705_v23  ;;  %v9707_v25 = vpop.f32.mrb[126].mxu1  ;;  %11201 = vmatpush1.bf16.msra.mxu1 %v17556_v53  ;;  %12663 = vmatpush1.bf16.msra.mxu0 %v20948_v42 }
 0x82a   : > { %v10887_v19 = vadd.f32 %v20163_v2, %v9707_v25  ;;  %v9709_v20 = vpop.f32.mrb[127].mxu1  ;;  %11202 = vmatprep.subr.bf16.mxu1 %v17564_v11  ;;  %v10949_v31 = vmax.f32 %v10885_v61, 0.0  ;;  %v20968_v11 = vld [vmem:[%s21516_s5 + $0x3f4] ss:$8 sps:$4 sm:$0xff]  }
 0x82b   : > { %v10888_v47 = vadd.f32 %v20169_v39, %v9709_v20  ;;  %v10950_v22 = vmax.f32 %v10886_v17, 0.0  ;;  %v20978_v17 = vld [vmem:[%s21516_s5 + $0x3f0] ss:$8 sps:$4 sm:$0xff]   ;;  %12664 = vmatprep.subr.bf16.mxu0 %v20968_v11 }
 0x82c   : > { %v10951_v43 = vmax.f32 %v10887_v19, 0.0 }
 0x82d   : > { %v10952_v26 = vmax.f32 %v10888_v47, 0.0  ;;  %11203 = vmatpush1.bf16.msra.mxu1 %v17562_v14  ;;  %12665 = vmatpush1.bf16.msra.mxu0 %v20978_v17 }
 0x82e   : > { %v20905_v46 = vpack.c.bf16 %v10951_v43, %v10949_v31  ;;  %11204 = vmatprep.subr.bf16.mxu1 %v17570_v32 }
 0x82f   : > { %v20907_v1 = vpack.c.bf16 %v10952_v26, %v10950_v22 }
 0x831   : > { %11205 = vmatpush1.bf16.msra.mxu1 %v17568_v28 }
 0x832   : > { %11206 = vmatprep.subr.bf16.mxu1 %v17576_v54 }
 0x835   : > { %11207 = vmatpush1.bf16.msra.mxu1 %v17574_v56 }
 0x836   : > { %11208 = vmatprep.subr.bf16.mxu1 %v17582_v4 }
 0x839   : > { %11209 = vmatpush1.bf16.msra.mxu1 %v17580_v13 }
 0x83a   : > { %14935 = vmatprep.subr.bf16.mxu1 %v20595_v44 }
 0x84d   : > { %v11981_v41 = vpop.f32.mrb[128].mxu0 }
 0x84e   : > { %v11983_v6 = vpop.f32.mrb[129].mxu0  ;;  %v12281_v9 = vadd.f32 %v20951_v63, %v11981_v41 }
 0x84f   : > { %v12282_v51 = vadd.f32 %v20943_v30, %v11983_v6  ;;  %v11985_v8 = vpop.f32.mrb[130].mxu0 }
 0x850   : > { %v12283_v15 = vadd.f32 %v20951_v63, %v11985_v8  ;;  %v11987_v53 = vpop.f32.mrb[131].mxu0  ;;  %v12345_v25 = vmax.f32 %v12281_v9, 0.0 }
 0x851   : > { %v12346_v61 = vmax.f32 %v12282_v51, 0.0  ;;  %v12284_v23 = vadd.f32 %v20943_v30, %v11987_v53 }
 0x852   : > { %v12347_v14 = vmax.f32 %v12283_v15, 0.0 }
 0x853   : > { %v12348_v19 = vmax.f32 %v12284_v23, 0.0 }
 0x854   : > { %v12409_v20 = vpack.c.bf16 %v12347_v14, %v12345_v25 }
 0x855   : > { %v12410_v32 = vpack.c.bf16 %v12348_v19, %v12346_v61  ;;  %v11991_v47 = vpop.f32.mrb[132].mxu0 }
 0x856   : > { %v11993_v31 = vpop.f32.mrb[133].mxu0  ;;  %v12285_v26 = vadd.f32 %v20951_v63, %v11991_v47 }
 0x857   : > { %v12286_v43 = vadd.f32 %v20943_v30, %v11993_v31  ;;  %v11995_v22 = vpop.f32.mrb[134].mxu0  ;;  %12666 = vmatprep.mubr.bf16.mxu0 %v12410_v32 }
 0x858   : > { %v12287_v28 = vadd.f32 %v20951_v63, %v11995_v22  ;;  %v11997_v54 = vpop.f32.mrb[135].mxu0  ;;  %12667 = vmatmul.mubr.bf16.vlgmr.msra.gmra.mrb[192].mxu0 %v12409_v20  ;;  %v12349_v41 = vmax.f32 %v12285_v26, 0.0 }
 0x859   : > { %v12350_v18 = vmax.f32 %v12286_v43, 0.0  ;;  %v12288_v56 = vadd.f32 %v20943_v30, %v11997_v54 }
 0x85a   : > { %v12351_v44 = vmax.f32 %v12287_v28, 0.0 }
 0x85b   : > { %v12352_v6 = vmax.f32 %v12288_v56, 0.0 }
 0x85c   : > { %v12411_v51 = vpack.c.bf16 %v12351_v44, %v12349_v41 }
 0x85d   : > { %v12412_v8 = vpack.c.bf16 %v12352_v6, %v12350_v18  ;;  %v12001_v4 = vpop.f32.mrb[136].mxu0 }
 0x85e   : > { %v12003_v9 = vpop.f32.mrb[137].mxu0  ;;  %v12289_v13 = vadd.f32 %v20951_v63, %v12001_v4 }
 0x85f   : > { %v12290_v15 = vadd.f32 %v20943_v30, %v12003_v9  ;;  %v12005_v53 = vpop.f32.mrb[138].mxu0  ;;  %12676 = vmatprep.mubr.bf16.mxu0 %v12412_v8 }
 0x860   : > { %v12291_v61 = vadd.f32 %v20951_v63, %v12005_v53  ;;  %v12007_v23 = vpop.f32.mrb[139].mxu0  ;;  %12677 = vmatmul.mubr.bf16.gmra.mrb[196].mxu0 %v12411_v51  ;;  %v12353_v19 = vmax.f32 %v12289_v13, 0.0 }
 0x861   : > { %v12354_v25 = vmax.f32 %v12290_v15, 0.0  ;;  %v12292_v14 = vadd.f32 %v20943_v30, %v12007_v23 }
 0x862   : > { %v12355_v20 = vmax.f32 %v12291_v61, 0.0 }
 0x863   : > { %v12356_v32 = vmax.f32 %v12292_v14, 0.0 }
 0x864   : > { %v12413_v47 = vpack.c.bf16 %v12355_v20, %v12353_v19 }
 0x865   : > { %v12414_v31 = vpack.c.bf16 %v12356_v32, %v12354_v25  ;;  %v12011_v43 = vpop.f32.mrb[140].mxu0 }
 0x866   : > { %v12013_v22 = vpop.f32.mrb[141].mxu0  ;;  %v12293_v54 = vadd.f32 %v20951_v63, %v12011_v43 }
 0x867   : > { %v12294_v26 = vadd.f32 %v20943_v30, %v12013_v22  ;;  %v12015_v28 = vpop.f32.mrb[142].mxu0  ;;  %12686 = vmatprep.mubr.bf16.mxu0 %v12414_v31 }
 0x868   : > { %v12295_v18 = vadd.f32 %v20951_v63, %v12015_v28  ;;  %v12017_v56 = vpop.f32.mrb[143].mxu0  ;;  %12687 = vmatmul.mubr.bf16.gmra.mrb[200].mxu0 %v12413_v47  ;;  %v12357_v6 = vmax.f32 %v12293_v54, 0.0 }
 0x869   : > { %v12358_v41 = vmax.f32 %v12294_v26, 0.0  ;;  %v12296_v44 = vadd.f32 %v20943_v30, %v12017_v56 }
 0x86a   : > { %v12359_v51 = vmax.f32 %v12295_v18, 0.0 }
 0x86b   : > { %v12360_v8 = vmax.f32 %v12296_v44, 0.0 }
 0x86c   : > { %v12415_v4 = vpack.c.bf16 %v12359_v51, %v12357_v6 }
 0x86d   : > { %v12416_v9 = vpack.c.bf16 %v12360_v8, %v12358_v41  ;;  %v12021_v15 = vpop.f32.mrb[144].mxu0 }
 0x86e   : > { %v12023_v53 = vpop.f32.mrb[145].mxu0  ;;  %v12297_v13 = vadd.f32 %v20951_v63, %v12021_v15 }
 0x86f   : > { %v12298_v61 = vadd.f32 %v20943_v30, %v12023_v53  ;;  %v12025_v23 = vpop.f32.mrb[146].mxu0  ;;  %12696 = vmatprep.mubr.bf16.mxu0 %v12416_v9 }
 0x870   : > { %v12299_v25 = vadd.f32 %v20951_v63, %v12025_v23  ;;  %v12027_v14 = vpop.f32.mrb[147].mxu0  ;;  %12697 = vmatmul.mubr.bf16.gmra.mrb[204].mxu0 %v12415_v4  ;;  %v12361_v19 = vmax.f32 %v12297_v13, 0.0 }
 0x871   : > { %v12362_v20 = vmax.f32 %v12298_v61, 0.0  ;;  %v12300_v32 = vadd.f32 %v20943_v30, %v12027_v14 }
 0x872   : > { %v12363_v47 = vmax.f32 %v12299_v25, 0.0 }
 0x873   : > { %v12364_v31 = vmax.f32 %v12300_v32, 0.0 }
 0x874   : > { %v12417_v43 = vpack.c.bf16 %v12363_v47, %v12361_v19 }
 0x875   : > { %v12418_v22 = vpack.c.bf16 %v12364_v31, %v12362_v20  ;;  %v12031_v26 = vpop.f32.mrb[148].mxu0 }
 0x876   : > { %v12033_v28 = vpop.f32.mrb[149].mxu0  ;;  %v12301_v54 = vadd.f32 %v20951_v63, %v12031_v26 }
 0x877   : > { %v12302_v18 = vadd.f32 %v20943_v30, %v12033_v28  ;;  %v12035_v56 = vpop.f32.mrb[150].mxu0  ;;  %12706 = vmatprep.mubr.bf16.mxu0 %v12418_v22 }
 0x878   : > { %v12303_v41 = vadd.f32 %v20951_v63, %v12035_v56  ;;  %v12037_v44 = vpop.f32.mrb[151].mxu0  ;;  %12707 = vmatmul.mubr.bf16.gmra.mrb[208].mxu0 %v12417_v43  ;;  %v12365_v6 = vmax.f32 %v12301_v54, 0.0 }
 0x879   : > { %v12366_v51 = vmax.f32 %v12302_v18, 0.0  ;;  %v12304_v8 = vadd.f32 %v20943_v30, %v12037_v44 }
 0x87a   : > { %v12367_v4 = vmax.f32 %v12303_v41, 0.0 }
 0x87b   : > { %v12368_v9 = vmax.f32 %v12304_v8, 0.0 }
 0x87c   : > { %v12419_v15 = vpack.c.bf16 %v12367_v4, %v12365_v6 }
 0x87d   : > { %v12420_v53 = vpack.c.bf16 %v12368_v9, %v12366_v51  ;;  %v12041_v13 = vpop.f32.mrb[152].mxu0 }
 0x87e   : > { %v12043_v61 = vpop.f32.mrb[153].mxu0  ;;  %v12305_v23 = vadd.f32 %v20951_v63, %v12041_v13 }
 0x87f   : > { %v12306_v25 = vadd.f32 %v20943_v30, %v12043_v61  ;;  %v12045_v14 = vpop.f32.mrb[154].mxu0  ;;  %12716 = vmatprep.mubr.bf16.mxu0 %v12420_v53 }
 0x880   : > { %v12307_v19 = vadd.f32 %v20951_v63, %v12045_v14  ;;  %v12047_v20 = vpop.f32.mrb[155].mxu0  ;;  %12717 = vmatmul.mubr.bf16.gmra.mrb[212].mxu0 %v12419_v15  ;;  %v12369_v32 = vmax.f32 %v12305_v23, 0.0 }
 0x881   : > { %v12370_v47 = vmax.f32 %v12306_v25, 0.0  ;;  %v12308_v31 = vadd.f32 %v20943_v30, %v12047_v20 }
 0x882   : > { %v12371_v43 = vmax.f32 %v12307_v19, 0.0 }
 0x883   : > { %v12372_v22 = vmax.f32 %v12308_v31, 0.0 }
 0x884   : > { %v12421_v26 = vpack.c.bf16 %v12371_v43, %v12369_v32 }
 0x885   : > { %v12422_v28 = vpack.c.bf16 %v12372_v22, %v12370_v47  ;;  %v12051_v54 = vpop.f32.mrb[156].mxu0 }
 0x886   : > { %v12053_v18 = vpop.f32.mrb[157].mxu0  ;;  %v12309_v56 = vadd.f32 %v20951_v63, %v12051_v54 }
 0x887   : > { %v12310_v41 = vadd.f32 %v20943_v30, %v12053_v18  ;;  %v12055_v44 = vpop.f32.mrb[158].mxu0  ;;  %12726 = vmatprep.mubr.bf16.mxu0 %v12422_v28 }
 0x888   : > { %v12311_v6 = vadd.f32 %v20951_v63, %v12055_v44  ;;  %v12057_v51 = vpop.f32.mrb[159].mxu0  ;;  %12727 = vmatmul.mubr.bf16.gmra.mrb[216].mxu0 %v12421_v26  ;;  %v12373_v8 = vmax.f32 %v12309_v56, 0.0 }
 0x889   : > { %v12374_v4 = vmax.f32 %v12310_v41, 0.0  ;;  %v12312_v9 = vadd.f32 %v20943_v30, %v12057_v51 }
 0x88a   : > { %v12375_v15 = vmax.f32 %v12311_v6, 0.0 }
 0x88b   : > { %v12376_v53 = vmax.f32 %v12312_v9, 0.0 }
 0x88c   : > { %v12423_v13 = vpack.c.bf16 %v12375_v15, %v12373_v8 }
 0x88d   : > { %v12424_v61 = vpack.c.bf16 %v12376_v53, %v12374_v4  ;;  %v12061_v23 = vpop.f32.mrb[160].mxu0 }
 0x88e   : > { %v12063_v25 = vpop.f32.mrb[161].mxu0  ;;  %v12313_v14 = vadd.f32 %v20951_v63, %v12061_v23 }
 0x88f   : > { %v12314_v19 = vadd.f32 %v20943_v30, %v12063_v25  ;;  %v12065_v20 = vpop.f32.mrb[162].mxu0  ;;  %12736 = vmatprep.mubr.bf16.mxu0 %v12424_v61 }
 0x890   : > { %v12315_v32 = vadd.f32 %v20951_v63, %v12065_v20  ;;  %v12067_v47 = vpop.f32.mrb[163].mxu0  ;;  %12737 = vmatmul.mubr.bf16.gmra.mrb[220].mxu0 %v12423_v13  ;;  %v12377_v31 = vmax.f32 %v12313_v14, 0.0 }
 0x891   : > { %v12378_v43 = vmax.f32 %v12314_v19, 0.0  ;;  %v12316_v22 = vadd.f32 %v20943_v30, %v12067_v47 }
 0x892   : > { %v12379_v26 = vmax.f32 %v12315_v32, 0.0 }
 0x893   : > { %v12380_v28 = vmax.f32 %v12316_v22, 0.0 }
 0x894   : > { %v12425_v54 = vpack.c.bf16 %v12379_v26, %v12377_v31 }
 0x895   : > { %v12426_v18 = vpack.c.bf16 %v12380_v28, %v12378_v43  ;;  %v12071_v56 = vpop.f32.mrb[164].mxu0 }
 0x896   : > { %v12073_v41 = vpop.f32.mrb[165].mxu0  ;;  %v12317_v44 = vadd.f32 %v20951_v63, %v12071_v56 }
 0x897   : > { %v12318_v6 = vadd.f32 %v20943_v30, %v12073_v41  ;;  %v12075_v51 = vpop.f32.mrb[166].mxu0  ;;  %12746 = vmatprep.mubr.bf16.mxu0 %v12426_v18 }
 0x898   : > { %v12319_v8 = vadd.f32 %v20951_v63, %v12075_v51  ;;  %v12077_v4 = vpop.f32.mrb[167].mxu0  ;;  %12747 = vmatmul.mubr.bf16.gmra.mrb[224].mxu0 %v12425_v54  ;;  %v12381_v9 = vmax.f32 %v12317_v44, 0.0 }
 0x899   : > { %v12382_v15 = vmax.f32 %v12318_v6, 0.0  ;;  %v12320_v53 = vadd.f32 %v20943_v30, %v12077_v4 }
 0x89a   : > { %v12383_v13 = vmax.f32 %v12319_v8, 0.0 }
 0x89b   : > { %v12384_v61 = vmax.f32 %v12320_v53, 0.0 }
 0x89c   : > { %v12427_v23 = vpack.c.bf16 %v12383_v13, %v12381_v9 }
 0x89d   : > { %v12428_v25 = vpack.c.bf16 %v12384_v61, %v12382_v15  ;;  %v12081_v14 = vpop.f32.mrb[168].mxu0 }
 0x89e   : > { %v12321_v19 = vadd.f32 %v20951_v63, %v12081_v14  ;;  %v12083_v20 = vpop.f32.mrb[169].mxu0 }
 0x89f   : > { %12756 = vmatprep.mubr.bf16.mxu0 %v12428_v25  ;;  %v12322_v32 = vadd.f32 %v20943_v30, %v12083_v20  ;;  %v12085_v47 = vpop.f32.mrb[170].mxu0 }
 0x8a0   : > { %12757 = vmatmul.mubr.bf16.gmra.mrb[228].mxu0 %v12427_v23  ;;  %v12385_v31 = vmax.f32 %v12321_v19, 0.0  ;;  %v12323_v43 = vadd.f32 %v20951_v63, %v12085_v47  ;;  %v12087_v22 = vpop.f32.mrb[171].mxu0 }
 0x8a1   : > { %v12386_v28 = vmax.f32 %v12322_v32, 0.0  ;;  %v12324_v54 = vadd.f32 %v20943_v30, %v12087_v22 }
 0x8a2   : > { %v12387_v41 = vmax.f32 %v12323_v43, 0.0 }
 0x8a3   : > { %v12388_v51 = vmax.f32 %v12324_v54, 0.0 }
 0x8a4   : > { %v21026_v9 = vpack.c.bf16 %v12387_v41, %v12385_v31 }
 0x8a5   : > { %v12091_v15 = vpop.f32.mrb[172].mxu0  ;;  %v21029_v13 = vpack.c.bf16 %v12388_v51, %v12386_v28 }
 0x8a6   : > { %v12325_v61 = vadd.f32 %v20951_v63, %v12091_v15  ;;  %v12093_v23 = vpop.f32.mrb[173].mxu0 }
 0x8a7   : > { %v12326_v19 = vadd.f32 %v20943_v30, %v12093_v23  ;;  %v12095_v20 = vpop.f32.mrb[174].mxu0 }
 0x8a8   : > { %v12389_v43 = vmax.f32 %v12325_v61, 0.0  ;;  %v12327_v22 = vadd.f32 %v20951_v63, %v12095_v20  ;;  %v12097_v31 = vpop.f32.mrb[175].mxu0 }
 0x8a9   : > { %v12390_v54 = vmax.f32 %v12326_v19, 0.0  ;;  %v17592_v19 = vld [vmem:[%s21516_s5 + $0x300] ss:$8 sps:$4 sm:$0xff]  }
 0x8cf   : > { %v10661_v26 = vpop.f32.mrb[64].mxu1 }
 0x8d0   : > { %v10825_v18 = vadd.f32 %v20163_v2, %v10661_v26  ;;  %v10663_v56 = vpop.f32.mrb[65].mxu1 }
 0x8d1   : > { %v10826_v44 = vadd.f32 %v20169_v39, %v10663_v56  ;;  %v10665_v6 = vpop.f32.mrb[66].mxu1  ;;  %v12328_v56 = vadd.f32 %v20943_v30, %v12097_v31 }
 0x8d2   : > { %v10827_v8 = vadd.f32 %v20163_v2, %v10665_v6  ;;  %v10667_v4 = vpop.f32.mrb[67].mxu1  ;;  %v10889_v25 = vmax.f32 %v10825_v18, 0.0  ;;  %v12391_v6 = vmax.f32 %v12327_v22, 0.0  ;;  %v17593_v22 = vld [vmem:[%s21516_s5 + $0x314] ss:$8 sps:$4 sm:$0xff]  }
 0x8d3   : > { %v10828_v53 = vadd.f32 %v20169_v39, %v10667_v4  ;;  %v10890_v32 = vmax.f32 %v10826_v44, 0.0 }
 0x8d4   : > { %v10891_v14 = vmax.f32 %v10827_v8, 0.0  ;;  %v12392_v8 = vmax.f32 %v12328_v56, 0.0  ;;  %v21037_v44 = vpack.c.bf16 %v12391_v6, %v12389_v43 }
 0x8d5   : > { %v10892_v47 = vmax.f32 %v10828_v53, 0.0 }
 0x8d6   : > { %v10953_v26 = vpack.c.bf16 %v10891_v14, %v10889_v25  ;;  %v21040_v23 = vpack.c.bf16 %v12392_v8, %v12390_v54  ;;  %v12101_v25 = vpop.f32.mrb[176].mxu0 }
 0x8d7   : > { %v10954_v28 = vpack.c.bf16 %v10892_v47, %v10890_v32  ;;  %v10671_v41 = vpop.f32.mrb[68].mxu1  ;;  %v12329_v20 = vadd.f32 %v20951_v63, %v12101_v25  ;;  %v12103_v32 = vpop.f32.mrb[177].mxu0 }
 0x8d8   : > { %v10829_v51 = vadd.f32 %v20163_v2, %v10671_v41  ;;  %v10673_v18 = vpop.f32.mrb[69].mxu1  ;;  %v12330_v31 = vadd.f32 %v20943_v30, %v12103_v32 }
 0x8d9   : > { %v10830_v4 = vadd.f32 %v20169_v39, %v10673_v18  ;;  %v10675_v15 = vpop.f32.mrb[70].mxu1  ;;  %11210 = vmatprep.mubr.bf16.mxu1 %v10954_v28  ;;  %v12393_v28 = vmax.f32 %v12329_v20, 0.0 }
 0x8da   : > { %v10831_v53 = vadd.f32 %v20163_v2, %v10675_v15  ;;  %v10677_v61 = vpop.f32.mrb[71].mxu1  ;;  %11211 = vmatmul.mubr.bf16.vlgmr.msra.gmra.mrb[0].mxu1 %v10953_v26  ;;  %v10893_v47 = vmax.f32 %v10829_v51, 0.0  ;;  %v12105_v26 = vpop.f32.mrb[178].mxu0  ;;  %v12394_v8 = vmax.f32 %v12330_v31, 0.0 }
 0x8db   : > { %v10832_v14 = vadd.f32 %v20169_v39, %v10677_v61  ;;  %14951 = vmatpush1.bf16.msra.mxu1 %v17592_v19  ;;  %v10894_v54 = vmax.f32 %v10830_v4, 0.0  ;;  %v12331_v41 = vadd.f32 %v20951_v63, %v12105_v26  ;;  %v12107_v6 = vpop.f32.mrb[179].mxu0  ;;  %v17594_v61 = vld [vmem:[%s21516_s5 + $0x310] ss:$8 sps:$4 sm:$0xff]  }
 0x8dc   : > { %v10895_v43 = vmax.f32 %v10831_v53, 0.0  ;;  %14936 = vmatprep.subr.bf16.mxu1 %v17593_v22  ;;  %v12332_v15 = vadd.f32 %v20943_v30, %v12107_v6 }
 0x8dd   : > { %v10896_v56 = vmax.f32 %v10832_v14, 0.0  ;;  %v12395_v25 = vmax.f32 %v12331_v41, 0.0  ;;  %v17595_v14 = vld [vmem:[%s21516_s5 + $0x324] ss:$8 sps:$4 sm:$0xff]   ;;  %v17596_v41 = vld [vmem:[%s21516_s5 + $0x320] ss:$8 sps:$4 sm:$0xff]  }
 0x8de   : > { %v10955_v18 = vpack.c.bf16 %v10895_v43, %v10893_v47  ;;  %v12396_v20 = vmax.f32 %v12332_v15, 0.0 }
 0x8df   : > { %v10956_v51 = vpack.c.bf16 %v10896_v56, %v10894_v54  ;;  %v10681_v53 = vpop.f32.mrb[72].mxu1  ;;  %14952 = vmatpush1.bf16.msra.mxu1 %v17594_v61  ;;  %v21061_v43 = vpack.c.bf16 %v12395_v25, %v12393_v28  ;;  %v12111_v54 = vpop.f32.mrb[180].mxu0 }
 0x8e0   : > { %v10833_v19 = vadd.f32 %v20163_v2, %v10681_v53  ;;  %v10683_v4 = vpop.f32.mrb[73].mxu1  ;;  %14937 = vmatprep.subr.bf16.mxu1 %v17595_v14  ;;  %v21064_v26 = vpack.c.bf16 %v12396_v20, %v12394_v8  ;;  %v12333_v6 = vadd.f32 %v20951_v63, %v12111_v54  ;;  %v12113_v15 = vpop.f32.mrb[181].mxu0  ;;  %v17597_v53 = vld [vmem:[%s21516_s5 + $0x334] ss:$8 sps:$4 sm:$0xff]  }
 0x8e1   : > { %v10834_v32 = vadd.f32 %v20169_v39, %v10683_v4  ;;  %v10685_v47 = vpop.f32.mrb[74].mxu1  ;;  %11220 = vmatprep.mubr.bf16.mxu1 %v10956_v51  ;;  %v12115_v8 = vpop.f32.mrb[182].mxu0 }
 0x8e2   : > { %v10835_v22 = vadd.f32 %v20163_v2, %v10685_v47  ;;  %v10687_v31 = vpop.f32.mrb[75].mxu1  ;;  %11221 = vmatmul.mubr.bf16.gmra.mrb[4].mxu1 %v10955_v18  ;;  %v10897_v51 = vmax.f32 %v10833_v19, 0.0  ;;  %v12334_v18 = vadd.f32 %v20943_v30, %v12113_v15  ;;  %v12397_v4 = vmax.f32 %v12333_v6, 0.0  ;;  %v12117_v20 = vpop.f32.mrb[183].mxu0 }
 0x8e3   : > { %v10836_v56 = vadd.f32 %v20169_v39, %v10687_v31  ;;  %14953 = vmatpush1.bf16.msra.mxu1 %v17596_v41  ;;  %v10898_v61 = vmax.f32 %v10834_v32, 0.0  ;;  %v12335_v14 = vadd.f32 %v20951_v63, %v12115_v8  ;;  %v12336_v54 = vadd.f32 %v20943_v30, %v12117_v20  ;;  %v17598_v41 = vld [vmem:[%s21516_s5 + $0x330] ss:$8 sps:$4 sm:$0xff]  }
 0x8e4   : > { %v10899_v28 = vmax.f32 %v10835_v22, 0.0  ;;  %14938 = vmatprep.subr.bf16.mxu1 %v17597_v53  ;;  %v12398_v31 = vmax.f32 %v12334_v18, 0.0 }
 0x8e5   : > { %v10900_v25 = vmax.f32 %v10836_v56, 0.0  ;;  %v12399_v53 = vmax.f32 %v12335_v14, 0.0  ;;  %v17599_v56 = vld [vmem:[%s21516_s5 + $0x344] ss:$8 sps:$4 sm:$0xff]   ;;  %v12400_v6 = vmax.f32 %v12336_v54, 0.0  ;;  %v12121_v14 = vpop.f32.mrb[184].mxu0 }
 0x8e6   : > { %v10957_v47 = vpack.c.bf16 %v10899_v28, %v10897_v51  ;;  %v12337_v54 = vadd.f32 %v20951_v63, %v12121_v14 }
 0x8e7   : > { %v10958_v19 = vpack.c.bf16 %v10900_v25, %v10898_v61  ;;  %v10691_v22 = vpop.f32.mrb[76].mxu1  ;;  %14954 = vmatpush1.bf16.msra.mxu1 %v17598_v41  ;;  %v21085_v18 = vpack.c.bf16 %v12399_v53, %v12397_v4  ;;  %v21088_v25 = vpack.c.bf16 %v12400_v6, %v12398_v31  ;;  %v12123_v41 = vpop.f32.mrb[185].mxu0 }
 0x8e8   : > { %v10837_v15 = vadd.f32 %v20163_v2, %v10691_v22  ;;  %v10693_v32 = vpop.f32.mrb[77].mxu1  ;;  %14939 = vmatprep.subr.bf16.mxu1 %v17599_v56  ;;  %v17600_v22 = vld [vmem:[%s21516_s5 + $0x340] ss:$8 sps:$4 sm:$0xff]   ;;  %v12125_v31 = vpop.f32.mrb[186].mxu0 }
 0x8e9   : > { %v10838_v51 = vadd.f32 %v20169_v39, %v10693_v32  ;;  %v10695_v28 = vpop.f32.mrb[78].mxu1  ;;  %11230 = vmatprep.mubr.bf16.mxu1 %v10958_v19  ;;  %v12401_v32 = vmax.f32 %v12337_v54, 0.0  ;;  %v12339_v56 = vadd.f32 %v20951_v63, %v12125_v31  ;;  %v12127_v6 = vpop.f32.mrb[187].mxu0  ;;  %v17605_v31 = vld [vmem:[%s21516_s5 + $0x374] ss:$8 sps:$4 sm:$0xff]  }
 0x8ea   : > { %v10839_v8 = vadd.f32 %v20163_v2, %v10695_v28  ;;  %v10697_v61 = vpop.f32.mrb[79].mxu1  ;;  %11231 = vmatmul.mubr.bf16.gmra.mrb[8].mxu1 %v10957_v47  ;;  %v10901_v19 = vmax.f32 %v10837_v15, 0.0  ;;  %v17601_v2 = vld [vmem:[%s21516_s5 + $0x354] ss:$8 sps:$4 sm:$0xff]   ;;  %v12338_v47 = vadd.f32 %v20943_v30, %v12123_v41  ;;  %v12340_v14 = vadd.f32 %v20943_v30, %v12127_v6 }
 0x8eb   : > { %v10840_v20 = vadd.f32 %v20169_v39, %v10697_v61  ;;  %14955 = vmatpush1.bf16.msra.mxu1 %v17600_v22  ;;  %v10902_v53 = vmax.f32 %v10838_v51, 0.0  ;;  %v12403_v22 = vmax.f32 %v12339_v56, 0.0  ;;  %v17603_v51 = vld [vmem:[%s21516_s5 + $0x364] ss:$8 sps:$4 sm:$0xff]  }
 0x8ec   : > { %v10903_v4 = vmax.f32 %v10839_v8, 0.0  ;;  %14940 = vmatprep.subr.bf16.mxu1 %v17601_v2  ;;  %v12402_v61 = vmax.f32 %v12338_v47, 0.0  ;;  %v17602_v8 = vld [vmem:[%s21516_s5 + $0x350] ss:$8 sps:$4 sm:$0xff]  }
 0x8ed   : > { %v10904_v39 = vmax.f32 %v10840_v20, 0.0  ;;  %v12404_v20 = vmax.f32 %v12340_v14, 0.0  ;;  %v21107_v54 = vpack.c.bf16 %v12403_v22, %v12401_v32 }
 0x8ee   : > { %v10959_v28 = vpack.c.bf16 %v10903_v4, %v10901_v19  ;;  %v12131_v19 = vpop.f32.mrb[188].mxu0  ;;  %v17604_v4 = vld [vmem:[%s21516_s5 + $0x360] ss:$8 sps:$4 sm:$0xff]  }
 0x8ef   : > { %v10960_v15 = vpack.c.bf16 %v10904_v39, %v10902_v53  ;;  %14956 = vmatpush1.bf16.msra.mxu1 %v17602_v8  ;;  %v21109_v41 = vpack.c.bf16 %v12404_v20, %v12402_v61  ;;  %v12341_v2 = vadd.f32 %v20951_v63, %v12131_v19  ;;  %v12133_v47 = vpop.f32.mrb[189].mxu0  ;;  %v17606_v61 = vld [vmem:[%s21516_s5 + $0x370] ss:$8 sps:$4 sm:$0xff]   ;;  %v17613_v19 = vld [vmem:[%s21516_s5 + $0x3b4] ss:$8 sps:$4 sm:$0xff]  }
 0x8f0   : > { %14941 = vmatprep.subr.bf16.mxu1 %v17603_v51  ;;  %v12342_v53 = vadd.f32 %v20943_v30, %v12133_v47  ;;  %v12135_v39 = vpop.f32.mrb[190].mxu0  ;;  %v17609_v51 = vld [vmem:[%s21516_s5 + $0x394] ss:$8 sps:$4 sm:$0xff]   ;;  %v17610_v20 = vld [vmem:[%s21516_s5 + $0x390] ss:$8 sps:$4 sm:$0xff]  }
 0x8f1   : > { %11240 = vmatprep.mubr.bf16.mxu1 %v10960_v15  ;;  %v12405_v32 = vmax.f32 %v12341_v2, 0.0  ;;  %v12343_v56 = vadd.f32 %v20951_v63, %v12135_v39  ;;  %v17607_v15 = vld [vmem:[%s21516_s5 + $0x384] ss:$8 sps:$4 sm:$0xff]  }
 0x8f2   : > { %11241 = vmatmul.mubr.bf16.gmra.mrb[12].mxu1 %v10959_v28  ;;  %v12406_v6 = vmax.f32 %v12342_v53, 0.0 }
 0x8f3   : > { %11250 = vmatprep.mubr.bf16.mxu1 %v20192_v3  ;;  %14957 = vmatpush1.bf16.msra.mxu1 %v17604_v4  ;;  %v12137_v3 = vpop.f32.mrb[191].mxu0  ;;  %v12407_v14 = vmax.f32 %v12343_v56, 0.0  ;;  %v17614_v4 = vld [vmem:[%s21516_s5 + $0x3b0] ss:$8 sps:$4 sm:$0xff]  }
 0x8f4   : > { %14942 = vmatprep.subr.bf16.mxu1 %v17605_v31  ;;  %v12344_v28 = vadd.f32 %v20943_v30, %v12137_v3  ;;  %v17608_v30 = vld [vmem:[%s21516_s5 + $0x380] ss:$8 sps:$4 sm:$0xff]  }
 0x8f5   : > { %v21128_v22 = vpack.c.bf16 %v12407_v14, %v12405_v32 }
 0x8f6   : > { %v12408_v8 = vmax.f32 %v12344_v28, 0.0 }
 0x8f7   : > { %14958 = vmatpush1.bf16.msra.mxu1 %v17606_v61 }
 0x8f8   : > { %14943 = vmatprep.subr.bf16.mxu1 %v17607_v15  ;;  %v21131_v63 = vpack.c.bf16 %v12408_v8, %v12406_v6 }
 0x8fa   : > { %11251 = vmatmul.mubr.bf16.gmra.mrb[16].mxu1 %v20187_v52  ;;  %v17611_v52 = vld [vmem:[%s21516_s5 + $0x3a4] ss:$8 sps:$4 sm:$0xff]  }
 0x8fb   : > { %11260 = vmatprep.mubr.bf16.mxu1 %v20223_v37  ;;  %14959 = vmatpush1.bf16.msra.mxu1 %v17608_v30  ;;  %v17612_v37 = vld [vmem:[%s21516_s5 + $0x3a0] ss:$8 sps:$4 sm:$0xff]  }
 0x8fc   : > { %14944 = vmatprep.subr.bf16.mxu1 %v17609_v51 }
 0x8ff   : > { %14960 = vmatpush1.bf16.msra.mxu1 %v17610_v20 }
 0x900   : > { %14945 = vmatprep.subr.bf16.mxu1 %v17611_v52 }
 0x902   : > { %11261 = vmatmul.mubr.bf16.gmra.mrb[20].mxu1 %v20215_v34 }
 0x903   : > { %11270 = vmatprep.mubr.bf16.mxu1 %v20257_v62  ;;  %14961 = vmatpush1.bf16.msra.mxu1 %v17612_v37 }
 0x904   : > { %14946 = vmatprep.subr.bf16.mxu1 %v17613_v19 }
 0x907   : > { %14962 = vmatpush1.bf16.msra.mxu1 %v17614_v4 }
 0x908   : > { %14947 = vmatprep.subr.bf16.mxu1 %v20912_v49 }
 0x90a   : > { %11271 = vmatmul.mubr.bf16.gmra.mrb[24].mxu1 %v20249_v36 }
 0x90b   : > { %11280 = vmatprep.mubr.bf16.mxu1 %v20291_v16  ;;  %14963 = vmatpush1.bf16.msra.mxu1 %v20917_v45 }
 0x90c   : > { %14948 = vmatprep.subr.bf16.mxu1 %v20924_v48 }
 0x90f   : > { %14964 = vmatpush1.bf16.msra.mxu1 %v20929_v5 }
 0x910   : > { %14949 = vmatprep.subr.bf16.mxu1 %v20956_v57 }
 0x912   : > { %11281 = vmatmul.mubr.bf16.gmra.mrb[28].mxu1 %v20283_v12 }
 0x913   : > { %11290 = vmatprep.mubr.bf16.mxu1 %v20328_v50  ;;  %14965 = vmatpush1.bf16.msra.mxu1 %v20948_v42 }
 0x914   : > { %14950 = vmatprep.subr.bf16.mxu1 %v20968_v11 }
 0x917   : > { %14966 = vmatpush1.bf16.msra.mxu1 %v20978_v17 }
 0x91a   : > { %11291 = vmatmul.mubr.bf16.gmra.mrb[32].mxu1 %v20320_v33 }
 0x91b   : > { %11300 = vmatprep.mubr.bf16.mxu1 %v20360_v29 }
 0x922   : > { %11301 = vmatmul.mubr.bf16.gmra.mrb[36].mxu1 %v20352_v7 }
 0x923   : > { %11310 = vmatprep.mubr.bf16.mxu1 %v20392_v27 }
 0x92a   : > { %11311 = vmatmul.mubr.bf16.gmra.mrb[40].mxu1 %v20384_v21 }
 0x92b   : > { %11320 = vmatprep.mubr.bf16.mxu1 %v20424_v0  ;;  %v21175_v34 = vpop.f32.mrb[192].mxu0 }
 0x92c   : > { %v21177_v36 = vpop.f32.mrb[193].mxu0 }
 0x92d   : > { %v21179_v62 = vpop.f32.mrb[194].mxu0 }
 0x92e   : > { %v21182_v12 = vpop.f32.mrb[195].mxu0 }
 0x932   : > { %11321 = vmatmul.mubr.bf16.gmra.mrb[44].mxu1 %v20416_v60 }
 0x933   : > { %11330 = vmatprep.mubr.bf16.mxu1 %v20850_v55  ;;  %v21185_v16 = vpop.f32.mrb[196].mxu0 }
 0x934   : > { %v21187_v33 = vpop.f32.mrb[197].mxu0 }
 0x935   : > { %v21189_v50 = vpop.f32.mrb[198].mxu0 }
 0x936   : > { %v21192_v7 = vpop.f32.mrb[199].mxu0 }
 0x93a   : > { %11331 = vmatmul.mubr.bf16.gmra.mrb[48].mxu1 %v20845_v24 }
 0x93b   : > { %11340 = vmatprep.mubr.bf16.mxu1 %v20870_v35  ;;  %v21195_v29 = vpop.f32.mrb[200].mxu0 }
 0x93c   : > { %v21197_v21 = vpop.f32.mrb[201].mxu0 }
 0x93d   : > { %v21199_v27 = vpop.f32.mrb[202].mxu0 }
 0x93e   : > { %v21202_v60 = vpop.f32.mrb[203].mxu0 }
 0x942   : > { %11341 = vmatmul.mubr.bf16.gmra.mrb[52].mxu1 %v20865_v38 }
 0x943   : > { %11350 = vmatprep.mubr.bf16.mxu1 %v20890_v40  ;;  %v21205_v0 = vpop.f32.mrb[204].mxu0 }
 0x944   : > { %v21207_v55 = vpop.f32.mrb[205].mxu0 }
 0x945   : > { %v21209_v24 = vpop.f32.mrb[206].mxu0 }
 0x946   : > { %v21212_v35 = vpop.f32.mrb[207].mxu0 }
 0x94a   : > { %11351 = vmatmul.mubr.bf16.gmra.mrb[56].mxu1 %v20885_v10 }
 0x94b   : > { %11360 = vmatprep.mubr.bf16.mxu1 %v20907_v1  ;;  %v21215_v49 = vpop.f32.mrb[208].mxu0 }
 0x94c   : > { %v21217_v45 = vpop.f32.mrb[209].mxu0 }
 0x94d   : > { %v21219_v38 = vpop.f32.mrb[210].mxu0 }
 0x94e   : > { %v21222_v40 = vpop.f32.mrb[211].mxu0 }
 0x952   : > { %11361 = vmatmul.mubr.bf16.gmra.mrb[60].mxu1 %v20905_v46 }
 0x953   : > { %12766 = vmatprep.mubr.bf16.mxu1 %v21029_v13  ;;  %v21225_v48 = vpop.f32.mrb[212].mxu0 }
 0x954   : > { %v21227_v5 = vpop.f32.mrb[213].mxu0 }
 0x955   : > { %v21229_v10 = vpop.f32.mrb[214].mxu0 }
 0x956   : > { %v21232_v1 = vpop.f32.mrb[215].mxu0 }
 0x95a   : > { %12767 = vmatmul.mubr.bf16.vlgmr.msra.gmra.mrb[40].mxu1 %v21026_v9 }
 0x95b   : > { %12776 = vmatprep.mubr.bf16.mxu1 %v21040_v23  ;;  %v21235_v42 = vpop.f32.mrb[216].mxu0 }
 0x95c   : > { %v21237_v57 = vpop.f32.mrb[217].mxu0 }
 0x95d   : > { %v21239_v46 = vpop.f32.mrb[218].mxu0 }
 0x95e   : > { %v21242_v11 = vpop.f32.mrb[219].mxu0 }
 0x962   : > { %12777 = vmatmul.mubr.bf16.gmra.mrb[44].mxu1 %v21037_v44 }
 0x963   : > { %12786 = vmatprep.mubr.bf16.mxu1 %v21064_v26  ;;  %v21245_v17 = vpop.f32.mrb[220].mxu0 }
 0x964   : > { %v21247_v13 = vpop.f32.mrb[221].mxu0 }
 0x965   : > { %v21249_v9 = vpop.f32.mrb[222].mxu0 }
 0x966   : > { %v21252_v23 = vpop.f32.mrb[223].mxu0 }
 0x96a   : > { %12787 = vmatmul.mubr.bf16.gmra.mrb[48].mxu1 %v21061_v43 }
 0x96b   : > { %12796 = vmatprep.mubr.bf16.mxu1 %v21088_v25  ;;  %v21255_v2 = vpop.f32.mrb[224].mxu0 }
 0x96c   : > { %v21257_v44 = vpop.f32.mrb[225].mxu0 }
 0x96d   : > { %v21259_v47 = vpop.f32.mrb[226].mxu0 }
 0x96e   : > { %v21262_v26 = vpop.f32.mrb[227].mxu0 }
 0x972   : > { %12797 = vmatmul.mubr.bf16.gmra.mrb[52].mxu1 %v21085_v18  ;;  %v12955_v18 = vld [vmem:[%s320_s17] sm:$0x3] }
 0x973   : > { %12806 = vmatprep.mubr.bf16.mxu1 %v21109_v41  ;;  %v21265_v43 = vpop.f32.mrb[228].mxu0  ;;  %v21282_v41 = vrot.slane %v12955_v18, %v18229_v58  ;;  %v21285_v32 = vrot.slane %v12955_v18, %v18231_v59 }
 0x974   : > { %v21267_v31 = vpop.f32.mrb[229].mxu0 }
 0x975   : > { %v21269_v53 = vpop.f32.mrb[230].mxu0 }
 0x976   : > { %v21272_v25 = vpop.f32.mrb[231].mxu0 }
 0x97a   : > { %12807 = vmatmul.mubr.bf16.gmra.mrb[56].mxu1 %v21107_v54 }
 0x97b   : > { %12816 = vmatprep.mubr.bf16.mxu1 %v21131_v63 }
 0x982   : > { %12817 = vmatmul.mubr.bf16.gmra.mrb[60].mxu1 %v21128_v22 }
 0x9ad   : > { %v11212_v39 = vpop.f32.mrb[0].mxu1 }
 0x9ae   : > { %v11214_v54 = vpop.f32.mrb[1].mxu1  ;;  %v14969_v56 = vadd.f32 %v21175_v34, %v11212_v39 }
 0x9af   : > { %v11216_v3 = vpop.f32.mrb[2].mxu1  ;;  %v14972_v6 = vadd.f32 %v21177_v36, %v11214_v54 }
 0x9b0   : > { %v11218_v28 = vpop.f32.mrb[3].mxu1  ;;  %v12967_v61 = vadd.f32 %v14969_v56, %v21282_v41  ;;  %v14975_v14 = vadd.f32 %v21179_v62, %v11216_v3 }
 0x9b1   : > { %v12968_v58 = vadd.f32 %v14972_v6, %v21285_v32  ;;  %v14978_v15 = vadd.f32 %v21182_v12, %v11218_v28 }
 0x9b2   : > { %v13031_v8 = vmax.f32 %v12967_v61, 0.0  ;;  %v12969_v59 = vadd.f32 %v14975_v14, %v21282_v41 }
 0x9b3   : > { %v13032_v22 = vmax.f32 %v12968_v58, 0.0  ;;  %v12970_v63 = vadd.f32 %v14978_v15, %v21285_v32 }
 0x9b4   : > { %13095 = vst [vmem:[%s21297_s20] sm:$0xff] %v13031_v8  ;;  %v13033_v30 = vmax.f32 %v12969_v59, 0.0 }
 0x9b5   : > { %v11222_v51 = vpop.f32.mrb[4].mxu1  ;;  %13096 = vst [vmem:[%s21297_s20 + $0x8] sm:$0xff] %v13032_v22  ;;  %v13034_v20 = vmax.f32 %v12970_v63, 0.0 }
 0x9b6   : > { %v11224_v52 = vpop.f32.mrb[5].mxu1  ;;  %13097 = vst [vmem:[%s21297_s20 + $0x10] sm:$0xff] %v13033_v30  ;;  %v14981_v37 = vadd.f32 %v21185_v16, %v11222_v51 }
 0x9b7   : > { %v11226_v19 = vpop.f32.mrb[6].mxu1  ;;  %13098 = vst [vmem:[%s21297_s20 + $0x18] sm:$0xff] %v13034_v20  ;;  %v14984_v4 = vadd.f32 %v21187_v33, %v11224_v52 }
 0x9b8   : > { %v11228_v34 = vpop.f32.mrb[7].mxu1  ;;  %v12971_v36 = vadd.f32 %v14981_v37, %v21282_v41  ;;  %v14987_v62 = vadd.f32 %v21189_v50, %v11226_v19 }
 0x9b9   : > { %v12972_v12 = vadd.f32 %v14984_v4, %v21285_v32  ;;  %v14990_v18 = vadd.f32 %v21192_v7, %v11228_v34 }
 0x9ba   : > { %v13035_v39 = vmax.f32 %v12971_v36, 0.0  ;;  %v12973_v54 = vadd.f32 %v14987_v62, %v21282_v41 }
 0x9bb   : > { %v13036_v16 = vmax.f32 %v12972_v12, 0.0  ;;  %v12974_v56 = vadd.f32 %v14990_v18, %v21285_v32 }
 0x9bc   : > { %13099 = vst [vmem:[%s21297_s20 + $0x20] sm:$0xff] %v13035_v39  ;;  %v13037_v3 = vmax.f32 %v12973_v54, 0.0 }
 0x9bd   : > { %v11232_v33 = vpop.f32.mrb[8].mxu1  ;;  %13100 = vst [vmem:[%s21297_s20 + $0x28] sm:$0xff] %v13036_v16  ;;  %v13038_v6 = vmax.f32 %v12974_v56, 0.0 }
 0x9be   : > { %v11234_v28 = vpop.f32.mrb[9].mxu1  ;;  %13101 = vst [vmem:[%s21297_s20 + $0x30] sm:$0xff] %v13037_v3  ;;  %v14993_v50 = vadd.f32 %v21195_v29, %v11232_v33 }
 0x9bf   : > { %v11236_v61 = vpop.f32.mrb[10].mxu1  ;;  %13102 = vst [vmem:[%s21297_s20 + $0x38] sm:$0xff] %v13038_v6  ;;  %v14996_v7 = vadd.f32 %v21197_v21, %v11234_v28 }
 0x9c0   : > { %v11238_v14 = vpop.f32.mrb[11].mxu1  ;;  %v12975_v58 = vadd.f32 %v14993_v50, %v21282_v41  ;;  %v14999_v15 = vadd.f32 %v21199_v27, %v11236_v61 }
 0x9c1   : > { %v12976_v8 = vadd.f32 %v14996_v7, %v21285_v32  ;;  %v15002_v59 = vadd.f32 %v21202_v60, %v11238_v14 }
 0x9c2   : > { %v13039_v22 = vmax.f32 %v12975_v58, 0.0  ;;  %v12977_v63 = vadd.f32 %v14999_v15, %v21282_v41 }
 0x9c3   : > { %v13040_v29 = vmax.f32 %v12976_v8, 0.0  ;;  %v12978_v30 = vadd.f32 %v15002_v59, %v21285_v32 }
 0x9c4   : > { %13103 = vst [vmem:[%s21297_s20 + $0x40] sm:$0xff] %v13039_v22  ;;  %v13041_v51 = vmax.f32 %v12977_v63, 0.0 }
 0x9c5   : > { %v11242_v21 = vpop.f32.mrb[12].mxu1  ;;  %13104 = vst [vmem:[%s21297_s20 + $0x48] sm:$0xff] %v13040_v29  ;;  %v13042_v20 = vmax.f32 %v12978_v30, 0.0 }
 0x9c6   : > { %v11244_v52 = vpop.f32.mrb[13].mxu1  ;;  %13105 = vst [vmem:[%s21297_s20 + $0x50] sm:$0xff] %v13041_v51  ;;  %v15005_v27 = vadd.f32 %v21205_v0, %v11242_v21 }
 0x9c7   : > { %v11246_v37 = vpop.f32.mrb[14].mxu1  ;;  %13106 = vst [vmem:[%s21297_s20 + $0x58] sm:$0xff] %v13042_v20  ;;  %v15008_v60 = vadd.f32 %v21207_v55, %v11244_v52 }
 0x9c8   : > { %v11248_v19 = vpop.f32.mrb[15].mxu1  ;;  %v12979_v4 = vadd.f32 %v15005_v27, %v21282_v41  ;;  %v15011_v34 = vadd.f32 %v21209_v24, %v11246_v37 }
 0x9c9   : > { %v12980_v36 = vadd.f32 %v15008_v60, %v21285_v32  ;;  %v15014_v62 = vadd.f32 %v21212_v35, %v11248_v19 }
 0x9ca   : > { %v13043_v12 = vmax.f32 %v12979_v4, 0.0  ;;  %v12981_v18 = vadd.f32 %v15011_v34, %v21282_v41 }
 0x9cb   : > { %v13044_v0 = vmax.f32 %v12980_v36, 0.0  ;;  %v12982_v39 = vadd.f32 %v15014_v62, %v21285_v32 }
 0x9cc   : > { %13107 = vst [vmem:[%s21297_s20 + $0x60] sm:$0xff] %v13043_v12  ;;  %v13045_v54 = vmax.f32 %v12981_v18, 0.0 }
 0x9cd   : > { %v11252_v55 = vpop.f32.mrb[16].mxu1  ;;  %13108 = vst [vmem:[%s21297_s20 + $0x68] sm:$0xff] %v13044_v0  ;;  %v13046_v16 = vmax.f32 %v12982_v39, 0.0 }
 0x9ce   : > { %v11254_v56 = vpop.f32.mrb[17].mxu1  ;;  %13109 = vst [vmem:[%s21297_s20 + $0x70] sm:$0xff] %v13045_v54  ;;  %v15017_v24 = vadd.f32 %v21215_v49, %v11252_v55 }
 0x9cf   : > { %v11256_v3 = vpop.f32.mrb[18].mxu1  ;;  %13110 = vst [vmem:[%s21297_s20 + $0x78] sm:$0xff] %v13046_v16  ;;  %v15020_v35 = vadd.f32 %v21217_v45, %v11254_v56 }
 0x9d0   : > { %v11258_v33 = vpop.f32.mrb[19].mxu1  ;;  %v12983_v6 = vadd.f32 %v15017_v24, %v21282_v41  ;;  %v15023_v28 = vadd.f32 %v21219_v38, %v11256_v3 }
 0x9d1   : > { %v12984_v50 = vadd.f32 %v15020_v35, %v21285_v32  ;;  %v15026_v61 = vadd.f32 %v21222_v40, %v11258_v33 }
 0x9d2   : > { %v13047_v7 = vmax.f32 %v12983_v6, 0.0  ;;  %v12985_v14 = vadd.f32 %v15023_v28, %v21282_v41 }
 0x9d3   : > { %v13048_v49 = vmax.f32 %v12984_v50, 0.0  ;;  %v12986_v58 = vadd.f32 %v15026_v61, %v21285_v32 }
 0x9d4   : > { %13111 = vst [vmem:[%s21297_s20 + $0x80] sm:$0xff] %v13047_v7  ;;  %v13049_v15 = vmax.f32 %v12985_v14, 0.0 }
 0x9d5   : > { %v11262_v45 = vpop.f32.mrb[20].mxu1  ;;  %13112 = vst [vmem:[%s21297_s20 + $0x88] sm:$0xff] %v13048_v49  ;;  %v13050_v8 = vmax.f32 %v12986_v58, 0.0 }
 0x9d6   : > { %v11264_v59 = vpop.f32.mrb[21].mxu1  ;;  %13113 = vst [vmem:[%s21297_s20 + $0x90] sm:$0xff] %v13049_v15  ;;  %v15029_v38 = vadd.f32 %v21225_v48, %v11262_v45 }
 0x9d7   : > { %v11266_v22 = vpop.f32.mrb[22].mxu1  ;;  %13114 = vst [vmem:[%s21297_s20 + $0x98] sm:$0xff] %v13050_v8  ;;  %v15032_v40 = vadd.f32 %v21227_v5, %v11264_v59 }
 0x9d8   : > { %v11268_v63 = vpop.f32.mrb[23].mxu1  ;;  %v12987_v29 = vadd.f32 %v15029_v38, %v21282_v41  ;;  %v15035_v30 = vadd.f32 %v21229_v10, %v11266_v22 }
 0x9d9   : > { %v12988_v51 = vadd.f32 %v15032_v40, %v21285_v32  ;;  %v15038_v21 = vadd.f32 %v21232_v1, %v11268_v63 }
 0x9da   : > { %v13051_v20 = vmax.f32 %v12987_v29, 0.0  ;;  %v12989_v52 = vadd.f32 %v15035_v30, %v21282_v41 }
 0x9db   : > { %v13052_v48 = vmax.f32 %v12988_v51, 0.0  ;;  %v12990_v27 = vadd.f32 %v15038_v21, %v21285_v32 }
 0x9dc   : > { %13115 = vst [vmem:[%s21297_s20 + $0xa0] sm:$0xff] %v13051_v20  ;;  %v13053_v37 = vmax.f32 %v12989_v52, 0.0 }
 0x9dd   : > { %v11272_v5 = vpop.f32.mrb[24].mxu1  ;;  %13116 = vst [vmem:[%s21297_s20 + $0xa8] sm:$0xff] %v13052_v48  ;;  %v13054_v60 = vmax.f32 %v12990_v27, 0.0 }
 0x9de   : > { %v11274_v19 = vpop.f32.mrb[25].mxu1  ;;  %13117 = vst [vmem:[%s21297_s20 + $0xb0] sm:$0xff] %v13053_v37  ;;  %v15041_v10 = vadd.f32 %v21235_v42, %v11272_v5 }
 0x9df   : > { %v11276_v4 = vpop.f32.mrb[26].mxu1  ;;  %13118 = vst [vmem:[%s21297_s20 + $0xb8] sm:$0xff] %v13054_v60  ;;  %v15044_v1 = vadd.f32 %v21237_v57, %v11274_v19 }
 0x9e0   : > { %v11278_v34 = vpop.f32.mrb[27].mxu1  ;;  %v12991_v36 = vadd.f32 %v15041_v10, %v21282_v41  ;;  %v15047_v62 = vadd.f32 %v21239_v46, %v11276_v4 }
 0x9e1   : > { %v12992_v12 = vadd.f32 %v15044_v1, %v21285_v32  ;;  %v15050_v18 = vadd.f32 %v21242_v11, %v11278_v34 }
 0x9e2   : > { %v13055_v0 = vmax.f32 %v12991_v36, 0.0  ;;  %v12993_v39 = vadd.f32 %v15047_v62, %v21282_v41 }
 0x9e3   : > { %v13056_v42 = vmax.f32 %v12992_v12, 0.0  ;;  %v12994_v54 = vadd.f32 %v15050_v18, %v21285_v32 }
 0x9e4   : > { %13119 = vst [vmem:[%s21297_s20 + $0xc0] sm:$0xff] %v13055_v0  ;;  %v13057_v55 = vmax.f32 %v12993_v39, 0.0 }
 0x9e5   : > { %v11282_v57 = vpop.f32.mrb[28].mxu1  ;;  %13120 = vst [vmem:[%s21297_s20 + $0xc8] sm:$0xff] %v13056_v42  ;;  %v13058_v16 = vmax.f32 %v12994_v54, 0.0 }
 0x9e6   : > { %v11284_v56 = vpop.f32.mrb[29].mxu1  ;;  %13121 = vst [vmem:[%s21297_s20 + $0xd0] sm:$0xff] %v13057_v55  ;;  %v15053_v46 = vadd.f32 %v21245_v17, %v11282_v57 }
 0x9e7   : > { %v11286_v24 = vpop.f32.mrb[30].mxu1  ;;  %13122 = vst [vmem:[%s21297_s20 + $0xd8] sm:$0xff] %v13058_v16  ;;  %v15056_v11 = vadd.f32 %v21247_v13, %v11284_v56 }
 0x9e8   : > { %v11288_v3 = vpop.f32.mrb[31].mxu1  ;;  %v12995_v35 = vadd.f32 %v15053_v46, %v21282_v41  ;;  %v15059_v33 = vadd.f32 %v21249_v9, %v11286_v24 }
 0x9e9   : > { %v12996_v6 = vadd.f32 %v15056_v11, %v21285_v32  ;;  %v15062_v28 = vadd.f32 %v21252_v23, %v11288_v3 }
 0x9ea   : > { %v13059_v50 = vmax.f32 %v12995_v35, 0.0  ;;  %v12997_v61 = vadd.f32 %v15059_v33, %v21282_v41 }
 0x9eb   : > { %v13060_v17 = vmax.f32 %v12996_v6, 0.0  ;;  %v12998_v7 = vadd.f32 %v15062_v28, %v21285_v32 }
 0x9ec   : > { %13123 = vst [vmem:[%s21297_s20 + $0xe0] sm:$0xff] %v13059_v50  ;;  %v13061_v14 = vmax.f32 %v12997_v61, 0.0 }
 0x9ed   : > { %v11292_v13 = vpop.f32.mrb[32].mxu1  ;;  %13124 = vst [vmem:[%s21297_s20 + $0xe8] sm:$0xff] %v13060_v17  ;;  %v13062_v49 = vmax.f32 %v12998_v7, 0.0 }
 0x9ee   : > { %v11294_v58 = vpop.f32.mrb[33].mxu1  ;;  %13125 = vst [vmem:[%s21297_s20 + $0xf0] sm:$0xff] %v13061_v14  ;;  %v15065_v9 = vadd.f32 %v21255_v2, %v11292_v13 }
 0x9ef   : > { %v11296_v15 = vpop.f32.mrb[34].mxu1  ;;  %13126 = vst [vmem:[%s21297_s20 + $0xf8] sm:$0xff] %v13062_v49  ;;  %v15068_v23 = vadd.f32 %v21257_v44, %v11294_v58 }
 0x9f0   : > { %v11298_v45 = vpop.f32.mrb[35].mxu1  ;;  %v12999_v8 = vadd.f32 %v15065_v9, %v21282_v41  ;;  %v15071_v59 = vadd.f32 %v21259_v47, %v11296_v15 }
 0x9f1   : > { %v13000_v38 = vadd.f32 %v15068_v23, %v21285_v32  ;;  %v15074_v22 = vadd.f32 %v21262_v26, %v11298_v45 }
 0x9f2   : > { %v13063_v40 = vmax.f32 %v12999_v8, 0.0  ;;  %v13001_v63 = vadd.f32 %v15071_v59, %v21282_v41 }
 0x9f3   : > { %v13064_v2 = vmax.f32 %v13000_v38, 0.0  ;;  %v13002_v29 = vadd.f32 %v15074_v22, %v21285_v32 }
 0x9f4   : > { %13127 = vst [vmem:[%s21297_s20 + $0x100] sm:$0xff] %v13063_v40  ;;  %v13065_v30 = vmax.f32 %v13001_v63, 0.0 }
 0x9f5   : > { %v11302_v44 = vpop.f32.mrb[36].mxu1  ;;  %13128 = vst [vmem:[%s21297_s20 + $0x108] sm:$0xff] %v13064_v2  ;;  %v13066_v51 = vmax.f32 %v13002_v29, 0.0 }
 0x9f6   : > { %v11304_v21 = vpop.f32.mrb[37].mxu1  ;;  %13129 = vst [vmem:[%s21297_s20 + $0x110] sm:$0xff] %v13065_v30  ;;  %v15077_v47 = vadd.f32 %v21265_v43, %v11302_v44 }
 0x9f7   : > { %v11306_v20 = vpop.f32.mrb[38].mxu1  ;;  %13130 = vst [vmem:[%s21297_s20 + $0x118] sm:$0xff] %v13066_v51  ;;  %v15080_v26 = vadd.f32 %v21267_v31, %v11304_v21 }
 0x9f8   : > { %v11308_v52 = vpop.f32.mrb[39].mxu1  ;;  %v13003_v48 = vadd.f32 %v15077_v47, %v21282_v41  ;;  %v15083_v27 = vadd.f32 %v21269_v53, %v11306_v20 }
 0x9f9   : > { %v13004_v37 = vadd.f32 %v15080_v26, %v21285_v32  ;;  %v15086_v5 = vadd.f32 %v21272_v25, %v11308_v52 }
 0x9fa   : > { %v13067_v60 = vmax.f32 %v13003_v48, 0.0  ;;  %v13005_v19 = vadd.f32 %v15083_v27, %v21282_v41 }
 0x9fb   : > { %v13068_v10 = vmax.f32 %v13004_v37, 0.0  ;;  %v13006_v43 = vadd.f32 %v15086_v5, %v21285_v32 }
 0x9fc   : > { %13131 = vst [vmem:[%s21297_s20 + $0x120] sm:$0xff] %v13067_v60  ;;  %v13069_v4 = vmax.f32 %v13005_v19, 0.0 }
 0x9fd   : > { %13132 = vst [vmem:[%s21297_s20 + $0x128] sm:$0xff] %v13068_v10  ;;  %v13070_v31 = vmax.f32 %v13006_v43, 0.0 }
 0x9fe   : > { %13133 = vst [vmem:[%s21297_s20 + $0x130] sm:$0xff] %v13069_v4 }
 0x9ff   : > { %13134 = vst [vmem:[%s21297_s20 + $0x138] sm:$0xff] %v13070_v31 }
 0xa2d   : > { %v12768_v53 = vpop.f32.mrb[40].mxu1 }
 0xa2e   : > { %v13007_v1 = vadd.f32 %v21282_v41, %v12768_v53  ;;  %v12770_v25 = vpop.f32.mrb[41].mxu1 }
 0xa2f   : > { %v13008_v34 = vadd.f32 %v21285_v32, %v12770_v25  ;;  %v12772_v36 = vpop.f32.mrb[42].mxu1 }
 0xa30   : > { %v13071_v62 = vmax.f32 %v13007_v1, 0.0  ;;  %v13009_v12 = vadd.f32 %v21282_v41, %v12772_v36  ;;  %v12774_v18 = vpop.f32.mrb[43].mxu1 }
 0xa31   : > { %v13072_v0 = vmax.f32 %v13008_v34, 0.0  ;;  %v13010_v39 = vadd.f32 %v21285_v32, %v12774_v18 }
 0xa32   : > { %13135 = vst [vmem:[%s21297_s20 + $0x140] sm:$0xff] %v13071_v62  ;;  %v13073_v42 = vmax.f32 %v13009_v12, 0.0 }
 0xa33   : > { %13136 = vst [vmem:[%s21297_s20 + $0x148] sm:$0xff] %v13072_v0  ;;  %v13074_v54 = vmax.f32 %v13010_v39, 0.0 }
 0xa34   : > { %13137 = vst [vmem:[%s21297_s20 + $0x150] sm:$0xff] %v13073_v42 }
 0xa35   : > { %13138 = vst [vmem:[%s21297_s20 + $0x158] sm:$0xff] %v13074_v54  ;;  %v12778_v55 = vpop.f32.mrb[44].mxu1 }
 0xa36   : > { %v13011_v57 = vadd.f32 %v21282_v41, %v12778_v55  ;;  %v12780_v16 = vpop.f32.mrb[45].mxu1 }
 0xa37   : > { %v13012_v56 = vadd.f32 %v21285_v32, %v12780_v16  ;;  %v12782_v46 = vpop.f32.mrb[46].mxu1 }
 0xa38   : > { %v13075_v24 = vmax.f32 %v13011_v57, 0.0  ;;  %v13013_v11 = vadd.f32 %v21282_v41, %v12782_v46  ;;  %v12784_v3 = vpop.f32.mrb[47].mxu1 }
 0xa39   : > { %v13076_v35 = vmax.f32 %v13012_v56, 0.0  ;;  %v13014_v33 = vadd.f32 %v21285_v32, %v12784_v3 }
 0xa3a   : > { %13139 = vst [vmem:[%s21297_s20 + $0x160] sm:$0xff] %v13075_v24  ;;  %v13077_v6 = vmax.f32 %v13013_v11, 0.0 }
 0xa3b   : > { %13140 = vst [vmem:[%s21297_s20 + $0x168] sm:$0xff] %v13076_v35  ;;  %v13078_v28 = vmax.f32 %v13014_v33, 0.0 }
 0xa3c   : > { %13141 = vst [vmem:[%s21297_s20 + $0x170] sm:$0xff] %v13077_v6 }
 0xa3d   : > { %13142 = vst [vmem:[%s21297_s20 + $0x178] sm:$0xff] %v13078_v28  ;;  %v12788_v50 = vpop.f32.mrb[48].mxu1 }
 0xa3e   : > { %v13015_v61 = vadd.f32 %v21282_v41, %v12788_v50  ;;  %v12790_v17 = vpop.f32.mrb[49].mxu1 }
 0xa3f   : > { %v13016_v7 = vadd.f32 %v21285_v32, %v12790_v17  ;;  %v12792_v14 = vpop.f32.mrb[50].mxu1 }
 0xa40   : > { %v13079_v13 = vmax.f32 %v13015_v61, 0.0  ;;  %v13017_v49 = vadd.f32 %v21282_v41, %v12792_v14  ;;  %v12794_v58 = vpop.f32.mrb[51].mxu1 }
 0xa41   : > { %v13080_v9 = vmax.f32 %v13016_v7, 0.0  ;;  %v13018_v15 = vadd.f32 %v21285_v32, %v12794_v58 }
 0xa42   : > { %13143 = vst [vmem:[%s21297_s20 + $0x180] sm:$0xff] %v13079_v13  ;;  %v13081_v23 = vmax.f32 %v13017_v49, 0.0 }
 0xa43   : > { %13144 = vst [vmem:[%s21297_s20 + $0x188] sm:$0xff] %v13080_v9  ;;  %v13082_v45 = vmax.f32 %v13018_v15, 0.0 }
 0xa44   : > { %13145 = vst [vmem:[%s21297_s20 + $0x190] sm:$0xff] %v13081_v23 }
 0xa45   : > { %13146 = vst [vmem:[%s21297_s20 + $0x198] sm:$0xff] %v13082_v45  ;;  %v12798_v8 = vpop.f32.mrb[52].mxu1 }
 0xa46   : > { %v13019_v59 = vadd.f32 %v21282_v41, %v12798_v8  ;;  %v12800_v38 = vpop.f32.mrb[53].mxu1 }
 0xa47   : > { %v13020_v22 = vadd.f32 %v21285_v32, %v12800_v38  ;;  %v12802_v40 = vpop.f32.mrb[54].mxu1 }
 0xa48   : > { %v13083_v63 = vmax.f32 %v13019_v59, 0.0  ;;  %v13021_v2 = vadd.f32 %v21282_v41, %v12802_v40  ;;  %v12804_v29 = vpop.f32.mrb[55].mxu1 }
 0xa49   : > { %v13084_v30 = vmax.f32 %v13020_v22, 0.0  ;;  %v13022_v44 = vadd.f32 %v21285_v32, %v12804_v29 }
 0xa4a   : > { %13147 = vst [vmem:[%s21297_s20 + $0x1a0] sm:$0xff] %v13083_v63  ;;  %v13085_v51 = vmax.f32 %v13021_v2, 0.0 }
 0xa4b   : > { %13148 = vst [vmem:[%s21297_s20 + $0x1a8] sm:$0xff] %v13084_v30  ;;  %v13086_v21 = vmax.f32 %v13022_v44, 0.0 }
 0xa4c   : > { %13149 = vst [vmem:[%s21297_s20 + $0x1b0] sm:$0xff] %v13085_v51 }
 0xa4d   : > { %13150 = vst [vmem:[%s21297_s20 + $0x1b8] sm:$0xff] %v13086_v21  ;;  %v12808_v47 = vpop.f32.mrb[56].mxu1 }
 0xa4e   : > { %v13023_v20 = vadd.f32 %v21282_v41, %v12808_v47  ;;  %v12810_v26 = vpop.f32.mrb[57].mxu1 }
 0xa4f   : > { %v13024_v52 = vadd.f32 %v21285_v32, %v12810_v26  ;;  %v12812_v48 = vpop.f32.mrb[58].mxu1 }
 0xa50   : > { %v13087_v27 = vmax.f32 %v13023_v20, 0.0  ;;  %v13025_v37 = vadd.f32 %v21282_v41, %v12812_v48  ;;  %v12814_v5 = vpop.f32.mrb[59].mxu1 }
 0xa51   : > { %v13088_v60 = vmax.f32 %v13024_v52, 0.0  ;;  %v13026_v19 = vadd.f32 %v21285_v32, %v12814_v5 }
 0xa52   : > { %13151 = vst [vmem:[%s21297_s20 + $0x1c0] sm:$0xff] %v13087_v27  ;;  %v13089_v10 = vmax.f32 %v13025_v37, 0.0 }
 0xa53   : > { %13152 = vst [vmem:[%s21297_s20 + $0x1c8] sm:$0xff] %v13088_v60  ;;  %v13090_v43 = vmax.f32 %v13026_v19, 0.0 }
 0xa54   : > { %13153 = vst [vmem:[%s21297_s20 + $0x1d0] sm:$0xff] %v13089_v10 }
 0xa55   : > { %13154 = vst [vmem:[%s21297_s20 + $0x1d8] sm:$0xff] %v13090_v43  ;;  %v12818_v4 = vpop.f32.mrb[60].mxu1 }
 0xa56   : > { %v13027_v31 = vadd.f32 %v21282_v41, %v12818_v4  ;;  %v12820_v53 = vpop.f32.mrb[61].mxu1 }
 0xa57   : > { %v13028_v1 = vadd.f32 %v21285_v32, %v12820_v53  ;;  %v12822_v25 = vpop.f32.mrb[62].mxu1 }
 0xa58   : > { %v13091_v34 = vmax.f32 %v13027_v31, 0.0  ;;  %v13029_v36 = vadd.f32 %v21282_v41, %v12822_v25  ;;  %v12824_v62 = vpop.f32.mrb[63].mxu1 }
 0xa59   : > { %v13092_v12 = vmax.f32 %v13028_v1, 0.0  ;;  %v13030_v18 = vadd.f32 %v21285_v32, %v12824_v62 }
 0xa5a   : > { %13155 = vst [vmem:[%s21297_s20 + $0x1e0] sm:$0xff] %v13091_v34  ;;  %v13093_v0 = vmax.f32 %v13029_v36, 0.0 }
 0xa5b   : > { %13156 = vst [vmem:[%s21297_s20 + $0x1e8] sm:$0xff] %v13092_v12  ;;  %v13094_v39 = vmax.f32 %v13030_v18, 0.0 }
 0xa5c   : > { %13157 = vst [vmem:[%s21297_s20 + $0x1f0] sm:$0xff] %v13093_v0 }
 0xa5d   : > { %13158 = vst [vmem:[%s21297_s20 + $0x1f8] sm:$0xff] %v13094_v39 }
 0xa5e   : > { %17628 = shalt.err (!%p17625_p3)
}
 0xa5f   : > { %s17629_s17 = scalar_lea.hbm %s21461_s19, 8192  ;;  %s17633_s20 = scalar_lea.hbm %s21519_s8, 16384 }
 0xa60   : > { %p17630_p4 = scmp.ne.s32.totalorder %s21461_s19, %s17629_s17  ;;  %p17634_p9 = scmp.lt.u32.totalorder %s21461_s19, %s21519_s8 }
 0xa61   : > { %p17635_p10 = scmp.lt.u32.totalorder %s17633_s20, %s17629_s17  ;;  %p17637_p12 = scmp.lt.u32.totalorder %s17629_s17, %s21461_s19 }
 0xa62   : > { %p17631_p7 = pnand %p17630_p4, %p17765_p5 }
 0xa63   : > { %p17636_p11 = por %p17635_p10, %p17634_p9 }
 0xa64   : > { %p17632_p8 = pneg %p17631_p7 }
 0xa65   : > { %p17638_p13 = por %p17637_p12, %p17636_p11 }
 0xa67   : > { %p17639_p0 = pnand %p17638_p13, %p17632_p8 }
 0xa69   : > { %17642 = shalt.err (!%p17639_p0)
}
 0xa6a   : > { %s17680_s26 = smov 256   ;;  %s17681_s10 = smov 16  }
 0xa6b   : > { %15832 = dma.vmem_to_hbm [thread:$0]  (%p17765_p5), %s21463_s23, 8192, %s21461_s19, %s21470_s9, %s17680_s26, %s17680_s26, %s17681_s10  }
 0xa6c PF: > { %p15838_p1 = scmp.ge.s32.totalorder %s17677_s30, 2  ;;  %s13188_s25 = sand.u32 1, %s17665_s27  }
 0xa6d   : > { %s13189_s12 = scalar_lea.sflag [#allocation4], %s13188_s25 }
 0xa6e   : > { %p15835_p2 = pnand %p15838_p1, %p17769_p6 }
 0xa70   : > { %17660 = dma.done.wait (!%p15835_p2), %s13189_s12, 8192  }
 0xa71   : > { %17662 = vsyncadd (!%p15835_p2), %s13189_s12, 4294959104  ;;  %p18_p3 = scmp.ge.s32.totalorder %s17752_s11, 4   ;;  %s21522_s27 = smov %s17669_s28 }
 0xa72   : > { %s21523_s28 = smov %s17673_s29  ;;  %s21524_s29 = smov %s17763_s14 }
 0xa73   : > { %s21525_s30 = smov %s17752_s11  ;;  %20 = sbr.rel (!%p18_p3) target bundleno = 3 (0x3), region = 100 }
 0xa7a   :  { %13194 = vsyncpa [#allocation4], 1 }
 0xa7b   :  { %13196 = vsyncpa [#allocation4 + $0x1], 1 }

</bundles_post_ra>
